<compile_context>
chip_gen: v7x
topology: tpu7x:2x2x1
jax: 0.10.0
libtpu: 0.0.40
codegen_flags: <defaults>
</compile_context>

<pallas_src>
import jax
import jax.numpy as jnp
from jax.experimental import pallas as pl
from jax.experimental.pallas import tpu as pltpu

EPS = 1e-3


# ----------------------------------------------------------------------------
# Fused Pallas kernel: conv1 -> BN1 -> ReLU -> conv2 -> BN2 -> ReLU
# ----------------------------------------------------------------------------
def _make_kernel(row_stride, m_valid):
    """row_stride = W + 2 (flat padded row pitch); m_valid = N*H*W."""
    inv_m = 1.0 / float(m_valid)

    def kernel(col_ref, w1_ref, w2_ref, g1_ref, b1_ref, g2_ref, b2_ref,
               mint_ref, mout_ref, o_ref, a1_ref):
        m_acc = o_ref.shape[0]

        # ---- conv1: single MXU matmul on the wrapper-built im2col ----------
        # col rows for halo / out-of-range positions are exactly zero, so the
        # unmasked BN1 sums over all rows equal sums over the valid rows.
        y1 = jnp.dot(col_ref[...], w1_ref[...],
                     preferred_element_type=jnp.float32)          # (TOT, C)

        # ---- BN1 (training-mode batch stats) + ReLU, halo re-zeroed --------
        s1 = jnp.sum(y1, axis=0, keepdims=True)
        ss1 = jnp.sum(y1 * y1, axis=0, keepdims=True)
        mean1 = s1 * inv_m
        var1 = jnp.maximum(ss1 * inv_m - mean1 * mean1, 0.0)
        scale1 = jax.lax.rsqrt(var1 + EPS) * g1_ref[...]
        shift1 = b1_ref[...] - mean1 * scale1
        # Mask restores exact zeros on the padding halo (needed by conv2) —
        # this replaces the old full-scratch zero fill.
        a1_ref[...] = jnp.maximum(y1 * scale1 + shift1, 0.0) * mint_ref[...]

        # ---- conv2: 9 accumulated MXU matmuls from sublane-offset views ----
        acc = jnp.dot(a1_ref[pl.ds(0, m_acc), :], w2_ref[0],
                      preferred_element_type=jnp.float32)          # (M_acc, C)
        for tap in range(1, 9):
            off = (tap // 3) * row_stride + (tap % 3)              # static int
            acc = acc + jnp.dot(a1_ref[pl.ds(off, m_acc), :], w2_ref[tap],
                                preferred_element_type=jnp.float32)

        # ---- BN2 + ReLU (stats over valid output rows only) ----------------
        ym = acc * mout_ref[...]
        s2 = jnp.sum(ym, axis=0, keepdims=True)
        ss2 = jnp.sum(ym * acc, axis=0, keepdims=True)
        mean2 = s2 * inv_m
        var2 = jnp.maximum(ss2 * inv_m - mean2 * mean2, 0.0)
        scale2 = jax.lax.rsqrt(var2 + EPS) * g2_ref[...]
        shift2 = b2_ref[...] - mean2 * scale2
        # Rows outside the valid set carry garbage; the wrapper drops them.
        o_ref[...] = jnp.maximum(acc * scale2 + shift2, 0.0)

    return kernel


# ----------------------------------------------------------------------------
# Model wrapper (mirrors Model.forward; NCHW in / NCHW out)
# ----------------------------------------------------------------------------
def model_forward(x_nchw, params):
    n, cin, h, w = x_nchw.shape
    cmid = params["w1"].shape[-1]

    hp, wp = h + 2, w + 2
    pp = hp * wp
    m_acc = n * pp                       # rows of the conv2 accumulator/output
    m_valid = n * h * w                  # rows carrying real pixels (BN denom)
    max_off = 2 * wp + 2                 # largest tap shift
    extra = ((max_off + 7) // 8) * 8     # tail rows so shifted views stay in bounds
    tot = m_acc + extra                  # rows of col / a1 buffers
    kdim = 9 * cin
    kpad = ((kdim + 127) // 128) * 128   # pad conv1's K to a full 128-lane block

    # NCHW -> NHWC (f32).
    x = jnp.transpose(x_nchw, (0, 2, 3, 1)).astype(jnp.float32)

    # conv1 im2col in the wrapper: 9 shifted 'same'-padded windows, channel
    # minor / (kh,kw) major to match w1.reshape(9*cin, cmid).
    xpad = jnp.pad(x, ((0, 0), (1, 1), (1, 1), (0, 0)))
    taps = [xpad[:, kh:kh + h, kw:kw + w, :]
            for kh in range(3) for kw in range(3)]
    col = jnp.concatenate(taps, axis=-1)                    # (n, h, w, 9*cin)
    # Place at the interior of the padded (hp, wp) grid, zero halo, pad K.
    col = jnp.pad(col, ((0, 0), (1, 1), (1, 1), (0, kpad - kdim)))
    col = col.reshape(m_acc, kpad)
    col = jnp.pad(col, ((0, extra), (0, 0)))                # (TOT, Kpad)

    # Weights: conv1 as (Kpad, C); conv2 as 9 per-tap (C, C) blocks.
    w1 = params["w1"].reshape(kdim, cmid).astype(jnp.float32)
    w1 = jnp.pad(w1, ((0, kpad - kdim), (0, 0)))            # (Kpad, C)
    w2 = params["w2"].reshape(9, cmid, cmid).astype(jnp.float32)

    g1 = params["g1"].reshape(1, cmid).astype(jnp.float32)
    b1 = params["b1"].reshape(1, cmid).astype(jnp.float32)
    g2 = params["g2"].reshape(1, cmid).astype(jnp.float32)
    b2 = params["b2"].reshape(1, cmid).astype(jnp.float32)

    # Row-validity masks (flat padded layout).
    mask_int = jnp.zeros((n, hp, wp), jnp.float32).at[:, 1:h + 1, 1:w + 1].set(1.0)
    mask_int = jnp.pad(mask_int.reshape(m_acc, 1), ((0, extra), (0, 0)))  # (TOT,1)
    mask_out = jnp.zeros((n, hp, wp), jnp.float32).at[:, :h, :w].set(1.0)
    mask_out = mask_out.reshape(m_acc, 1)                                 # (M_acc,1)

    flops = 2 * tot * kpad * cmid + 2 * m_acc * cmid * cmid * 9
    bytes_accessed = 4 * (tot * kpad + kpad * cmid + 9 * cmid * cmid
                          + tot + m_acc + 4 * cmid + m_acc * cmid)

    out_flat = pl.pallas_call(
        _make_kernel(wp, m_valid),
        out_shape=jax.ShapeDtypeStruct((m_acc, cmid), jnp.float32),
        scratch_shapes=[
            pltpu.VMEM((tot, cmid), jnp.float32),   # flat padded activations a1
        ],
        compiler_params=pltpu.CompilerParams(vmem_limit_bytes=32 * 1024 * 1024),
        cost_estimate=pl.CostEstimate(
            flops=flops, transcendentals=2 * cmid,
            bytes_accessed=bytes_accessed),
    )(col, w1, w2, g1, b1, g2, b2, mask_int, mask_out)

    # Wrapper absorbs layout: flat slab -> padded grid -> valid interior -> NCHW.
    out_nhwc = out_flat.reshape(n, hp, wp, cmid)[:, :h, :w, :]
    return jnp.transpose(out_nhwc, (0, 3, 1, 2))


# ----------------------------------------------------------------------------
# Pure-JAX reference (correctness check)
# ----------------------------------------------------------------------------
def reference_forward(x_nchw, params):
    x = jnp.transpose(x_nchw, (0, 2, 3, 1))

    def conv(x, w):
        return jax.lax.conv_general_dilated(
            x, w, window_strides=(1, 1), padding="SAME",
            dimension_numbers=("NHWC", "HWIO", "NHWC"))

    def bn_relu(x, g, b):
        mean = jnp.mean(x, axis=(0, 1, 2), keepdims=True)
        var = jnp.mean((x - mean) ** 2, axis=(0, 1, 2), keepdims=True)
        y = (x - mean) * jax.lax.rsqrt(var + EPS) * g.reshape(1, 1, 1, -1) \
            + b.reshape(1, 1, 1, -1)
        return jnp.maximum(y, 0.0)

    v = conv(x, params["w1"])
    v = bn_relu(v, params["g1"], params["b1"])
    v = conv(v, params["w2"])
    v = bn_relu(v, params["g2"], params["b2"])
    return jnp.transpose(v, (0, 3, 1, 2))


if __name__ == "__main__":
    key = jax.random.PRNGKey(0)
    k_x, k_w1, k_w2, k_g1, k_b1, k_g2, k_b2 = jax.random.split(key, 7)

    # Small shapes consistent with the module: batch=2, Cin=3, H=W=16, Cmid=64.
    N, Cin, H, W = 2, 3, 16, 16
    Cmid = 64

    x = jax.random.normal(k_x, (N, Cin, H, W), dtype=jnp.float32)

    params = {
        "w1": jax.random.normal(k_w1, (3, 3, Cin, Cmid), jnp.float32)
              * (1.0 / jnp.sqrt(9.0 * Cin)),
        "g1": 1.0 + 0.1 * jax.random.normal(k_g1, (Cmid,), jnp.float32),
        "b1": 0.1 * jax.random.normal(k_b1, (Cmid,), jnp.float32),
        "w2": jax.random.normal(k_w2, (3, 3, Cmid, Cmid), jnp.float32)
              * (1.0 / jnp.sqrt(9.0 * Cmid)),
        "g2": 1.0 + 0.1 * jax.random.normal(k_g2, (Cmid,), jnp.float32),
        "b2": 0.1 * jax.random.normal(k_b2, (Cmid,), jnp.float32),
    }

    out = jax.block_until_ready(jax.jit(model_forward)(x, params))
    ref = jax.block_until_ready(reference_forward(x, params))

    assert out.shape == (N, Cmid, H, W), out.shape
    max_err = float(jnp.max(jnp.abs(out - ref)))
    assert jnp.allclose(out, ref, atol=1e-3, rtol=1e-3), max_err

    print("KERNEL_OK")
</pallas_src>

<mosaic_0001>
module attributes {stable_mosaic.version = 11 : i64} {
  func.func @kernel(%arg0: memref<688x128xf32, #tpu.memory_space<vmem>>, %arg1: memref<128x64xf32, #tpu.memory_space<vmem>>, %arg2: memref<9x64x64xf32, #tpu.memory_space<vmem>>, %arg3: memref<1x64xf32, #tpu.memory_space<vmem>>, %arg4: memref<1x64xf32, #tpu.memory_space<vmem>>, %arg5: memref<1x64xf32, #tpu.memory_space<vmem>>, %arg6: memref<1x64xf32, #tpu.memory_space<vmem>>, %arg7: memref<688x1xf32, #tpu.memory_space<vmem>>, %arg8: memref<648x1xf32, #tpu.memory_space<vmem>>, %arg9: memref<648x64xf32, #tpu.memory_space<vmem>>, %arg10: memref<688x64xf32, #tpu.memory_space<vmem>>) attributes {dimension_semantics = [], scalar_prefetch = 0 : i64, scratch_operands = 1 : i64, tpu.core_type = #tpu.core_type<tc>} {
    %c0 = arith.constant 0 : index
    %c0_0 = arith.constant 0 : index
    %0 = vector.load %arg0[%c0, %c0_0] : memref<688x128xf32, #tpu.memory_space<vmem>>, vector<688x128xf32>
    %c0_1 = arith.constant 0 : index
    %c0_2 = arith.constant 0 : index
    %1 = vector.load %arg1[%c0_1, %c0_2] : memref<128x64xf32, #tpu.memory_space<vmem>>, vector<128x64xf32>
    %cst = arith.constant dense<0.000000e+00> : vector<688x64xf32>
    %2 = tpu.matmul %0, %1, %cst {dimension_numbers = #tpu.dot_dimension_numbers<[1], [0], [0], [1], [0, 0, 1, 1], [], []>} : vector<688x128xf32>, vector<128x64xf32>, vector<688x64xf32> -> vector<688x64xf32>
    %cst_3 = arith.constant dense<0.000000e+00> : vector<64xf32>
    %3 = vector.multi_reduction <add>, %2, %cst_3 [0] : vector<688x64xf32> to vector<64xf32>
    %4 = vector.shape_cast %3 : vector<64xf32> to vector<1x64xf32>
    %5 = arith.mulf %2, %2 : vector<688x64xf32>
    %cst_4 = arith.constant dense<0.000000e+00> : vector<64xf32>
    %6 = vector.multi_reduction <add>, %5, %cst_4 [0] : vector<688x64xf32> to vector<64xf32>
    %7 = vector.shape_cast %6 : vector<64xf32> to vector<1x64xf32>
    %cst_5 = arith.constant 0.001953125 : f32
    %8 = vector.broadcast %cst_5 : f32 to vector<1x64xf32>
    %9 = arith.mulf %4, %8 : vector<1x64xf32>
    %cst_6 = arith.constant 0.001953125 : f32
    %10 = vector.broadcast %cst_6 : f32 to vector<1x64xf32>
    %11 = arith.mulf %7, %10 : vector<1x64xf32>
    %12 = arith.mulf %9, %9 : vector<1x64xf32>
    %13 = arith.subf %11, %12 : vector<1x64xf32>
    %cst_7 = arith.constant 0.000000e+00 : f32
    %14 = vector.broadcast %cst_7 : f32 to vector<1x64xf32>
    %15 = arith.maximumf %13, %14 : vector<1x64xf32>
    %cst_8 = arith.constant 1.000000e-03 : f32
    %16 = vector.broadcast %cst_8 : f32 to vector<1x64xf32>
    %17 = arith.addf %15, %16 : vector<1x64xf32>
    %18 = math.rsqrt %17 : vector<1x64xf32>
    %c0_9 = arith.constant 0 : index
    %c0_10 = arith.constant 0 : index
    %19 = vector.load %arg3[%c0_9, %c0_10] : memref<1x64xf32, #tpu.memory_space<vmem>>, vector<1x64xf32>
    %20 = arith.mulf %18, %19 : vector<1x64xf32>
    %c0_11 = arith.constant 0 : index
    %c0_12 = arith.constant 0 : index
    %21 = vector.load %arg4[%c0_11, %c0_12] : memref<1x64xf32, #tpu.memory_space<vmem>>, vector<1x64xf32>
    %22 = arith.mulf %9, %20 : vector<1x64xf32>
    %23 = arith.subf %21, %22 : vector<1x64xf32>
    %24 = vector.broadcast %20 : vector<1x64xf32> to vector<688x64xf32>
    %25 = arith.mulf %2, %24 : vector<688x64xf32>
    %26 = vector.broadcast %23 : vector<1x64xf32> to vector<688x64xf32>
    %27 = arith.addf %25, %26 : vector<688x64xf32>
    %cst_13 = arith.constant 0.000000e+00 : f32
    %28 = vector.broadcast %cst_13 : f32 to vector<688x64xf32>
    %29 = arith.maximumf %27, %28 : vector<688x64xf32>
    %c0_14 = arith.constant 0 : index
    %c0_15 = arith.constant 0 : index
    %30 = vector.load %arg7[%c0_14, %c0_15] : memref<688x1xf32, #tpu.memory_space<vmem>>, vector<688x1xf32>
    %31 = vector.broadcast %30 : vector<688x1xf32> to vector<688x64xf32>
    %32 = arith.mulf %29, %31 : vector<688x64xf32>
    %c0_16 = arith.constant 0 : index
    %c0_17 = arith.constant 0 : index
    %33 = vector.load %arg10[%c0_16, %c0_17] : memref<688x64xf32, #tpu.memory_space<vmem>>, vector<688x64xf32>
    tpu.vector_store %arg10[%c0_16, %c0_17], %32 {strides = array<i32>} : memref<688x64xf32, #tpu.memory_space<vmem>>, vector<688x64xf32>,
    %c0_18 = arith.constant 0 : index
    %c0_19 = arith.constant 0 : index
    %34 = vector.load %arg10[%c0_18, %c0_19] : memref<688x64xf32, #tpu.memory_space<vmem>>, vector<648x64xf32>
    %c0_20 = arith.constant 0 : index
    %c0_21 = arith.constant 0 : index
    %c0_22 = arith.constant 0 : index
    %35 = vector.load %arg2[%c0_20, %c0_21, %c0_22] : memref<9x64x64xf32, #tpu.memory_space<vmem>>, vector<1x64x64xf32>
    %36 = vector.shape_cast %35 : vector<1x64x64xf32> to vector<64x64xf32>
    %cst_23 = arith.constant dense<0.000000e+00> : vector<648x64xf32>
    %37 = tpu.matmul %34, %36, %cst_23 {dimension_numbers = #tpu.dot_dimension_numbers<[1], [0], [0], [1], [0, 0, 1, 1], [], []>} : vector<648x64xf32>, vector<64x64xf32>, vector<648x64xf32> -> vector<648x64xf32>
    %c1 = arith.constant 1 : index
    %c0_24 = arith.constant 0 : index
    %38 = vector.load %arg10[%c1, %c0_24] : memref<688x64xf32, #tpu.memory_space<vmem>>, vector<648x64xf32>
    %c1_25 = arith.constant 1 : index
    %c0_26 = arith.constant 0 : index
    %c0_27 = arith.constant 0 : index
    %39 = vector.load %arg2[%c1_25, %c0_26, %c0_27] : memref<9x64x64xf32, #tpu.memory_space<vmem>>, vector<1x64x64xf32>
    %40 = vector.shape_cast %39 : vector<1x64x64xf32> to vector<64x64xf32>
    %cst_28 = arith.constant dense<0.000000e+00> : vector<648x64xf32>
    %41 = tpu.matmul %38, %40, %cst_28 {dimension_numbers = #tpu.dot_dimension_numbers<[1], [0], [0], [1], [0, 0, 1, 1], [], []>} : vector<648x64xf32>, vector<64x64xf32>, vector<648x64xf32> -> vector<648x64xf32>
    %42 = arith.addf %37, %41 : vector<648x64xf32>
    %c2 = arith.constant 2 : index
    %c0_29 = arith.constant 0 : index
    %43 = vector.load %arg10[%c2, %c0_29] : memref<688x64xf32, #tpu.memory_space<vmem>>, vector<648x64xf32>
    %c2_30 = arith.constant 2 : index
    %c0_31 = arith.constant 0 : index
    %c0_32 = arith.constant 0 : index
    %44 = vector.load %arg2[%c2_30, %c0_31, %c0_32] : memref<9x64x64xf32, #tpu.memory_space<vmem>>, vector<1x64x64xf32>
    %45 = vector.shape_cast %44 : vector<1x64x64xf32> to vector<64x64xf32>
    %cst_33 = arith.constant dense<0.000000e+00> : vector<648x64xf32>
    %46 = tpu.matmul %43, %45, %cst_33 {dimension_numbers = #tpu.dot_dimension_numbers<[1], [0], [0], [1], [0, 0, 1, 1], [], []>} : vector<648x64xf32>, vector<64x64xf32>, vector<648x64xf32> -> vector<648x64xf32>
    %47 = arith.addf %42, %46 : vector<648x64xf32>
    %c18 = arith.constant 18 : index
    %c0_34 = arith.constant 0 : index
    %48 = vector.load %arg10[%c18, %c0_34] : memref<688x64xf32, #tpu.memory_space<vmem>>, vector<648x64xf32>
    %c3 = arith.constant 3 : index
    %c0_35 = arith.constant 0 : index
    %c0_36 = arith.constant 0 : index
    %49 = vector.load %arg2[%c3, %c0_35, %c0_36] : memref<9x64x64xf32, #tpu.memory_space<vmem>>, vector<1x64x64xf32>
    %50 = vector.shape_cast %49 : vector<1x64x64xf32> to vector<64x64xf32>
    %cst_37 = arith.constant dense<0.000000e+00> : vector<648x64xf32>
    %51 = tpu.matmul %48, %50, %cst_37 {dimension_numbers = #tpu.dot_dimension_numbers<[1], [0], [0], [1], [0, 0, 1, 1], [], []>} : vector<648x64xf32>, vector<64x64xf32>, vector<648x64xf32> -> vector<648x64xf32>
    %52 = arith.addf %47, %51 : vector<648x64xf32>
    %c19 = arith.constant 19 : index
    %c0_38 = arith.constant 0 : index
    %53 = vector.load %arg10[%c19, %c0_38] : memref<688x64xf32, #tpu.memory_space<vmem>>, vector<648x64xf32>
    %c4 = arith.constant 4 : index
    %c0_39 = arith.constant 0 : index
    %c0_40 = arith.constant 0 : index
    %54 = vector.load %arg2[%c4, %c0_39, %c0_40] : memref<9x64x64xf32, #tpu.memory_space<vmem>>, vector<1x64x64xf32>
    %55 = vector.shape_cast %54 : vector<1x64x64xf32> to vector<64x64xf32>
    %cst_41 = arith.constant dense<0.000000e+00> : vector<648x64xf32>
    %56 = tpu.matmul %53, %55, %cst_41 {dimension_numbers = #tpu.dot_dimension_numbers<[1], [0], [0], [1], [0, 0, 1, 1], [], []>} : vector<648x64xf32>, vector<64x64xf32>, vector<648x64xf32> -> vector<648x64xf32>
    %57 = arith.addf %52, %56 : vector<648x64xf32>
    %c20 = arith.constant 20 : index
    %c0_42 = arith.constant 0 : index
    %58 = vector.load %arg10[%c20, %c0_42] : memref<688x64xf32, #tpu.memory_space<vmem>>, vector<648x64xf32>
    %c5 = arith.constant 5 : index
    %c0_43 = arith.constant 0 : index
    %c0_44 = arith.constant 0 : index
    %59 = vector.load %arg2[%c5, %c0_43, %c0_44] : memref<9x64x64xf32, #tpu.memory_space<vmem>>, vector<1x64x64xf32>
    %60 = vector.shape_cast %59 : vector<1x64x64xf32> to vector<64x64xf32>
    %cst_45 = arith.constant dense<0.000000e+00> : vector<648x64xf32>
    %61 = tpu.matmul %58, %60, %cst_45 {dimension_numbers = #tpu.dot_dimension_numbers<[1], [0], [0], [1], [0, 0, 1, 1], [], []>} : vector<648x64xf32>, vector<64x64xf32>, vector<648x64xf32> -> vector<648x64xf32>
    %62 = arith.addf %57, %61 : vector<648x64xf32>
    %c36 = arith.constant 36 : index
    %c0_46 = arith.constant 0 : index
    %63 = vector.load %arg10[%c36, %c0_46] : memref<688x64xf32, #tpu.memory_space<vmem>>, vector<648x64xf32>
    %c6 = arith.constant 6 : index
    %c0_47 = arith.constant 0 : index
    %c0_48 = arith.constant 0 : index
    %64 = vector.load %arg2[%c6, %c0_47, %c0_48] : memref<9x64x64xf32, #tpu.memory_space<vmem>>, vector<1x64x64xf32>
    %65 = vector.shape_cast %64 : vector<1x64x64xf32> to vector<64x64xf32>
    %cst_49 = arith.constant dense<0.000000e+00> : vector<648x64xf32>
    %66 = tpu.matmul %63, %65, %cst_49 {dimension_numbers = #tpu.dot_dimension_numbers<[1], [0], [0], [1], [0, 0, 1, 1], [], []>} : vector<648x64xf32>, vector<64x64xf32>, vector<648x64xf32> -> vector<648x64xf32>
    %67 = arith.addf %62, %66 : vector<648x64xf32>
    %c37 = arith.constant 37 : index
    %c0_50 = arith.constant 0 : index
    %68 = vector.load %arg10[%c37, %c0_50] : memref<688x64xf32, #tpu.memory_space<vmem>>, vector<648x64xf32>
    %c7 = arith.constant 7 : index
    %c0_51 = arith.constant 0 : index
    %c0_52 = arith.constant 0 : index
    %69 = vector.load %arg2[%c7, %c0_51, %c0_52] : memref<9x64x64xf32, #tpu.memory_space<vmem>>, vector<1x64x64xf32>
    %70 = vector.shape_cast %69 : vector<1x64x64xf32> to vector<64x64xf32>
    %cst_53 = arith.constant dense<0.000000e+00> : vector<648x64xf32>
    %71 = tpu.matmul %68, %70, %cst_53 {dimension_numbers = #tpu.dot_dimension_numbers<[1], [0], [0], [1], [0, 0, 1, 1], [], []>} : vector<648x64xf32>, vector<64x64xf32>, vector<648x64xf32> -> vector<648x64xf32>
    %72 = arith.addf %67, %71 : vector<648x64xf32>
    %c38 = arith.constant 38 : index
    %c0_54 = arith.constant 0 : index
    %73 = vector.load %arg10[%c38, %c0_54] : memref<688x64xf32, #tpu.memory_space<vmem>>, vector<648x64xf32>
    %c8 = arith.constant 8 : index
    %c0_55 = arith.constant 0 : index
    %c0_56 = arith.constant 0 : index
    %74 = vector.load %arg2[%c8, %c0_55, %c0_56] : memref<9x64x64xf32, #tpu.memory_space<vmem>>, vector<1x64x64xf32>
    %75 = vector.shape_cast %74 : vector<1x64x64xf32> to vector<64x64xf32>
    %cst_57 = arith.constant dense<0.000000e+00> : vector<648x64xf32>
    %76 = tpu.matmul %73, %75, %cst_57 {dimension_numbers = #tpu.dot_dimension_numbers<[1], [0], [0], [1], [0, 0, 1, 1], [], []>} : vector<648x64xf32>, vector<64x64xf32>, vector<648x64xf32> -> vector<648x64xf32>
    %77 = arith.addf %72, %76 : vector<648x64xf32>
    %c0_58 = arith.constant 0 : index
    %c0_59 = arith.constant 0 : index
    %78 = vector.load %arg8[%c0_58, %c0_59] : memref<648x1xf32, #tpu.memory_space<vmem>>, vector<648x1xf32>
    %79 = vector.broadcast %78 : vector<648x1xf32> to vector<648x64xf32>
    %80 = arith.mulf %77, %79 : vector<648x64xf32>
    %cst_60 = arith.constant dense<0.000000e+00> : vector<64xf32>
    %81 = vector.multi_reduction <add>, %80, %cst_60 [0] : vector<648x64xf32> to vector<64xf32>
    %82 = vector.shape_cast %81 : vector<64xf32> to vector<1x64xf32>
    %83 = arith.mulf %80, %77 : vector<648x64xf32>
    %cst_61 = arith.constant dense<0.000000e+00> : vector<64xf32>
    %84 = vector.multi_reduction <add>, %83, %cst_61 [0] : vector<648x64xf32> to vector<64xf32>
    %85 = vector.shape_cast %84 : vector<64xf32> to vector<1x64xf32>
    %cst_62 = arith.constant 0.001953125 : f32
    %86 = vector.broadcast %cst_62 : f32 to vector<1x64xf32>
    %87 = arith.mulf %82, %86 : vector<1x64xf32>
    %cst_63 = arith.constant 0.001953125 : f32
    %88 = vector.broadcast %cst_63 : f32 to vector<1x64xf32>
    %89 = arith.mulf %85, %88 : vector<1x64xf32>
    %90 = arith.mulf %87, %87 : vector<1x64xf32>
    %91 = arith.subf %89, %90 : vector<1x64xf32>
    %cst_64 = arith.constant 0.000000e+00 : f32
    %92 = vector.broadcast %cst_64 : f32 to vector<1x64xf32>
    %93 = arith.maximumf %91, %92 : vector<1x64xf32>
    %cst_65 = arith.constant 1.000000e-03 : f32
    %94 = vector.broadcast %cst_65 : f32 to vector<1x64xf32>
    %95 = arith.addf %93, %94 : vector<1x64xf32>
    %96 = math.rsqrt %95 : vector<1x64xf32>
    %c0_66 = arith.constant 0 : index
    %c0_67 = arith.constant 0 : index
    %97 = vector.load %arg5[%c0_66, %c0_67] : memref<1x64xf32, #tpu.memory_space<vmem>>, vector<1x64xf32>
    %98 = arith.mulf %96, %97 : vector<1x64xf32>
    %c0_68 = arith.constant 0 : index
    %c0_69 = arith.constant 0 : index
    %99 = vector.load %arg6[%c0_68, %c0_69] : memref<1x64xf32, #tpu.memory_space<vmem>>, vector<1x64xf32>
    %100 = arith.mulf %87, %98 : vector<1x64xf32>
    %101 = arith.subf %99, %100 : vector<1x64xf32>
    %102 = vector.broadcast %98 : vector<1x64xf32> to vector<648x64xf32>
    %103 = arith.mulf %77, %102 : vector<648x64xf32>
    %104 = vector.broadcast %101 : vector<1x64xf32> to vector<648x64xf32>
    %105 = arith.addf %103, %104 : vector<648x64xf32>
    %cst_70 = arith.constant 0.000000e+00 : f32
    %106 = vector.broadcast %cst_70 : f32 to vector<648x64xf32>
    %107 = arith.maximumf %105, %106 : vector<648x64xf32>
    %c0_71 = arith.constant 0 : index
    %c0_72 = arith.constant 0 : index
    %108 = vector.load %arg9[%c0_71, %c0_72] : memref<648x64xf32, #tpu.memory_space<vmem>>, vector<648x64xf32>
    tpu.vector_store %arg9[%c0_71, %c0_72], %107 {strides = array<i32>} : memref<648x64xf32, #tpu.memory_space<vmem>>, vector<648x64xf32>,
    return
  }
}

</mosaic_0001>

<bundles_post_ra>
// kernel: model_forward.1
= control target key start
LH: loop header
LB: loop body
LE: loop exit
PB: predicated region body
PF: predicated region fallthrough
CT: control target
= control target key end

     0   :  { %v16726_v0 = vmov 0   ;;  %vm629_vm0 = vcmask 523264   ;;  %vm16728_vm1 = vmmov 0   ;;  %s24113_s7 = inlined_call_operand.vmem [shape: f32[688,1], index: 7, kind: input, shape index: {}]   ;;  %s24114_s1 = inlined_call_operand.vmem [shape: f32[128,64], index: 1, kind: input, shape index: {}]   ;;  %s24115_s0 = inlined_call_operand.vmem [shape: f32[688,128], index: 0, kind: input, shape index: {}]   ;;  %s24116_s8 = inlined_call_operand.vmem [shape: f32[648,1], index: 8, kind: input, shape index: {}]   ;;  %s24117_s2 = inlined_call_operand.vmem [shape: f32[9,64,64], index: 2, kind: input, shape index: {}]   ;;  %s24118_s3 = inlined_call_operand.vmem [shape: f32[1,64], index: 3, kind: input, shape index: {}]   ;;  %s24119_s4 = inlined_call_operand.vmem [shape: f32[1,64], index: 4, kind: input, shape index: {}]   ;;  %s24120_s5 = inlined_call_operand.vmem [shape: f32[1,64], index: 5, kind: input, shape index: {}]   ;;  %s24121_s6 = inlined_call_operand.vmem [shape: f32[1,64], index: 6, kind: input, shape index: {}]   ;;  %s24122_s9 = inlined_call_operand.vmem [shape: f32[648,64], index: 9, kind: output, shape index: {}]  }
   0x1   :  { %16718 = vset.pattern.permute.xlu0 %v16726_v0  ;;  %v1369_v1 = vld [vmem:[%s24113_s7 + $0x98] sm:$0xff]  ;;  %v118_v2 = vld [vmem:[%s24114_s1] sm:$0xff]  ;;  %v119_v3 = vld [vmem:[%s24114_s1 + $0x8] sm:$0xff]  ;;  %16719 = vset.pattern.permute.xlu1 %v16726_v0 }
   0x2   :  { %1533 = vperm.xlu0 %16718, %v1369_v1   ;;  %v15351_v4 = vpack.c.bf16 %v119_v3, %v118_v2  ;;  %v120_v5 = vld [vmem:[%s24114_s1 + $0x10] sm:$0xff]  ;;  %v121_v6 = vld [vmem:[%s24114_s1 + $0x18] sm:$0xff]  ;;  %v1370_v7 = vld [vmem:[%s24113_s7 + $0xa0] sm:$0xff] }
   0x3   :  { %v15355_v8 = vpack.c.bf16 %v121_v6, %v120_v5  ;;  %v122_v9 = vld [vmem:[%s24114_s1 + $0x20] sm:$0xff]  ;;  %v123_v10 = vld [vmem:[%s24114_s1 + $0x28] sm:$0xff]  ;;  %v1372_v13 = vld [vmem:[%s24113_s7 + $0xb0] sm:$0xff] }
   0x4   :  { %15352 = vmatprep.subr.bf16.mxu0 %v15351_v4  ;;  %v1371_v11 = vld [vmem:[%s24113_s7 + $0xa8] sm:$0xff]  ;;  %v15359_v12 = vpack.c.bf16 %v123_v10, %v122_v9  ;;  %v1373_v14 = vld [vmem:[%s24113_s7 + $0xb8] sm:$0xff]  ;;  %v124_v15 = vld [vmem:[%s24114_s1 + $0x30] sm:$0xff] }
   0x5   :  { %15354 = vmatpush3.bf16.msra.mxu0 %v15351_v4  ;;  %1543 = vperm.xlu1 %16719, %v1371_v11   ;;  %v125_v16 = vld [vmem:[%s24114_s1 + $0x38] sm:$0xff]  ;;  %v1375_v17 = vld [vmem:[%s24113_s7 + $0xc8] sm:$0xff]  ;;  %v1374_v19 = vld [vmem:[%s24113_s7 + $0xc0] sm:$0xff] }
   0x6   :  { %1538 = vperm.xlu0 %16718, %v1370_v7   ;;  %15356 = vmatprep.subr.bf16.mxu0 %v15355_v8  ;;  %v15363_v18 = vpack.c.bf16 %v125_v16, %v124_v15  ;;  %v126_v20 = vld [vmem:[%s24114_s1 + $0x40] sm:$0xff]  ;;  %v127_v21 = vld [vmem:[%s24114_s1 + $0x48] sm:$0xff]  ;;  %v1376_v24 = vld [vmem:[%s24113_s7 + $0xd0] sm:$0xff] }
   0x7   :  { %v32_v22 = vld [vmem:[%s24115_s0] sm:$0xff]  ;;  %v15367_v23 = vpack.c.bf16 %v127_v21, %v126_v20  ;;  %v1377_v25 = vld [vmem:[%s24113_s7 + $0xd8] sm:$0xff]  ;;  %v128_v26 = vld [vmem:[%s24114_s1 + $0x50] sm:$0xff] }
   0x8   :  { %12891 = vmatprep.mubr.f32.mxu0 %v32_v22  ;;  %v129_v27 = vld [vmem:[%s24114_s1 + $0x58] sm:$0xff]  ;;  %v1378_v29 = vld [vmem:[%s24113_s7 + $0xe0] sm:$0xff]  ;;  %v1379_v30 = vld [vmem:[%s24113_s7 + $0xe8] sm:$0xff] }
   0x9   :  { %15358 = vmatpush3.bf16.msra.mxu0 %v15355_v8  ;;  %1548 = vperm.xlu1 %16719, %v1372_v13   ;;  %v15371_v28 = vpack.c.bf16 %v129_v27, %v128_v26  ;;  %v130_v31 = vld [vmem:[%s24114_s1 + $0x60] sm:$0xff]  ;;  %v131_v32 = vld [vmem:[%s24114_s1 + $0x68] sm:$0xff]  ;;  %v1380_v34 = vld [vmem:[%s24113_s7 + $0xf0] sm:$0xff] }
   0xa   :  { %1553 = vperm.xlu0 %16718, %v1373_v14   ;;  %15360 = vmatprep.subr.bf16.mxu0 %v15359_v12  ;;  %v15375_v33 = vpack.c.bf16 %v131_v32, %v130_v31  ;;  %v1381_v35 = vld [vmem:[%s24113_s7 + $0xf8] sm:$0xff]  ;;  %v132_v36 = vld [vmem:[%s24114_s1 + $0x70] sm:$0xff]  ;;  %v1382_v39 = vld [vmem:[%s24113_s7 + $0x100] sm:$0xff] }
   0xb   :  { %v133_v37 = vld [vmem:[%s24114_s1 + $0x78] sm:$0xff]  ;;  %v1383_v40 = vld [vmem:[%s24113_s7 + $0x108] sm:$0xff]  ;;  %v1384_v41 = vld [vmem:[%s24113_s7 + $0x110] sm:$0xff] }
   0xc   :  { %v15379_v38 = vpack.c.bf16 %v133_v37, %v132_v36  ;;  %v1350_v42 = vld [vmem:[%s24113_s7] sm:$0xff]  ;;  %v33_v43 = vld [vmem:[%s24115_s0 + $0x8] sm:$0xff]  ;;  %v34_v44 = vld [vmem:[%s24115_s0 + $0x10] sm:$0xff] }
   0xd   :  { %15362 = vmatpush3.bf16.msra.mxu0 %v15359_v12  ;;  %1558 = vperm.xlu1 %16719, %v1374_v19   ;;  %v1351_v45 = vld [vmem:[%s24113_s7 + $0x8] sm:$0xff]  ;;  %v1385_v46 = vld [vmem:[%s24113_s7 + $0x118] sm:$0xff]  ;;  %v36_v48 = vld [vmem:[%s24115_s0 + $0x20] sm:$0xff] }
   0xe   :  { %1563 = vperm.xlu0 %16718, %v1375_v17   ;;  %15364 = vmatprep.subr.bf16.mxu0 %v15363_v18  ;;  %v35_v47 = vld [vmem:[%s24115_s0 + $0x18] sm:$0xff]  ;;  %v1352_v49 = vld [vmem:[%s24113_s7 + $0x10] sm:$0xff]  ;;  %v1386_v50 = vld [vmem:[%s24113_s7 + $0x120] sm:$0xff] }
   0xf   :  { %v37_v51 = vld [vmem:[%s24115_s0 + $0x28] sm:$0xff]  ;;  %v38_v52 = vld [vmem:[%s24115_s0 + $0x30] sm:$0xff]  ;;  %v1353_v53 = vld [vmem:[%s24113_s7 + $0x18] sm:$0xff] }
  0x10   :  { %v1387_v54 = vld [vmem:[%s24113_s7 + $0x128] sm:$0xff]  ;;  %v39_v55 = vld [vmem:[%s24115_s0 + $0x38] sm:$0xff]  ;;  %v40_v56 = vld [vmem:[%s24115_s0 + $0x40] sm:$0xff] }
  0x11   :  { %15366 = vmatpush3.bf16.msra.mxu0 %v15363_v18  ;;  %1568 = vperm.xlu1 %16719, %v1376_v24   ;;  %v1354_v57 = vld [vmem:[%s24113_s7 + $0x20] sm:$0xff]  ;;  %v1388_v58 = vld [vmem:[%s24113_s7 + $0x130] sm:$0xff]  ;;  %v41_v59 = vld [vmem:[%s24115_s0 + $0x48] sm:$0xff] }
  0x12   :  { %1573 = vperm.xlu0 %16718, %v1377_v25   ;;  %15368 = vmatprep.subr.bf16.mxu0 %v15367_v23  ;;  %v42_v60 = vld [vmem:[%s24115_s0 + $0x50] sm:$0xff]  ;;  %v1355_v61 = vld [vmem:[%s24113_s7 + $0x28] sm:$0xff]  ;;  %v1389_v62 = vld [vmem:[%s24113_s7 + $0x138] sm:$0xff] }
  0x13   :  { %v43_v63 = vld [vmem:[%s24115_s0 + $0x58] sm:$0xff]  ;;  %v44_v0 = vld [vmem:[%s24115_s0 + $0x60] sm:$0xff]  ;;  %v1356_v1 = vld [vmem:[%s24113_s7 + $0x30] sm:$0xff] }
  0x14   :  { %v1390_v2 = vld [vmem:[%s24113_s7 + $0x140] sm:$0xff]  ;;  %v45_v3 = vld [vmem:[%s24115_s0 + $0x68] sm:$0xff]  ;;  %v46_v4 = vld [vmem:[%s24115_s0 + $0x70] sm:$0xff] }
  0x15   :  { %15370 = vmatpush3.bf16.msra.mxu0 %v15367_v23  ;;  %1578 = vperm.xlu1 %16719, %v1378_v29   ;;  %v1357_v5 = vld [vmem:[%s24113_s7 + $0x38] sm:$0xff]  ;;  %v1391_v6 = vld [vmem:[%s24113_s7 + $0x148] sm:$0xff]  ;;  %v48_v8 = vld [vmem:[%s24115_s0 + $0x80] sm:$0xff] }
  0x16   :  { %1583 = vperm.xlu0 %16718, %v1379_v30   ;;  %15372 = vmatprep.subr.bf16.mxu0 %v15371_v28  ;;  %v47_v7 = vld [vmem:[%s24115_s0 + $0x78] sm:$0xff]  ;;  %v1358_v9 = vld [vmem:[%s24113_s7 + $0x40] sm:$0xff]  ;;  %v1392_v10 = vld [vmem:[%s24113_s7 + $0x150] sm:$0xff] }
  0x17   :  { %v49_v11 = vld [vmem:[%s24115_s0 + $0x88] sm:$0xff]  ;;  %v50_v12 = vld [vmem:[%s24115_s0 + $0x90] sm:$0xff]  ;;  %v1393_v14 = vld [vmem:[%s24113_s7 + $0x158] sm:$0xff] }
  0x18   :  { %v1359_v13 = vld [vmem:[%s24113_s7 + $0x48] sm:$0xff]  ;;  %v51_v15 = vld [vmem:[%s24115_s0 + $0x98] sm:$0xff]  ;;  %v52_v16 = vld [vmem:[%s24115_s0 + $0xa0] sm:$0xff] }
  0x19   :  { %15374 = vmatpush3.bf16.msra.mxu0 %v15371_v28  ;;  %1588 = vperm.xlu1 %16719, %v1380_v34   ;;  %v1360_v17 = vld [vmem:[%s24113_s7 + $0x50] sm:$0xff]  ;;  %v1394_v18 = vld [vmem:[%s24113_s7 + $0x160] sm:$0xff]  ;;  %v53_v19 = vld [vmem:[%s24115_s0 + $0xa8] sm:$0xff] }
  0x1a   :  { %1593 = vperm.xlu0 %16718, %v1381_v35   ;;  %15376 = vmatprep.subr.bf16.mxu0 %v15375_v33  ;;  %v54_v20 = vld [vmem:[%s24115_s0 + $0xb0] sm:$0xff]  ;;  %v1361_v21 = vld [vmem:[%s24113_s7 + $0x58] sm:$0xff]  ;;  %v1395_v22 = vld [vmem:[%s24113_s7 + $0x168] sm:$0xff] }
  0x1b   :  { %v55_v23 = vld [vmem:[%s24115_s0 + $0xb8] sm:$0xff]  ;;  %v56_v24 = vld [vmem:[%s24115_s0 + $0xc0] sm:$0xff]  ;;  %v1396_v26 = vld [vmem:[%s24113_s7 + $0x170] sm:$0xff] }
  0x1c   :  { %v1362_v25 = vld [vmem:[%s24113_s7 + $0x60] sm:$0xff]  ;;  %v57_v27 = vld [vmem:[%s24115_s0 + $0xc8] sm:$0xff]  ;;  %v58_v28 = vld [vmem:[%s24115_s0 + $0xd0] sm:$0xff] }
  0x1d   :  { %15378 = vmatpush3.bf16.msra.mxu0 %v15375_v33  ;;  %1598 = vperm.xlu1 %16719, %v1382_v39   ;;  %v1363_v29 = vld [vmem:[%s24113_s7 + $0x68] sm:$0xff]  ;;  %v1397_v30 = vld [vmem:[%s24113_s7 + $0x178] sm:$0xff]  ;;  %v60_v32 = vld [vmem:[%s24115_s0 + $0xe0] sm:$0xff] }
  0x1e   :  { %1603 = vperm.xlu0 %16718, %v1383_v40   ;;  %15380 = vmatprep.subr.bf16.mxu0 %v15379_v38  ;;  %v59_v31 = vld [vmem:[%s24115_s0 + $0xd8] sm:$0xff]  ;;  %v1364_v33 = vld [vmem:[%s24113_s7 + $0x70] sm:$0xff]  ;;  %v1398_v34 = vld [vmem:[%s24113_s7 + $0x180] sm:$0xff] }
  0x1f   :  { %v61_v35 = vld [vmem:[%s24115_s0 + $0xe8] sm:$0xff]  ;;  %v62_v36 = vld [vmem:[%s24115_s0 + $0xf0] sm:$0xff]  ;;  %v1365_v37 = vld [vmem:[%s24113_s7 + $0x78] sm:$0xff] }
  0x20   :  { %v63_v39 = vld [vmem:[%s24115_s0 + $0xf8] sm:$0xff]  ;;  %v64_v40 = vld [vmem:[%s24115_s0 + $0x100] sm:$0xff] }
  0x21   :  { %15382 = vmatpush3.bf16.msra.mxu0 %v15379_v38  ;;  %1608 = vperm.xlu1 %16719, %v1384_v41   ;;  %v1399_v38 = vld [vmem:[%s24113_s7 + $0x188] sm:$0xff]  ;;  %v1366_v41 = vld [vmem:[%s24113_s7 + $0x80] sm:$0xff] }
  0x22   :  { %1438 = vperm.xlu0 %16718, %v1350_v42   ;;  %v1400_v42 = vld [vmem:[%s24113_s7 + $0x190] sm:$0xff] }
  0x24   :  { %12892 = vmatmul.mubr.f32.vlgmr.msra.gmra.mrb[0].mxu0 %v33_v43  ;;  %v65_v43 = vld [vmem:[%s24115_s0 + $0x108] sm:$0xff] }
  0x25   :  { %12894 = vmatprep.mubr.f32.mxu0 %v34_v44  ;;  %1443 = vperm.xlu1 %16719, %v1351_v45   ;;  %v66_v44 = vld [vmem:[%s24115_s0 + $0x110] sm:$0xff]  ;;  %v1367_v45 = vld [vmem:[%s24113_s7 + $0x88] sm:$0xff] }
  0x26   :  { %1613 = vperm.xlu0 %16718, %v1385_v46   ;;  %v1401_v46 = vld [vmem:[%s24113_s7 + $0x198] sm:$0xff] }
  0x28   :  { %12895 = vmatmul.mubr.f32.gmra.mrb[2].mxu0 %v35_v47  ;;  %v67_v47 = vld [vmem:[%s24115_s0 + $0x118] sm:$0xff] }
  0x29   :  { %12897 = vmatprep.mubr.f32.mxu0 %v36_v48  ;;  %1448 = vperm.xlu1 %16719, %v1352_v49   ;;  %v68_v48 = vld [vmem:[%s24115_s0 + $0x120] sm:$0xff]  ;;  %v1368_v49 = vld [vmem:[%s24113_s7 + $0x90] sm:$0xff] }
  0x2a   :  { %1618 = vperm.xlu0 %16718, %v1386_v50   ;;  %v1402_v50 = vld [vmem:[%s24113_s7 + $0x1a0] sm:$0xff] }
  0x2c   :  { %12898 = vmatmul.mubr.f32.gmra.mrb[4].mxu0 %v37_v51  ;;  %v69_v51 = vld [vmem:[%s24115_s0 + $0x128] sm:$0xff] }
  0x2d   :  { %12900 = vmatprep.mubr.f32.mxu0 %v38_v52  ;;  %1453 = vperm.xlu1 %16719, %v1353_v53   ;;  %v70_v52 = vld [vmem:[%s24115_s0 + $0x130] sm:$0xff]  ;;  %v1403_v53 = vld [vmem:[%s24113_s7 + $0x1a8] sm:$0xff] }
  0x2e   :  { %1623 = vperm.xlu0 %16718, %v1387_v54   ;;  %v1404_v54 = vld [vmem:[%s24113_s7 + $0x1b0] sm:$0xff] }
  0x30   :  { %12901 = vmatmul.mubr.f32.gmra.mrb[6].mxu0 %v39_v55  ;;  %v71_v55 = vld [vmem:[%s24115_s0 + $0x138] sm:$0xff] }
  0x31   :  { %12903 = vmatprep.mubr.f32.mxu0 %v40_v56  ;;  %1458 = vperm.xlu1 %16719, %v1354_v57   ;;  %v72_v56 = vld [vmem:[%s24115_s0 + $0x140] sm:$0xff]  ;;  %v1405_v57 = vld [vmem:[%s24113_s7 + $0x1b8] sm:$0xff] }
  0x32   :  { %1628 = vperm.xlu0 %16718, %v1388_v58   ;;  %v1406_v58 = vld [vmem:[%s24113_s7 + $0x1c0] sm:$0xff] }
  0x34   :  { %12904 = vmatmul.mubr.f32.gmra.mrb[8].mxu0 %v41_v59  ;;  %v73_v59 = vld [vmem:[%s24115_s0 + $0x148] sm:$0xff] }
  0x35   :  { %12906 = vmatprep.mubr.f32.mxu0 %v42_v60  ;;  %1463 = vperm.xlu1 %16719, %v1355_v61   ;;  %v74_v60 = vld [vmem:[%s24115_s0 + $0x150] sm:$0xff]  ;;  %v1407_v61 = vld [vmem:[%s24113_s7 + $0x1c8] sm:$0xff] }
  0x36   :  { %1633 = vperm.xlu0 %16718, %v1389_v62   ;;  %v1408_v62 = vld [vmem:[%s24113_s7 + $0x1d0] sm:$0xff] }
  0x38   :  { %12907 = vmatmul.mubr.f32.gmra.mrb[10].mxu0 %v43_v63  ;;  %v75_v63 = vld [vmem:[%s24115_s0 + $0x158] sm:$0xff] }
  0x39   :  { %12909 = vmatprep.mubr.f32.mxu0 %v44_v0  ;;  %1468 = vperm.xlu1 %16719, %v1356_v1   ;;  %v76_v0 = vld [vmem:[%s24115_s0 + $0x160] sm:$0xff]  ;;  %v1409_v1 = vld [vmem:[%s24113_s7 + $0x1d8] sm:$0xff] }
  0x3a   :  { %1638 = vperm.xlu0 %16718, %v1390_v2   ;;  %v1410_v2 = vld [vmem:[%s24113_s7 + $0x1e0] sm:$0xff] }
  0x3c   :  { %12910 = vmatmul.mubr.f32.gmra.mrb[12].mxu0 %v45_v3  ;;  %v77_v3 = vld [vmem:[%s24115_s0 + $0x168] sm:$0xff] }
  0x3d   :  { %12912 = vmatprep.mubr.f32.mxu0 %v46_v4  ;;  %1473 = vperm.xlu1 %16719, %v1357_v5   ;;  %v78_v4 = vld [vmem:[%s24115_s0 + $0x170] sm:$0xff]  ;;  %v1411_v5 = vld [vmem:[%s24113_s7 + $0x1e8] sm:$0xff] }
  0x3e   :  { %1643 = vperm.xlu0 %16718, %v1391_v6   ;;  %v1412_v6 = vld [vmem:[%s24113_s7 + $0x1f0] sm:$0xff] }
  0x40   :  { %12913 = vmatmul.mubr.f32.gmra.mrb[14].mxu0 %v47_v7  ;;  %v79_v7 = vld [vmem:[%s24115_s0 + $0x178] sm:$0xff] }
  0x41   :  { %12915 = vmatprep.mubr.f32.mxu0 %v48_v8  ;;  %1478 = vperm.xlu1 %16719, %v1358_v9   ;;  %v80_v8 = vld [vmem:[%s24115_s0 + $0x180] sm:$0xff]  ;;  %v1413_v9 = vld [vmem:[%s24113_s7 + $0x1f8] sm:$0xff] }
  0x42   :  { %1648 = vperm.xlu0 %16718, %v1392_v10   ;;  %v1414_v10 = vld [vmem:[%s24113_s7 + $0x200] sm:$0xff] }
  0x44   :  { %12916 = vmatmul.mubr.f32.gmra.mrb[16].mxu0 %v49_v11  ;;  %v81_v11 = vld [vmem:[%s24115_s0 + $0x188] sm:$0xff] }
  0x45   :  { %12918 = vmatprep.mubr.f32.mxu0 %v50_v12  ;;  %1483 = vperm.xlu1 %16719, %v1359_v13   ;;  %v82_v13 = vld [vmem:[%s24115_s0 + $0x190] sm:$0xff] }
  0x46   :  { %1653 = vperm.xlu0 %16718, %v1393_v14   ;;  %v1415_v14 = vld [vmem:[%s24113_s7 + $0x208] sm:$0xff] }
  0x48   :  { %12919 = vmatmul.mubr.f32.gmra.mrb[18].mxu0 %v51_v15  ;;  %v1416_v15 = vld [vmem:[%s24113_s7 + $0x210] sm:$0xff] }
  0x49   :  { %12921 = vmatprep.mubr.f32.mxu0 %v52_v16  ;;  %1488 = vperm.xlu1 %16719, %v1360_v17   ;;  %v83_v16 = vld [vmem:[%s24115_s0 + $0x198] sm:$0xff]  ;;  %v84_v17 = vld [vmem:[%s24115_s0 + $0x1a0] sm:$0xff] }
  0x4a   :  { %1658 = vperm.xlu0 %16718, %v1394_v18   ;;  %v1417_v18 = vld [vmem:[%s24113_s7 + $0x218] sm:$0xff] }
  0x4c   :  { %12922 = vmatmul.mubr.f32.gmra.mrb[20].mxu0 %v53_v19  ;;  %v1418_v19 = vld [vmem:[%s24113_s7 + $0x220] sm:$0xff] }
  0x4d   :  { %12924 = vmatprep.mubr.f32.mxu0 %v54_v20  ;;  %1493 = vperm.xlu1 %16719, %v1361_v21  }
  0x4e   :  { %1663 = vperm.xlu0 %16718, %v1395_v22   ;;  %v85_v22 = vld [vmem:[%s24115_s0 + $0x1a8] sm:$0xff] }
  0x50   :  { %12925 = vmatmul.mubr.f32.gmra.mrb[22].mxu0 %v55_v23  ;;  %v86_v23 = vld [vmem:[%s24115_s0 + $0x1b0] sm:$0xff] }
  0x51   :  { %12927 = vmatprep.mubr.f32.mxu0 %v56_v24  ;;  %1498 = vperm.xlu1 %16719, %v1362_v25   ;;  %v1419_v24 = vld [vmem:[%s24113_s7 + $0x228] sm:$0xff]  ;;  %v1420_v25 = vld [vmem:[%s24113_s7 + $0x230] sm:$0xff] }
  0x52   :  { %1668 = vperm.xlu0 %16718, %v1396_v26   ;;  %v87_v26 = vld [vmem:[%s24115_s0 + $0x1b8] sm:$0xff] }
  0x54   :  { %12928 = vmatmul.mubr.f32.gmra.mrb[24].mxu0 %v57_v27 }
  0x55   :  { %12930 = vmatprep.mubr.f32.mxu0 %v58_v28  ;;  %1503 = vperm.xlu1 %16719, %v1363_v29   ;;  %v88_v29 = vld [vmem:[%s24115_s0 + $0x1c0] sm:$0xff] }
  0x56   :  { %1673 = vperm.xlu0 %16718, %v1397_v30   ;;  %v1421_v30 = vld [vmem:[%s24113_s7 + $0x238] sm:$0xff] }
  0x58   :  { %12931 = vmatmul.mubr.f32.gmra.mrb[26].mxu0 %v59_v31  ;;  %v1422_v31 = vld [vmem:[%s24113_s7 + $0x240] sm:$0xff] }
  0x59   :  { %12933 = vmatprep.mubr.f32.mxu0 %v60_v32  ;;  %1508 = vperm.xlu1 %16719, %v1364_v33   ;;  %v89_v32 = vld [vmem:[%s24115_s0 + $0x1c8] sm:$0xff]  ;;  %v90_v33 = vld [vmem:[%s24115_s0 + $0x1d0] sm:$0xff] }
  0x5a   :  { %1678 = vperm.xlu0 %16718, %v1398_v34   ;;  %v1423_v34 = vld [vmem:[%s24113_s7 + $0x248] sm:$0xff] }
  0x5c   :  { %12934 = vmatmul.mubr.f32.gmra.mrb[28].mxu0 %v61_v35 }
  0x5d   :  { %12936 = vmatprep.mubr.f32.mxu0 %v62_v36  ;;  %1513 = vperm.xlu1 %16719, %v1365_v37   ;;  %v1424_v36 = vld [vmem:[%s24113_s7 + $0x250] sm:$0xff] }
  0x5e   :  { %1683 = vperm.xlu0 %16718, %v1399_v38   ;;  %v91_v38 = vld [vmem:[%s24115_s0 + $0x1d8] sm:$0xff] }
  0x60   :  { %12937 = vmatmul.mubr.f32.gmra.mrb[30].mxu0 %v63_v39  ;;  %v92_v39 = vld [vmem:[%s24115_s0 + $0x1e0] sm:$0xff] }
  0x61   :  { %12939 = vmatprep.mubr.f32.mxu0 %v64_v40  ;;  %1518 = vperm.xlu1 %16719, %v1366_v41   ;;  %v1425_v40 = vld [vmem:[%s24113_s7 + $0x258] sm:$0xff]  ;;  %v1426_v41 = vld [vmem:[%s24113_s7 + $0x260] sm:$0xff] }
  0x62   :  { %1688 = vperm.xlu0 %16718, %v1400_v42  }
  0x64   :  { %12940 = vmatmul.mubr.f32.gmra.mrb[32].mxu0 %v65_v43  ;;  %v93_v43 = vld [vmem:[%s24115_s0 + $0x1e8] sm:$0xff] }
  0x65   :  { %12942 = vmatprep.mubr.f32.mxu0 %v66_v44  ;;  %1523 = vperm.xlu1 %16719, %v1367_v45   ;;  %v94_v45 = vld [vmem:[%s24115_s0 + $0x1f0] sm:$0xff] }
  0x66   :  { %1693 = vperm.xlu0 %16718, %v1401_v46   ;;  %v1427_v46 = vld [vmem:[%s24113_s7 + $0x268] sm:$0xff] }
  0x68   :  { %12943 = vmatmul.mubr.f32.gmra.mrb[34].mxu0 %v67_v47  ;;  %v1428_v47 = vld [vmem:[%s24113_s7 + $0x270] sm:$0xff] }
  0x69   :  { %12945 = vmatprep.mubr.f32.mxu0 %v68_v48  ;;  %1528 = vperm.xlu1 %16719, %v1368_v49   ;;  %v95_v48 = vld [vmem:[%s24115_s0 + $0x1f8] sm:$0xff]  ;;  %v96_v49 = vld [vmem:[%s24115_s0 + $0x200] sm:$0xff] }
  0x6a   :  { %1698 = vperm.xlu0 %16718, %v1402_v50   ;;  %v1429_v50 = vld [vmem:[%s24113_s7 + $0x278] sm:$0xff] }
  0x6c   :  { %12946 = vmatmul.mubr.f32.gmra.mrb[36].mxu0 %v69_v51 }
  0x6d   :  { %12948 = vmatprep.mubr.f32.mxu0 %v70_v52  ;;  %1703 = vperm.xlu1 %16719, %v1403_v53   ;;  %v1430_v52 = vld [vmem:[%s24113_s7 + $0x280] sm:$0xff] }
  0x6e   :  { %1708 = vperm.xlu0 %16718, %v1404_v54   ;;  %v97_v54 = vld [vmem:[%s24115_s0 + $0x208] sm:$0xff] }
  0x70   :  { %12949 = vmatmul.mubr.f32.gmra.mrb[38].mxu0 %v71_v55  ;;  %v98_v55 = vld [vmem:[%s24115_s0 + $0x210] sm:$0xff] }
  0x71   :  { %12951 = vmatprep.mubr.f32.mxu0 %v72_v56  ;;  %1713 = vperm.xlu1 %16719, %v1405_v57   ;;  %v1431_v56 = vld [vmem:[%s24113_s7 + $0x288] sm:$0xff]  ;;  %v1432_v57 = vld [vmem:[%s24113_s7 + $0x290] sm:$0xff] }
  0x72   :  { %1718 = vperm.xlu0 %16718, %v1406_v58  }
  0x74   :  { %12952 = vmatmul.mubr.f32.gmra.mrb[40].mxu0 %v73_v59  ;;  %v99_v59 = vld [vmem:[%s24115_s0 + $0x218] sm:$0xff] }
  0x75   :  { %12954 = vmatprep.mubr.f32.mxu0 %v74_v60  ;;  %1723 = vperm.xlu1 %16719, %v1407_v61   ;;  %v100_v61 = vld [vmem:[%s24115_s0 + $0x220] sm:$0xff] }
  0x76   :  { %1728 = vperm.xlu0 %16718, %v1408_v62   ;;  %v1433_v62 = vld [vmem:[%s24113_s7 + $0x298] sm:$0xff] }
  0x78   :  { %12955 = vmatmul.mubr.f32.gmra.mrb[42].mxu0 %v75_v63  ;;  %v1434_v63 = vld [vmem:[%s24113_s7 + $0x2a0] sm:$0xff] }
  0x79   :  { %12957 = vmatprep.mubr.f32.mxu0 %v76_v0  ;;  %1733 = vperm.xlu1 %16719, %v1409_v1   ;;  %v101_v0 = vld [vmem:[%s24115_s0 + $0x228] sm:$0xff]  ;;  %v102_v1 = vld [vmem:[%s24115_s0 + $0x230] sm:$0xff] }
  0x7a   :  { %1738 = vperm.xlu0 %16718, %v1410_v2   ;;  %v1435_v2 = vld [vmem:[%s24113_s7 + $0x2a8] sm:$0xff] }
  0x7c   :  { %12958 = vmatmul.mubr.f32.gmra.mrb[44].mxu0 %v77_v3 }
  0x7d   :  { %12960 = vmatprep.mubr.f32.mxu0 %v78_v4  ;;  %1743 = vperm.xlu1 %16719, %v1411_v5   ;;  %v9831_v4 = vld [vmem:[%s24116_s8] sm:$0xff] }
  0x7e   :  { %1748 = vperm.xlu0 %16718, %v1412_v6   ;;  %v103_v6 = vld [vmem:[%s24115_s0 + $0x238] sm:$0xff] }
  0x80   :  { %12961 = vmatmul.mubr.f32.gmra.mrb[46].mxu0 %v79_v7  ;;  %v104_v7 = vld [vmem:[%s24115_s0 + $0x240] sm:$0xff] }
  0x81   :  { %12963 = vmatprep.mubr.f32.mxu0 %v80_v8  ;;  %1753 = vperm.xlu1 %16719, %v1413_v9   ;;  %v17173_v12 = vpop.permute.xlu0 %1533  ;;  %v9832_v8 = vld [vmem:[%s24116_s8 + $0x8] sm:$0xff]  ;;  %v9833_v9 = vld [vmem:[%s24116_s8 + $0x10] sm:$0xff] }
  0x82   :  { %24273 = vst [vmem:[#allocation3_spill] sm:$0xff] %v17173_v12  ;;  %1758 = vperm.xlu0 %16718, %v1414_v10  }
  0x84   :  { %12964 = vmatmul.mubr.f32.gmra.mrb[48].mxu0 %v81_v11  ;;  %v17196_v20 = vpop.permute.xlu1 %1543  ;;  %v105_v11 = vld [vmem:[%s24115_s0 + $0x248] sm:$0xff] }
  0x85   :  { %12966 = vmatprep.mubr.f32.mxu0 %v82_v13  ;;  %1763 = vperm.xlu1 %16719, %v1415_v14   ;;  %24274 = vst [vmem:[#allocation4_spill] sm:$0xff] %v17196_v20  ;;  %v17198_v21 = vpop.permute.xlu0 %1538  ;;  %v106_v14 = vld [vmem:[%s24115_s0 + $0x250] sm:$0xff] }
  0x86   :  { %1768 = vperm.xlu0 %16718, %v1416_v15   ;;  %24275 = vst [vmem:[#allocation5_spill] sm:$0xff] %v17198_v21  ;;  %v9834_v15 = vld [vmem:[%s24116_s8 + $0x18] sm:$0xff] }
  0x88   :  { %12967 = vmatmul.mubr.f32.gmra.mrb[50].mxu0 %v83_v16  ;;  %v17215_v27 = vpop.permute.xlu1 %1548  ;;  %v9835_v16 = vld [vmem:[%s24116_s8 + $0x20] sm:$0xff] }
  0x89   :  { %12969 = vmatprep.mubr.f32.mxu0 %v84_v17  ;;  %1773 = vperm.xlu1 %16719, %v1417_v18   ;;  %24276 = vst [vmem:[#allocation6_spill] sm:$0xff] %v17215_v27  ;;  %v17217_v28 = vpop.permute.xlu0 %1553  ;;  %v107_v17 = vld [vmem:[%s24115_s0 + $0x258] sm:$0xff]  ;;  %v108_v18 = vld [vmem:[%s24115_s0 + $0x260] sm:$0xff] }
  0x8a   :  { %1778 = vperm.xlu0 %16718, %v1418_v19   ;;  %24277 = vst [vmem:[#allocation7_spill] sm:$0xff] %v17217_v28  ;;  %v9836_v19 = vld [vmem:[%s24116_s8 + $0x28] sm:$0xff] }
  0x8c   :  { %12970 = vmatmul.mubr.f32.gmra.mrb[52].mxu0 %v85_v22  ;;  %v17237_v35 = vpop.permute.xlu1 %1558 }
  0x8d   :  { %12972 = vmatprep.mubr.f32.mxu0 %v86_v23  ;;  %1783 = vperm.xlu1 %16719, %v1419_v24   ;;  %24278 = vst [vmem:[#allocation8_spill] sm:$0xff] %v17237_v35  ;;  %v17242_v37 = vpop.permute.xlu0 %1563  ;;  %v9837_v23 = vld [vmem:[%s24116_s8 + $0x30] sm:$0xff] }
  0x8e   :  { %1788 = vperm.xlu0 %16718, %v1420_v25   ;;  %24279 = vst [vmem:[#allocation9_spill] sm:$0xff] %v17242_v37  ;;  %v109_v25 = vld [vmem:[%s24115_s0 + $0x268] sm:$0xff] }
  0x90   :  { %12973 = vmatmul.mubr.f32.gmra.mrb[54].mxu0 %v87_v26  ;;  %v17256_v42 = vpop.permute.xlu1 %1568  ;;  %v110_v26 = vld [vmem:[%s24115_s0 + $0x270] sm:$0xff] }
  0x91   :  { %12975 = vmatprep.mubr.f32.mxu0 %v88_v29  ;;  %1793 = vperm.xlu1 %16719, %v1421_v30   ;;  %24280 = vst [vmem:[#allocation10_spill] sm:$0xff] %v17256_v42  ;;  %v17261_v44 = vpop.permute.xlu0 %1573  ;;  %v9838_v29 = vld [vmem:[%s24116_s8 + $0x38] sm:$0xff]  ;;  %v9839_v30 = vld [vmem:[%s24116_s8 + $0x40] sm:$0xff] }
  0x92   :  { %1798 = vperm.xlu0 %16718, %v1422_v31   ;;  %24281 = vst [vmem:[#allocation11_spill] sm:$0xff] %v17261_v44 }
  0x94   :  { %12976 = vmatmul.mubr.f32.gmra.mrb[56].mxu0 %v89_v32  ;;  %v17281_v51 = vpop.permute.xlu1 %1578  ;;  %v111_v32 = vld [vmem:[%s24115_s0 + $0x278] sm:$0xff] }
  0x95   :  { %12978 = vmatprep.mubr.f32.mxu0 %v90_v33  ;;  %1803 = vperm.xlu1 %16719, %v1423_v34   ;;  %24282 = vst [vmem:[#allocation12_spill] sm:$0xff] %v17281_v51  ;;  %v17286_v53 = vpop.permute.xlu0 %1583  ;;  %v112_v34 = vld [vmem:[%s24115_s0 + $0x280] sm:$0xff] }
  0x96   :  { %1808 = vperm.xlu0 %16718, %v1424_v36   ;;  %24283 = vst [vmem:[#allocation13_spill] sm:$0xff] %v17286_v53  ;;  %v9840_v36 = vld [vmem:[%s24116_s8 + $0x48] sm:$0xff] }
  0x97   :  { %v9888_v53 = vld [vmem:[%s24116_s8 + $0x1c8] sm:$0xff] }
  0x98   :  { %12979 = vmatmul.mubr.f32.gmra.mrb[58].mxu0 %v91_v38  ;;  %v17300_v58 = vpop.permute.xlu1 %1588  ;;  %v9841_v38 = vld [vmem:[%s24116_s8 + $0x50] sm:$0xff] }
  0x99   :  { %12981 = vmatprep.mubr.f32.mxu0 %v92_v39  ;;  %1813 = vperm.xlu1 %16719, %v1425_v40   ;;  %24284 = vst [vmem:[#allocation14_spill] sm:$0xff] %v17300_v58  ;;  %v17305_v60 = vpop.permute.xlu0 %1593  ;;  %v113_v39 = vld [vmem:[%s24115_s0 + $0x288] sm:$0xff]  ;;  %v114_v40 = vld [vmem:[%s24115_s0 + $0x290] sm:$0xff] }
  0x9a   :  { %1818 = vperm.xlu0 %16718, %v1426_v41   ;;  %24285 = vst [vmem:[#allocation15_spill] sm:$0xff] %v17305_v60  ;;  %v9842_v41 = vld [vmem:[%s24116_s8 + $0x58] sm:$0xff] }
  0x9c   :  { %12982 = vmatmul.mubr.f32.gmra.mrb[60].mxu0 %v93_v43  ;;  %v17325_v3 = vpop.permute.xlu1 %1598 }
  0x9d   :  { %12984 = vmatprep.mubr.f32.mxu0 %v94_v45  ;;  %1823 = vperm.xlu1 %16719, %v1427_v46   ;;  %24286 = vst [vmem:[#allocation16_spill] sm:$0xff] %v17325_v3  ;;  %v17330_v5 = vpop.permute.xlu0 %1603  ;;  %v9843_v45 = vld [vmem:[%s24116_s8 + $0x60] sm:$0xff] }
  0x9e   :  { %1828 = vperm.xlu0 %16718, %v1428_v47   ;;  %24287 = vst [vmem:[#allocation17_spill] sm:$0xff] %v17330_v5  ;;  %v115_v47 = vld [vmem:[%s24115_s0 + $0x298] sm:$0xff] }
  0xa0   :  { %12985 = vmatmul.mubr.f32.gmra.mrb[62].mxu0 %v95_v48  ;;  %v17344_v10 = vpop.permute.xlu1 %1608  ;;  %v116_v48 = vld [vmem:[%s24115_s0 + $0x2a0] sm:$0xff] }
  0xa1   :  { %12987 = vmatprep.mubr.f32.mxu0 %v96_v49  ;;  %1833 = vperm.xlu1 %16719, %v1429_v50   ;;  %24288 = vst [vmem:[#allocation18_spill] sm:$0xff] %v17344_v10  ;;  %v17349_v13 = vpop.permute.xlu0 %1438  ;;  %v9844_v49 = vld [vmem:[%s24116_s8 + $0x68] sm:$0xff]  ;;  %v9845_v50 = vld [vmem:[%s24116_s8 + $0x70] sm:$0xff] }
  0xa2   :  { %1838 = vperm.xlu0 %16718, %v1430_v52   ;;  %24289 = vst [vmem:[#allocation19_spill] sm:$0xff] %v17349_v13 }
  0xa4   :  { %12988 = vmatmul.mubr.f32.gmra.mrb[64].mxu0 %v97_v54  ;;  %v17369_v22 = vpop.permute.xlu1 %1443  ;;  %v117_v54 = vld [vmem:[%s24115_s0 + $0x2a8] sm:$0xff] }
  0xa5   :  { %12990 = vmatprep.mubr.f32.mxu0 %v98_v55  ;;  %1843 = vperm.xlu1 %16719, %v1431_v56   ;;  %24290 = vst [vmem:[#allocation20_spill] sm:$0xff] %v17369_v22  ;;  %v17374_v24 = vpop.permute.xlu0 %1613  ;;  %v9846_v56 = vld [vmem:[%s24116_s8 + $0x78] sm:$0xff] }
  0xa6   :  { %1848 = vperm.xlu0 %16718, %v1432_v57   ;;  %24291 = vst [vmem:[#allocation21_spill] sm:$0xff] %v17374_v24  ;;  %v9847_v57 = vld [vmem:[%s24116_s8 + $0x80] sm:$0xff] }
  0xa8   :  { %12991 = vmatmul.mubr.f32.gmra.mrb[66].mxu0 %v99_v59  ;;  %v17388_v31 = vpop.permute.xlu1 %1448  ;;  %v9848_v59 = vld [vmem:[%s24116_s8 + $0x88] sm:$0xff] }
  0xa9   :  { %12993 = vmatprep.mubr.f32.mxu0 %v100_v61  ;;  %1853 = vperm.xlu1 %16719, %v1433_v62   ;;  %24292 = vst [vmem:[#allocation22_spill] sm:$0xff] %v17388_v31  ;;  %v17393_v33 = vpop.permute.xlu0 %1618  ;;  %v9849_v62 = vld [vmem:[%s24116_s8 + $0x90] sm:$0xff] }
  0xaa   :  { %1858 = vperm.xlu0 %16718, %v1434_v63   ;;  %24293 = vst [vmem:[#allocation23_spill] sm:$0xff] %v17393_v33 }
  0xac   :  { %12994 = vmatmul.mubr.f32.gmra.mrb[68].mxu0 %v101_v0  ;;  %v17413_v43 = vpop.permute.xlu1 %1453  ;;  %v9850_v0 = vld [vmem:[%s24116_s8 + $0x98] sm:$0xff] }
  0xad   :  { %12996 = vmatprep.mubr.f32.mxu0 %v102_v1  ;;  %1863 = vperm.xlu1 %16719, %v1435_v2   ;;  %24294 = vst [vmem:[#allocation24_spill] sm:$0xff] %v17413_v43  ;;  %v17418_v46 = vpop.permute.xlu0 %1623  ;;  %v9851_v1 = vld [vmem:[%s24116_s8 + $0xa0] sm:$0xff] }
  0xae   :  { %9914 = vperm.xlu0 %16718, %v9831_v4   ;;  %24295 = vst [vmem:[#allocation25_spill] sm:$0xff] %v17418_v46 }
  0xb0   :  { %12997 = vmatmul.mubr.f32.gmra.mrb[70].mxu0 %v103_v6  ;;  %v17432_v52 = vpop.permute.xlu1 %1458  ;;  %v9852_v6 = vld [vmem:[%s24116_s8 + $0xa8] sm:$0xff] }
  0xb1   :  { %12999 = vmatprep.mubr.f32.mxu0 %v104_v7  ;;  %9919 = vperm.xlu1 %16719, %v9832_v8   ;;  %24296 = vst [vmem:[#allocation26_spill] sm:$0xff] %v17432_v52  ;;  %v17437_v55 = vpop.permute.xlu0 %1628  ;;  %v9853_v7 = vld [vmem:[%s24116_s8 + $0xb0] sm:$0xff]  ;;  %v9854_v8 = vld [vmem:[%s24116_s8 + $0xb8] sm:$0xff] }
  0xb2   :  { %9924 = vperm.xlu0 %16718, %v9833_v9   ;;  %24297 = vst [vmem:[#allocation27_spill] sm:$0xff] %v17437_v55 }
  0xb4   :  { %13000 = vmatmul.mubr.f32.gmra.mrb[72].mxu0 %v105_v11  ;;  %v17448_v61 = vpop.permute.xlu1 %1463  ;;  %v9855_v11 = vld [vmem:[%s24116_s8 + $0xc0] sm:$0xff] }
  0xb5   :  { %13002 = vmatprep.mubr.f32.mxu0 %v106_v14  ;;  %9929 = vperm.xlu1 %16719, %v9834_v15   ;;  %24298 = vst [vmem:[#allocation28_spill] sm:$0xff] %v17448_v61  ;;  %v17453_v63 = vpop.permute.xlu0 %1633  ;;  %v9856_v15 = vld [vmem:[%s24116_s8 + $0xc8] sm:$0xff] }
  0xb6   :  { %9934 = vperm.xlu0 %16718, %v9835_v16   ;;  %24299 = vst [vmem:[#allocation29_spill] sm:$0xff] %v17453_v63  ;;  %v9857_v16 = vld [vmem:[%s24116_s8 + $0xd0] sm:$0xff] }
  0xb8   :  { %13003 = vmatmul.mubr.f32.gmra.mrb[74].mxu0 %v107_v17  ;;  %v17461_v2 = vpop.permute.xlu1 %1468 }
  0xb9   :  { %13005 = vmatprep.mubr.f32.mxu0 %v108_v18  ;;  %9939 = vperm.xlu1 %16719, %v9836_v19   ;;  %24300 = vst [vmem:[#allocation30_spill] sm:$0xff] %v17461_v2  ;;  %v17463_v4 = vpop.permute.xlu0 %1638  ;;  %v9858_v19 = vld [vmem:[%s24116_s8 + $0xd8] sm:$0xff] }
  0xba   :  { %9944 = vperm.xlu0 %16718, %v9837_v23   ;;  %24301 = vst [vmem:[#allocation31_spill] sm:$0xff] %v17463_v4  ;;  %v9859_v23 = vld [vmem:[%s24116_s8 + $0xe0] sm:$0xff] }
  0xbc   :  { %13006 = vmatmul.mubr.f32.gmra.mrb[76].mxu0 %v109_v25  ;;  %v17474_v9 = vpop.permute.xlu1 %1473  ;;  %v9860_v25 = vld [vmem:[%s24116_s8 + $0xe8] sm:$0xff] }
  0xbd   :  { %13008 = vmatprep.mubr.f32.mxu0 %v110_v26  ;;  %9949 = vperm.xlu1 %16719, %v9838_v29   ;;  %24302 = vst [vmem:[#allocation32_spill] sm:$0xff] %v17474_v9  ;;  %v17479_v14 = vpop.permute.xlu0 %1643  ;;  %v9861_v29 = vld [vmem:[%s24116_s8 + $0xf0] sm:$0xff] }
  0xbe   :  { %9954 = vperm.xlu0 %16718, %v9839_v30   ;;  %24303 = vst [vmem:[#allocation33_spill] sm:$0xff] %v17479_v14 }
  0xc0   :  { %13009 = vmatmul.mubr.f32.gmra.mrb[78].mxu0 %v111_v32  ;;  %v17487_v17 = vpop.permute.xlu1 %1478  ;;  %v9862_v32 = vld [vmem:[%s24116_s8 + $0xf8] sm:$0xff] }
  0xc1   :  { %13011 = vmatprep.mubr.f32.mxu0 %v112_v34  ;;  %9959 = vperm.xlu1 %16719, %v9840_v36   ;;  %24304 = vst [vmem:[#allocation34_spill] sm:$0xff] %v17487_v17  ;;  %v17489_v18 = vpop.permute.xlu0 %1648  ;;  %v9863_v34 = vld [vmem:[%s24116_s8 + $0x100] sm:$0xff] }
  0xc2   :  { %9964 = vperm.xlu0 %16718, %v9841_v38   ;;  %24305 = vst [vmem:[#allocation35_spill] sm:$0xff] %v17489_v18 }
  0xc4   :  { %13012 = vmatmul.mubr.f32.gmra.mrb[80].mxu0 %v113_v39  ;;  %v17500_v26 = vpop.permute.xlu1 %1483  ;;  %v9864_v39 = vld [vmem:[%s24116_s8 + $0x108] sm:$0xff] }
  0xc5   :  { %13014 = vmatprep.mubr.f32.mxu0 %v114_v40  ;;  %9969 = vperm.xlu1 %16719, %v9842_v41   ;;  %24306 = vst [vmem:[#allocation36_spill] sm:$0xff] %v17500_v26  ;;  %v17505_v30 = vpop.permute.xlu0 %1653  ;;  %v9865_v40 = vld [vmem:[%s24116_s8 + $0x110] sm:$0xff]  ;;  %v24123_v41 = vmov 0.0|0.0  }
  0xc6   :  { %9974 = vperm.xlu0 %16718, %v9843_v45   ;;  %24307 = vst [vmem:[#allocation37_spill] sm:$0xff] %v17505_v30  ;;  %15383 = vmatprep.subr.bf16.mxu0 %v24123_v41  ;;  %v11163_v45 = vld [vmem:[%s24117_s2 + $0x40] sm:$0xff] }
  0xc7   :  { %15491 = vmatprep.subr.bf16.mxu1 %v24123_v41 }
  0xc8   :  { %13015 = vmatmul.mubr.f32.gmra.mrb[82].mxu0 %v115_v47  ;;  %v17513_v36 = vpop.permute.xlu1 %1488  ;;  %v11164_v47 = vld [vmem:[%s24117_s2 + $0x48] sm:$0xff] }
  0xc9   :  { %13017 = vmatprep.mubr.f32.mxu0 %v116_v48  ;;  %9979 = vperm.xlu1 %16719, %v9844_v49   ;;  %24308 = vst [vmem:[#allocation38_spill] sm:$0xff] %v17513_v36  ;;  %v17515_v38 = vpop.permute.xlu0 %1658  ;;  %v9866_v48 = vld [vmem:[%s24116_s8 + $0x118] sm:$0xff]  ;;  %v15384_v49 = vpack.c.bf16 %v11164_v47, %v11163_v45 }
  0xca   :  { %9984 = vperm.xlu0 %16718, %v9845_v50   ;;  %24309 = vst [vmem:[#allocation39_spill] sm:$0xff] %v17515_v38 }
  0xcb   :  { %15385 = vmatpush3.bf16.msra.mxu0 %v15384_v49  ;;  %v9872_v49 = vld [vmem:[%s24116_s8 + $0x148] sm:$0xff] }
  0xcc   :  { %13018 = vmatmul.mubr.f32.gmra.mrb[84].mxu0 %v117_v54  ;;  %v17534_v50 = vpop.permute.xlu1 %1493  ;;  %v9867_v54 = vld [vmem:[%s24116_s8 + $0x120] sm:$0xff]  ;;  %15386 = vmatprep.subr.bf16.mxu0 %v24123_v41 }
  0xcd   :  { %9989 = vperm.xlu1 %16719, %v9846_v56   ;;  %24310 = vst [vmem:[#allocation40_spill] sm:$0xff] %v17534_v50  ;;  %v17539_v56 = vpop.permute.xlu0 %1663 }
  0xce   :  { %9994 = vperm.xlu0 %16718, %v9847_v57   ;;  %24311 = vst [vmem:[#allocation41_spill] sm:$0xff] %v17539_v56  ;;  %v9868_v57 = vld [vmem:[%s24116_s8 + $0x128] sm:$0xff] }
  0xd1   :  { %9999 = vperm.xlu1 %16719, %v9848_v59  }
  0xd2   :  { %10004 = vperm.xlu0 %16718, %v9849_v62   ;;  %v9869_v62 = vld [vmem:[%s24116_s8 + $0x130] sm:$0xff] }
  0xd5   :  { %10009 = vperm.xlu1 %16719, %v9850_v0  }
  0xd6   :  { %10014 = vperm.xlu0 %16718, %v9851_v1  }
  0xd9   :  { %10019 = vperm.xlu1 %16719, %v9852_v6  }
  0xda   :  { %10024 = vperm.xlu0 %16718, %v9853_v7   ;;  %v17556_v7 = vpop.permute.xlu1 %1498 }
  0xdb   :  { %24312 = vst [vmem:[#allocation42_spill] sm:$0xff] %v17556_v7 }
  0xdd   :  { %10029 = vperm.xlu1 %16719, %v9854_v8  }
  0xde   :  { %10034 = vperm.xlu0 %16718, %v9855_v11  }
  0xe1   :  { %10039 = vperm.xlu1 %16719, %v9856_v15   ;;  %v17562_v15 = vpop.permute.xlu0 %1668 }
  0xe2   :  { %10044 = vperm.xlu0 %16718, %v9857_v16   ;;  %24313 = vst [vmem:[#allocation43_spill] sm:$0xff] %v17562_v15 }
  0xe5   :  { %10049 = vperm.xlu1 %16719, %v9858_v19  }
  0xe6   :  { %10054 = vperm.xlu0 %16718, %v9859_v23   ;;  %v9870_v23 = vld [vmem:[%s24116_s8 + $0x138] sm:$0xff] }
  0xe9   :  { %10059 = vperm.xlu1 %16719, %v9860_v25  }
  0xea   :  { %10064 = vperm.xlu0 %16718, %v9861_v29  }
  0xed   :  { %10069 = vperm.xlu1 %16719, %v9862_v32   ;;  %v9871_v32 = vld [vmem:[%s24116_s8 + $0x140] sm:$0xff] }
  0xee   :  { %10074 = vperm.xlu0 %16718, %v9863_v34  }
  0xf1   :  { %10079 = vperm.xlu1 %16719, %v9864_v39  }
  0xf2   :  { %10084 = vperm.xlu0 %16718, %v9865_v40  }
  0xf5   :  { %10089 = vperm.xlu1 %16719, %v9866_v48  }
  0xf6   :  { %10094 = vperm.xlu0 %16718, %v9867_v54   ;;  %v17585_v54 = vpop.permute.xlu1 %1503 }
  0xf7   :  { %v17545_v59 = vpop.f32.mrb[0].mxu0  ;;  %24314 = vst [vmem:[#allocation44_spill] sm:$0xff] %v17585_v54 }
  0xf8   :  { %v631_v0 = vsel %vm629_vm0, %v17545_v59, 0.0  ;;  %v808_v1 = vmul.f32 %v17545_v59, %v17545_v59  ;;  %v17554_v6 = vpop.f32.mrb[1].mxu0 }
  0xf9   :  { %v630_v8 = vsel %vm629_vm0, %v17554_v6, 0.0  ;;  %v807_v11 = vmul.f32 %v17554_v6, %v17554_v6  ;;  %10099 = vperm.xlu1 %16719, %v9868_v57  }
  0xfa   :  { %v894_v16 = vsel %vm629_vm0, %v808_v1, 0.0  ;;  %v632_v19 = vadd.f32 %v631_v0, %v630_v8  ;;  %10104 = vperm.xlu0 %16718, %v9869_v62   ;;  %v9873_v1 = vld [vmem:[%s24116_s8 + $0x150] sm:$0xff]  ;;  %v17595_v8 = vpop.permute.xlu0 %1673 }
  0xfb   :  { %v893_v25 = vsel %vm629_vm0, %v807_v11, 0.0  ;;  %v17569_v29 = vpop.f32.mrb[2].mxu0  ;;  %24315 = vst [vmem:[#allocation45_spill] sm:$0xff] %v17595_v8 }
  0xfc   :  { %v895_v34 = vadd.f32 %v894_v16, %v893_v25  ;;  %v17574_v39 = vpop.f32.mrb[3].mxu0  ;;  %v810_v40 = vmul.f32 %v17569_v29, %v17569_v29  ;;  %v635_v57 = vsel %vm629_vm0, %v17569_v29, 0.0 }
  0xfd   :  { %v633_v45 = vsel %vm629_vm0, %v17574_v39, 0.0  ;;  %v809_v47 = vmul.f32 %v17574_v39, %v17574_v39  ;;  %10109 = vperm.xlu1 %16719, %v9870_v23  }
  0xfe   :  { %v634_v48 = vadd.f32 %v633_v45, %v632_v19  ;;  %10114 = vperm.xlu0 %16718, %v9871_v32   ;;  %v898_v23 = vsel %vm629_vm0, %v810_v40, 0.0  ;;  %v17628_v15 = vpop.permute.xlu0 %1678 }
  0xff   :  { %v896_v62 = vsel %vm629_vm0, %v809_v47, 0.0  ;;  %v17590_v0 = vpop.f32.mrb[4].mxu0  ;;  %24317 = vst [vmem:[#allocation47_spill] sm:$0xff] %v17628_v15 }
 0x100   :  { %v636_v11 = vadd.f32 %v635_v57, %v634_v48  ;;  %v897_v16 = vadd.f32 %v896_v62, %v895_v34  ;;  %v17597_v19 = vpop.f32.mrb[5].mxu0  ;;  %v812_v25 = vmul.f32 %v17590_v0, %v17590_v0  ;;  %v9874_v34 = vld [vmem:[%s24116_s8 + $0x158] sm:$0xff]  ;;  %v639_v40 = vsel %vm629_vm0, %v17590_v0, 0.0  ;;  %v9875_v62 = vld [vmem:[%s24116_s8 + $0x160] sm:$0xff] }
 0x101   :  { %v637_v32 = vsel %vm629_vm0, %v17597_v19, 0.0  ;;  %v811_v45 = vmul.f32 %v17597_v19, %v17597_v19  ;;  %10119 = vperm.xlu1 %16719, %v9872_v49  }
 0x102   :  { %v899_v47 = vadd.f32 %v898_v23, %v897_v16  ;;  %v638_v41 = vadd.f32 %v637_v32, %v636_v11  ;;  %10124 = vperm.xlu0 %16718, %v9873_v1   ;;  %v17619_v1 = vpop.permute.xlu1 %1508  ;;  %v902_v11 = vsel %vm629_vm0, %v812_v25, 0.0 }
 0x103   :  { %v900_v48 = vsel %vm629_vm0, %v811_v45, 0.0  ;;  %v17612_v57 = vpop.f32.mrb[6].mxu0  ;;  %24316 = vst [vmem:[#allocation46_spill] sm:$0xff] %v17619_v1 }
 0x104   :  { %v640_v8 = vadd.f32 %v639_v40, %v638_v41  ;;  %v901_v49 = vadd.f32 %v900_v48, %v899_v47  ;;  %v17617_v16 = vpop.f32.mrb[7].mxu0  ;;  %v814_v23 = vmul.f32 %v17612_v57, %v17612_v57  ;;  %v9876_v40 = vld [vmem:[%s24116_s8 + $0x168] sm:$0xff]  ;;  %v643_v25 = vsel %vm629_vm0, %v17612_v57, 0.0 }
 0x105   :  { %v641_v32 = vsel %vm629_vm0, %v17617_v16, 0.0  ;;  %v813_v45 = vmul.f32 %v17617_v16, %v17617_v16  ;;  %10129 = vperm.xlu1 %16719, %v9874_v34   ;;  %v9877_v34 = vld [vmem:[%s24116_s8 + $0x170] sm:$0xff] }
 0x106   :  { %v903_v41 = vadd.f32 %v902_v11, %v901_v49  ;;  %v642_v47 = vadd.f32 %v641_v32, %v640_v8  ;;  %10134 = vperm.xlu0 %16718, %v9875_v62   ;;  %v906_v8 = vsel %vm629_vm0, %v814_v23, 0.0 }
 0x107   :  { %v904_v48 = vsel %vm629_vm0, %v813_v45, 0.0  ;;  %v17636_v56 = vpop.f32.mrb[8].mxu0 }
 0x108   :  { %v644_v38 = vadd.f32 %v643_v25, %v642_v47  ;;  %v905_v15 = vadd.f32 %v904_v48, %v903_v41  ;;  %v17641_v49 = vpop.f32.mrb[9].mxu0  ;;  %v816_v62 = vmul.f32 %v17636_v56, %v17636_v56  ;;  %v9878_v41 = vld [vmem:[%s24116_s8 + $0x178] sm:$0xff]  ;;  %v17653_v47 = vpop.permute.xlu1 %1513  ;;  %v647_v23 = vsel %vm629_vm0, %v17636_v56, 0.0 }
 0x109   :  { %v645_v11 = vsel %vm629_vm0, %v17641_v49, 0.0  ;;  %v815_v32 = vmul.f32 %v17641_v49, %v17641_v49  ;;  %10139 = vperm.xlu1 %16719, %v9876_v40   ;;  %24318 = vst [vmem:[#allocation48_spill] sm:$0xff] %v17653_v47  ;;  %v9879_v40 = vld [vmem:[%s24116_s8 + $0x180] sm:$0xff] }
 0x10a   :  { %v907_v45 = vadd.f32 %v906_v8, %v905_v15  ;;  %v646_v30 = vadd.f32 %v645_v11, %v644_v38  ;;  %10144 = vperm.xlu0 %16718, %v9877_v34   ;;  %v17663_v15 = vpop.permute.xlu0 %1683  ;;  %v910_v11 = vsel %vm629_vm0, %v816_v62, 0.0 }
 0x10b   :  { %v908_v25 = vsel %vm629_vm0, %v815_v32, 0.0  ;;  %v17658_v48 = vpop.f32.mrb[10].mxu0  ;;  %24319 = vst [vmem:[#allocation49_spill] sm:$0xff] %v17663_v15 }
 0x10c   :  { %v648_v38 = vadd.f32 %v647_v23, %v646_v30  ;;  %v909_v34 = vadd.f32 %v908_v25, %v907_v45  ;;  %v17665_v8 = vpop.f32.mrb[11].mxu0  ;;  %v818_v18 = vmul.f32 %v17658_v48, %v17658_v48  ;;  %v9880_v30 = vld [vmem:[%s24116_s8 + $0x188] sm:$0xff]  ;;  %v651_v62 = vsel %vm629_vm0, %v17658_v48, 0.0  ;;  %v9881_v25 = vld [vmem:[%s24116_s8 + $0x190] sm:$0xff] }
 0x10d   :  { %v649_v32 = vsel %vm629_vm0, %v17665_v8, 0.0  ;;  %v817_v14 = vmul.f32 %v17665_v8, %v17665_v8  ;;  %10149 = vperm.xlu1 %16719, %v9878_v41  }
 0x10e   :  { %v911_v4 = vadd.f32 %v910_v11, %v909_v34  ;;  %v650_v63 = vadd.f32 %v649_v32, %v648_v38  ;;  %10154 = vperm.xlu0 %16718, %v9879_v40   ;;  %v17687_v40 = vpop.permute.xlu1 %1518  ;;  %v914_v38 = vsel %vm629_vm0, %v818_v18, 0.0  ;;  %v17696_v55 = vpop.permute.xlu0 %1688 }
 0x10f   :  { %v912_v45 = vsel %vm629_vm0, %v817_v14, 0.0  ;;  %v17680_v23 = vpop.f32.mrb[12].mxu0  ;;  %24320 = vst [vmem:[#allocation50_spill] sm:$0xff] %v17687_v40  ;;  %24321 = vst [vmem:[#allocation51_spill] sm:$0xff] %v17696_v55 }
 0x110   :  { %v652_v15 = vadd.f32 %v651_v62, %v650_v63  ;;  %v913_v41 = vadd.f32 %v912_v45, %v911_v4  ;;  %v17685_v34 = vpop.f32.mrb[13].mxu0  ;;  %v820_v11 = vmul.f32 %v17680_v23, %v17680_v23  ;;  %v9882_v62 = vld [vmem:[%s24116_s8 + $0x198] sm:$0xff]  ;;  %v655_v18 = vsel %vm629_vm0, %v17680_v23, 0.0 }
 0x111   :  { %v653_v14 = vsel %vm629_vm0, %v17685_v34, 0.0  ;;  %v819_v32 = vmul.f32 %v17685_v34, %v17685_v34  ;;  %10159 = vperm.xlu1 %16719, %v9880_v30   ;;  %v9883_v30 = vld [vmem:[%s24116_s8 + $0x1a0] sm:$0xff] }
 0x112   :  { %v915_v63 = vadd.f32 %v914_v38, %v913_v41  ;;  %v654_v4 = vadd.f32 %v653_v14, %v652_v15  ;;  %10164 = vperm.xlu0 %16718, %v9881_v25   ;;  %v918_v15 = vsel %vm629_vm0, %v820_v11, 0.0 }
 0x113   :  { %v916_v45 = vsel %vm629_vm0, %v819_v32, 0.0  ;;  %v17704_v46 = vpop.f32.mrb[14].mxu0 }
 0x114   :  { %v656_v33 = vadd.f32 %v655_v18, %v654_v4  ;;  %v917_v55 = vadd.f32 %v916_v45, %v915_v63  ;;  %v17709_v41 = vpop.f32.mrb[15].mxu0  ;;  %v822_v25 = vmul.f32 %v17704_v46, %v17704_v46  ;;  %v9884_v63 = vld [vmem:[%s24116_s8 + $0x1a8] sm:$0xff]  ;;  %v17721_v4 = vpop.permute.xlu1 %1523  ;;  %v659_v11 = vsel %vm629_vm0, %v17704_v46, 0.0 }
 0x115   :  { %v657_v38 = vsel %vm629_vm0, %v17709_v41, 0.0  ;;  %v821_v14 = vmul.f32 %v17709_v41, %v17709_v41  ;;  %10169 = vperm.xlu1 %16719, %v9882_v62   ;;  %24322 = vst [vmem:[#allocation52_spill] sm:$0xff] %v17721_v4  ;;  %v9885_v62 = vld [vmem:[%s24116_s8 + $0x1b0] sm:$0xff] }
 0x116   :  { %v919_v32 = vadd.f32 %v918_v15, %v917_v55  ;;  %v658_v24 = vadd.f32 %v657_v38, %v656_v33  ;;  %10174 = vperm.xlu0 %16718, %v9883_v30   ;;  %v17731_v55 = vpop.permute.xlu0 %1693  ;;  %v922_v10 = vsel %vm629_vm0, %v822_v25, 0.0 }
 0x117   :  { %v920_v18 = vsel %vm629_vm0, %v821_v14, 0.0  ;;  %v17726_v45 = vpop.f32.mrb[16].mxu0  ;;  %24323 = vst [vmem:[#allocation53_spill] sm:$0xff] %v17731_v55 }
 0x118   :  { %v660_v33 = vadd.f32 %v659_v11, %v658_v24  ;;  %v921_v30 = vadd.f32 %v920_v18, %v919_v32  ;;  %v824_v15 = vmul.f32 %v17726_v45, %v17726_v45  ;;  %v17735_v38 = vpop.f32.mrb[17].mxu0  ;;  %v9886_v24 = vld [vmem:[%s24116_s8 + $0x1b8] sm:$0xff]  ;;  %v663_v32 = vsel %vm629_vm0, %v17726_v45, 0.0  ;;  %v9887_v18 = vld [vmem:[%s24116_s8 + $0x1c0] sm:$0xff] }
 0x119   :  { %v661_v14 = vsel %vm629_vm0, %v17735_v38, 0.0  ;;  %v823_v5 = vmul.f32 %v17735_v38, %v17735_v38  ;;  %10179 = vperm.xlu1 %16719, %v9884_v63  }
 0x11a   :  { %v923_v3 = vadd.f32 %v922_v10, %v921_v30  ;;  %v662_v60 = vadd.f32 %v661_v14, %v660_v33  ;;  %10184 = vperm.xlu0 %16718, %v9885_v62   ;;  %v926_v63 = vsel %vm629_vm0, %v824_v15, 0.0  ;;  %v11165_v30 = vld [vmem:[%s24117_s2 + $0x50] sm:$0xff]  ;;  %v17762_v14 = vpop.permute.xlu1 %1528 }
 0x11b   :  { %v924_v11 = vsel %vm629_vm0, %v823_v5, 0.0  ;;  %v17748_v25 = vpop.f32.mrb[18].mxu0  ;;  %v11166_v5 = vld [vmem:[%s24117_s2 + $0x58] sm:$0xff]  ;;  %24324 = vst [vmem:[#allocation54_spill] sm:$0xff] %v17762_v14 }
 0x11c   :  { %v664_v10 = vadd.f32 %v663_v32, %v662_v60  ;;  %v925_v33 = vadd.f32 %v924_v11, %v923_v3  ;;  %v17754_v62 = vpop.f32.mrb[19].mxu0  ;;  %v826_v55 = vmul.f32 %v17748_v25, %v17748_v25  ;;  %v15387_v3 = vpack.c.bf16 %v11166_v5, %v11165_v30  ;;  %v17770_v32 = vpop.permute.xlu0 %1698 }
 0x11d   :  { %v665_v15 = vsel %vm629_vm0, %v17754_v62, 0.0  ;;  %v825_v60 = vmul.f32 %v17754_v62, %v17754_v62  ;;  %10189 = vperm.xlu1 %16719, %v9886_v24   ;;  %24325 = vst [vmem:[#allocation55_spill] sm:$0xff] %v17770_v32  ;;  %v667_v51 = vsel %vm629_vm0, %v17748_v25, 0.0  ;;  %v9889_v24 = vld [vmem:[%s24116_s8 + $0x1d0] sm:$0xff] }
 0x11e   :  { %v927_v11 = vadd.f32 %v926_v63, %v925_v33  ;;  %v666_v58 = vadd.f32 %v665_v15, %v664_v10  ;;  %10194 = vperm.xlu0 %16718, %v9887_v18   ;;  %15388 = vmatpush3.bf16.msra.mxu0 %v15387_v3  ;;  %v24326_v18 = vmov 0.0|0.0   ;;  %v930_v33 = vsel %vm629_vm0, %v826_v55, 0.0 }
 0x11f   :  { %v928_v44 = vsel %vm629_vm0, %v825_v60, 0.0  ;;  %v17778_v42 = vpop.f32.mrb[20].mxu0  ;;  %15389 = vmatprep.subr.bf16.mxu0 %v24326_v18 }
 0x120   :  { %v668_v30 = vadd.f32 %v667_v51, %v666_v58  ;;  %v929_v63 = vadd.f32 %v928_v44, %v927_v11  ;;  %v17783_v10 = vpop.f32.mrb[21].mxu0  ;;  %v828_v5 = vmul.f32 %v17778_v42, %v17778_v42  ;;  %v9890_v44 = vld [vmem:[%s24116_s8 + $0x1d8] sm:$0xff]  ;;  %v17796_v51 = vpop.permute.xlu1 %1703  ;;  %v671_v58 = vsel %vm629_vm0, %v17778_v42, 0.0 }
 0x121   :  { %v669_v15 = vsel %vm629_vm0, %v17783_v10, 0.0  ;;  %v827_v60 = vmul.f32 %v17783_v10, %v17783_v10  ;;  %10199 = vperm.xlu1 %16719, %v9888_v53   ;;  %24327 = vst [vmem:[#allocation56_spill] sm:$0xff] %v17796_v51  ;;  %v9891_v53 = vld [vmem:[%s24116_s8 + $0x1e0] sm:$0xff] }
 0x122   :  { %v931_v32 = vadd.f32 %v930_v33, %v929_v63  ;;  %v670_v3 = vadd.f32 %v669_v15, %v668_v30  ;;  %10204 = vperm.xlu0 %16718, %v9889_v24   ;;  %v17806_v63 = vpop.permute.xlu0 %1708  ;;  %v934_v15 = vsel %vm629_vm0, %v828_v5, 0.0 }
 0x123   :  { %v932_v55 = vsel %vm629_vm0, %v827_v60, 0.0  ;;  %v17801_v11 = vpop.f32.mrb[22].mxu0  ;;  %24328 = vst [vmem:[#allocation57_spill] sm:$0xff] %v17806_v63 }
 0x124   :  { %v672_v24 = vadd.f32 %v671_v58, %v670_v3  ;;  %v933_v30 = vadd.f32 %v932_v55, %v931_v32  ;;  %v17808_v33 = vpop.f32.mrb[23].mxu0  ;;  %v830_v51 = vmul.f32 %v17801_v11, %v17801_v11  ;;  %v9892_v32 = vld [vmem:[%s24116_s8 + $0x1e8] sm:$0xff]  ;;  %v675_v5 = vsel %vm629_vm0, %v17801_v11, 0.0  ;;  %v9893_v55 = vld [vmem:[%s24116_s8 + $0x1f0] sm:$0xff] }
 0x125   :  { %v673_v60 = vsel %vm629_vm0, %v17808_v33, 0.0  ;;  %v829_v37 = vmul.f32 %v17808_v33, %v17808_v33  ;;  %10209 = vperm.xlu1 %16719, %v9890_v44  }
 0x126   :  { %v935_v35 = vadd.f32 %v934_v15, %v933_v30  ;;  %v674_v28 = vadd.f32 %v673_v60, %v672_v24  ;;  %10214 = vperm.xlu0 %16718, %v9891_v53   ;;  %v17830_v53 = vpop.permute.xlu1 %1713  ;;  %v938_v24 = vsel %vm629_vm0, %v830_v51, 0.0  ;;  %v17839_v27 = vpop.permute.xlu0 %1718 }
 0x127   :  { %v936_v3 = vsel %vm629_vm0, %v829_v37, 0.0  ;;  %v17823_v58 = vpop.f32.mrb[24].mxu0  ;;  %24329 = vst [vmem:[#allocation58_spill] sm:$0xff] %v17830_v53  ;;  %24330 = vst [vmem:[#allocation59_spill] sm:$0xff] %v17839_v27 }
 0x128   :  { %v676_v63 = vadd.f32 %v675_v5, %v674_v28  ;;  %v937_v44 = vadd.f32 %v936_v3, %v935_v35  ;;  %v17828_v30 = vpop.f32.mrb[25].mxu0  ;;  %v832_v15 = vmul.f32 %v17823_v58, %v17823_v58  ;;  %v9894_v5 = vld [vmem:[%s24116_s8 + $0x1f8] sm:$0xff]  ;;  %v679_v51 = vsel %vm629_vm0, %v17823_v58, 0.0 }
 0x129   :  { %v677_v37 = vsel %vm629_vm0, %v17828_v30, 0.0  ;;  %v831_v60 = vmul.f32 %v17828_v30, %v17828_v30  ;;  %10219 = vperm.xlu1 %16719, %v9892_v32   ;;  %v9895_v32 = vld [vmem:[%s24116_s8 + $0x200] sm:$0xff] }
 0x12a   :  { %v939_v28 = vadd.f32 %v938_v24, %v937_v44  ;;  %v678_v35 = vadd.f32 %v677_v37, %v676_v63  ;;  %10224 = vperm.xlu0 %16718, %v9893_v55   ;;  %v942_v63 = vsel %vm629_vm0, %v832_v15, 0.0 }
 0x12b   :  { %v940_v3 = vsel %vm629_vm0, %v831_v60, 0.0  ;;  %v17847_v53 = vpop.f32.mrb[26].mxu0 }
 0x12c   :  { %v680_v20 = vadd.f32 %v679_v51, %v678_v35  ;;  %v941_v27 = vadd.f32 %v940_v3, %v939_v28  ;;  %v17852_v44 = vpop.f32.mrb[27].mxu0  ;;  %v834_v55 = vmul.f32 %v17847_v53, %v17847_v53  ;;  %v9896_v28 = vld [vmem:[%s24116_s8 + $0x208] sm:$0xff]  ;;  %v17864_v35 = vpop.permute.xlu1 %1723  ;;  %v683_v15 = vsel %vm629_vm0, %v17847_v53, 0.0 }
 0x12d   :  { %v681_v24 = vsel %vm629_vm0, %v17852_v44, 0.0  ;;  %v833_v37 = vmul.f32 %v17852_v44, %v17852_v44  ;;  %10229 = vperm.xlu1 %16719, %v9894_v5   ;;  %24331 = vst [vmem:[#allocation60_spill] sm:$0xff] %v17864_v35  ;;  %v9897_v5 = vld [vmem:[%s24116_s8 + $0x210] sm:$0xff] }
 0x12e   :  { %v943_v60 = vadd.f32 %v942_v63, %v941_v27  ;;  %v682_v21 = vadd.f32 %v681_v24, %v680_v20  ;;  %10234 = vperm.xlu0 %16718, %v9895_v32   ;;  %v17874_v27 = vpop.permute.xlu0 %1728  ;;  %v946_v24 = vsel %vm629_vm0, %v834_v55, 0.0 }
 0x12f   :  { %v944_v51 = vsel %vm629_vm0, %v833_v37, 0.0  ;;  %v17869_v3 = vpop.f32.mrb[28].mxu0  ;;  %24332 = vst [vmem:[#allocation61_spill] sm:$0xff] %v17874_v27 }
 0x130   :  { %v945_v20 = vadd.f32 %v944_v51, %v943_v60  ;;  %v17876_v32 = vpop.f32.mrb[29].mxu0  ;;  %v684_v63 = vadd.f32 %v683_v15, %v682_v21  ;;  %v836_v35 = vmul.f32 %v17869_v3, %v17869_v3  ;;  %v9898_v60 = vld [vmem:[%s24116_s8 + $0x218] sm:$0xff]  ;;  %v687_v21 = vsel %vm629_vm0, %v17869_v3, 0.0  ;;  %v9899_v51 = vld [vmem:[%s24116_s8 + $0x220] sm:$0xff] }
 0x131   :  { %v685_v37 = vsel %vm629_vm0, %v17876_v32, 0.0  ;;  %v835_v12 = vmul.f32 %v17876_v32, %v17876_v32  ;;  %10239 = vperm.xlu1 %16719, %v9896_v28  }
 0x132   :  { %v686_v14 = vadd.f32 %v685_v37, %v684_v63  ;;  %v947_v4 = vadd.f32 %v946_v24, %v945_v20  ;;  %10244 = vperm.xlu0 %16718, %v9897_v5   ;;  %v17898_v5 = vpop.permute.xlu1 %1733  ;;  %v950_v63 = vsel %vm629_vm0, %v836_v35, 0.0  ;;  %v17907_v40 = vpop.permute.xlu0 %1738 }
 0x133   :  { %v948_v55 = vsel %vm629_vm0, %v835_v12, 0.0  ;;  %v17891_v15 = vpop.f32.mrb[30].mxu0  ;;  %24333 = vst [vmem:[#allocation62_spill] sm:$0xff] %v17898_v5  ;;  %24334 = vst [vmem:[#allocation63_spill] sm:$0xff] %v17907_v40 }
 0x134   :  { %v949_v27 = vadd.f32 %v948_v55, %v947_v4  ;;  %v17896_v28 = vpop.f32.mrb[31].mxu0  ;;  %v688_v20 = vadd.f32 %v687_v21, %v686_v14  ;;  %v838_v24 = vmul.f32 %v17891_v15, %v17891_v15  ;;  %v9900_v14 = vld [vmem:[%s24116_s8 + $0x228] sm:$0xff]  ;;  %v691_v35 = vsel %vm629_vm0, %v17891_v15, 0.0 }
 0x135   :  { %v689_v12 = vsel %vm629_vm0, %v17896_v28, 0.0  ;;  %v837_v37 = vmul.f32 %v17896_v28, %v17896_v28  ;;  %10249 = vperm.xlu1 %16719, %v9898_v60   ;;  %v9901_v60 = vld [vmem:[%s24116_s8 + $0x230] sm:$0xff] }
 0x136   :  { %v690_v4 = vadd.f32 %v689_v12, %v688_v20  ;;  %v951_v55 = vadd.f32 %v950_v63, %v949_v27  ;;  %10254 = vperm.xlu0 %16718, %v9899_v51   ;;  %v954_v51 = vsel %vm629_vm0, %v838_v24, 0.0 }
 0x137   :  { %v952_v21 = vsel %vm629_vm0, %v837_v37, 0.0  ;;  %v17915_v5 = vpop.f32.mrb[32].mxu0 }
 0x138   :  { %v953_v47 = vadd.f32 %v952_v21, %v951_v55  ;;  %v17920_v40 = vpop.f32.mrb[33].mxu0  ;;  %v692_v27 = vadd.f32 %v691_v35, %v690_v4  ;;  %v840_v20 = vmul.f32 %v17915_v5, %v17915_v5  ;;  %v9902_v55 = vld [vmem:[%s24116_s8 + $0x238] sm:$0xff]  ;;  %v17932_v4 = vpop.permute.xlu1 %1743  ;;  %v695_v24 = vsel %vm629_vm0, %v17915_v5, 0.0 }
 0x139   :  { %v693_v63 = vsel %vm629_vm0, %v17920_v40, 0.0  ;;  %v839_v12 = vmul.f32 %v17920_v40, %v17920_v40  ;;  %10259 = vperm.xlu1 %16719, %v9900_v14   ;;  %24335 = vst [vmem:[#allocation64_spill] sm:$0xff] %v17932_v4  ;;  %v9903_v14 = vld [vmem:[%s24116_s8 + $0x240] sm:$0xff] }
 0x13a   :  { %v694_v37 = vadd.f32 %v693_v63, %v692_v27  ;;  %v955_v1 = vadd.f32 %v954_v51, %v953_v47  ;;  %10264 = vperm.xlu0 %16718, %v9901_v60   ;;  %v17942_v27 = vpop.permute.xlu0 %1748  ;;  %v958_v63 = vsel %vm629_vm0, %v840_v20, 0.0 }
 0x13b   :  { %v956_v35 = vsel %vm629_vm0, %v839_v12, 0.0  ;;  %v17937_v21 = vpop.f32.mrb[34].mxu0  ;;  %24336 = vst [vmem:[#allocation65_spill] sm:$0xff] %v17942_v27 }
 0x13c   :  { %v957_v47 = vadd.f32 %v956_v35, %v955_v1  ;;  %v17944_v60 = vpop.f32.mrb[35].mxu0  ;;  %v696_v51 = vadd.f32 %v695_v24, %v694_v37  ;;  %v842_v4 = vmul.f32 %v17937_v21, %v17937_v21  ;;  %v9904_v1 = vld [vmem:[%s24116_s8 + $0x248] sm:$0xff]  ;;  %v699_v20 = vsel %vm629_vm0, %v17937_v21, 0.0  ;;  %v9905_v35 = vld [vmem:[%s24116_s8 + $0x250] sm:$0xff] }
 0x13d   :  { %v697_v12 = vsel %vm629_vm0, %v17944_v60, 0.0  ;;  %v841_v54 = vmul.f32 %v17944_v60, %v17944_v60  ;;  %10269 = vperm.xlu1 %16719, %v9902_v55  }
 0x13e   :  { %v698_v7 = vadd.f32 %v697_v12, %v696_v51  ;;  %v959_v50 = vadd.f32 %v958_v63, %v957_v47  ;;  %10274 = vperm.xlu0 %16718, %v9903_v14   ;;  %v17966_v14 = vpop.permute.xlu1 %1753  ;;  %v962_v51 = vsel %vm629_vm0, %v842_v4, 0.0  ;;  %v17975_v36 = vpop.permute.xlu0 %1758 }
 0x13f   :  { %v960_v37 = vsel %vm629_vm0, %v841_v54, 0.0  ;;  %v17959_v24 = vpop.f32.mrb[36].mxu0  ;;  %24337 = vst [vmem:[#allocation66_spill] sm:$0xff] %v17966_v14  ;;  %24338 = vst [vmem:[#allocation67_spill] sm:$0xff] %v17975_v36 }
 0x140   :  { %v961_v27 = vadd.f32 %v960_v37, %v959_v50  ;;  %v17964_v55 = vpop.f32.mrb[37].mxu0  ;;  %v700_v47 = vadd.f32 %v699_v20, %v698_v7  ;;  %v844_v63 = vmul.f32 %v17959_v24, %v17959_v24  ;;  %v9906_v7 = vld [vmem:[%s24116_s8 + $0x258] sm:$0xff]  ;;  %v703_v4 = vsel %vm629_vm0, %v17959_v24, 0.0 }
 0x141   :  { %v701_v54 = vsel %vm629_vm0, %v17964_v55, 0.0  ;;  %v843_v12 = vmul.f32 %v17964_v55, %v17964_v55  ;;  %10279 = vperm.xlu1 %16719, %v9904_v1   ;;  %v9907_v1 = vld [vmem:[%s24116_s8 + $0x260] sm:$0xff] }
 0x142   :  { %v702_v50 = vadd.f32 %v701_v54, %v700_v47  ;;  %v963_v37 = vadd.f32 %v962_v51, %v961_v27  ;;  %10284 = vperm.xlu0 %16718, %v9905_v35   ;;  %v966_v35 = vsel %vm629_vm0, %v844_v63, 0.0 }
 0x143   :  { %v964_v20 = vsel %vm629_vm0, %v843_v12, 0.0  ;;  %v17983_v14 = vpop.f32.mrb[38].mxu0 }
 0x144   :  { %v965_v26 = vadd.f32 %v964_v20, %v963_v37  ;;  %v17988_v36 = vpop.f32.mrb[39].mxu0  ;;  %v704_v27 = vadd.f32 %v703_v4, %v702_v50  ;;  %v846_v47 = vmul.f32 %v17983_v14, %v17983_v14  ;;  %v9908_v37 = vld [vmem:[%s24116_s8 + $0x268] sm:$0xff]  ;;  %v18000_v50 = vpop.permute.xlu1 %1763  ;;  %v707_v63 = vsel %vm629_vm0, %v17983_v14, 0.0 }
 0x145   :  { %v705_v51 = vsel %vm629_vm0, %v17988_v36, 0.0  ;;  %v845_v54 = vmul.f32 %v17988_v36, %v17988_v36  ;;  %10289 = vperm.xlu1 %16719, %v9906_v7   ;;  %24339 = vst [vmem:[#allocation68_spill] sm:$0xff] %v18000_v50  ;;  %v9909_v7 = vld [vmem:[%s24116_s8 + $0x270] sm:$0xff] }
 0x146   :  { %v706_v12 = vadd.f32 %v705_v51, %v704_v27  ;;  %v967_v17 = vadd.f32 %v966_v35, %v965_v26  ;;  %10294 = vperm.xlu0 %16718, %v9907_v1   ;;  %v18010_v27 = vpop.permute.xlu0 %1768  ;;  %v970_v51 = vsel %vm629_vm0, %v846_v47, 0.0 }
 0x147   :  { %v968_v4 = vsel %vm629_vm0, %v845_v54, 0.0  ;;  %v18005_v20 = vpop.f32.mrb[40].mxu0  ;;  %24340 = vst [vmem:[#allocation69_spill] sm:$0xff] %v18010_v27 }
 0x148   :  { %v969_v26 = vadd.f32 %v968_v4, %v967_v17  ;;  %v18012_v1 = vpop.f32.mrb[41].mxu0  ;;  %v708_v35 = vadd.f32 %v707_v63, %v706_v12  ;;  %v848_v50 = vmul.f32 %v18005_v20, %v18005_v20  ;;  %v9910_v17 = vld [vmem:[%s24116_s8 + $0x278] sm:$0xff]  ;;  %v711_v47 = vsel %vm629_vm0, %v18005_v20, 0.0  ;;  %v9911_v4 = vld [vmem:[%s24116_s8 + $0x280] sm:$0xff] }
 0x149   :  { %v709_v54 = vsel %vm629_vm0, %v18012_v1, 0.0  ;;  %v847_v9 = vmul.f32 %v18012_v1, %v18012_v1  ;;  %10299 = vperm.xlu1 %16719, %v9908_v37  }
 0x14a   :  { %v710_v2 = vadd.f32 %v709_v54, %v708_v35  ;;  %v971_v61 = vadd.f32 %v970_v51, %v969_v26  ;;  %10304 = vperm.xlu0 %16718, %v9909_v7   ;;  %v18034_v7 = vpop.permute.xlu1 %1773  ;;  %v974_v35 = vsel %vm629_vm0, %v848_v50, 0.0  ;;  %v18043_v52 = vpop.permute.xlu0 %1778 }
 0x14b   :  { %v972_v12 = vsel %vm629_vm0, %v847_v9, 0.0  ;;  %v18027_v63 = vpop.f32.mrb[42].mxu0  ;;  %24343 = vst [vmem:[#allocation72_spill] sm:$0xff] %v18034_v7  ;;  %24344 = vst [vmem:[#allocation73_spill] sm:$0xff] %v18043_v52 }
 0x14c   :  { %24341 = vst [vmem:[#allocation70_spill] sm:$0xff] %v18027_v63  ;;  %v973_v27 = vadd.f32 %v972_v12, %v971_v61  ;;  %v18032_v37 = vpop.f32.mrb[43].mxu0  ;;  %v712_v26 = vadd.f32 %v711_v47, %v710_v2  ;;  %v850_v51 = vmul.f32 %v18027_v63, %v18027_v63  ;;  %v715_v2 = vsel %vm629_vm0, %v18027_v63, 0.0  ;;  %v11518_v63 = vld [vmem:[%s24117_s2 + $0x138] sm:$0xff] }
 0x14d   :  { %24342 = vst [vmem:[#allocation71_spill] sm:$0xff] %v18032_v37  ;;  %v713_v9 = vsel %vm629_vm0, %v18032_v37, 0.0  ;;  %v849_v54 = vmul.f32 %v18032_v37, %v18032_v37  ;;  %10309 = vperm.xlu1 %16719, %v9910_v17  }
 0x14e   :  { %v714_v61 = vadd.f32 %v713_v9, %v712_v26  ;;  %v975_v12 = vadd.f32 %v974_v35, %v973_v27  ;;  %10314 = vperm.xlu0 %16718, %v9911_v4   ;;  %v978_v22 = vsel %vm629_vm0, %v850_v51, 0.0 }
 0x14f   :  { %v976_v50 = vsel %vm629_vm0, %v849_v54, 0.0  ;;  %v18048_v47 = vpop.f32.mrb[44].mxu0 }
 0x150   :  { %24345 = vst [vmem:[#allocation74_spill] sm:$0xff] %v18048_v47  ;;  %v977_v7 = vadd.f32 %v976_v50, %v975_v12  ;;  %v18050_v43 = vpop.f32.mrb[45].mxu0  ;;  %v716_v31 = vadd.f32 %v715_v2, %v714_v61  ;;  %v852_v17 = vmul.f32 %v18048_v47, %v18048_v47  ;;  %v719_v9 = vsel %vm629_vm0, %v18048_v47, 0.0 }
 0x151   :  { %24346 = vst [vmem:[#allocation75_spill] sm:$0xff] %v18050_v43  ;;  %v717_v27 = vsel %vm629_vm0, %v18050_v43, 0.0  ;;  %v851_v4 = vmul.f32 %v18050_v43, %v18050_v43 }
 0x152   :  { %v718_v26 = vadd.f32 %v717_v27, %v716_v31  ;;  %v979_v35 = vadd.f32 %v978_v22, %v977_v7  ;;  %v982_v50 = vsel %vm629_vm0, %v852_v17, 0.0 }
 0x153   :  { %v980_v54 = vsel %vm629_vm0, %v851_v4, 0.0  ;;  %v18062_v12 = vpop.f32.mrb[46].mxu0 }
 0x154   :  { %24347 = vst [vmem:[#allocation76_spill] sm:$0xff] %v18062_v12  ;;  %v981_v61 = vadd.f32 %v980_v54, %v979_v35  ;;  %v18064_v51 = vpop.f32.mrb[47].mxu0  ;;  %v720_v2 = vadd.f32 %v719_v9, %v718_v26  ;;  %v854_v52 = vmul.f32 %v18062_v12, %v18062_v12  ;;  %v723_v4 = vsel %vm629_vm0, %v18062_v12, 0.0 }
 0x155   :  { %24348 = vst [vmem:[#allocation77_spill] sm:$0xff] %v18064_v51  ;;  %v721_v31 = vsel %vm629_vm0, %v18064_v51, 0.0  ;;  %v853_v22 = vmul.f32 %v18064_v51, %v18064_v51 }
 0x156   :  { %v722_v7 = vadd.f32 %v721_v31, %v720_v2  ;;  %v983_v27 = vadd.f32 %v982_v50, %v981_v61  ;;  %v986_v13 = vsel %vm629_vm0, %v854_v52, 0.0 }
 0x157   :  { %v984_v35 = vsel %vm629_vm0, %v853_v22, 0.0  ;;  %v18076_v54 = vpop.f32.mrb[48].mxu0 }
 0x158   :  { %24349 = vst [vmem:[#allocation78_spill] sm:$0xff] %v18076_v54  ;;  %v985_v26 = vadd.f32 %v984_v35, %v983_v27  ;;  %v18078_v17 = vpop.f32.mrb[49].mxu0  ;;  %v724_v9 = vadd.f32 %v723_v4, %v722_v7  ;;  %v856_v47 = vmul.f32 %v18076_v54, %v18076_v54  ;;  %v727_v22 = vsel %vm629_vm0, %v18076_v54, 0.0 }
 0x159   :  { %24350 = vst [vmem:[#allocation79_spill] sm:$0xff] %v18078_v17  ;;  %v725_v2 = vsel %vm629_vm0, %v18078_v17, 0.0  ;;  %v855_v61 = vmul.f32 %v18078_v17, %v18078_v17 }
 0x15a   :  { %v726_v50 = vadd.f32 %v725_v2, %v724_v9  ;;  %v987_v31 = vadd.f32 %v986_v13, %v985_v26  ;;  %v990_v12 = vsel %vm629_vm0, %v856_v47, 0.0 }
 0x15b   :  { %v988_v27 = vsel %vm629_vm0, %v855_v61, 0.0  ;;  %v18090_v35 = vpop.f32.mrb[50].mxu0 }
 0x15c   :  { %24351 = vst [vmem:[#allocation80_spill] sm:$0xff] %v18090_v35  ;;  %v989_v7 = vadd.f32 %v988_v27, %v987_v31  ;;  %v18092_v52 = vpop.f32.mrb[51].mxu0  ;;  %v728_v4 = vadd.f32 %v727_v22, %v726_v50  ;;  %v858_v51 = vmul.f32 %v18090_v35, %v18090_v35  ;;  %v731_v61 = vsel %vm629_vm0, %v18090_v35, 0.0 }
 0x15d   :  { %24352 = vst [vmem:[#allocation81_spill] sm:$0xff] %v18092_v52  ;;  %v729_v9 = vsel %vm629_vm0, %v18092_v52, 0.0  ;;  %v857_v13 = vmul.f32 %v18092_v52, %v18092_v52 }
 0x15e   :  { %v730_v26 = vadd.f32 %v729_v9, %v728_v4  ;;  %v991_v2 = vadd.f32 %v990_v12, %v989_v7  ;;  %v994_v54 = vsel %vm629_vm0, %v858_v51, 0.0 }
 0x15f   :  { %v992_v31 = vsel %vm629_vm0, %v857_v13, 0.0  ;;  %v18104_v27 = vpop.f32.mrb[52].mxu0 }
 0x160   :  { %24353 = vst [vmem:[#allocation82_spill] sm:$0xff] %v18104_v27  ;;  %v993_v50 = vadd.f32 %v992_v31, %v991_v2  ;;  %v18106_v47 = vpop.f32.mrb[53].mxu0  ;;  %v732_v22 = vadd.f32 %v731_v61, %v730_v26  ;;  %v860_v17 = vmul.f32 %v18104_v27, %v18104_v27  ;;  %v735_v13 = vsel %vm629_vm0, %v18104_v27, 0.0 }
 0x161   :  { %24354 = vst [vmem:[#allocation83_spill] sm:$0xff] %v18106_v47  ;;  %v733_v4 = vsel %vm629_vm0, %v18106_v47, 0.0  ;;  %v859_v12 = vmul.f32 %v18106_v47, %v18106_v47 }
 0x162   :  { %v734_v7 = vadd.f32 %v733_v4, %v732_v22  ;;  %v995_v9 = vadd.f32 %v994_v54, %v993_v50  ;;  %v998_v35 = vsel %vm629_vm0, %v860_v17, 0.0 }
 0x163   :  { %v996_v2 = vsel %vm629_vm0, %v859_v12, 0.0  ;;  %v18118_v31 = vpop.f32.mrb[54].mxu0 }
 0x164   :  { %24355 = vst [vmem:[#allocation84_spill] sm:$0xff] %v18118_v31  ;;  %v997_v26 = vadd.f32 %v996_v2, %v995_v9  ;;  %v18120_v51 = vpop.f32.mrb[55].mxu0  ;;  %v736_v61 = vadd.f32 %v735_v13, %v734_v7  ;;  %v862_v52 = vmul.f32 %v18118_v31, %v18118_v31  ;;  %v739_v12 = vsel %vm629_vm0, %v18118_v31, 0.0 }
 0x165   :  { %24356 = vst [vmem:[#allocation85_spill] sm:$0xff] %v18120_v51  ;;  %v737_v22 = vsel %vm629_vm0, %v18120_v51, 0.0  ;;  %v861_v54 = vmul.f32 %v18120_v51, %v18120_v51 }
 0x166   :  { %v738_v50 = vadd.f32 %v737_v22, %v736_v61  ;;  %v999_v4 = vadd.f32 %v998_v35, %v997_v26  ;;  %v1002_v27 = vsel %vm629_vm0, %v862_v52, 0.0 }
 0x167   :  { %v1000_v9 = vsel %vm629_vm0, %v861_v54, 0.0  ;;  %v18132_v2 = vpop.f32.mrb[56].mxu0 }
 0x168   :  { %24357 = vst [vmem:[#allocation86_spill] sm:$0xff] %v18132_v2  ;;  %v1001_v7 = vadd.f32 %v1000_v9, %v999_v4  ;;  %v18134_v17 = vpop.f32.mrb[57].mxu0  ;;  %v740_v13 = vadd.f32 %v739_v12, %v738_v50  ;;  %v864_v47 = vmul.f32 %v18132_v2, %v18132_v2  ;;  %v743_v54 = vsel %vm629_vm0, %v18132_v2, 0.0 }
 0x169   :  { %24358 = vst [vmem:[#allocation87_spill] sm:$0xff] %v18134_v17  ;;  %v741_v61 = vsel %vm629_vm0, %v18134_v17, 0.0  ;;  %v863_v35 = vmul.f32 %v18134_v17, %v18134_v17 }
 0x16a   :  { %v742_v26 = vadd.f32 %v741_v61, %v740_v13  ;;  %v1003_v22 = vadd.f32 %v1002_v27, %v1001_v7  ;;  %v1006_v31 = vsel %vm629_vm0, %v864_v47, 0.0 }
 0x16b   :  { %v1004_v4 = vsel %vm629_vm0, %v863_v35, 0.0  ;;  %v18146_v9 = vpop.f32.mrb[58].mxu0 }
 0x16c   :  { %24359 = vst [vmem:[#allocation88_spill] sm:$0xff] %v18146_v9  ;;  %v1005_v50 = vadd.f32 %v1004_v4, %v1003_v22  ;;  %v18148_v52 = vpop.f32.mrb[59].mxu0  ;;  %v744_v12 = vadd.f32 %v743_v54, %v742_v26  ;;  %v866_v51 = vmul.f32 %v18146_v9, %v18146_v9  ;;  %v747_v35 = vsel %vm629_vm0, %v18146_v9, 0.0 }
 0x16d   :  { %24360 = vst [vmem:[#allocation89_spill] sm:$0xff] %v18148_v52  ;;  %v745_v13 = vsel %vm629_vm0, %v18148_v52, 0.0  ;;  %v865_v27 = vmul.f32 %v18148_v52, %v18148_v52 }
 0x16e   :  { %v746_v7 = vadd.f32 %v745_v13, %v744_v12  ;;  %v1007_v61 = vadd.f32 %v1006_v31, %v1005_v50  ;;  %v1010_v2 = vsel %vm629_vm0, %v866_v51, 0.0 }
 0x16f   :  { %v1008_v22 = vsel %vm629_vm0, %v865_v27, 0.0  ;;  %v18160_v4 = vpop.f32.mrb[60].mxu0 }
 0x170   :  { %24361 = vst [vmem:[#allocation90_spill] sm:$0xff] %v18160_v4  ;;  %v1009_v26 = vadd.f32 %v1008_v22, %v1007_v61  ;;  %v18162_v47 = vpop.f32.mrb[61].mxu0  ;;  %v748_v54 = vadd.f32 %v747_v35, %v746_v7  ;;  %v868_v17 = vmul.f32 %v18160_v4, %v18160_v4  ;;  %v751_v27 = vsel %vm629_vm0, %v18160_v4, 0.0 }
 0x171   :  { %24362 = vst [vmem:[#allocation91_spill] sm:$0xff] %v18162_v47  ;;  %v749_v12 = vsel %vm629_vm0, %v18162_v47, 0.0  ;;  %v867_v31 = vmul.f32 %v18162_v47, %v18162_v47 }
 0x172   :  { %v750_v50 = vadd.f32 %v749_v12, %v748_v54  ;;  %v1011_v13 = vadd.f32 %v1010_v2, %v1009_v26  ;;  %v1014_v9 = vsel %vm629_vm0, %v868_v17, 0.0 }
 0x173   :  { %v1012_v61 = vsel %vm629_vm0, %v867_v31, 0.0  ;;  %v18174_v22 = vpop.f32.mrb[62].mxu0 }
 0x174   :  { %24363 = vst [vmem:[#allocation92_spill] sm:$0xff] %v18174_v22  ;;  %v1013_v7 = vadd.f32 %v1012_v61, %v1011_v13  ;;  %v18176_v51 = vpop.f32.mrb[63].mxu0  ;;  %v752_v35 = vadd.f32 %v751_v27, %v750_v50  ;;  %v870_v52 = vmul.f32 %v18174_v22, %v18174_v22  ;;  %v755_v31 = vsel %vm629_vm0, %v18174_v22, 0.0 }
 0x175   :  { %24364 = vst [vmem:[#allocation93_spill] sm:$0xff] %v18176_v51  ;;  %v753_v54 = vsel %vm629_vm0, %v18176_v51, 0.0  ;;  %v869_v2 = vmul.f32 %v18176_v51, %v18176_v51 }
 0x176   :  { %v754_v26 = vadd.f32 %v753_v54, %v752_v35  ;;  %v1015_v12 = vadd.f32 %v1014_v9, %v1013_v7  ;;  %v1018_v4 = vsel %vm629_vm0, %v870_v52, 0.0 }
 0x177   :  { %v1016_v13 = vsel %vm629_vm0, %v869_v2, 0.0  ;;  %v18188_v61 = vpop.f32.mrb[64].mxu0 }
 0x178   :  { %24365 = vst [vmem:[#allocation94_spill] sm:$0xff] %v18188_v61  ;;  %v1017_v50 = vadd.f32 %v1016_v13, %v1015_v12  ;;  %v18190_v17 = vpop.f32.mrb[65].mxu0  ;;  %v756_v27 = vadd.f32 %v755_v31, %v754_v26  ;;  %v872_v47 = vmul.f32 %v18188_v61, %v18188_v61  ;;  %v759_v2 = vsel %vm629_vm0, %v18188_v61, 0.0 }
 0x179   :  { %24366 = vst [vmem:[#allocation95_spill] sm:$0xff] %v18190_v17  ;;  %v757_v35 = vsel %vm629_vm0, %v18190_v17, 0.0  ;;  %v871_v9 = vmul.f32 %v18190_v17, %v18190_v17 }
 0x17a   :  { %v758_v7 = vadd.f32 %v757_v35, %v756_v27  ;;  %v1019_v54 = vadd.f32 %v1018_v4, %v1017_v50  ;;  %v1022_v22 = vsel %vm629_vm0, %v872_v47, 0.0 }
 0x17b   :  { %v1020_v12 = vsel %vm629_vm0, %v871_v9, 0.0  ;;  %v18202_v13 = vpop.f32.mrb[66].mxu0 }
 0x17c   :  { %24367 = vst [vmem:[#allocation96_spill] sm:$0xff] %v18202_v13  ;;  %v1021_v26 = vadd.f32 %v1020_v12, %v1019_v54  ;;  %v18204_v52 = vpop.f32.mrb[67].mxu0  ;;  %v760_v31 = vadd.f32 %v759_v2, %v758_v7  ;;  %v874_v51 = vmul.f32 %v18202_v13, %v18202_v13  ;;  %v763_v9 = vsel %vm629_vm0, %v18202_v13, 0.0 }
 0x17d   :  { %24368 = vst [vmem:[#allocation97_spill] sm:$0xff] %v18204_v52  ;;  %v761_v27 = vsel %vm629_vm0, %v18204_v52, 0.0  ;;  %v873_v4 = vmul.f32 %v18204_v52, %v18204_v52 }
 0x17e   :  { %v762_v50 = vadd.f32 %v761_v27, %v760_v31  ;;  %v1023_v35 = vadd.f32 %v1022_v22, %v1021_v26  ;;  %v1026_v61 = vsel %vm629_vm0, %v874_v51, 0.0 }
 0x17f   :  { %v1024_v54 = vsel %vm629_vm0, %v873_v4, 0.0  ;;  %v18216_v12 = vpop.f32.mrb[68].mxu0 }
 0x180   :  { %24369 = vst [vmem:[#allocation98_spill] sm:$0xff] %v18216_v12  ;;  %v1025_v7 = vadd.f32 %v1024_v54, %v1023_v35  ;;  %v18218_v47 = vpop.f32.mrb[69].mxu0  ;;  %v764_v2 = vadd.f32 %v763_v9, %v762_v50  ;;  %v876_v17 = vmul.f32 %v18216_v12, %v18216_v12  ;;  %v767_v4 = vsel %vm629_vm0, %v18216_v12, 0.0 }
 0x181   :  { %24370 = vst [vmem:[#allocation99_spill] sm:$0xff] %v18218_v47  ;;  %v765_v31 = vsel %vm629_vm0, %v18218_v47, 0.0  ;;  %v875_v22 = vmul.f32 %v18218_v47, %v18218_v47 }
 0x182   :  { %v766_v26 = vadd.f32 %v765_v31, %v764_v2  ;;  %v1027_v27 = vadd.f32 %v1026_v61, %v1025_v7  ;;  %v1030_v13 = vsel %vm629_vm0, %v876_v17, 0.0 }
 0x183   :  { %v1028_v35 = vsel %vm629_vm0, %v875_v22, 0.0  ;;  %v18230_v54 = vpop.f32.mrb[70].mxu0 }
 0x184   :  { %24371 = vst [vmem:[#allocation100_spill] sm:$0xff] %v18230_v54  ;;  %v1029_v50 = vadd.f32 %v1028_v35, %v1027_v27  ;;  %v18232_v51 = vpop.f32.mrb[71].mxu0  ;;  %v768_v9 = vadd.f32 %v767_v4, %v766_v26  ;;  %v878_v52 = vmul.f32 %v18230_v54, %v18230_v54  ;;  %v771_v22 = vsel %vm629_vm0, %v18230_v54, 0.0 }
 0x185   :  { %24372 = vst [vmem:[#allocation101_spill] sm:$0xff] %v18232_v51  ;;  %v769_v2 = vsel %vm629_vm0, %v18232_v51, 0.0  ;;  %v877_v61 = vmul.f32 %v18232_v51, %v18232_v51 }
 0x186   :  { %v770_v7 = vadd.f32 %v769_v2, %v768_v9  ;;  %v1031_v31 = vadd.f32 %v1030_v13, %v1029_v50  ;;  %v1034_v12 = vsel %vm629_vm0, %v878_v52, 0.0 }
 0x187   :  { %v1032_v27 = vsel %vm629_vm0, %v877_v61, 0.0  ;;  %v18244_v35 = vpop.f32.mrb[72].mxu0 }
 0x188   :  { %24373 = vst [vmem:[#allocation102_spill] sm:$0xff] %v18244_v35  ;;  %v1033_v26 = vadd.f32 %v1032_v27, %v1031_v31  ;;  %v18246_v17 = vpop.f32.mrb[73].mxu0  ;;  %v772_v4 = vadd.f32 %v771_v22, %v770_v7  ;;  %v880_v47 = vmul.f32 %v18244_v35, %v18244_v35  ;;  %v775_v61 = vsel %vm629_vm0, %v18244_v35, 0.0 }
 0x189   :  { %24374 = vst [vmem:[#allocation103_spill] sm:$0xff] %v18246_v17  ;;  %v773_v9 = vsel %vm629_vm0, %v18246_v17, 0.0  ;;  %v879_v13 = vmul.f32 %v18246_v17, %v18246_v17 }
 0x18a   :  { %v774_v50 = vadd.f32 %v773_v9, %v772_v4  ;;  %v1035_v2 = vadd.f32 %v1034_v12, %v1033_v26  ;;  %v1038_v54 = vsel %vm629_vm0, %v880_v47, 0.0 }
 0x18b   :  { %v1036_v31 = vsel %vm629_vm0, %v879_v13, 0.0  ;;  %v18258_v27 = vpop.f32.mrb[74].mxu0 }
 0x18c   :  { %24375 = vst [vmem:[#allocation104_spill] sm:$0xff] %v18258_v27  ;;  %v1037_v7 = vadd.f32 %v1036_v31, %v1035_v2  ;;  %v18260_v52 = vpop.f32.mrb[75].mxu0  ;;  %v776_v22 = vadd.f32 %v775_v61, %v774_v50  ;;  %v882_v51 = vmul.f32 %v18258_v27, %v18258_v27  ;;  %v779_v13 = vsel %vm629_vm0, %v18258_v27, 0.0 }
 0x18d   :  { %24376 = vst [vmem:[#allocation105_spill] sm:$0xff] %v18260_v52  ;;  %v777_v4 = vsel %vm629_vm0, %v18260_v52, 0.0  ;;  %v881_v12 = vmul.f32 %v18260_v52, %v18260_v52 }
 0x18e   :  { %v778_v26 = vadd.f32 %v777_v4, %v776_v22  ;;  %v1039_v9 = vadd.f32 %v1038_v54, %v1037_v7  ;;  %v1042_v35 = vsel %vm629_vm0, %v882_v51, 0.0 }
 0x18f   :  { %v1040_v2 = vsel %vm629_vm0, %v881_v12, 0.0  ;;  %v18272_v31 = vpop.f32.mrb[76].mxu0 }
 0x190   :  { %24377 = vst [vmem:[#allocation106_spill] sm:$0xff] %v18272_v31  ;;  %v1041_v50 = vadd.f32 %v1040_v2, %v1039_v9  ;;  %v18274_v47 = vpop.f32.mrb[77].mxu0  ;;  %v780_v61 = vadd.f32 %v779_v13, %v778_v26  ;;  %v884_v17 = vmul.f32 %v18272_v31, %v18272_v31  ;;  %v783_v12 = vsel %vm629_vm0, %v18272_v31, 0.0 }
 0x191   :  { %24378 = vst [vmem:[#allocation107_spill] sm:$0xff] %v18274_v47  ;;  %v781_v22 = vsel %vm629_vm0, %v18274_v47, 0.0  ;;  %v883_v54 = vmul.f32 %v18274_v47, %v18274_v47 }
 0x192   :  { %v782_v7 = vadd.f32 %v781_v22, %v780_v61  ;;  %v1043_v4 = vadd.f32 %v1042_v35, %v1041_v50  ;;  %v1046_v27 = vsel %vm629_vm0, %v884_v17, 0.0 }
 0x193   :  { %v1044_v9 = vsel %vm629_vm0, %v883_v54, 0.0  ;;  %v18286_v2 = vpop.f32.mrb[78].mxu0 }
 0x194   :  { %24379 = vst [vmem:[#allocation108_spill] sm:$0xff] %v18286_v2  ;;  %v1045_v26 = vadd.f32 %v1044_v9, %v1043_v4  ;;  %v18288_v51 = vpop.f32.mrb[79].mxu0  ;;  %v784_v13 = vadd.f32 %v783_v12, %v782_v7  ;;  %v886_v52 = vmul.f32 %v18286_v2, %v18286_v2  ;;  %v787_v54 = vsel %vm629_vm0, %v18286_v2, 0.0 }
 0x195   :  { %24380 = vst [vmem:[#allocation109_spill] sm:$0xff] %v18288_v51  ;;  %v785_v61 = vsel %vm629_vm0, %v18288_v51, 0.0  ;;  %v885_v35 = vmul.f32 %v18288_v51, %v18288_v51 }
 0x196   :  { %v786_v50 = vadd.f32 %v785_v61, %v784_v13  ;;  %v1047_v22 = vadd.f32 %v1046_v27, %v1045_v26  ;;  %v1050_v31 = vsel %vm629_vm0, %v886_v52, 0.0  ;;  %v11511_v26 = vld [vmem:[%s24117_s2 + $0x100] sm:$0xff]  ;;  %v11512_v61 = vld [vmem:[%s24117_s2 + $0x108] sm:$0xff] }
 0x197   :  { %v1048_v4 = vsel %vm629_vm0, %v885_v35, 0.0  ;;  %v18300_v9 = vpop.f32.mrb[80].mxu0  ;;  %v18317_v52 = vpack.c.bf16 %v11512_v61, %v11511_v26 }
 0x198   :  { %24381 = vst [vmem:[#allocation110_spill] sm:$0xff] %v18300_v9  ;;  %v1049_v7 = vadd.f32 %v1048_v4, %v1047_v22  ;;  %v18302_v17 = vpop.f32.mrb[81].mxu0  ;;  %v788_v12 = vadd.f32 %v787_v54, %v786_v50  ;;  %v888_v47 = vmul.f32 %v18300_v9, %v18300_v9  ;;  %v791_v22 = vsel %vm629_vm0, %v18300_v9, 0.0 }
 0x199   :  { %24382 = vst [vmem:[#allocation111_spill] sm:$0xff] %v18302_v17  ;;  %v789_v13 = vsel %vm629_vm0, %v18302_v17, 0.0  ;;  %v887_v27 = vmul.f32 %v18302_v17, %v18302_v17  ;;  %24383 = vst [vmem:[#allocation112_spill] sm:$0xff] %v18317_v52  ;;  %15495 = vmatpush3.bf16.msra.mxu1 %v18317_v52 }
 0x19a   :  { %v790_v35 = vadd.f32 %v789_v13, %v788_v12  ;;  %v1051_v50 = vadd.f32 %v1050_v31, %v1049_v7  ;;  %v1054_v43 = vsel %vm629_vm0, %v888_v47, 0.0  ;;  %15492 = vmatprep.subr.bf16.mxu1 %v24326_v18  ;;  %v11513_v13 = vld [vmem:[%s24117_s2 + $0x110] sm:$0xff] }
 0x19b   :  { %v1052_v54 = vsel %vm629_vm0, %v887_v27, 0.0  ;;  %v18322_v4 = vpop.f32.mrb[82].mxu0  ;;  %v11514_v27 = vld [vmem:[%s24117_s2 + $0x118] sm:$0xff] }
 0x19c   :  { %24384 = vst [vmem:[#allocation113_spill] sm:$0xff] %v18322_v4  ;;  %v1053_v17 = vadd.f32 %v1052_v54, %v1051_v50  ;;  %v18324_v2 = vpop.f32.mrb[83].mxu0  ;;  %v792_v51 = vadd.f32 %v791_v22, %v790_v35  ;;  %v890_v31 = vmul.f32 %v18322_v4, %v18322_v4  ;;  %v18341_v61 = vpack.c.bf16 %v11514_v27, %v11513_v13 }
 0x19d   :  { %24385 = vst [vmem:[#allocation114_spill] sm:$0xff] %v18324_v2  ;;  %v793_v7 = vsel %vm629_vm0, %v18324_v2, 0.0  ;;  %v889_v12 = vmul.f32 %v18324_v2, %v18324_v2  ;;  %v795_v35 = vsel %vm629_vm0, %v18322_v4, 0.0  ;;  %v11517_v4 = vld [vmem:[%s24117_s2 + $0x130] sm:$0xff] }
 0x19e   :  { %v794_v47 = vadd.f32 %v793_v7, %v792_v51  ;;  %v1055_v26 = vadd.f32 %v1054_v43, %v1053_v17  ;;  %24386 = vst [vmem:[#allocation115_spill] sm:$0xff] %v18341_v61  ;;  %15496 = vmatpush3.bf16.msra.mxu1 %v18341_v61  ;;  %v1058_v9 = vsel %vm629_vm0, %v890_v31, 0.0  ;;  %v11167_v7 = vld [vmem:[%s24117_s2 + $0x60] sm:$0xff] }
 0x19f   :  { %v1056_v50 = vsel %vm629_vm0, %v889_v12, 0.0  ;;  %v18346_v22 = vpop.f32.mrb[84].mxu0  ;;  %v11168_v12 = vld [vmem:[%s24117_s2 + $0x68] sm:$0xff]  ;;  %15493 = vmatprep.subr.bf16.mxu1 %v24326_v18  ;;  %v11515_v31 = vld [vmem:[%s24117_s2 + $0x120] sm:$0xff] }
 0x1a0   :  { %24387 = vst [vmem:[#allocation116_spill] sm:$0xff] %v18346_v22  ;;  %v1057_v54 = vadd.f32 %v1056_v50, %v1055_v26  ;;  %v18348_v52 = vpop.f32.mrb[85].mxu0  ;;  %v796_v2 = vadd.f32 %v795_v35, %v794_v47  ;;  %v892_v43 = vmul.f32 %v18346_v22, %v18346_v22  ;;  %v799_v13 = vsel %vm629_vm0, %v18346_v22, 0.0  ;;  %v11516_v35 = vld [vmem:[%s24117_s2 + $0x128] sm:$0xff] }
 0x1a1   :  { %v797_v51 = vsel %vm629_vm0, %v18348_v52, 0.0  ;;  %v891_v17 = vmul.f32 %v18348_v52, %v18348_v52  ;;  %v15390_v26 = vpack.c.bf16 %v11168_v12, %v11167_v7  ;;  %v18374_v61 = vpack.c.bf16 %v11516_v35, %v11515_v31 }
 0x1a2   :  { %v798_v27 = vadd.f32 %v797_v51, %v796_v2  ;;  %v1059_v47 = vadd.f32 %v1058_v9, %v1057_v54  ;;  %v11169_v2 = vld [vmem:[%s24117_s2 + $0x70] sm:$0xff]  ;;  %v11170_v51 = vld [vmem:[%s24117_s2 + $0x78] sm:$0xff]  ;;  %v1062_v7 = vsel %vm629_vm0, %v892_v43, 0.0  ;;  %v18393_v12 = vpack.c.bf16 %v11518_v63, %v11517_v4 }
 0x1a3   :  { %v1060_v50 = vsel %vm629_vm0, %v891_v17, 0.0  ;;  %24388 = vst [vmem:[#allocation117_spill] sm:$0xff] %v18374_v61  ;;  %15391 = vmatpush3.bf16.msra.mxu0 %v15390_v26  ;;  %v24168_v17 = vmov 0.0   ;;  %15497 = vmatpush3.bf16.msra.mxu1 %v18374_v61  ;;  %v15393_v31 = vpack.c.bf16 %v11170_v51, %v11169_v2 }
 0x1a4   :  { %v800_v9 = vadd.f32 %v799_v13, %v798_v27  ;;  %v1061_v54 = vadd.f32 %v1060_v50, %v1059_v47  ;;  %13036 = vmatprep.mubr.msk.f32.mxu0 %vm16728_vm1, %v24168_v17  ;;  %15392 = vmatprep.subr.bf16.mxu0 %v24326_v18  ;;  %24389 = vst [vmem:[#allocation118_spill] sm:$0xff] %v18393_v12  ;;  %v18398_v47 = vpop.permute.xlu0 %1788 }
 0x1a5   :  { %15494 = vmatprep.subr.bf16.mxu1 %v24326_v18  ;;  %14123 = vmatprep.mubr.msk.f32.mxu1 %vm16728_vm1, %v24168_v17  ;;  %24390 = vst [vmem:[#allocation119_spill] sm:$0xff] %v18398_v47 }
 0x1a6   :  { %v801_v13 = vrot.slane %v800_v9, 4  ;;  %v1063_v27 = vadd.f32 %v1062_v7, %v1061_v54 }
 0x1a7   :  { %15394 = vmatpush3.bf16.msra.mxu0 %v15393_v31  ;;  %15498 = vmatpush3.bf16.msra.mxu1 %v18393_v12 }
 0x1a8   :  { %v802_v26 = vadd.f32 %v801_v13, %v800_v9  ;;  %v1064_v35 = vrot.slane %v1063_v27, 4  ;;  %15395 = vmatprep.subr.bf16.mxu0 %v24326_v18  ;;  %15443 = vmatprep.subr.bf16.mxu1 %v24326_v18  ;;  %v18403_v2 = vpop.permute.xlu0 %1798  ;;  %v24406_v18 = vld [vmem:[#allocation79_spill] sm:$0xff] }
 0x1a9   :  { %24391 = vst [vmem:[#allocation120_spill] sm:$0xff] %v18403_v2  ;;  %v24415_v2 = vld [vmem:[#allocation85_spill] sm:$0xff] }
 0x1aa   :  { %v803_v43 = vrot.slane %v802_v26, 2  ;;  %v1065_v63 = vadd.f32 %v1064_v35, %v1063_v27 }
 0x1ac   :  { %v804_v4 = vadd.f32 %v803_v43, %v802_v26  ;;  %v1066_v50 = vrot.slane %v1065_v63, 2  ;;  %v18405_v13 = vpop.permute.xlu0 %1808  ;;  %v1082_v26 = vlaneseq }
 0x1ad   :  { %24392 = vst [vmem:[#allocation121_spill] sm:$0xff] %v18405_v13  ;;  %v24413_v13 = vld [vmem:[#allocation82_spill] sm:$0xff] }
 0x1ae   :  { %v805_v54 = vrot.slane %v804_v4, 1  ;;  %v1067_v51 = vadd.f32 %v1066_v50, %v1065_v63  ;;  %v1083_v43 = vshrl.u32 %v1082_v26, 7  ;;  %v1077_v63 = vld [vmem:[%s24118_s3] sm:$0x1] }
 0x1b0   :  { %v806_v7 = vadd.f32 %v805_v54, %v804_v4  ;;  %v1068_v17 = vrot.slane %v1067_v51, 1  ;;  %v18407_v37 = vpop.permute.xlu0 %1818 }
 0x1b1   :  { %24393 = vst [vmem:[#allocation122_spill] sm:$0xff] %v18407_v37  ;;  %v24411_v37 = vld [vmem:[#allocation83_spill] sm:$0xff] }
 0x1b2   :  { %v1069_v61 = vadd.f32 %v1068_v17, %v1067_v51  ;;  %v1070_v9 = vmul.f32 0.001953125, %v806_v7  ;;  %v18414_v17 = vsub.s32 0, %v1083_v43  ;;  %v24404_v7 = vld [vmem:[#allocation77_spill] sm:$0xff] }
 0x1b4   :  { %v1071_v31 = vmul.f32 0.001953125, %v1069_v61  ;;  %v1072_v12 = vmul.f32 %v1070_v9, %v1070_v9  ;;  %v18409_v35 = vpop.permute.xlu0 %1828  ;;  %24395 = vst [vmem:[#allocation124_spill] sm:$0xff] %v18414_v17 }
 0x1b5   :  { %24394 = vst [vmem:[#allocation123_spill] sm:$0xff] %v18409_v35  ;;  %v24409_v35 = vld [vmem:[#allocation80_spill] sm:$0xff] }
 0x1b6   :  { %v1073_v47 = vsub.f32 %v1071_v31, %v1072_v12  ;;  %v18421_v12 = vld [vmem:[%s24117_s2 + $0x140] sm:$0xff] }
 0x1b7   :  { %24397 = vst [vmem:[#allocation126_spill] sm:$0xff] %v18421_v12  ;;  %v24417_v12 = vld [vmem:[#allocation84_spill] sm:$0xff] }
 0x1b8   :  { %v1074_v22 = vmax.f32 %v1073_v47, 0.0  ;;  %v18416_v50 = vpop.permute.xlu0 %1838  ;;  %v1079_v47 = vld [vmem:[%s24119_s4] sm:$0x1] }
 0x1b9   :  { %24396 = vst [vmem:[#allocation125_spill] sm:$0xff] %v18416_v50  ;;  %v24408_v50 = vld [vmem:[#allocation81_spill] sm:$0xff] }
 0x1ba   :  { %v1075_v27 = vadd.f32 0.001, %v1074_v22  ;;  %v18426_v22 = vld [vmem:[%s24117_s2 + $0x148] sm:$0xff] }
 0x1bb   :  { %24398 = vst [vmem:[#allocation127_spill] sm:$0xff] %v18426_v22  ;;  %v24419_v22 = vld [vmem:[#allocation87_spill] sm:$0xff] }
 0x1bc   :  { %16720 = vrsqrt.f32 %v1075_v27 }
 0x1c6   :  { %v16721_v4 = vpop.eup %16720 }
 0x1c7   :  { %v1078_v61 = vmul.f32 %v16721_v4, %v1077_v63  ;;  %v18446_v63 = vpop.permute.xlu0 %1848 }
 0x1c8   :  { %24399 = vst [vmem:[#allocation128_spill] sm:$0xff] %v18446_v63  ;;  %v24407_v63 = vld [vmem:[#allocation78_spill] sm:$0xff] }
 0x1c9   :  { %v1080_v54 = vmul.f32 %v1078_v61, %v1070_v9  ;;  %v18432_v51 = vrot.slane %v1078_v61, %v18414_v17 }
 0x1cb   :  { %v1081_v31 = vsub.f32 %v1079_v47, %v1080_v54  ;;  %v1170_v27 = vmul.f32 %v18432_v51, %v18348_v52  ;;  %v18440_v26 = vmul.f32 %v18432_v51, %v17554_v6  ;;  %v18444_v43 = vmul.f32 %v17545_v59, %v18432_v51 }
 0x1cc   :  { %v18450_v9 = vmul.f32 %v18432_v51, %v17574_v39  ;;  %v18454_v4 = vmul.f32 %v17569_v29, %v18432_v51  ;;  %v18458_v52 = vmul.f32 %v18432_v51, %v17597_v19  ;;  %v18462_v6 = vmul.f32 %v17590_v0, %v18432_v51 }
 0x1cd   :  { %v18465_v59 = vrot.slane %v1081_v31, %v18414_v17  ;;  %v18469_v61 = vmul.f32 %v18432_v51, %v17617_v16  ;;  %v18473_v39 = vmul.f32 %v17612_v57, %v18432_v51  ;;  %v18477_v29 = vmul.f32 %v18432_v51, %v17641_v49  ;;  %v1859_v31 = vpop.permute.xlu0 %1858  ;;  %v24405_v17 = vld [vmem:[#allocation76_spill] sm:$0xff] }
 0x1ce   :  { %v18481_v19 = vmul.f32 %v17636_v56, %v18432_v51  ;;  %v18485_v0 = vmul.f32 %v18432_v51, %v17665_v8  ;;  %v18489_v16 = vmul.f32 %v17658_v48, %v18432_v51  ;;  %v18493_v57 = vmul.f32 %v18432_v51, %v17685_v34 }
 0x1cf   :  { %v1262_v47 = vadd.f32 %v18465_v59, %v1170_v27  ;;  %v18498_v49 = vmul.f32 %v17680_v23, %v18432_v51  ;;  %v18502_v56 = vmul.f32 %v18432_v51, %v17709_v41  ;;  %v18506_v8 = vmul.f32 %v17704_v46, %v18432_v51 }
 0x1d0   :  { %v18510_v48 = vmul.f32 %v18432_v51, %v17735_v38  ;;  %v18514_v34 = vmul.f32 %v17726_v45, %v18432_v51  ;;  %v18518_v23 = vmul.f32 %v18432_v51, %v17754_v62  ;;  %v18522_v41 = vmul.f32 %v17748_v25, %v18432_v51 }
 0x1d1   :  { %v1348_v54 = vmax.f32 %v1262_v47, 0.0  ;;  %v18526_v46 = vmul.f32 %v18432_v51, %v17783_v10  ;;  %v18530_v38 = vmul.f32 %v17778_v42, %v18432_v51  ;;  %v18534_v45 = vmul.f32 %v18432_v51, %v17808_v33  ;;  %v24400_v47 = vld [vmem:[#allocation71_spill] sm:$0xff] }
 0x1d2   :  { %v18538_v62 = vmul.f32 %v17801_v11, %v18432_v51  ;;  %v18542_v25 = vmul.f32 %v18432_v51, %v17828_v30  ;;  %v18546_v10 = vmul.f32 %v17823_v58, %v18432_v51  ;;  %v18550_v42 = vmul.f32 %v18432_v51, %v17852_v44 }
 0x1d3   :  { %v1950_v27 = vmul.f32 %v1859_v31, %v1348_v54  ;;  %v18554_v33 = vmul.f32 %v17847_v53, %v18432_v51  ;;  %v18558_v11 = vmul.f32 %v18432_v51, %v17876_v32  ;;  %v18562_v30 = vmul.f32 %v17869_v3, %v18432_v51  ;;  %v24401_v54 = vld [vmem:[#allocation70_spill] sm:$0xff]  ;;  %v24402_v31 = vld [vmem:[#allocation75_spill] sm:$0xff] }
 0x1d4   :  { %v18566_v58 = vmul.f32 %v18432_v51, %v17896_v28  ;;  %v18570_v44 = vmul.f32 %v17891_v15, %v18432_v51  ;;  %v18574_v53 = vmul.f32 %v18432_v51, %v17920_v40  ;;  %v18578_v32 = vmul.f32 %v17915_v5, %v18432_v51 }
 0x1d5   :  { %2036 = vst.msk [vmem:[#allocation2 + $0x2a0] sm:$0xff] %vm629_vm0, %v1950_v27  ;;  %v18583_v3 = vmul.f32 %v18432_v51, %v17944_v60  ;;  %v18587_v28 = vmul.f32 %v17937_v21, %v18432_v51  ;;  %v18591_v15 = vmul.f32 %v18432_v51, %v17964_v55  ;;  %v18595_v40 = vmul.f32 %v17959_v24, %v18432_v51  ;;  %v24403_v27 = vld [vmem:[#allocation74_spill] sm:$0xff] }
 0x1d6   :  { %v18599_v5 = vmul.f32 %v18432_v51, %v17988_v36  ;;  %v18603_v60 = vmul.f32 %v17983_v14, %v18432_v51  ;;  %v18607_v21 = vmul.f32 %v18432_v51, %v18012_v1  ;;  %v18611_v55 = vmul.f32 %v18005_v20, %v18432_v51 }
 0x1d7   :  { %v18615_v24 = vmul.f32 %v18432_v51, %v24400_v47  ;;  %v18619_v36 = vmul.f32 %v24401_v54, %v18432_v51  ;;  %v18623_v14 = vmul.f32 %v18432_v51, %v24402_v31  ;;  %v18627_v1 = vmul.f32 %v24403_v27, %v18432_v51 }
 0x1d8   :  { %v18631_v20 = vmul.f32 %v18432_v51, %v24404_v7  ;;  %v18635_v47 = vmul.f32 %v24405_v17, %v18432_v51  ;;  %v18639_v54 = vmul.f32 %v18432_v51, %v24406_v18  ;;  %v18643_v31 = vmul.f32 %v24407_v63, %v18432_v51 }
 0x1d9   :  { %v18647_v27 = vmul.f32 %v18432_v51, %v24408_v50  ;;  %v18651_v7 = vmul.f32 %v24409_v35, %v18432_v51  ;;  %v18655_v17 = vmul.f32 %v18432_v51, %v24411_v37  ;;  %v18659_v18 = vmul.f32 %v24413_v13, %v18432_v51 }
 0x1da   :  { %v18663_v63 = vmul.f32 %v18432_v51, %v24415_v2  ;;  %v18667_v50 = vmul.f32 %v24417_v12, %v18432_v51  ;;  %v18671_v35 = vmul.f32 %v18432_v51, %v24419_v22 }
 0x1db   :  { %24410 = vst [vmem:[#allocation71_spill] sm:$0xff] %v18651_v7  ;;  %24412 = vst [vmem:[#allocation70_spill] sm:$0xff] %v18655_v17  ;;  %v24421_v7 = vld [vmem:[#allocation86_spill] sm:$0xff]  ;;  %v24423_v17 = vld [vmem:[#allocation89_spill] sm:$0xff] }
 0x1dc   :  { %24414 = vst [vmem:[#allocation75_spill] sm:$0xff] %v18659_v18  ;;  %24416 = vst [vmem:[#allocation74_spill] sm:$0xff] %v18663_v63  ;;  %v18675_v37 = vmul.f32 %v24421_v7, %v18432_v51  ;;  %v18679_v13 = vmul.f32 %v18432_v51, %v24423_v17  ;;  %v24425_v18 = vld [vmem:[#allocation88_spill] sm:$0xff]  ;;  %v24427_v63 = vld [vmem:[#allocation91_spill] sm:$0xff] }
 0x1dd   :  { %24418 = vst [vmem:[#allocation77_spill] sm:$0xff] %v18667_v50  ;;  %24420 = vst [vmem:[#allocation76_spill] sm:$0xff] %v18671_v35  ;;  %v18683_v2 = vmul.f32 %v24425_v18, %v18432_v51  ;;  %v18687_v12 = vmul.f32 %v18432_v51, %v24427_v63  ;;  %v24429_v50 = vld [vmem:[#allocation90_spill] sm:$0xff]  ;;  %v24431_v35 = vld [vmem:[#allocation93_spill] sm:$0xff] }
 0x1de   :  { %24422 = vst [vmem:[#allocation79_spill] sm:$0xff] %v18675_v37  ;;  %24424 = vst [vmem:[#allocation78_spill] sm:$0xff] %v18679_v13  ;;  %v18691_v22 = vmul.f32 %v24429_v50, %v18432_v51  ;;  %v18695_v7 = vmul.f32 %v18432_v51, %v24431_v35  ;;  %v24433_v37 = vld [vmem:[#allocation92_spill] sm:$0xff]  ;;  %v24435_v13 = vld [vmem:[#allocation95_spill] sm:$0xff] }
 0x1df   :  { %24426 = vst [vmem:[#allocation81_spill] sm:$0xff] %v18683_v2  ;;  %24428 = vst [vmem:[#allocation80_spill] sm:$0xff] %v18687_v12  ;;  %v18699_v17 = vmul.f32 %v24433_v37, %v18432_v51  ;;  %v18703_v18 = vmul.f32 %v18432_v51, %v24435_v13  ;;  %v24437_v2 = vld [vmem:[#allocation94_spill] sm:$0xff]  ;;  %v24439_v12 = vld [vmem:[#allocation97_spill] sm:$0xff] }
 0x1e0   :  { %24430 = vst [vmem:[#allocation83_spill] sm:$0xff] %v18691_v22  ;;  %24432 = vst [vmem:[#allocation82_spill] sm:$0xff] %v18695_v7  ;;  %v18707_v63 = vmul.f32 %v24437_v2, %v18432_v51  ;;  %v18711_v50 = vmul.f32 %v18432_v51, %v24439_v12  ;;  %v24441_v22 = vld [vmem:[#allocation96_spill] sm:$0xff]  ;;  %v24443_v7 = vld [vmem:[#allocation99_spill] sm:$0xff] }
 0x1e1   :  { %24434 = vst [vmem:[#allocation85_spill] sm:$0xff] %v18699_v17  ;;  %24436 = vst [vmem:[#allocation84_spill] sm:$0xff] %v18703_v18  ;;  %v18715_v35 = vmul.f32 %v24441_v22, %v18432_v51  ;;  %v18719_v37 = vmul.f32 %v18432_v51, %v24443_v7  ;;  %v24445_v17 = vld [vmem:[#allocation98_spill] sm:$0xff]  ;;  %v24447_v18 = vld [vmem:[#allocation101_spill] sm:$0xff] }
 0x1e2   :  { %24438 = vst [vmem:[#allocation87_spill] sm:$0xff] %v18707_v63  ;;  %24440 = vst [vmem:[#allocation86_spill] sm:$0xff] %v18711_v50  ;;  %v18723_v13 = vmul.f32 %v24445_v17, %v18432_v51  ;;  %v18727_v2 = vmul.f32 %v18432_v51, %v24447_v18  ;;  %v24449_v63 = vld [vmem:[#allocation100_spill] sm:$0xff]  ;;  %v24451_v50 = vld [vmem:[#allocation103_spill] sm:$0xff] }
 0x1e3   :  { %24442 = vst [vmem:[#allocation89_spill] sm:$0xff] %v18715_v35  ;;  %24444 = vst [vmem:[#allocation88_spill] sm:$0xff] %v18719_v37  ;;  %v18731_v12 = vmul.f32 %v24449_v63, %v18432_v51  ;;  %v18735_v22 = vmul.f32 %v18432_v51, %v24451_v50  ;;  %v24453_v35 = vld [vmem:[#allocation102_spill] sm:$0xff]  ;;  %v24455_v37 = vld [vmem:[#allocation105_spill] sm:$0xff] }
 0x1e4   :  { %24446 = vst [vmem:[#allocation91_spill] sm:$0xff] %v18723_v13  ;;  %24448 = vst [vmem:[#allocation90_spill] sm:$0xff] %v18727_v2  ;;  %v18739_v7 = vmul.f32 %v24453_v35, %v18432_v51  ;;  %v18743_v17 = vmul.f32 %v18432_v51, %v24455_v37  ;;  %v24457_v13 = vld [vmem:[#allocation104_spill] sm:$0xff]  ;;  %v24459_v2 = vld [vmem:[#allocation107_spill] sm:$0xff] }
 0x1e5   :  { %24450 = vst [vmem:[#allocation93_spill] sm:$0xff] %v18731_v12  ;;  %24452 = vst [vmem:[#allocation92_spill] sm:$0xff] %v18735_v22  ;;  %v18747_v18 = vmul.f32 %v24457_v13, %v18432_v51  ;;  %v18751_v63 = vmul.f32 %v18432_v51, %v24459_v2  ;;  %v24461_v12 = vld [vmem:[#allocation106_spill] sm:$0xff]  ;;  %v24463_v22 = vld [vmem:[#allocation109_spill] sm:$0xff] }
 0x1e6   :  { %24454 = vst [vmem:[#allocation95_spill] sm:$0xff] %v18739_v7  ;;  %24456 = vst [vmem:[#allocation94_spill] sm:$0xff] %v18743_v17  ;;  %v18755_v50 = vmul.f32 %v24461_v12, %v18432_v51  ;;  %v18759_v35 = vmul.f32 %v18432_v51, %v24463_v22  ;;  %v24465_v7 = vld [vmem:[#allocation108_spill] sm:$0xff]  ;;  %v24466_v17 = vld [vmem:[#allocation111_spill] sm:$0xff] }
 0x1e7   :  { %24458 = vst [vmem:[#allocation97_spill] sm:$0xff] %v18747_v18  ;;  %24460 = vst [vmem:[#allocation96_spill] sm:$0xff] %v18751_v63  ;;  %v18763_v37 = vmul.f32 %v24465_v7, %v18432_v51  ;;  %v18767_v13 = vmul.f32 %v18432_v51, %v24466_v17  ;;  %v24467_v18 = vld [vmem:[#allocation110_spill] sm:$0xff]  ;;  %v18787_v17 = vadd.f32 %v18465_v59, %v18440_v26 }
 0x1e8   :  { %24462 = vst [vmem:[#allocation99_spill] sm:$0xff] %v18755_v50  ;;  %24464 = vst [vmem:[#allocation98_spill] sm:$0xff] %v18759_v35  ;;  %v18771_v2 = vmul.f32 %v24467_v18, %v18432_v51  ;;  %v24468_v63 = vld [vmem:[#allocation114_spill] sm:$0xff]  ;;  %v24469_v50 = vld [vmem:[#allocation113_spill] sm:$0xff]  ;;  %v18791_v18 = vadd.f32 %v18465_v59, %v18444_v43  ;;  %v18807_v26 = vadd.f32 %v18465_v59, %v18462_v6 }
 0x1e9   :  { %v18775_v12 = vmul.f32 %v18432_v51, %v24468_v63  ;;  %v18779_v22 = vmul.f32 %v24469_v50, %v18432_v51  ;;  %v24470_v35 = vld [vmem:[#allocation116_spill] sm:$0xff]  ;;  %v18795_v63 = vadd.f32 %v18465_v59, %v18450_v9  ;;  %v18799_v50 = vadd.f32 %v18465_v59, %v18454_v4 }
 0x1ea   :  { %v18783_v7 = vmul.f32 %v24470_v35, %v18432_v51  ;;  %v18803_v51 = vadd.f32 %v18465_v59, %v18458_v52  ;;  %v18811_v43 = vadd.f32 %v18465_v59, %v18469_v61  ;;  %v18815_v9 = vadd.f32 %v18465_v59, %v18473_v39  ;;  %v24486_v35 = vld [vmem:[#allocation71_spill] sm:$0xff] }
 0x1eb   :  { %v18819_v4 = vadd.f32 %v18465_v59, %v18477_v29  ;;  %v18823_v52 = vadd.f32 %v18465_v59, %v18481_v19  ;;  %v18827_v6 = vadd.f32 %v18465_v59, %v18485_v0  ;;  %v18831_v61 = vadd.f32 %v18465_v59, %v18489_v16 }
 0x1ec   :  { %v18835_v39 = vadd.f32 %v18465_v59, %v18493_v57  ;;  %v18839_v29 = vadd.f32 %v18465_v59, %v18498_v49  ;;  %v18843_v19 = vadd.f32 %v18465_v59, %v18502_v56  ;;  %v18847_v0 = vadd.f32 %v18465_v59, %v18506_v8 }
 0x1ed   :  { %v18851_v16 = vadd.f32 %v18465_v59, %v18510_v48  ;;  %v18855_v57 = vadd.f32 %v18465_v59, %v18514_v34  ;;  %v18859_v49 = vadd.f32 %v18465_v59, %v18518_v23  ;;  %v18863_v56 = vadd.f32 %v18465_v59, %v18522_v41 }
 0x1ee   :  { %v18867_v8 = vadd.f32 %v18465_v59, %v18526_v46  ;;  %v18871_v48 = vadd.f32 %v18465_v59, %v18530_v38  ;;  %v18875_v34 = vadd.f32 %v18465_v59, %v18534_v45  ;;  %v18879_v23 = vadd.f32 %v18465_v59, %v18538_v62 }
 0x1ef   :  { %v18883_v41 = vadd.f32 %v18465_v59, %v18542_v25  ;;  %v18887_v46 = vadd.f32 %v18465_v59, %v18546_v10  ;;  %v18891_v38 = vadd.f32 %v18465_v59, %v18550_v42  ;;  %v18895_v45 = vadd.f32 %v18465_v59, %v18554_v33 }
 0x1f0   :  { %v18899_v62 = vadd.f32 %v18465_v59, %v18558_v11  ;;  %v18903_v25 = vadd.f32 %v18465_v59, %v18562_v30  ;;  %v18907_v10 = vadd.f32 %v18465_v59, %v18566_v58  ;;  %v18911_v42 = vadd.f32 %v18465_v59, %v18570_v44 }
 0x1f1   :  { %v18915_v33 = vadd.f32 %v18465_v59, %v18574_v53  ;;  %v18919_v11 = vadd.f32 %v18465_v59, %v18578_v32  ;;  %v18923_v30 = vadd.f32 %v18465_v59, %v18583_v3  ;;  %v18927_v58 = vadd.f32 %v18465_v59, %v18587_v28 }
 0x1f2   :  { %v18931_v44 = vadd.f32 %v18465_v59, %v18591_v15  ;;  %v18935_v53 = vadd.f32 %v18465_v59, %v18595_v40  ;;  %v18939_v32 = vadd.f32 %v18465_v59, %v18599_v5  ;;  %v18943_v3 = vadd.f32 %v18465_v59, %v18603_v60 }
 0x1f3   :  { %v18947_v28 = vadd.f32 %v18465_v59, %v18607_v21  ;;  %v18951_v15 = vadd.f32 %v18465_v59, %v18611_v55  ;;  %v18955_v40 = vadd.f32 %v18465_v59, %v18615_v24  ;;  %v18959_v5 = vadd.f32 %v18465_v59, %v18619_v36 }
 0x1f4   :  { %24471 = vst [vmem:[#allocation101_spill] sm:$0xff] %v18931_v44  ;;  %24472 = vst [vmem:[#allocation100_spill] sm:$0xff] %v18935_v53  ;;  %v18963_v60 = vadd.f32 %v18465_v59, %v18623_v14  ;;  %v18967_v21 = vadd.f32 %v18465_v59, %v18627_v1  ;;  %v18971_v55 = vadd.f32 %v18465_v59, %v18631_v20  ;;  %v24582_v44 = vld [vmem:[#allocation19_spill] sm:$0xff] }
 0x1f5   :  { %24473 = vst [vmem:[#allocation103_spill] sm:$0xff] %v18939_v32  ;;  %24474 = vst [vmem:[#allocation102_spill] sm:$0xff] %v18943_v3  ;;  %v18975_v24 = vadd.f32 %v18465_v59, %v18635_v47  ;;  %v18979_v36 = vadd.f32 %v18465_v59, %v18639_v54  ;;  %v18983_v14 = vadd.f32 %v18465_v59, %v18643_v31  ;;  %v24588_v3 = vld [vmem:[#allocation24_spill] sm:$0xff] }
 0x1f6   :  { %24475 = vst [vmem:[#allocation105_spill] sm:$0xff] %v18947_v28  ;;  %24476 = vst [vmem:[#allocation104_spill] sm:$0xff] %v18951_v15  ;;  %v18987_v1 = vadd.f32 %v18465_v59, %v18647_v27  ;;  %v18991_v20 = vadd.f32 %v18465_v59, %v24486_v35  ;;  %v24590_v15 = vld [vmem:[#allocation26_spill] sm:$0xff] }
 0x1f7   :  { %24477 = vst [vmem:[#allocation107_spill] sm:$0xff] %v18955_v40  ;;  %24478 = vst [vmem:[#allocation106_spill] sm:$0xff] %v18959_v5 }
 0x1f8   :  { %24479 = vst [vmem:[#allocation109_spill] sm:$0xff] %v18963_v60  ;;  %24480 = vst [vmem:[#allocation108_spill] sm:$0xff] %v18967_v21 }
 0x1f9   :  { %24481 = vst [vmem:[#allocation111_spill] sm:$0xff] %v18971_v55  ;;  %24482 = vst [vmem:[#allocation110_spill] sm:$0xff] %v18975_v24  ;;  %v24488_v55 = vld [vmem:[#allocation70_spill] sm:$0xff]  ;;  %v24490_v24 = vld [vmem:[#allocation75_spill] sm:$0xff] }
 0x1fa   :  { %24483 = vst [vmem:[#allocation114_spill] sm:$0xff] %v18979_v36  ;;  %24484 = vst [vmem:[#allocation113_spill] sm:$0xff] %v18983_v14  ;;  %v18995_v47 = vadd.f32 %v18465_v59, %v24488_v55  ;;  %v18999_v54 = vadd.f32 %v18465_v59, %v24490_v24  ;;  %v24492_v36 = vld [vmem:[#allocation74_spill] sm:$0xff]  ;;  %v24494_v14 = vld [vmem:[#allocation77_spill] sm:$0xff] }
 0x1fb   :  { %24485 = vst [vmem:[#allocation116_spill] sm:$0xff] %v18987_v1  ;;  %24487 = vst [vmem:[#allocation71_spill] sm:$0xff] %v18991_v20  ;;  %v19003_v31 = vadd.f32 %v18465_v59, %v24492_v36  ;;  %v19007_v27 = vadd.f32 %v18465_v59, %v24494_v14  ;;  %v24496_v1 = vld [vmem:[#allocation76_spill] sm:$0xff]  ;;  %v19013_v20 = vpop.permute.xlu1 %1783  ;;  %v24499_v55 = vld [vmem:[#allocation79_spill] sm:$0xff] }
 0x1fc   :  { %24489 = vst [vmem:[#allocation70_spill] sm:$0xff] %v18995_v47  ;;  %24491 = vst [vmem:[#allocation75_spill] sm:$0xff] %v18999_v54  ;;  %v19011_v35 = vadd.f32 %v18465_v59, %v24496_v1  ;;  %v19017_v47 = vadd.f32 %v18465_v59, %v24499_v55  ;;  %v24501_v24 = vld [vmem:[#allocation78_spill] sm:$0xff]  ;;  %v24503_v36 = vld [vmem:[#allocation81_spill] sm:$0xff] }
 0x1fd   :  { %24493 = vst [vmem:[#allocation74_spill] sm:$0xff] %v19003_v31  ;;  %24495 = vst [vmem:[#allocation77_spill] sm:$0xff] %v19007_v27  ;;  %v19021_v54 = vadd.f32 %v18465_v59, %v24501_v24  ;;  %v19025_v31 = vadd.f32 %v18465_v59, %v24503_v36  ;;  %v24505_v14 = vld [vmem:[#allocation80_spill] sm:$0xff]  ;;  %v24507_v1 = vld [vmem:[#allocation83_spill] sm:$0xff] }
 0x1fe   :  { %24497 = vst [vmem:[#allocation76_spill] sm:$0xff] %v19011_v35  ;;  %24498 = vst [vmem:[#allocation129_spill] sm:$0xff] %v19013_v20  ;;  %v19029_v27 = vadd.f32 %v18465_v59, %v24505_v14  ;;  %v19033_v35 = vadd.f32 %v18465_v59, %v24507_v1  ;;  %v24509_v20 = vld [vmem:[#allocation82_spill] sm:$0xff] }
 0x1ff   :  { %24500 = vst [vmem:[#allocation79_spill] sm:$0xff] %v19017_v47  ;;  %24502 = vst [vmem:[#allocation78_spill] sm:$0xff] %v19021_v54  ;;  %v19037_v55 = vadd.f32 %v18465_v59, %v24509_v20  ;;  %v24511_v47 = vld [vmem:[#allocation85_spill] sm:$0xff]  ;;  %v24513_v54 = vld [vmem:[#allocation84_spill] sm:$0xff] }
 0x200   :  { %24504 = vst [vmem:[#allocation81_spill] sm:$0xff] %v19025_v31  ;;  %24506 = vst [vmem:[#allocation80_spill] sm:$0xff] %v19029_v27  ;;  %v19041_v24 = vadd.f32 %v18465_v59, %v24511_v47  ;;  %v19045_v36 = vadd.f32 %v18465_v59, %v24513_v54  ;;  %v24515_v31 = vld [vmem:[#allocation87_spill] sm:$0xff]  ;;  %v24517_v27 = vld [vmem:[#allocation86_spill] sm:$0xff] }
 0x201   :  { %24508 = vst [vmem:[#allocation83_spill] sm:$0xff] %v19033_v35  ;;  %24510 = vst [vmem:[#allocation82_spill] sm:$0xff] %v19037_v55  ;;  %v19049_v14 = vadd.f32 %v18465_v59, %v24515_v31  ;;  %v19053_v1 = vadd.f32 %v18465_v59, %v24517_v27  ;;  %v24519_v35 = vld [vmem:[#allocation89_spill] sm:$0xff]  ;;  %v24521_v55 = vld [vmem:[#allocation88_spill] sm:$0xff] }
 0x202   :  { %24512 = vst [vmem:[#allocation85_spill] sm:$0xff] %v19041_v24  ;;  %24514 = vst [vmem:[#allocation84_spill] sm:$0xff] %v19045_v36  ;;  %v19057_v20 = vadd.f32 %v18465_v59, %v24519_v35  ;;  %v19061_v47 = vadd.f32 %v18465_v59, %v24521_v55  ;;  %v24523_v24 = vld [vmem:[#allocation91_spill] sm:$0xff]  ;;  %v24525_v36 = vld [vmem:[#allocation90_spill] sm:$0xff] }
 0x203   :  { %24516 = vst [vmem:[#allocation87_spill] sm:$0xff] %v19049_v14  ;;  %24518 = vst [vmem:[#allocation86_spill] sm:$0xff] %v19053_v1  ;;  %v19065_v54 = vadd.f32 %v18465_v59, %v24523_v24  ;;  %v19069_v31 = vadd.f32 %v18465_v59, %v24525_v36  ;;  %v24527_v14 = vld [vmem:[#allocation93_spill] sm:$0xff]  ;;  %v24529_v1 = vld [vmem:[#allocation92_spill] sm:$0xff] }
 0x204   :  { %24520 = vst [vmem:[#allocation89_spill] sm:$0xff] %v19057_v20  ;;  %24522 = vst [vmem:[#allocation88_spill] sm:$0xff] %v19061_v47  ;;  %v19073_v27 = vadd.f32 %v18465_v59, %v24527_v14  ;;  %v19077_v35 = vadd.f32 %v18465_v59, %v24529_v1  ;;  %v24531_v20 = vld [vmem:[#allocation95_spill] sm:$0xff]  ;;  %v24532_v47 = vld [vmem:[#allocation94_spill] sm:$0xff] }
 0x205   :  { %24524 = vst [vmem:[#allocation91_spill] sm:$0xff] %v19065_v54  ;;  %24526 = vst [vmem:[#allocation90_spill] sm:$0xff] %v19069_v31  ;;  %v19081_v55 = vadd.f32 %v18465_v59, %v24531_v20  ;;  %v19085_v24 = vadd.f32 %v18465_v59, %v24532_v47  ;;  %v24533_v54 = vld [vmem:[#allocation97_spill] sm:$0xff]  ;;  %v24535_v31 = vld [vmem:[#allocation96_spill] sm:$0xff]  ;;  %v19105_v47 = vadd.f32 %v18465_v59, %v18763_v37 }
 0x206   :  { %24528 = vst [vmem:[#allocation93_spill] sm:$0xff] %v19073_v27  ;;  %24530 = vst [vmem:[#allocation92_spill] sm:$0xff] %v19077_v35  ;;  %v19089_v36 = vadd.f32 %v18465_v59, %v24533_v54  ;;  %v19093_v14 = vadd.f32 %v18465_v59, %v24535_v31  ;;  %v24536_v27 = vld [vmem:[#allocation99_spill] sm:$0xff]  ;;  %v24538_v35 = vld [vmem:[#allocation98_spill] sm:$0xff]  ;;  %v19109_v54 = vadd.f32 %v18465_v59, %v18767_v13 }
 0x207   :  { %v19097_v1 = vadd.f32 %v18465_v59, %v24536_v27  ;;  %v19101_v20 = vadd.f32 %v18465_v59, %v24538_v35  ;;  %24539 = vst [vmem:[#allocation97_spill] sm:$0xff] %v19105_v47  ;;  %v19115_v31 = vadd.f32 %v18465_v59, %v18771_v2  ;;  %v19119_v27 = vadd.f32 %v18465_v59, %v18775_v12  ;;  %v24560_v53 = vld [vmem:[#allocation78_spill] sm:$0xff] }
 0x208   :  { %24534 = vst [vmem:[#allocation95_spill] sm:$0xff] %v19089_v36  ;;  %24540 = vst [vmem:[#allocation96_spill] sm:$0xff] %v19109_v54  ;;  %v19111_v36 = vpop.permute.xlu1 %1793  ;;  %v19123_v35 = vadd.f32 %v18465_v59, %v18779_v22  ;;  %v19127_v37 = vadd.f32 %v18465_v59, %v18783_v7  ;;  %v24577_v32 = vmov %v19109_v54  ;;  %v24585_v54 = vmax.f32 %v18795_v63, 0.0  ;;  %v24586_v47 = vld [vmem:[#allocation22_spill] sm:$0xff] }
 0x209   :  { %24537 = vst [vmem:[#allocation94_spill] sm:$0xff] %v19097_v1  ;;  %24541 = vst [vmem:[#allocation99_spill] sm:$0xff] %v19111_v36  ;;  %v24565_v40 = vld [vmem:[#allocation85_spill] sm:$0xff]  ;;  %v24566_v5 = vld [vmem:[#allocation84_spill] sm:$0xff]  ;;  %v24579_v28 = vmov %v19119_v27  ;;  %v24595_v63 = vmax.f32 %v18815_v9, 0.0  ;;  %v24603_v9 = vmax.f32 %v18831_v61, 0.0 }
 0x20a   :  { %24542 = vst [vmem:[#allocation98_spill] sm:$0xff] %v19115_v31  ;;  %24543 = vst [vmem:[#allocation130_spill] sm:$0xff] %v19119_v27  ;;  %v24568_v60 = vld [vmem:[#allocation86_spill] sm:$0xff]  ;;  %v24584_v1 = vld [vmem:[#allocation20_spill] sm:$0xff]  ;;  %v1868_v2 = vmul.f32 %v24586_v47, %v24585_v54  ;;  %v24587_v31 = vmax.f32 %v18799_v50, 0.0  ;;  %v24589_v27 = vmax.f32 %v18803_v51, 0.0 }
 0x20b   :  { %24544 = vst [vmem:[#allocation131_spill] sm:$0xff] %v19123_v35  ;;  %24545 = vst [vmem:[#allocation132_spill] sm:$0xff] %v19127_v37  ;;  %v24569_v21 = vld [vmem:[#allocation89_spill] sm:$0xff]  ;;  %v24571_v7 = vld [vmem:[#allocation88_spill] sm:$0xff]  ;;  %v24581_v35 = vmax.f32 %v18787_v17, 0.0  ;;  %v24591_v17 = vmax.f32 %v18807_v26, 0.0 }
 0x20c   :  { %v19149_v13 = vpop.permute.xlu1 %1803  ;;  %v1870_v22 = vmul.f32 %v24590_v15, %v24589_v27  ;;  %v24592_v37 = vld [vmem:[#allocation28_spill] sm:$0xff]  ;;  %v24598_v54 = vld [vmem:[#allocation34_spill] sm:$0xff]  ;;  %v24599_v15 = vmax.f32 %v18823_v52, 0.0  ;;  %v24601_v27 = vmax.f32 %v18827_v6, 0.0  ;;  %1954 = vst.msk [vmem:[#allocation2 + $0x10] sm:$0xff] %vm629_vm0, %v1868_v2  ;;  %v24611_v61 = vmax.f32 %v18847_v0, 0.0 }
 0x20d   :  { %24546 = vst [vmem:[#allocation133_spill] sm:$0xff] %v19149_v13  ;;  %v1866_v59 = vmul.f32 %v24582_v44, %v24581_v35  ;;  %v1871_v44 = vmul.f32 %v24592_v37, %v24591_v17  ;;  %v24594_v35 = vld [vmem:[#allocation30_spill] sm:$0xff]  ;;  %v24596_v47 = vld [vmem:[#allocation32_spill] sm:$0xff]  ;;  %v24619_v0 = vmax.f32 %v18863_v56, 0.0  ;;  %v24627_v56 = vmax.f32 %v18879_v23, 0.0 }
 0x20e   :  { %v1873_v50 = vmul.f32 %v24596_v47, %v24595_v63  ;;  %v24602_v37 = vld [vmem:[#allocation38_spill] sm:$0xff]  ;;  %v24604_v17 = vld [vmem:[#allocation40_spill] sm:$0xff]  ;;  %v24607_v63 = vmax.f32 %v18839_v29, 0.0  ;;  %1956 = vst.msk [vmem:[#allocation2 + $0x20] sm:$0xff] %vm629_vm0, %v1870_v22  ;;  %v24613_v29 = vmax.f32 %v18851_v16, 0.0  ;;  %v24620_v16 = vld [vmem:[#allocation3_spill] sm:$0xff] }
 0x20f   :  { %1952 = vst.msk [vmem:[#allocation2] sm:$0xff] %vm629_vm0, %v1866_v59  ;;  %v24608_v47 = vld [vmem:[#allocation44_spill] sm:$0xff]  ;;  %1957 = vst.msk [vmem:[#allocation2 + $0x28] sm:$0xff] %vm629_vm0, %v1871_v44  ;;  %v24614_v2 = vld [vmem:[#allocation50_spill] sm:$0xff]  ;;  %v1885_v44 = vmul.f32 %v24620_v16, %v24619_v0  ;;  %v24635_v23 = vmax.f32 %v18895_v45, 0.0  ;;  %v24649_v0 = vmax.f32 %v18923_v30, 0.0 }
 0x210   :  { %v19175_v13 = vpop.permute.xlu1 %1813  ;;  %v1879_v6 = vmul.f32 %v24608_v47, %v24607_v63  ;;  %1959 = vst.msk [vmem:[#allocation2 + $0x38] sm:$0xff] %vm629_vm0, %v1873_v50  ;;  %v24625_v50 = vmax.f32 %v18875_v34, 0.0  ;;  %v24631_v34 = vmax.f32 %v18887_v46, 0.0  ;;  %v24632_v47 = vld [vmem:[#allocation9_spill] sm:$0xff]  ;;  %v24637_v46 = vmax.f32 %v18899_v62, 0.0  ;;  %v24650_v16 = vld [vmem:[#allocation18_spill] sm:$0xff] }
 0x211   :  { %24547 = vst [vmem:[#allocation134_spill] sm:$0xff] %v19175_v13  ;;  %v1869_v13 = vmul.f32 %v24588_v3, %v24587_v31  ;;  %v24597_v3 = vmax.f32 %v18819_v4, 0.0  ;;  %v24600_v31 = vld [vmem:[#allocation36_spill] sm:$0xff]  ;;  %v1877_v4 = vmul.f32 %v24604_v17, %v24603_v9  ;;  %1971 = vst.msk [vmem:[#allocation2 + $0x98] sm:$0xff] %vm629_vm0, %v1885_v44  ;;  %v24643_v62 = vmax.f32 %v18911_v42, 0.0 }
 0x212   :  { %v1875_v26 = vmul.f32 %v24600_v31, %v24599_v15  ;;  %v1882_v15 = vmul.f32 %v24614_v2, %v24613_v29  ;;  %v24616_v31 = vld [vmem:[#allocation52_spill] sm:$0xff]  ;;  %1965 = vst.msk [vmem:[#allocation2 + $0x68] sm:$0xff] %vm629_vm0, %v1879_v6  ;;  %v24642_v2 = vld [vmem:[#allocation14_spill] sm:$0xff]  ;;  %v1900_v44 = vmul.f32 %v24650_v16, %v24649_v0  ;;  %v24651_v42 = vmax.f32 %v18927_v58, 0.0  ;;  %v24685_v0 = vld [vmem:[#allocation43_spill] sm:$0xff] }
 0x213   :  { %v1874_v51 = vmul.f32 %v24598_v54, %v24597_v3  ;;  %v24609_v3 = vmax.f32 %v18843_v19, 0.0  ;;  %v24610_v54 = vld [vmem:[#allocation46_spill] sm:$0xff]  ;;  %1955 = vst.msk [vmem:[#allocation2 + $0x18] sm:$0xff] %vm629_vm0, %v1869_v13  ;;  %v24615_v19 = vmax.f32 %v18855_v57, 0.0  ;;  %v24617_v13 = vmax.f32 %v18859_v49, 0.0  ;;  %v24624_v17 = vld [vmem:[#allocation4_spill] sm:$0xff] }
 0x214   :  { %v19201_v12 = vpop.permute.xlu1 %1823  ;;  %1961 = vst.msk [vmem:[#allocation2 + $0x48] sm:$0xff] %vm629_vm0, %v1875_v26  ;;  %v24621_v57 = vmax.f32 %v18867_v8, 0.0  ;;  %v24623_v49 = vmax.f32 %v18871_v48, 0.0  ;;  %1963 = vst.msk [vmem:[#allocation2 + $0x58] sm:$0xff] %vm629_vm0, %v1877_v4  ;;  %v24628_v8 = vld [vmem:[#allocation7_spill] sm:$0xff]  ;;  %v24629_v48 = vmax.f32 %v18883_v41, 0.0 }
 0x215   :  { %24570 = vst [vmem:[#allocation78_spill] sm:$0xff] %v19201_v12  ;;  %v24583_v12 = vmax.f32 %v18791_v18, 0.0  ;;  %v24593_v18 = vmax.f32 %v18811_v43, 0.0  ;;  %v1876_v43 = vmul.f32 %v24602_v37, %v24601_v27  ;;  %v1880_v59 = vmul.f32 %v24610_v54, %v24609_v3  ;;  %v24618_v37 = vld [vmem:[#allocation54_spill] sm:$0xff]  ;;  %1960 = vst.msk [vmem:[#allocation2 + $0x40] sm:$0xff] %vm629_vm0, %v1874_v51  ;;  %v24636_v41 = vld [vmem:[#allocation11_spill] sm:$0xff] }
 0x216   :  { %v1883_v27 = vmul.f32 %v24616_v31, %v24615_v19  ;;  %v1884_v22 = vmul.f32 %v24618_v37, %v24617_v13  ;;  %v1889_v26 = vmul.f32 %v24628_v8, %v24627_v56  ;;  %v1891_v3 = vmul.f32 %v24632_v47, %v24631_v34  ;;  %v24634_v54 = vld [vmem:[#allocation10_spill] sm:$0xff]  ;;  %1968 = vst.msk [vmem:[#allocation2 + $0x80] sm:$0xff] %vm629_vm0, %v1882_v15  ;;  %v24644_v19 = vld [vmem:[#allocation15_spill] sm:$0xff]  ;;  %v24648_v37 = vld [vmem:[#allocation17_spill] sm:$0xff] }
 0x217   :  { %v1867_v36 = vmul.f32 %v24584_v1, %v24583_v12  ;;  %v1872_v1 = vmul.f32 %v24594_v35, %v24593_v18  ;;  %v24605_v18 = vmax.f32 %v18835_v39, 0.0  ;;  %v24606_v35 = vld [vmem:[#allocation42_spill] sm:$0xff]  ;;  %v24612_v39 = vld [vmem:[#allocation48_spill] sm:$0xff]  ;;  %1962 = vst.msk [vmem:[#allocation2 + $0x50] sm:$0xff] %vm629_vm0, %v1876_v43  ;;  %1966 = vst.msk [vmem:[#allocation2 + $0x70] sm:$0xff] %vm629_vm0, %v1880_v59  ;;  %v24633_v4 = vmax.f32 %v18891_v38, 0.0 }
 0x218   :  { %v19241_v12 = vpop.permute.xlu1 %1833  ;;  %v24630_v43 = vld [vmem:[#allocation8_spill] sm:$0xff]  ;;  %1969 = vst.msk [vmem:[#allocation2 + $0x88] sm:$0xff] %vm629_vm0, %v1883_v27  ;;  %1970 = vst.msk [vmem:[#allocation2 + $0x90] sm:$0xff] %vm629_vm0, %v1884_v22  ;;  %v1893_v6 = vmul.f32 %v24636_v41, %v24635_v23  ;;  %v24639_v38 = vmax.f32 %v18903_v25, 0.0  ;;  %v1897_v25 = vmul.f32 %v24644_v19, %v24643_v62  ;;  %v24645_v31 = vmax.f32 %v18915_v33, 0.0  ;;  %v24652_v33 = vld [vmem:[#allocation21_spill] sm:$0xff] }
 0x219   :  { %1953 = vst.msk [vmem:[#allocation2 + $0x8] sm:$0xff] %vm629_vm0, %v1867_v36  ;;  %v1878_v52 = vmul.f32 %v24606_v35, %v24605_v18  ;;  %1958 = vst.msk [vmem:[#allocation2 + $0x30] sm:$0xff] %vm629_vm0, %v1872_v1  ;;  %v1881_v36 = vmul.f32 %v24612_v39, %v24611_v61  ;;  %v24622_v1 = vld [vmem:[#allocation5_spill] sm:$0xff]  ;;  %v1887_v18 = vmul.f32 %v24624_v17, %v24623_v49  ;;  %v24626_v35 = vld [vmem:[#allocation6_spill] sm:$0xff]  ;;  %v24647_v13 = vmax.f32 %v18919_v11, 0.0 }
 0x21a   :  { %v1886_v9 = vmul.f32 %v24622_v1, %v24621_v57  ;;  %v1888_v51 = vmul.f32 %v24626_v35, %v24625_v50  ;;  %v1890_v63 = vmul.f32 %v24630_v43, %v24629_v48  ;;  %v24638_v59 = vld [vmem:[#allocation12_spill] sm:$0xff]  ;;  %v24640_v39 = vld [vmem:[#allocation13_spill] sm:$0xff]  ;;  %1975 = vst.msk [vmem:[#allocation2 + $0xb8] sm:$0xff] %vm629_vm0, %v1889_v26  ;;  %1977 = vst.msk [vmem:[#allocation2 + $0xc8] sm:$0xff] %vm629_vm0, %v1891_v3  ;;  %v24686_v16 = vmov 0.0  }
 0x21b   :  { %1964 = vst.msk [vmem:[#allocation2 + $0x60] sm:$0xff] %vm629_vm0, %v1878_v52  ;;  %v1892_v52 = vmul.f32 %v24634_v54, %v24633_v4  ;;  %1967 = vst.msk [vmem:[#allocation2 + $0x78] sm:$0xff] %vm629_vm0, %v1881_v36  ;;  %v1894_v61 = vmul.f32 %v24638_v59, %v24637_v46  ;;  %v1895_v29 = vmul.f32 %v24640_v39, %v24639_v38  ;;  %v24641_v36 = vmax.f32 %v18907_v10, 0.0  ;;  %v24646_v27 = vld [vmem:[#allocation16_spill] sm:$0xff]  ;;  %v24653_v1 = vld [vmem:[#allocation101_spill] sm:$0xff] }
 0x21c   :  { %1972 = vst.msk [vmem:[#allocation2 + $0xa0] sm:$0xff] %vm629_vm0, %v1886_v9  ;;  %1973 = vst.msk [vmem:[#allocation2 + $0xa8] sm:$0xff] %vm629_vm0, %v1887_v18  ;;  %v19338_v45 = vpop.permute.xlu1 %1843  ;;  %v1898_v10 = vmul.f32 %v24646_v27, %v24645_v31  ;;  %v1899_v22 = vmul.f32 %v24648_v37, %v24647_v13  ;;  %v1901_v57 = vmul.f32 %v24652_v33, %v24651_v42  ;;  %v24654_v11 = vmax.f32 %v24653_v1, 0.0  ;;  %v24655_v9 = vld [vmem:[#allocation23_spill] sm:$0xff]  ;;  %v24656_v17 = vld [vmem:[#allocation100_spill] sm:$0xff] }
 0x21d   :  { %v1896_v15 = vmul.f32 %v24642_v2, %v24641_v36  ;;  %1974 = vst.msk [vmem:[#allocation2 + $0xb0] sm:$0xff] %vm629_vm0, %v1888_v51  ;;  %1976 = vst.msk [vmem:[#allocation2 + $0xc0] sm:$0xff] %vm629_vm0, %v1890_v63  ;;  %v24657_v30 = vmax.f32 %v24656_v17, 0.0  ;;  %v24658_v18 = vld [vmem:[#allocation25_spill] sm:$0xff]  ;;  %v24659_v35 = vld [vmem:[#allocation103_spill] sm:$0xff] }
 0x21e   :  { %1978 = vst.msk [vmem:[#allocation2 + $0xd0] sm:$0xff] %vm629_vm0, %v1892_v52  ;;  %v1902_v49 = vmul.f32 %v24655_v9, %v24654_v11  ;;  %v24660_v51 = vmax.f32 %v24659_v35, 0.0  ;;  %v24661_v56 = vld [vmem:[#allocation27_spill] sm:$0xff]  ;;  %1979 = vst.msk [vmem:[#allocation2 + $0xd8] sm:$0xff] %vm629_vm0, %v1893_v6  ;;  %v24662_v26 = vld [vmem:[#allocation102_spill] sm:$0xff] }
 0x21f   :  { %v1903_v50 = vmul.f32 %v24658_v18, %v24657_v30  ;;  %1980 = vst.msk [vmem:[#allocation2 + $0xe0] sm:$0xff] %vm629_vm0, %v1894_v61  ;;  %1981 = vst.msk [vmem:[#allocation2 + $0xe8] sm:$0xff] %vm629_vm0, %v1895_v29  ;;  %v24663_v48 = vmax.f32 %v24662_v26, 0.0  ;;  %v24664_v43 = vld [vmem:[#allocation29_spill] sm:$0xff]  ;;  %v24667_v3 = vld [vmem:[#allocation31_spill] sm:$0xff] }
 0x220   :  { %v1904_v8 = vmul.f32 %v24661_v56, %v24660_v51  ;;  %1982 = vst.msk [vmem:[#allocation2 + $0xf0] sm:$0xff] %vm629_vm0, %v1896_v15  ;;  %v2127_v58 = vld [vmem:[#allocation2 + $0x1] sm:$0xff]  ;;  %v24668_v54 = vld [vmem:[#allocation104_spill] sm:$0xff]  ;;  %v24671_v6 = vld [vmem:[#allocation107_spill] sm:$0xff] }
 0x221   :  { %v1905_v63 = vmul.f32 %v24664_v43, %v24663_v48  ;;  %v24665_v34 = vld [vmem:[#allocation105_spill] sm:$0xff]  ;;  %v24669_v52 = vmax.f32 %v24668_v54, 0.0  ;;  %v24672_v46 = vmax.f32 %v24671_v6, 0.0  ;;  %v24673_v59 = vld [vmem:[#allocation35_spill] sm:$0xff]  ;;  %1983 = vst.msk [vmem:[#allocation2 + $0xf8] sm:$0xff] %vm629_vm0, %v1897_v25  ;;  %1984 = vst.msk [vmem:[#allocation2 + $0x100] sm:$0xff] %vm629_vm0, %v1898_v10  ;;  %13037 = vmatmul.mubr.msk.f32.vlgmr.msra.gmra.mrb[86].mxu0 %vm629_vm0, %v2127_v58 }
 0x222   :  { %v24666_v47 = vmax.f32 %v24665_v34, 0.0  ;;  %v24670_v23 = vld [vmem:[#allocation33_spill] sm:$0xff]  ;;  %1985 = vst.msk [vmem:[#allocation2 + $0x108] sm:$0xff] %vm629_vm0, %v1899_v22  ;;  %1986 = vst.msk [vmem:[#allocation2 + $0x110] sm:$0xff] %vm629_vm0, %v1900_v44  ;;  %v24674_v38 = vld [vmem:[#allocation106_spill] sm:$0xff]  ;;  %13039 = vmatprep.mubr.msk.f32.mxu0 %vm16728_vm1, %v24686_v16 }
 0x223   :  { %v1907_v41 = vmul.f32 %v24670_v23, %v24669_v52  ;;  %v1908_v61 = vmul.f32 %v24673_v59, %v24672_v46  ;;  %v24675_v39 = vmax.f32 %v24674_v38, 0.0  ;;  %v24676_v29 = vld [vmem:[#allocation37_spill] sm:$0xff]  ;;  %v24679_v62 = vld [vmem:[#allocation39_spill] sm:$0xff]  ;;  %v24680_v31 = vld [vmem:[#allocation108_spill] sm:$0xff]  ;;  %1987 = vst.msk [vmem:[#allocation2 + $0x118] sm:$0xff] %vm629_vm0, %v1901_v57 }
 0x224   :  { %v1906_v4 = vmul.f32 %v24667_v3, %v24666_v47  ;;  %v24677_v2 = vld [vmem:[#allocation109_spill] sm:$0xff]  ;;  %v24681_v27 = vmax.f32 %v24680_v31, 0.0  ;;  %v24683_v37 = vld [vmem:[#allocation111_spill] sm:$0xff]  ;;  %1988 = vst.msk [vmem:[#allocation2 + $0x120] sm:$0xff] %vm629_vm0, %v1902_v49  ;;  %1989 = vst.msk [vmem:[#allocation2 + $0x128] sm:$0xff] %vm629_vm0, %v1903_v50 }
 0x225   :  { %v1909_v36 = vmul.f32 %v24676_v29, %v24675_v39  ;;  %v24678_v15 = vmax.f32 %v24677_v2, 0.0  ;;  %v24682_v13 = vld [vmem:[#allocation41_spill] sm:$0xff]  ;;  %v24684_v10 = vmax.f32 %v24683_v37, 0.0  ;;  %1990 = vst.msk [vmem:[#allocation2 + $0x130] sm:$0xff] %vm629_vm0, %v1904_v8  ;;  %v24687_v44 = vld [vmem:[#allocation110_spill] sm:$0xff]  ;;  %v24692_v17 = vld [vmem:[#allocation47_spill] sm:$0xff] }
 0x226   :  { %v1911_v25 = vmul.f32 %v24682_v13, %v24681_v27  ;;  %v24688_v42 = vmax.f32 %v24687_v44, 0.0  ;;  %v24689_v33 = vld [vmem:[#allocation45_spill] sm:$0xff]  ;;  %v24690_v11 = vld [vmem:[#allocation114_spill] sm:$0xff]  ;;  %v24696_v49 = vld [vmem:[#allocation116_spill] sm:$0xff]  ;;  %1991 = vst.msk [vmem:[#allocation2 + $0x138] sm:$0xff] %vm629_vm0, %v1905_v63 }
 0x227   :  { %v1910_v19 = vmul.f32 %v24679_v62, %v24678_v15  ;;  %v1912_v22 = vmul.f32 %v24685_v0, %v24684_v10  ;;  %v24691_v9 = vmax.f32 %v24690_v11, 0.0  ;;  %v24693_v18 = vld [vmem:[#allocation113_spill] sm:$0xff]  ;;  %v24697_v56 = vmax.f32 %v24696_v49, 0.0  ;;  %v24698_v50 = vld [vmem:[#allocation51_spill] sm:$0xff]  ;;  %1992 = vst.msk [vmem:[#allocation2 + $0x140] sm:$0xff] %vm629_vm0, %v1906_v4  ;;  %1993 = vst.msk [vmem:[#allocation2 + $0x148] sm:$0xff] %vm629_vm0, %v1907_v41 }
 0x228   :  { %v1913_v1 = vmul.f32 %v24689_v33, %v24688_v42  ;;  %v24694_v35 = vmax.f32 %v24693_v18, 0.0  ;;  %v24695_v57 = vld [vmem:[#allocation49_spill] sm:$0xff]  ;;  %1994 = vst.msk [vmem:[#allocation2 + $0x150] sm:$0xff] %vm629_vm0, %v1908_v61  ;;  %v24699_v8 = vld [vmem:[#allocation71_spill] sm:$0xff]  ;;  %v24702_v34 = vld [vmem:[#allocation70_spill] sm:$0xff]  ;;  %v19439_v61 = vpop.permute.xlu1 %1853 }
 0x229   :  { %v1914_v30 = vmul.f32 %v24692_v17, %v24691_v9  ;;  %v1916_v58 = vmul.f32 %v24698_v50, %v24697_v56  ;;  %v24700_v26 = vmax.f32 %v24699_v8, 0.0  ;;  %v24701_v48 = vld [vmem:[#allocation53_spill] sm:$0xff]  ;;  %v24703_v47 = vmax.f32 %v24702_v34, 0.0  ;;  %v24704_v3 = vld [vmem:[#allocation55_spill] sm:$0xff]  ;;  %v24707_v6 = vld [vmem:[#allocation56_spill] sm:$0xff]  ;;  %1995 = vst.msk [vmem:[#allocation2 + $0x158] sm:$0xff] %vm629_vm0, %v1909_v36 }
 0x22a   :  { %v1915_v51 = vmul.f32 %v24695_v57, %v24694_v35  ;;  %v24705_v52 = vld [vmem:[#allocation75_spill] sm:$0xff]  ;;  %v24708_v59 = vld [vmem:[#allocation74_spill] sm:$0xff]  ;;  %v24710_v38 = vld [vmem:[#allocation57_spill] sm:$0xff]  ;;  %1996 = vst.msk [vmem:[#allocation2 + $0x160] sm:$0xff] %vm629_vm0, %v1910_v19  ;;  %v24720_v19 = vmax.f32 %v24560_v53, 0.0  ;;  %v24736_v34 = vmax.f32 %v24566_v5, 0.0 }
 0x22b   :  { %v1917_v43 = vmul.f32 %v24701_v48, %v24700_v26  ;;  %v1918_v54 = vmul.f32 %v24704_v3, %v24703_v47  ;;  %v24706_v23 = vmax.f32 %v24705_v52, 0.0  ;;  %v24709_v63 = vmax.f32 %v24708_v59, 0.0  ;;  %1997 = vst.msk [vmem:[#allocation2 + $0x168] sm:$0xff] %vm629_vm0, %v1911_v25  ;;  %1998 = vst.msk [vmem:[#allocation2 + $0x170] sm:$0xff] %vm629_vm0, %v1912_v22  ;;  %v2128_v41 = vld [vmem:[#allocation2 + $0x9] sm:$0xff]  ;;  %v24711_v39 = vld [vmem:[#allocation77_spill] sm:$0xff] }
 0x22c   :  { %v24712_v29 = vmax.f32 %v24711_v39, 0.0  ;;  %v24713_v2 = vld [vmem:[#allocation58_spill] sm:$0xff]  ;;  %v24714_v62 = vld [vmem:[#allocation76_spill] sm:$0xff]  ;;  %v24716_v27 = vld [vmem:[#allocation59_spill] sm:$0xff]  ;;  %1999 = vst.msk [vmem:[#allocation2 + $0x178] sm:$0xff] %vm629_vm0, %v1913_v1  ;;  %13040 = vmatmul.mubr.msk.f32.gmra.mrb[88].mxu0 %vm629_vm0, %v2128_v41 }
 0x22d   :  { %v1919_v46 = vmul.f32 %v24707_v6, %v24706_v23  ;;  %v1920_v4 = vmul.f32 %v24710_v38, %v24709_v63  ;;  %v24715_v31 = vmax.f32 %v24714_v62, 0.0  ;;  %v24717_v37 = vld [vmem:[#allocation79_spill] sm:$0xff]  ;;  %v24719_v36 = vld [vmem:[#allocation60_spill] sm:$0xff]  ;;  %v24721_v25 = vld [vmem:[#allocation61_spill] sm:$0xff]  ;;  %2000 = vst.msk [vmem:[#allocation2 + $0x180] sm:$0xff] %vm629_vm0, %v1914_v30  ;;  %v24746_v38 = vmax.f32 %v24569_v21, 0.0  ;;  %13042 = vmatprep.mubr.msk.f32.mxu0 %vm16728_vm1, %v24686_v16 }
 0x22e   :  { %v1921_v15 = vmul.f32 %v24713_v2, %v24712_v29  ;;  %v24718_v10 = vmax.f32 %v24717_v37, 0.0  ;;  %v1924_v44 = vmul.f32 %v24721_v25, %v24720_v19  ;;  %2001 = vst.msk [vmem:[#allocation2 + $0x188] sm:$0xff] %vm629_vm0, %v1915_v51  ;;  %2002 = vst.msk [vmem:[#allocation2 + $0x190] sm:$0xff] %vm629_vm0, %v1916_v58  ;;  %v5428_v22 = vld [vmem:[#allocation2 + $0x9b] sm:$0xff]  ;;  %v24724_v11 = vld [vmem:[#allocation62_spill] sm:$0xff]  ;;  %v24734_v58 = vmax.f32 %v24565_v40, 0.0 }
 0x22f   :  { %v1922_v13 = vmul.f32 %v24716_v27, %v24715_v31  ;;  %v24722_v42 = vld [vmem:[#allocation81_spill] sm:$0xff]  ;;  %v24725_v17 = vld [vmem:[#allocation80_spill] sm:$0xff]  ;;  %v24727_v53 = vld [vmem:[#allocation63_spill] sm:$0xff]  ;;  %2003 = vst.msk [vmem:[#allocation2 + $0x198] sm:$0xff] %vm629_vm0, %v1917_v43  ;;  %14124 = vmatmul.mubr.msk.f32.vlgmr.msra.gmra.mrb[0].mxu1 %vm629_vm0, %v5428_v22 }
 0x230   :  { %v1923_v0 = vmul.f32 %v24719_v36, %v24718_v10  ;;  %v24723_v33 = vmax.f32 %v24722_v42, 0.0  ;;  %v24726_v18 = vmax.f32 %v24725_v17, 0.0  ;;  %v24728_v57 = vld [vmem:[#allocation83_spill] sm:$0xff]  ;;  %v24730_v1 = vld [vmem:[#allocation64_spill] sm:$0xff]  ;;  %v24731_v30 = vld [vmem:[#allocation82_spill] sm:$0xff]  ;;  %2004 = vst.msk [vmem:[#allocation2 + $0x1a0] sm:$0xff] %vm629_vm0, %v1918_v54  ;;  %14126 = vmatprep.mubr.msk.f32.mxu1 %vm16728_vm1, %v24686_v16 }
 0x231   :  { %v24729_v49 = vmax.f32 %v24728_v57, 0.0  ;;  %v24732_v50 = vmax.f32 %v24731_v30, 0.0  ;;  %v24733_v51 = vld [vmem:[#allocation65_spill] sm:$0xff]  ;;  %2005 = vst.msk [vmem:[#allocation2 + $0x1a8] sm:$0xff] %vm629_vm0, %v1919_v46  ;;  %2006 = vst.msk [vmem:[#allocation2 + $0x1b0] sm:$0xff] %vm629_vm0, %v1920_v4  ;;  %v24735_v26 = vld [vmem:[#allocation66_spill] sm:$0xff] }
 0x232   :  { %v1925_v9 = vmul.f32 %v24724_v11, %v24723_v33  ;;  %v1926_v35 = vmul.f32 %v24727_v53, %v24726_v18  ;;  %v1929_v48 = vmul.f32 %v24735_v26, %v24734_v58  ;;  %v24737_v47 = vld [vmem:[#allocation67_spill] sm:$0xff]  ;;  %v24740_v6 = vld [vmem:[#allocation68_spill] sm:$0xff]  ;;  %v24741_v54 = vmax.f32 %v24568_v60, 0.0  ;;  %v24742_v59 = vld [vmem:[#allocation69_spill] sm:$0xff]  ;;  %2007 = vst.msk [vmem:[#allocation2 + $0x1b8] sm:$0xff] %vm629_vm0, %v1921_v15 }
 0x233   :  { %v1927_v56 = vmul.f32 %v24730_v1, %v24729_v49  ;;  %v1928_v8 = vmul.f32 %v24733_v51, %v24732_v50  ;;  %v1930_v3 = vmul.f32 %v24737_v47, %v24736_v34  ;;  %v24738_v52 = vld [vmem:[#allocation87_spill] sm:$0xff]  ;;  %2008 = vst.msk [vmem:[#allocation2 + $0x1c0] sm:$0xff] %vm629_vm0, %v1922_v13  ;;  %2009 = vst.msk [vmem:[#allocation2 + $0x1c8] sm:$0xff] %vm629_vm0, %v1923_v0  ;;  %v24744_v5 = vld [vmem:[#allocation126_spill] sm:$0xff]  ;;  %v24748_v60 = vmax.f32 %v24571_v7, 0.0 }
 0x234   :  { %v24739_v23 = vmax.f32 %v24738_v52, 0.0  ;;  %v1932_v46 = vmul.f32 %v24742_v59, %v24741_v54  ;;  %2010 = vst.msk [vmem:[#allocation2 + $0x1d0] sm:$0xff] %vm629_vm0, %v1924_v44  ;;  %v24743_v40 = vld [vmem:[#allocation127_spill] sm:$0xff]  ;;  %v24747_v4 = vld [vmem:[#allocation72_spill] sm:$0xff]  ;;  %v24749_v39 = vld [vmem:[#allocation73_spill] sm:$0xff]  ;;  %v24762_v42 = vmax.f32 %v19081_v55, 0.0 }
 0x235   :  { %v24745_v63 = vpack.c.bf16 %v24743_v40, %v24744_v5  ;;  %v1933_v41 = vmul.f32 %v24747_v4, %v24746_v38  ;;  %v1934_v29 = vmul.f32 %v24749_v39, %v24748_v60  ;;  %v24750_v2 = vld [vmem:[#allocation91_spill] sm:$0xff]  ;;  %v24752_v62 = vld [vmem:[#allocation129_spill] sm:$0xff]  ;;  %v24753_v27 = vld [vmem:[#allocation90_spill] sm:$0xff]  ;;  %2011 = vst.msk [vmem:[#allocation2 + $0x1d8] sm:$0xff] %vm629_vm0, %v1925_v9  ;;  %v24764_v9 = vmax.f32 %v19085_v24, 0.0 }
 0x236   :  { %v1931_v43 = vmul.f32 %v24740_v6, %v24739_v23  ;;  %v24751_v15 = vmax.f32 %v24750_v2, 0.0  ;;  %v24754_v13 = vmax.f32 %v24753_v27, 0.0  ;;  %v24755_v37 = vld [vmem:[#allocation119_spill] sm:$0xff]  ;;  %2012 = vst.msk [vmem:[#allocation2 + $0x1e0] sm:$0xff] %vm629_vm0, %v1926_v35  ;;  %2013 = vst.msk [vmem:[#allocation2 + $0x1e8] sm:$0xff] %vm629_vm0, %v1927_v56  ;;  %v24756_v21 = vld [vmem:[#allocation93_spill] sm:$0xff] }
 0x237   :  { %15445 = vmatpush3.bf16.msra.mxu1 %v24745_v63  ;;  %2014 = vst.msk [vmem:[#allocation2 + $0x1f0] sm:$0xff] %vm629_vm0, %v1928_v8  ;;  %v24757_v7 = vmax.f32 %v24756_v21, 0.0  ;;  %v24758_v36 = vld [vmem:[#allocation99_spill] sm:$0xff]  ;;  %v24759_v19 = vld [vmem:[#allocation92_spill] sm:$0xff]  ;;  %v24763_v33 = vld [vmem:[#allocation133_spill] sm:$0xff]  ;;  %v24769_v56 = vmax.f32 %v19093_v14, 0.0 }
 0x238   :  { %v1935_v31 = vmul.f32 %v24752_v62, %v24751_v15  ;;  %v1936_v10 = vmul.f32 %v24755_v37, %v24754_v13  ;;  %v24760_v25 = vmax.f32 %v24759_v19, 0.0  ;;  %v24761_v44 = vld [vmem:[#allocation120_spill] sm:$0xff]  ;;  %v1939_v11 = vmul.f32 %v24763_v33, %v24762_v42  ;;  %v24765_v17 = vld [vmem:[#allocation121_spill] sm:$0xff]  ;;  %2015 = vst.msk [vmem:[#allocation2 + $0x1f8] sm:$0xff] %vm629_vm0, %v1929_v48  ;;  %2016 = vst.msk [vmem:[#allocation2 + $0x200] sm:$0xff] %vm629_vm0, %v1930_v3  ;;  %v1864_v3 = vpop.permute.xlu1 %1863 }
 0x239   :  { %v1937_v0 = vmul.f32 %v24758_v36, %v24757_v7  ;;  %v1940_v18 = vmul.f32 %v24765_v17, %v24764_v9  ;;  %2017 = vst.msk [vmem:[#allocation2 + $0x208] sm:$0xff] %vm629_vm0, %v1931_v43  ;;  %2018 = vst.msk [vmem:[#allocation2 + $0x210] sm:$0xff] %vm629_vm0, %v1932_v46  ;;  %v5429_v53 = vld [vmem:[#allocation2 + $0xa3] sm:$0xff]  ;;  %v24766_v35 = vld [vmem:[#allocation95_spill] sm:$0xff]  ;;  %v24774_v48 = vmax.f32 %v19101_v20, 0.0  ;;  %v24778_v43 = vmax.f32 %v24577_v32, 0.0 }
 0x23a   :  { %v1938_v22 = vmul.f32 %v24761_v44, %v24760_v25  ;;  %v2119_v55 = vld [vmem:[%s24117_s2] sm:$0xff]  ;;  %v2120_v24 = vld [vmem:[%s24117_s2 + $0x8] sm:$0xff]  ;;  %v24767_v57 = vmax.f32 %v24766_v35, 0.0  ;;  %v24775_v34 = vld [vmem:[#allocation123_spill] sm:$0xff]  ;;  %2019 = vst.msk [vmem:[#allocation2 + $0x218] sm:$0xff] %vm629_vm0, %v1933_v41  ;;  %14127 = vmatmul.mubr.msk.f32.gmra.mrb[2].mxu1 %vm629_vm0, %v5429_v53  ;;  %v24782_v63 = vmax.f32 %v24579_v28, 0.0 }
 0x23b   :  { %v24768_v49 = vld [vmem:[#allocation134_spill] sm:$0xff]  ;;  %v1944_v47 = vmul.f32 %v24775_v34, %v24774_v48  ;;  %2020 = vst.msk [vmem:[#allocation2 + $0x220] sm:$0xff] %vm629_vm0, %v1934_v29  ;;  %2021 = vst.msk [vmem:[#allocation2 + $0x228] sm:$0xff] %vm629_vm0, %v1935_v31  ;;  %v11602_v14 = vld [vmem:[%s24117_s2 + $0x150] sm:$0xff]  ;;  %14129 = vmatprep.mubr.msk.f32.mxu1 %vm16728_vm1, %v24686_v16  ;;  %v15396_v29 = vpack.c.bf16 %v2120_v24, %v2119_v55  ;;  %v24788_v2 = vmov 0.0|0.0  }
 0x23c   :  { %v1941_v1 = vmul.f32 %v24768_v49, %v24767_v57  ;;  %v24770_v30 = vld [vmem:[#allocation122_spill] sm:$0xff]  ;;  %2022 = vst.msk [vmem:[#allocation2 + $0x230] sm:$0xff] %vm629_vm0, %v1936_v10  ;;  %v11603_v20 = vld [vmem:[%s24117_s2 + $0x158] sm:$0xff]  ;;  %v24776_v52 = vld [vmem:[#allocation97_spill] sm:$0xff]  ;;  %15446 = vmatprep.subr.bf16.mxu1 %v24788_v2 }
 0x23d   :  { %v1942_v50 = vmul.f32 %v24770_v30, %v24769_v56  ;;  %v24771_v51 = vld [vmem:[#allocation94_spill] sm:$0xff]  ;;  %v24777_v23 = vmax.f32 %v24776_v52, 0.0  ;;  %v24779_v54 = vld [vmem:[#allocation125_spill] sm:$0xff]  ;;  %v24783_v38 = vld [vmem:[#allocation128_spill] sm:$0xff]  ;;  %2023 = vst.msk [vmem:[#allocation2 + $0x238] sm:$0xff] %vm629_vm0, %v1937_v0  ;;  %v15447_v15 = vpack.c.bf16 %v11603_v20, %v11602_v14  ;;  %15397 = vmatpush3.bf16.msra.mxu0 %v15396_v29 }
 0x23e   :  { %v24772_v8 = vmax.f32 %v24771_v51, 0.0  ;;  %v24773_v58 = vld [vmem:[#allocation78_spill] sm:$0xff]  ;;  %v1946_v59 = vmul.f32 %v24779_v54, %v24778_v43  ;;  %v1948_v4 = vmul.f32 %v24783_v38, %v24782_v63  ;;  %2024 = vst.msk [vmem:[#allocation2 + $0x240] sm:$0xff] %vm629_vm0, %v1938_v22  ;;  %2025 = vst.msk [vmem:[#allocation2 + $0x248] sm:$0xff] %vm629_vm0, %v1939_v11  ;;  %v2129_v32 = vld [vmem:[#allocation2 + $0x11] sm:$0xff]  ;;  %15398 = vmatprep.subr.bf16.mxu0 %v24788_v2 }
 0x23f   :  { %v1945_v6 = vmul.f32 %v19241_v12, %v24777_v23  ;;  %v24780_v46 = vld [vmem:[#allocation98_spill] sm:$0xff]  ;;  %2026 = vst.msk [vmem:[#allocation2 + $0x250] sm:$0xff] %vm629_vm0, %v1940_v18  ;;  %v24784_v12 = vld [vmem:[#allocation131_spill] sm:$0xff]  ;;  %v24786_v60 = vld [vmem:[#allocation132_spill] sm:$0xff]  ;;  %13043 = vmatmul.mubr.msk.f32.gmra.mrb[90].mxu0 %vm629_vm0, %v2129_v32  ;;  %15448 = vmatpush3.bf16.msra.mxu1 %v15447_v15 }
 0x240   :  { %v1943_v26 = vmul.f32 %v24773_v58, %v24772_v8  ;;  %v24781_v40 = vmax.f32 %v24780_v46, 0.0  ;;  %v24785_v41 = vmax.f32 %v24784_v12, 0.0  ;;  %v24787_v28 = vmax.f32 %v24786_v60, 0.0  ;;  %2027 = vst.msk [vmem:[#allocation2 + $0x258] sm:$0xff] %vm629_vm0, %v1941_v1  ;;  %2028 = vst.msk [vmem:[#allocation2 + $0x260] sm:$0xff] %vm629_vm0, %v1942_v50  ;;  %13045 = vmatprep.mubr.msk.f32.mxu0 %vm16728_vm1, %v24686_v16  ;;  %v2130_v62 = vld [vmem:[#allocation2 + $0x19] sm:$0xff]  ;;  %15449 = vmatprep.subr.bf16.mxu1 %v24788_v2 }
 0x241   :  { %2030 = vst.msk [vmem:[#allocation2 + $0x270] sm:$0xff] %vm629_vm0, %v1944_v47  ;;  %2031 = vst.msk [vmem:[#allocation2 + $0x278] sm:$0xff] %vm629_vm0, %v1945_v6  ;;  %v5431_v31 = vld [vmem:[#allocation2 + $0xb3] sm:$0xff]  ;;  %v2131_v27 = vld [vmem:[#allocation2 + $0x21] sm:$0xff] }
 0x242   :  { %v1947_v5 = vmul.f32 %v19338_v45, %v24781_v40  ;;  %v1949_v45 = vmul.f32 %v19439_v61, %v24785_v41  ;;  %v1951_v39 = vmul.f32 %v1864_v3, %v24787_v28  ;;  %2029 = vst.msk [vmem:[#allocation2 + $0x268] sm:$0xff] %vm629_vm0, %v1943_v26  ;;  %2032 = vst.msk [vmem:[#allocation2 + $0x280] sm:$0xff] %vm629_vm0, %v1946_v59  ;;  %v5430_v61 = vld [vmem:[#allocation2 + $0xab] sm:$0xff]  ;;  %v5432_v13 = vld [vmem:[#allocation2 + $0xbb] sm:$0xff] }
 0x243   :  { %2034 = vst.msk [vmem:[#allocation2 + $0x290] sm:$0xff] %vm629_vm0, %v1948_v4  ;;  %14130 = vmatmul.mubr.msk.f32.gmra.mrb[4].mxu1 %vm629_vm0, %v5430_v61  ;;  %13046 = vmatmul.mubr.msk.f32.gmra.mrb[92].mxu0 %vm629_vm0, %v2130_v62  ;;  %v11604_v37 = vld [vmem:[%s24117_s2 + $0x160] sm:$0xff]  ;;  %v11605_v10 = vld [vmem:[%s24117_s2 + $0x168] sm:$0xff]  ;;  %v2121_v0 = vld [vmem:[%s24117_s2 + $0x10] sm:$0xff] }
 0x244   :  { %2033 = vst.msk [vmem:[#allocation2 + $0x288] sm:$0xff] %vm629_vm0, %v1947_v5  ;;  %2035 = vst.msk [vmem:[#allocation2 + $0x298] sm:$0xff] %vm629_vm0, %v1949_v45  ;;  %14132 = vmatprep.mubr.msk.f32.mxu1 %vm16728_vm1, %v24686_v16  ;;  %13048 = vmatprep.mubr.msk.f32.mxu0 %vm16728_vm1, %v24686_v16  ;;  %v2132_v21 = vld [vmem:[#allocation2 + $0x29] sm:$0xff]  ;;  %v15450_v7 = vpack.c.bf16 %v11605_v10, %v11604_v37  ;;  %v2122_v19 = vld [vmem:[%s24117_s2 + $0x18] sm:$0xff] }
 0x245   :  { %2037 = vst.msk [vmem:[#allocation2 + $0x2a8] sm:$0xff] %vm629_vm0, %v1951_v39  ;;  %v5433_v36 = vld [vmem:[#allocation2 + $0xc3] sm:$0xff]  ;;  %v15399_v25 = vpack.c.bf16 %v2122_v19, %v2121_v0  ;;  %v2133_v44 = vld [vmem:[#allocation2 + $0x31] sm:$0xff]  ;;  %v2134_v42 = vld [vmem:[#allocation2 + $0x39] sm:$0xff] }
 0x246   :  { %15451 = vmatpush3.bf16.msra.mxu1 %v15450_v7  ;;  %v5434_v22 = vld [vmem:[#allocation2 + $0xcb] sm:$0xff]  ;;  %v5435_v33 = vld [vmem:[#allocation2 + $0xd3] sm:$0xff]  ;;  %v2135_v11 = vld [vmem:[#allocation2 + $0x41] sm:$0xff] }
 0x247   :  { %14133 = vmatmul.mubr.msk.f32.gmra.mrb[6].mxu1 %vm629_vm0, %v5431_v31  ;;  %13049 = vmatmul.mubr.msk.f32.gmra.mrb[94].mxu0 %vm629_vm0, %v2131_v27  ;;  %v5436_v9 = vld [vmem:[#allocation2 + $0xdb] sm:$0xff]  ;;  %v2136_v17 = vld [vmem:[#allocation2 + $0x49] sm:$0xff]  ;;  %v2137_v53 = vld [vmem:[#allocation2 + $0x51] sm:$0xff] }
 0x248   :  { %14135 = vmatprep.mubr.msk.f32.mxu1 %vm16728_vm1, %v24686_v16  ;;  %13051 = vmatprep.mubr.msk.f32.mxu0 %vm16728_vm1, %v24686_v16  ;;  %v5437_v18 = vld [vmem:[#allocation2 + $0xe3] sm:$0xff]  ;;  %v5438_v55 = vld [vmem:[#allocation2 + $0xeb] sm:$0xff]  ;;  %v2138_v24 = vld [vmem:[#allocation2 + $0x59] sm:$0xff] }
 0x249   :  { %15452 = vmatprep.subr.bf16.mxu1 %v24788_v2  ;;  %15400 = vmatpush3.bf16.msra.mxu0 %v15399_v25  ;;  %v5439_v35 = vld [vmem:[#allocation2 + $0xf3] sm:$0xff]  ;;  %v2139_v57 = vld [vmem:[#allocation2 + $0x61] sm:$0xff]  ;;  %v2140_v1 = vld [vmem:[#allocation2 + $0x69] sm:$0xff] }
 0x24a   :  { %15401 = vmatprep.subr.bf16.mxu0 %v24788_v2  ;;  %v5440_v49 = vld [vmem:[#allocation2 + $0xfb] sm:$0xff]  ;;  %v5441_v56 = vld [vmem:[#allocation2 + $0x103] sm:$0xff]  ;;  %v2141_v30 = vld [vmem:[#allocation2 + $0x71] sm:$0xff] }
 0x24b   :  { %14136 = vmatmul.mubr.msk.f32.gmra.mrb[8].mxu1 %vm629_vm0, %v5432_v13  ;;  %13052 = vmatmul.mubr.msk.f32.gmra.mrb[96].mxu0 %vm629_vm0, %v2132_v21  ;;  %v5442_v50 = vld [vmem:[#allocation2 + $0x10b] sm:$0xff]  ;;  %v2142_v51 = vld [vmem:[#allocation2 + $0x79] sm:$0xff]  ;;  %v2143_v58 = vld [vmem:[#allocation2 + $0x81] sm:$0xff] }
 0x24c   :  { %14138 = vmatprep.mubr.msk.f32.mxu1 %vm16728_vm1, %v24686_v16  ;;  %13054 = vmatprep.mubr.msk.f32.mxu0 %vm16728_vm1, %v24686_v16  ;;  %v5443_v8 = vld [vmem:[#allocation2 + $0x113] sm:$0xff]  ;;  %v5444_v26 = vld [vmem:[#allocation2 + $0x11b] sm:$0xff]  ;;  %v2144_v47 = vld [vmem:[#allocation2 + $0x89] sm:$0xff] }
 0x24d   :  { %v11606_v48 = vld [vmem:[%s24117_s2 + $0x170] sm:$0xff]  ;;  %v11607_v34 = vld [vmem:[%s24117_s2 + $0x178] sm:$0xff]  ;;  %v5445_v20 = vld [vmem:[#allocation2 + $0x123] sm:$0xff] }
 0x24e   :  { %v15453_v14 = vpack.c.bf16 %v11607_v34, %v11606_v48  ;;  %v2145_v3 = vld [vmem:[#allocation2 + $0x91] sm:$0xff]  ;;  %v2146_v23 = vld [vmem:[#allocation2 + $0x99] sm:$0xff]  ;;  %v2147_v43 = vld [vmem:[#allocation2 + $0xa1] sm:$0xff] }
 0x24f   :  { %14139 = vmatmul.mubr.msk.f32.gmra.mrb[10].mxu1 %vm629_vm0, %v5433_v36  ;;  %13055 = vmatmul.mubr.msk.f32.gmra.mrb[98].mxu0 %vm629_vm0, %v2133_v44  ;;  %v5446_v52 = vld [vmem:[#allocation2 + $0x12b] sm:$0xff]  ;;  %v5447_v6 = vld [vmem:[#allocation2 + $0x133] sm:$0xff]  ;;  %v5448_v54 = vld [vmem:[#allocation2 + $0x13b] sm:$0xff] }
 0x250   :  { %14141 = vmatprep.mubr.msk.f32.mxu1 %vm16728_vm1, %v24686_v16  ;;  %13057 = vmatprep.mubr.msk.f32.mxu0 %vm16728_vm1, %v24686_v16  ;;  %v2148_v59 = vld [vmem:[#allocation2 + $0xa9] sm:$0xff]  ;;  %v2149_v40 = vld [vmem:[#allocation2 + $0xb1] sm:$0xff]  ;;  %v2150_v63 = vld [vmem:[#allocation2 + $0xb9] sm:$0xff] }
 0x251   :  { %15454 = vmatpush3.bf16.msra.mxu1 %v15453_v14  ;;  %v5449_v46 = vld [vmem:[#allocation2 + $0x143] sm:$0xff]  ;;  %v5450_v5 = vld [vmem:[#allocation2 + $0x14b] sm:$0xff]  ;;  %v5451_v38 = vld [vmem:[#allocation2 + $0x153] sm:$0xff] }
 0x252   :  { %15455 = vmatprep.subr.bf16.mxu1 %v24788_v2  ;;  %v2123_v4 = vld [vmem:[%s24117_s2 + $0x20] sm:$0xff]  ;;  %v2124_v32 = vld [vmem:[%s24117_s2 + $0x28] sm:$0xff]  ;;  %v2153_v39 = vld [vmem:[#allocation2 + $0xd1] sm:$0xff] }
 0x253   :  { %14142 = vmatmul.mubr.msk.f32.gmra.mrb[12].mxu1 %vm629_vm0, %v5434_v22  ;;  %13058 = vmatmul.mubr.msk.f32.gmra.mrb[100].mxu0 %vm629_vm0, %v2134_v42  ;;  %v2151_v12 = vld [vmem:[#allocation2 + $0xc1] sm:$0xff]  ;;  %v15402_v41 = vpack.c.bf16 %v2124_v32, %v2123_v4  ;;  %v2152_v60 = vld [vmem:[#allocation2 + $0xc9] sm:$0xff]  ;;  %v2154_v61 = vld [vmem:[#allocation2 + $0xd9] sm:$0xff] }
 0x254   :  { %14144 = vmatprep.mubr.msk.f32.mxu1 %vm16728_vm1, %v24686_v16  ;;  %13060 = vmatprep.mubr.msk.f32.mxu0 %vm16728_vm1, %v24686_v16  ;;  %v5452_v45 = vld [vmem:[#allocation2 + $0x15b] sm:$0xff]  ;;  %v5453_v28 = vld [vmem:[#allocation2 + $0x163] sm:$0xff]  ;;  %v5454_v29 = vld [vmem:[#allocation2 + $0x16b] sm:$0xff] }
 0x255   :  { %15403 = vmatpush3.bf16.msra.mxu0 %v15402_v41  ;;  %v5455_v15 = vld [vmem:[#allocation2 + $0x173] sm:$0xff]  ;;  %v2155_v62 = vld [vmem:[#allocation2 + $0xe1] sm:$0xff]  ;;  %v2156_v27 = vld [vmem:[#allocation2 + $0xe9] sm:$0xff] }
 0x256   :  { %15404 = vmatprep.subr.bf16.mxu0 %v24788_v2  ;;  %v5456_v31 = vld [vmem:[#allocation2 + $0x17b] sm:$0xff]  ;;  %v5457_v13 = vld [vmem:[#allocation2 + $0x183] sm:$0xff]  ;;  %v2157_v37 = vld [vmem:[#allocation2 + $0xf1] sm:$0xff] }
 0x257   :  { %14145 = vmatmul.mubr.msk.f32.gmra.mrb[14].mxu1 %vm629_vm0, %v5435_v33  ;;  %13061 = vmatmul.mubr.msk.f32.gmra.mrb[102].mxu0 %vm629_vm0, %v2135_v11  ;;  %v5458_v10 = vld [vmem:[#allocation2 + $0x18b] sm:$0xff]  ;;  %v2158_v21 = vld [vmem:[#allocation2 + $0xf9] sm:$0xff]  ;;  %v2159_v36 = vld [vmem:[#allocation2 + $0x101] sm:$0xff] }
 0x258   :  { %14147 = vmatprep.mubr.msk.f32.mxu1 %vm16728_vm1, %v24686_v16  ;;  %13063 = vmatprep.mubr.msk.f32.mxu0 %vm16728_vm1, %v24686_v16  ;;  %v5459_v7 = vld [vmem:[#allocation2 + $0x193] sm:$0xff]  ;;  %v5460_v0 = vld [vmem:[#allocation2 + $0x19b] sm:$0xff]  ;;  %v2160_v19 = vld [vmem:[#allocation2 + $0x109] sm:$0xff] }
 0x259   :  { %v5461_v25 = vld [vmem:[#allocation2 + $0x1a3] sm:$0xff]  ;;  %v2161_v44 = vld [vmem:[#allocation2 + $0x111] sm:$0xff]  ;;  %v2162_v42 = vld [vmem:[#allocation2 + $0x119] sm:$0xff] }
 0x25a   :  { %v5462_v22 = vld [vmem:[#allocation2 + $0x1ab] sm:$0xff]  ;;  %v5463_v33 = vld [vmem:[#allocation2 + $0x1b3] sm:$0xff]  ;;  %v2163_v11 = vld [vmem:[#allocation2 + $0x121] sm:$0xff] }
 0x25b   :  { %14148 = vmatmul.mubr.msk.f32.gmra.mrb[16].mxu1 %vm629_vm0, %v5436_v9  ;;  %13064 = vmatmul.mubr.msk.f32.gmra.mrb[104].mxu0 %vm629_vm0, %v2136_v17  ;;  %v5464_v9 = vld [vmem:[#allocation2 + $0x1bb] sm:$0xff]  ;;  %v2164_v17 = vld [vmem:[#allocation2 + $0x129] sm:$0xff] }
 0x25c   :  { %14150 = vmatprep.mubr.msk.f32.mxu1 %vm16728_vm1, %v24686_v16  ;;  %13066 = vmatprep.mubr.msk.f32.mxu0 %vm16728_vm1, %v24686_v16  ;;  %v2171_v48 = vld [vmem:[#allocation2 + $0x161] sm:$0xff]  ;;  %v2172_v14 = vld [vmem:[#allocation2 + $0x169] sm:$0xff] }
 0x25d   :  { %v2179_v4 = vld [vmem:[#allocation2 + $0x1a1] sm:$0xff] }
 0x25e   :  { %v5480_v32 = vld [vmem:[#allocation2 + $0x23b] sm:$0xff]  ;;  %v5481_v41 = vld [vmem:[#allocation2 + $0x243] sm:$0xff] }
 0x25f   :  { %14151 = vmatmul.mubr.msk.f32.gmra.mrb[18].mxu1 %vm629_vm0, %v5437_v18  ;;  %13067 = vmatmul.mubr.msk.f32.gmra.mrb[106].mxu0 %vm629_vm0, %v2137_v53  ;;  %v5465_v18 = vld [vmem:[#allocation2 + $0x1c3] sm:$0xff]  ;;  %v2165_v53 = vld [vmem:[#allocation2 + $0x131] sm:$0xff] }
 0x260   :  { %14153 = vmatprep.mubr.msk.f32.mxu1 %vm16728_vm1, %v24686_v16  ;;  %13069 = vmatprep.mubr.msk.f32.mxu0 %vm16728_vm1, %v24686_v16 }
 0x263   :  { %14154 = vmatmul.mubr.msk.f32.gmra.mrb[20].mxu1 %vm629_vm0, %v5438_v55  ;;  %13070 = vmatmul.mubr.msk.f32.gmra.mrb[108].mxu0 %vm629_vm0, %v2138_v24  ;;  %v5466_v55 = vld [vmem:[#allocation2 + $0x1cb] sm:$0xff]  ;;  %v2166_v24 = vld [vmem:[#allocation2 + $0x139] sm:$0xff] }
 0x264   :  { %14156 = vmatprep.mubr.msk.f32.mxu1 %vm16728_vm1, %v24686_v16  ;;  %13072 = vmatprep.mubr.msk.f32.mxu0 %vm16728_vm1, %v24686_v16 }
 0x267   :  { %14157 = vmatmul.mubr.msk.f32.gmra.mrb[22].mxu1 %vm629_vm0, %v5439_v35  ;;  %13073 = vmatmul.mubr.msk.f32.gmra.mrb[110].mxu0 %vm629_vm0, %v2139_v57  ;;  %v5467_v35 = vld [vmem:[#allocation2 + $0x1d3] sm:$0xff]  ;;  %v2167_v57 = vld [vmem:[#allocation2 + $0x141] sm:$0xff] }
 0x268   :  { %14159 = vmatprep.mubr.msk.f32.mxu1 %vm16728_vm1, %v24686_v16  ;;  %13075 = vmatprep.mubr.msk.f32.mxu0 %vm16728_vm1, %v24686_v16 }
 0x26b   :  { %14160 = vmatmul.mubr.msk.f32.gmra.mrb[24].mxu1 %vm629_vm0, %v5440_v49  ;;  %13076 = vmatmul.mubr.msk.f32.gmra.mrb[112].mxu0 %vm629_vm0, %v2140_v1  ;;  %v5468_v49 = vld [vmem:[#allocation2 + $0x1db] sm:$0xff]  ;;  %v2168_v1 = vld [vmem:[#allocation2 + $0x149] sm:$0xff] }
 0x26c   :  { %14162 = vmatprep.mubr.msk.f32.mxu1 %vm16728_vm1, %v24686_v16  ;;  %13078 = vmatprep.mubr.msk.f32.mxu0 %vm16728_vm1, %v24686_v16 }
 0x26f   :  { %14163 = vmatmul.mubr.msk.f32.gmra.mrb[26].mxu1 %vm629_vm0, %v5441_v56  ;;  %13079 = vmatmul.mubr.msk.f32.gmra.mrb[114].mxu0 %vm629_vm0, %v2141_v30  ;;  %v5469_v56 = vld [vmem:[#allocation2 + $0x1e3] sm:$0xff]  ;;  %v2169_v30 = vld [vmem:[#allocation2 + $0x151] sm:$0xff] }
 0x270   :  { %14165 = vmatprep.mubr.msk.f32.mxu1 %vm16728_vm1, %v24686_v16  ;;  %13081 = vmatprep.mubr.msk.f32.mxu0 %vm16728_vm1, %v24686_v16 }
 0x273   :  { %14166 = vmatmul.mubr.msk.f32.gmra.mrb[28].mxu1 %vm629_vm0, %v5442_v50  ;;  %13082 = vmatmul.mubr.msk.f32.gmra.mrb[116].mxu0 %vm629_vm0, %v2142_v51  ;;  %v5470_v50 = vld [vmem:[#allocation2 + $0x1eb] sm:$0xff]  ;;  %v2170_v51 = vld [vmem:[#allocation2 + $0x159] sm:$0xff] }
 0x274   :  { %14168 = vmatprep.mubr.msk.f32.mxu1 %vm16728_vm1, %v24686_v16  ;;  %13084 = vmatprep.mubr.msk.f32.mxu0 %vm16728_vm1, %v24686_v16 }
 0x277   :  { %14169 = vmatmul.mubr.msk.f32.gmra.mrb[30].mxu1 %vm629_vm0, %v5443_v8  ;;  %13085 = vmatmul.mubr.msk.f32.gmra.mrb[118].mxu0 %vm629_vm0, %v2143_v58  ;;  %v5471_v8 = vld [vmem:[#allocation2 + $0x1f3] sm:$0xff] }
 0x278   :  { %14171 = vmatprep.mubr.msk.f32.mxu1 %vm16728_vm1, %v24686_v16  ;;  %13087 = vmatprep.mubr.msk.f32.mxu0 %vm16728_vm1, %v24686_v16  ;;  %v2125_v58 = vld [vmem:[%s24117_s2 + $0x30] sm:$0xff] }
 0x27b   :  { %14172 = vmatmul.mubr.msk.f32.gmra.mrb[32].mxu1 %vm629_vm0, %v5444_v26  ;;  %13088 = vmatmul.mubr.msk.f32.gmra.mrb[120].mxu0 %vm629_vm0, %v2144_v47  ;;  %v2126_v26 = vld [vmem:[%s24117_s2 + $0x38] sm:$0xff] }
 0x27c   :  { %14174 = vmatprep.mubr.msk.f32.mxu1 %vm16728_vm1, %v24686_v16  ;;  %13090 = vmatprep.mubr.msk.f32.mxu0 %vm16728_vm1, %v24686_v16  ;;  %v15405_v34 = vpack.c.bf16 %v2126_v26, %v2125_v58  ;;  %v5472_v47 = vld [vmem:[#allocation2 + $0x1fb] sm:$0xff]  ;;  %v6301_v58 = vld [vmem:[#allocation2 + $0x44] sm:$0xff] }
 0x27d   :  { %v2198_v26 = vld [vmem:[#allocation2 + $0x239] sm:$0xff] }
 0x27e   :  { %15406 = vmatpush3.bf16.msra.mxu0 %v15405_v34  ;;  %v2199_v34 = vld [vmem:[#allocation2 + $0x241] sm:$0xff] }
 0x27f   :  { %14175 = vmatmul.mubr.msk.f32.gmra.mrb[34].mxu1 %vm629_vm0, %v5445_v20  ;;  %13091 = vmatmul.mubr.msk.f32.gmra.mrb[122].mxu0 %vm629_vm0, %v2145_v3  ;;  %v5473_v20 = vld [vmem:[#allocation2 + $0x203] sm:$0xff]  ;;  %v2173_v3 = vld [vmem:[#allocation2 + $0x171] sm:$0xff] }
 0x280   :  { %14177 = vmatprep.mubr.msk.f32.mxu1 %vm16728_vm1, %v24686_v16  ;;  %13093 = vmatprep.mubr.msk.f32.mxu0 %vm16728_vm1, %v24686_v16 }
 0x281   :  { %15407 = vmatprep.subr.bf16.mxu0 %v24788_v2 }
 0x283   :  { %14178 = vmatmul.mubr.msk.f32.gmra.mrb[36].mxu1 %vm629_vm0, %v5446_v52  ;;  %13094 = vmatmul.mubr.msk.f32.gmra.mrb[124].mxu0 %vm629_vm0, %v2146_v23  ;;  %v5474_v52 = vld [vmem:[#allocation2 + $0x20b] sm:$0xff]  ;;  %v2174_v23 = vld [vmem:[#allocation2 + $0x179] sm:$0xff] }
 0x284   :  { %14180 = vmatprep.mubr.msk.f32.mxu1 %vm16728_vm1, %v24686_v16  ;;  %13096 = vmatprep.mubr.msk.f32.mxu0 %vm16728_vm1, %v24686_v16 }
 0x287   :  { %14181 = vmatmul.mubr.msk.f32.gmra.mrb[38].mxu1 %vm629_vm0, %v5447_v6  ;;  %13097 = vmatmul.mubr.msk.f32.gmra.mrb[126].mxu0 %vm629_vm0, %v2147_v43  ;;  %v5475_v6 = vld [vmem:[#allocation2 + $0x213] sm:$0xff]  ;;  %v2175_v43 = vld [vmem:[#allocation2 + $0x181] sm:$0xff] }
 0x288   :  { %14183 = vmatprep.mubr.msk.f32.mxu1 %vm16728_vm1, %v24686_v16  ;;  %13099 = vmatprep.mubr.msk.f32.mxu0 %vm16728_vm1, %v24686_v16 }
 0x28b   :  { %14184 = vmatmul.mubr.msk.f32.gmra.mrb[40].mxu1 %vm629_vm0, %v5448_v54  ;;  %13100 = vmatmul.mubr.msk.f32.gmra.mrb[128].mxu0 %vm629_vm0, %v2148_v59  ;;  %v5476_v54 = vld [vmem:[#allocation2 + $0x21b] sm:$0xff]  ;;  %v2176_v59 = vld [vmem:[#allocation2 + $0x189] sm:$0xff] }
 0x28c   :  { %14186 = vmatprep.mubr.msk.f32.mxu1 %vm16728_vm1, %v24686_v16  ;;  %13102 = vmatprep.mubr.msk.f32.mxu0 %vm16728_vm1, %v24686_v16 }
 0x28f   :  { %14187 = vmatmul.mubr.msk.f32.gmra.mrb[42].mxu1 %vm629_vm0, %v5449_v46  ;;  %13103 = vmatmul.mubr.msk.f32.gmra.mrb[130].mxu0 %vm629_vm0, %v2149_v40  ;;  %v5477_v46 = vld [vmem:[#allocation2 + $0x223] sm:$0xff]  ;;  %v2177_v40 = vld [vmem:[#allocation2 + $0x191] sm:$0xff] }
 0x290   :  { %14189 = vmatprep.mubr.msk.f32.mxu1 %vm16728_vm1, %v24686_v16  ;;  %13105 = vmatprep.mubr.msk.f32.mxu0 %vm16728_vm1, %v24686_v16 }
 0x293   :  { %14190 = vmatmul.mubr.msk.f32.gmra.mrb[44].mxu1 %vm629_vm0, %v5450_v5  ;;  %13106 = vmatmul.mubr.msk.f32.gmra.mrb[132].mxu0 %vm629_vm0, %v2150_v63  ;;  %v5478_v5 = vld [vmem:[#allocation2 + $0x22b] sm:$0xff]  ;;  %v2178_v63 = vld [vmem:[#allocation2 + $0x199] sm:$0xff] }
 0x294   :  { %14192 = vmatprep.mubr.msk.f32.mxu1 %vm16728_vm1, %v24686_v16  ;;  %13108 = vmatprep.mubr.msk.f32.mxu0 %vm16728_vm1, %v24686_v16 }
 0x297   :  { %14193 = vmatmul.mubr.msk.f32.gmra.mrb[46].mxu1 %vm629_vm0, %v5451_v38  ;;  %13109 = vmatmul.mubr.msk.f32.gmra.mrb[134].mxu0 %vm629_vm0, %v2151_v12  ;;  %v5479_v38 = vld [vmem:[#allocation2 + $0x233] sm:$0xff]  ;;  %v2180_v12 = vld [vmem:[#allocation2 + $0x1a9] sm:$0xff] }
 0x298   :  { %14195 = vmatprep.mubr.msk.f32.mxu1 %vm16728_vm1, %v24686_v16  ;;  %13111 = vmatprep.mubr.msk.f32.mxu0 %vm16728_vm1, %v24686_v16 }
 0x29b   :  { %14196 = vmatmul.mubr.msk.f32.gmra.mrb[48].mxu1 %vm629_vm0, %v5452_v45  ;;  %13112 = vmatmul.mubr.msk.f32.gmra.mrb[136].mxu0 %vm629_vm0, %v2152_v60  ;;  %v2181_v45 = vld [vmem:[#allocation2 + $0x1b1] sm:$0xff] }
 0x29c   :  { %14198 = vmatprep.mubr.msk.f32.mxu1 %vm16728_vm1, %v24686_v16  ;;  %13114 = vmatprep.mubr.msk.f32.mxu0 %vm16728_vm1, %v24686_v16  ;;  %v5482_v60 = vld [vmem:[#allocation2 + $0x24b] sm:$0xff] }
 0x29f   :  { %14199 = vmatmul.mubr.msk.f32.gmra.mrb[50].mxu1 %vm629_vm0, %v5453_v28  ;;  %13115 = vmatmul.mubr.msk.f32.gmra.mrb[138].mxu0 %vm629_vm0, %v2153_v39  ;;  %v2182_v28 = vld [vmem:[#allocation2 + $0x1b9] sm:$0xff] }
 0x2a0   :  { %14201 = vmatprep.mubr.msk.f32.mxu1 %vm16728_vm1, %v24686_v16  ;;  %13117 = vmatprep.mubr.msk.f32.mxu0 %vm16728_vm1, %v24686_v16  ;;  %v5483_v39 = vld [vmem:[#allocation2 + $0x253] sm:$0xff] }
 0x2a3   :  { %14202 = vmatmul.mubr.msk.f32.gmra.mrb[52].mxu1 %vm629_vm0, %v5454_v29  ;;  %13118 = vmatmul.mubr.msk.f32.gmra.mrb[140].mxu0 %vm629_vm0, %v2154_v61  ;;  %v2183_v29 = vld [vmem:[#allocation2 + $0x1c1] sm:$0xff] }
 0x2a4   :  { %14204 = vmatprep.mubr.msk.f32.mxu1 %vm16728_vm1, %v24686_v16  ;;  %13120 = vmatprep.mubr.msk.f32.mxu0 %vm16728_vm1, %v24686_v16  ;;  %v5484_v61 = vld [vmem:[#allocation2 + $0x25b] sm:$0xff] }
 0x2a7   :  { %14205 = vmatmul.mubr.msk.f32.gmra.mrb[54].mxu1 %vm629_vm0, %v5455_v15  ;;  %13121 = vmatmul.mubr.msk.f32.gmra.mrb[142].mxu0 %vm629_vm0, %v2155_v62  ;;  %v2184_v15 = vld [vmem:[#allocation2 + $0x1c9] sm:$0xff] }
 0x2a8   :  { %14207 = vmatprep.mubr.msk.f32.mxu1 %vm16728_vm1, %v24686_v16  ;;  %13123 = vmatprep.mubr.msk.f32.mxu0 %vm16728_vm1, %v24686_v16  ;;  %v5485_v62 = vld [vmem:[#allocation2 + $0x263] sm:$0xff] }
 0x2ab   :  { %14208 = vmatmul.mubr.msk.f32.gmra.mrb[56].mxu1 %vm629_vm0, %v5456_v31  ;;  %13124 = vmatmul.mubr.msk.f32.gmra.mrb[144].mxu0 %vm629_vm0, %v2156_v27  ;;  %v2185_v31 = vld [vmem:[#allocation2 + $0x1d1] sm:$0xff] }
 0x2ac   :  { %14210 = vmatprep.mubr.msk.f32.mxu1 %vm16728_vm1, %v24686_v16  ;;  %13126 = vmatprep.mubr.msk.f32.mxu0 %vm16728_vm1, %v24686_v16  ;;  %v5486_v27 = vld [vmem:[#allocation2 + $0x26b] sm:$0xff] }
 0x2af   :  { %14211 = vmatmul.mubr.msk.f32.gmra.mrb[58].mxu1 %vm629_vm0, %v5457_v13  ;;  %13127 = vmatmul.mubr.msk.f32.gmra.mrb[146].mxu0 %vm629_vm0, %v2157_v37  ;;  %v2186_v13 = vld [vmem:[#allocation2 + $0x1d9] sm:$0xff] }
 0x2b0   :  { %14213 = vmatprep.mubr.msk.f32.mxu1 %vm16728_vm1, %v24686_v16  ;;  %13129 = vmatprep.mubr.msk.f32.mxu0 %vm16728_vm1, %v24686_v16  ;;  %v5487_v37 = vld [vmem:[#allocation2 + $0x273] sm:$0xff] }
 0x2b3   :  { %14214 = vmatmul.mubr.msk.f32.gmra.mrb[60].mxu1 %vm629_vm0, %v5458_v10  ;;  %13130 = vmatmul.mubr.msk.f32.gmra.mrb[148].mxu0 %vm629_vm0, %v2158_v21  ;;  %v2187_v10 = vld [vmem:[#allocation2 + $0x1e1] sm:$0xff] }
 0x2b4   :  { %14216 = vmatprep.mubr.msk.f32.mxu1 %vm16728_vm1, %v24686_v16  ;;  %13132 = vmatprep.mubr.msk.f32.mxu0 %vm16728_vm1, %v24686_v16  ;;  %v5488_v21 = vld [vmem:[#allocation2 + $0x27b] sm:$0xff] }
 0x2b7   :  { %14217 = vmatmul.mubr.msk.f32.gmra.mrb[62].mxu1 %vm629_vm0, %v5459_v7  ;;  %13133 = vmatmul.mubr.msk.f32.gmra.mrb[150].mxu0 %vm629_vm0, %v2159_v36  ;;  %v2188_v7 = vld [vmem:[#allocation2 + $0x1e9] sm:$0xff] }
 0x2b8   :  { %14219 = vmatprep.mubr.msk.f32.mxu1 %vm16728_vm1, %v24686_v16  ;;  %13135 = vmatprep.mubr.msk.f32.mxu0 %vm16728_vm1, %v24686_v16  ;;  %v5489_v36 = vld [vmem:[#allocation2 + $0x283] sm:$0xff] }
 0x2bb   :  { %14220 = vmatmul.mubr.msk.f32.gmra.mrb[64].mxu1 %vm629_vm0, %v5460_v0  ;;  %13136 = vmatmul.mubr.msk.f32.gmra.mrb[152].mxu0 %vm629_vm0, %v2160_v19  ;;  %v2189_v0 = vld [vmem:[#allocation2 + $0x1f1] sm:$0xff] }
 0x2bc   :  { %14222 = vmatprep.mubr.msk.f32.mxu1 %vm16728_vm1, %v24686_v16  ;;  %13138 = vmatprep.mubr.msk.f32.mxu0 %vm16728_vm1, %v24686_v16  ;;  %v5490_v19 = vld [vmem:[#allocation2 + $0x28b] sm:$0xff] }
 0x2bf   :  { %14223 = vmatmul.mubr.msk.f32.gmra.mrb[66].mxu1 %vm629_vm0, %v5461_v25  ;;  %13139 = vmatmul.mubr.msk.f32.gmra.mrb[154].mxu0 %vm629_vm0, %v2161_v44  ;;  %v2190_v25 = vld [vmem:[#allocation2 + $0x1f9] sm:$0xff] }
 0x2c0   :  { %14225 = vmatprep.mubr.msk.f32.mxu1 %vm16728_vm1, %v24686_v16  ;;  %13141 = vmatprep.mubr.msk.f32.mxu0 %vm16728_vm1, %v24686_v16  ;;  %v11689_v44 = vld [vmem:[%s24117_s2 + $0x180] sm:$0xff] }
 0x2c3   :  { %14226 = vmatmul.mubr.msk.f32.gmra.mrb[68].mxu1 %vm629_vm0, %v5462_v22  ;;  %13142 = vmatmul.mubr.msk.f32.gmra.mrb[156].mxu0 %vm629_vm0, %v2162_v42  ;;  %v11690_v22 = vld [vmem:[%s24117_s2 + $0x188] sm:$0xff]  ;;  %v5491_v42 = vld [vmem:[#allocation2 + $0x293] sm:$0xff] }
 0x2c4   :  { %14228 = vmatprep.mubr.msk.f32.mxu1 %vm16728_vm1, %v24686_v16  ;;  %13144 = vmatprep.mubr.msk.f32.mxu0 %vm16728_vm1, %v24686_v16 }
 0x2c7   :  { %14229 = vmatmul.mubr.msk.f32.gmra.mrb[70].mxu1 %vm629_vm0, %v5463_v33  ;;  %13145 = vmatmul.mubr.msk.f32.gmra.mrb[158].mxu0 %vm629_vm0, %v2163_v11  ;;  %v2191_v33 = vld [vmem:[#allocation2 + $0x201] sm:$0xff]  ;;  %v15456_v11 = vpack.c.bf16 %v11690_v22, %v11689_v44  ;;  %v2044_v44 = vld [vmem:[#allocation2 + $0x30] sm:$0xff] }
 0x2c8   :  { %14231 = vmatprep.mubr.msk.f32.mxu1 %vm16728_vm1, %v24686_v16  ;;  %13147 = vmatprep.mubr.msk.f32.mxu0 %vm16728_vm1, %v24686_v16  ;;  %v6318_v22 = vld [vmem:[#allocation2 + $0xcc] sm:$0xff] }
 0x2cb   :  { %14232 = vmatmul.mubr.msk.f32.gmra.mrb[72].mxu1 %vm629_vm0, %v5464_v9  ;;  %13148 = vmatmul.mubr.msk.f32.gmra.mrb[160].mxu0 %vm629_vm0, %v2164_v17  ;;  %v11691_v9 = vld [vmem:[%s24117_s2 + $0x190] sm:$0xff]  ;;  %v11692_v17 = vld [vmem:[%s24117_s2 + $0x198] sm:$0xff] }
 0x2cc   :  { %14234 = vmatprep.mubr.msk.f32.mxu1 %vm16728_vm1, %v24686_v16  ;;  %13150 = vmatprep.mubr.msk.f32.mxu0 %vm16728_vm1, %v24686_v16 }
 0x2cf   :  { %14235 = vmatmul.mubr.msk.f32.gmra.mrb[74].mxu1 %vm629_vm0, %v5465_v18  ;;  %13151 = vmatmul.mubr.msk.f32.gmra.mrb[162].mxu0 %vm629_vm0, %v2165_v53  ;;  %v6295_v18 = vld [vmem:[#allocation2 + $0x14] sm:$0xff]  ;;  %v2192_v53 = vld [vmem:[#allocation2 + $0x209] sm:$0xff] }
 0x2d0   :  { %14237 = vmatprep.mubr.msk.f32.mxu1 %vm16728_vm1, %v24686_v16  ;;  %13153 = vmatprep.mubr.msk.f32.mxu0 %vm16728_vm1, %v24686_v16 }
 0x2d3   :  { %14238 = vmatmul.mubr.msk.f32.gmra.mrb[76].mxu1 %vm629_vm0, %v5466_v55  ;;  %13154 = vmatmul.mubr.msk.f32.gmra.mrb[164].mxu0 %vm629_vm0, %v2166_v24  ;;  %v15459_v55 = vpack.c.bf16 %v11692_v17, %v11691_v9  ;;  %v6296_v24 = vld [vmem:[#allocation2 + $0x1c] sm:$0xff]  ;;  %v2047_v17 = vld [vmem:[#allocation2 + $0x48] sm:$0xff] }
 0x2d4   :  { %14240 = vmatprep.mubr.msk.f32.mxu1 %vm16728_vm1, %v24686_v16  ;;  %13156 = vmatprep.mubr.msk.f32.mxu0 %vm16728_vm1, %v24686_v16  ;;  %v6320_v9 = vld [vmem:[#allocation2 + $0xdc] sm:$0xff] }
 0x2d7   :  { %14241 = vmatmul.mubr.msk.f32.gmra.mrb[78].mxu1 %vm629_vm0, %v5467_v35  ;;  %13157 = vmatmul.mubr.msk.f32.gmra.mrb[166].mxu0 %vm629_vm0, %v2167_v57  ;;  %v2193_v35 = vld [vmem:[#allocation2 + $0x211] sm:$0xff]  ;;  %v20029_v57 = vld [vmem:[#allocation2 + $0x24] sm:$0xff] }
 0x2d8   :  { %14243 = vmatprep.mubr.msk.f32.mxu1 %vm16728_vm1, %v24686_v16  ;;  %13159 = vmatprep.mubr.msk.f32.mxu0 %vm16728_vm1, %v24686_v16 }
 0x2db   :  { %14244 = vmatmul.mubr.msk.f32.gmra.mrb[80].mxu1 %vm629_vm0, %v5468_v49  ;;  %13160 = vmatmul.mubr.msk.f32.gmra.mrb[168].mxu0 %vm629_vm0, %v2168_v1  ;;  %v2194_v49 = vld [vmem:[#allocation2 + $0x219] sm:$0xff]  ;;  %v6298_v1 = vld [vmem:[#allocation2 + $0x2c] sm:$0xff] }
 0x2dc   :  { %14246 = vmatprep.mubr.msk.f32.mxu1 %vm16728_vm1, %v24686_v16  ;;  %13162 = vmatprep.mubr.msk.f32.mxu0 %vm16728_vm1, %v24686_v16 }
 0x2df   :  { %14247 = vmatmul.mubr.msk.f32.gmra.mrb[82].mxu1 %vm629_vm0, %v5469_v56  ;;  %13163 = vmatmul.mubr.msk.f32.gmra.mrb[170].mxu0 %vm629_vm0, %v2169_v30  ;;  %v2195_v56 = vld [vmem:[#allocation2 + $0x221] sm:$0xff]  ;;  %v6299_v30 = vld [vmem:[#allocation2 + $0x34] sm:$0xff] }
 0x2e0   :  { %14249 = vmatprep.mubr.msk.f32.mxu1 %vm16728_vm1, %v24686_v16  ;;  %13165 = vmatprep.mubr.msk.f32.mxu0 %vm16728_vm1, %v24686_v16 }
 0x2e3   :  { %14250 = vmatmul.mubr.msk.f32.gmra.mrb[84].mxu1 %vm629_vm0, %v5470_v50  ;;  %13166 = vmatmul.mubr.msk.f32.gmra.mrb[172].mxu0 %vm629_vm0, %v2170_v51  ;;  %v2196_v50 = vld [vmem:[#allocation2 + $0x229] sm:$0xff]  ;;  %v6300_v51 = vld [vmem:[#allocation2 + $0x3c] sm:$0xff] }
 0x2e4   :  { %14252 = vmatprep.mubr.msk.f32.mxu1 %vm16728_vm1, %v24686_v16  ;;  %13168 = vmatprep.mubr.msk.f32.mxu0 %vm16728_vm1, %v24686_v16 }
 0x2e7   :  { %14253 = vmatmul.mubr.msk.f32.gmra.mrb[86].mxu1 %vm629_vm0, %v5471_v8  ;;  %13169 = vmatmul.mubr.msk.f32.gmra.mrb[174].mxu0 %vm629_vm0, %v2171_v48  ;;  %v2197_v8 = vld [vmem:[#allocation2 + $0x231] sm:$0xff] }
 0x2e8   :  { %14255 = vmatprep.mubr.msk.f32.mxu1 %vm16728_vm1, %v24686_v16  ;;  %13171 = vmatprep.mubr.msk.f32.mxu0 %vm16728_vm1, %v24686_v16  ;;  %v6302_v48 = vld [vmem:[#allocation2 + $0x4c] sm:$0xff] }
 0x2eb   :  { %14256 = vmatmul.mubr.msk.f32.gmra.mrb[88].mxu1 %vm629_vm0, %v5472_v47  ;;  %13172 = vmatmul.mubr.msk.f32.gmra.mrb[176].mxu0 %vm629_vm0, %v2172_v14  ;;  %v6303_v47 = vld [vmem:[#allocation2 + $0x54] sm:$0xff]  ;;  %v11693_v14 = vld [vmem:[%s24117_s2 + $0x1a0] sm:$0xff] }
 0x2ec   :  { %14258 = vmatprep.mubr.msk.f32.mxu1 %vm16728_vm1, %v24686_v16  ;;  %13174 = vmatprep.mubr.msk.f32.mxu0 %vm16728_vm1, %v24686_v16 }
 0x2ef   :  { %14259 = vmatmul.mubr.msk.f32.gmra.mrb[90].mxu1 %vm629_vm0, %v5473_v20  ;;  %13175 = vmatmul.mubr.msk.f32.gmra.mrb[178].mxu0 %vm629_vm0, %v2173_v3  ;;  %v11694_v20 = vld [vmem:[%s24117_s2 + $0x1a8] sm:$0xff] }
 0x2f0   :  { %14261 = vmatprep.mubr.msk.f32.mxu1 %vm16728_vm1, %v24686_v16  ;;  %13177 = vmatprep.mubr.msk.f32.mxu0 %vm16728_vm1, %v24686_v16  ;;  %v2200_v3 = vld [vmem:[#allocation2 + $0x249] sm:$0xff] }
 0x2f3   :  { %14262 = vmatmul.mubr.msk.f32.gmra.mrb[92].mxu1 %vm629_vm0, %v5474_v52  ;;  %13178 = vmatmul.mubr.msk.f32.gmra.mrb[180].mxu0 %vm629_vm0, %v2174_v23  ;;  %v15462_v52 = vpack.c.bf16 %v11694_v20, %v11693_v14  ;;  %v6304_v23 = vld [vmem:[#allocation2 + $0x5c] sm:$0xff]  ;;  %v2055_v20 = vld [vmem:[#allocation2 + $0x88] sm:$0xff] }
 0x2f4   :  { %14264 = vmatprep.mubr.msk.f32.mxu1 %vm16728_vm1, %v24686_v16  ;;  %13180 = vmatprep.mubr.msk.f32.mxu0 %vm16728_vm1, %v24686_v16  ;;  %v20255_v14 = vld [vmem:[#allocation2 + $0x11c] sm:$0xff] }
 0x2f7   :  { %14265 = vmatmul.mubr.msk.f32.gmra.mrb[94].mxu1 %vm629_vm0, %v5475_v6  ;;  %13181 = vmatmul.mubr.msk.f32.gmra.mrb[182].mxu0 %vm629_vm0, %v2175_v43  ;;  %v2201_v6 = vld [vmem:[#allocation2 + $0x251] sm:$0xff]  ;;  %v6305_v43 = vld [vmem:[#allocation2 + $0x64] sm:$0xff] }
 0x2f8   :  { %14267 = vmatprep.mubr.msk.f32.mxu1 %vm16728_vm1, %v24686_v16  ;;  %13183 = vmatprep.mubr.msk.f32.mxu0 %vm16728_vm1, %v24686_v16 }
 0x2fb   :  { %14268 = vmatmul.mubr.msk.f32.gmra.mrb[96].mxu1 %vm629_vm0, %v5476_v54  ;;  %13184 = vmatmul.mubr.msk.f32.gmra.mrb[184].mxu0 %vm629_vm0, %v2176_v59  ;;  %v2202_v54 = vld [vmem:[#allocation2 + $0x259] sm:$0xff]  ;;  %v6306_v59 = vld [vmem:[#allocation2 + $0x6c] sm:$0xff] }
 0x2fc   :  { %14270 = vmatprep.mubr.msk.f32.mxu1 %vm16728_vm1, %v24686_v16  ;;  %13186 = vmatprep.mubr.msk.f32.mxu0 %vm16728_vm1, %v24686_v16 }
 0x2ff   :  { %14271 = vmatmul.mubr.msk.f32.gmra.mrb[98].mxu1 %vm629_vm0, %v5477_v46  ;;  %13187 = vmatmul.mubr.msk.f32.gmra.mrb[186].mxu0 %vm629_vm0, %v2177_v40  ;;  %v2203_v46 = vld [vmem:[#allocation2 + $0x261] sm:$0xff]  ;;  %v6307_v40 = vld [vmem:[#allocation2 + $0x74] sm:$0xff] }
 0x300   :  { %14273 = vmatprep.mubr.msk.f32.mxu1 %vm16728_vm1, %v24686_v16  ;;  %13189 = vmatprep.mubr.msk.f32.mxu0 %vm16728_vm1, %v24686_v16 }
 0x303   :  { %14274 = vmatmul.mubr.msk.f32.gmra.mrb[100].mxu1 %vm629_vm0, %v5478_v5  ;;  %13190 = vmatmul.mubr.msk.f32.gmra.mrb[188].mxu0 %vm629_vm0, %v2178_v63  ;;  %v2204_v5 = vld [vmem:[#allocation2 + $0x269] sm:$0xff]  ;;  %v6308_v63 = vld [vmem:[#allocation2 + $0x7c] sm:$0xff] }
 0x304   :  { %14276 = vmatprep.mubr.msk.f32.mxu1 %vm16728_vm1, %v24686_v16  ;;  %13192 = vmatprep.mubr.msk.f32.mxu0 %vm16728_vm1, %v24686_v16 }
 0x307   :  { %14277 = vmatmul.mubr.msk.f32.gmra.mrb[102].mxu1 %vm629_vm0, %v5479_v38  ;;  %13193 = vmatmul.mubr.msk.f32.gmra.mrb[190].mxu0 %vm629_vm0, %v2179_v4  ;;  %v2205_v38 = vld [vmem:[#allocation2 + $0x271] sm:$0xff]  ;;  %v6309_v4 = vld [vmem:[#allocation2 + $0x84] sm:$0xff] }
 0x308   :  { %14279 = vmatprep.mubr.msk.f32.mxu1 %vm16728_vm1, %v24686_v16  ;;  %13195 = vmatprep.mubr.msk.f32.mxu0 %vm16728_vm1, %v24686_v16 }
 0x30b   :  { %14280 = vmatmul.mubr.msk.f32.gmra.mrb[104].mxu1 %vm629_vm0, %v5480_v32  ;;  %13196 = vmatmul.mubr.msk.f32.gmra.mrb[192].mxu0 %vm629_vm0, %v2180_v12  ;;  %v2206_v32 = vld [vmem:[#allocation2 + $0x279] sm:$0xff]  ;;  %v6310_v12 = vld [vmem:[#allocation2 + $0x8c] sm:$0xff] }
 0x30c   :  { %14282 = vmatprep.mubr.msk.f32.mxu1 %vm16728_vm1, %v24686_v16  ;;  %13198 = vmatprep.mubr.msk.f32.mxu0 %vm16728_vm1, %v24686_v16 }
 0x30f   :  { %14283 = vmatmul.mubr.msk.f32.gmra.mrb[106].mxu1 %vm629_vm0, %v5481_v41  ;;  %13199 = vmatmul.mubr.msk.f32.gmra.mrb[194].mxu0 %vm629_vm0, %v2181_v45  ;;  %v11333_v41 = vld [vmem:[%s24117_s2 + $0x80] sm:$0xff]  ;;  %v11334_v45 = vld [vmem:[%s24117_s2 + $0x88] sm:$0xff] }
 0x310   :  { %14285 = vmatprep.mubr.msk.f32.mxu1 %vm16728_vm1, %v24686_v16  ;;  %13201 = vmatprep.mubr.msk.f32.mxu0 %vm16728_vm1, %v24686_v16 }
 0x313   :  { %14286 = vmatmul.mubr.msk.f32.gmra.mrb[108].mxu1 %vm629_vm0, %v5482_v60  ;;  %13202 = vmatmul.mubr.msk.f32.gmra.mrb[196].mxu0 %vm629_vm0, %v2182_v28  ;;  %v2207_v60 = vld [vmem:[#allocation2 + $0x281] sm:$0xff]  ;;  %v6311_v28 = vld [vmem:[#allocation2 + $0x94] sm:$0xff] }
 0x314   :  { %14288 = vmatprep.mubr.msk.f32.mxu1 %vm16728_vm1, %v24686_v16  ;;  %13204 = vmatprep.mubr.msk.f32.mxu0 %vm16728_vm1, %v24686_v16 }
 0x317   :  { %14289 = vmatmul.mubr.msk.f32.gmra.mrb[110].mxu1 %vm629_vm0, %v5483_v39  ;;  %13205 = vmatmul.mubr.msk.f32.gmra.mrb[198].mxu0 %vm629_vm0, %v2183_v29  ;;  %v15408_v39 = vpack.c.bf16 %v11334_v45, %v11333_v41  ;;  %v2038_v29 = vld [vmem:[#allocation2] sm:$0xff] }
 0x318   :  { %14291 = vmatprep.mubr.msk.f32.mxu1 %vm16728_vm1, %v24686_v16  ;;  %13207 = vmatprep.mubr.msk.f32.mxu0 %vm16728_vm1, %v24686_v16  ;;  %v2062_v41 = vld [vmem:[#allocation2 + $0xc0] sm:$0xff] }
 0x31b   :  { %14292 = vmatmul.mubr.msk.f32.gmra.mrb[112].mxu1 %vm629_vm0, %v5484_v61  ;;  %13208 = vmatmul.mubr.msk.f32.gmra.mrb[200].mxu0 %vm629_vm0, %v2184_v15  ;;  %v6312_v61 = vld [vmem:[#allocation2 + $0x9c] sm:$0xff]  ;;  %v2039_v15 = vld [vmem:[#allocation2 + $0x8] sm:$0xff] }
 0x31c   :  { %14294 = vmatprep.mubr.msk.f32.mxu1 %vm16728_vm1, %v24686_v16  ;;  %13210 = vmatprep.mubr.msk.f32.mxu0 %vm16728_vm1, %v24686_v16 }
 0x31f   :  { %14295 = vmatmul.mubr.msk.f32.gmra.mrb[114].mxu1 %vm629_vm0, %v5485_v62  ;;  %13211 = vmatmul.mubr.msk.f32.gmra.mrb[202].mxu0 %vm629_vm0, %v2185_v31  ;;  %v6313_v62 = vld [vmem:[#allocation2 + $0xa4] sm:$0xff]  ;;  %v2040_v31 = vld [vmem:[#allocation2 + $0x10] sm:$0xff] }
 0x320   :  { %14297 = vmatprep.mubr.msk.f32.mxu1 %vm16728_vm1, %v24686_v16  ;;  %13213 = vmatprep.mubr.msk.f32.mxu0 %vm16728_vm1, %v24686_v16 }
 0x323   :  { %14298 = vmatmul.mubr.msk.f32.gmra.mrb[116].mxu1 %vm629_vm0, %v5486_v27  ;;  %13214 = vmatmul.mubr.msk.f32.gmra.mrb[204].mxu0 %vm629_vm0, %v2186_v13  ;;  %v6314_v27 = vld [vmem:[#allocation2 + $0xac] sm:$0xff]  ;;  %v2041_v13 = vld [vmem:[#allocation2 + $0x18] sm:$0xff] }
 0x324   :  { %14300 = vmatprep.mubr.msk.f32.mxu1 %vm16728_vm1, %v24686_v16  ;;  %13216 = vmatprep.mubr.msk.f32.mxu0 %vm16728_vm1, %v24686_v16 }
 0x327   :  { %14301 = vmatmul.mubr.msk.f32.gmra.mrb[118].mxu1 %vm629_vm0, %v5487_v37  ;;  %13217 = vmatmul.mubr.msk.f32.gmra.mrb[206].mxu0 %vm629_vm0, %v2187_v10  ;;  %v6315_v37 = vld [vmem:[#allocation2 + $0xb4] sm:$0xff] }
 0x328   :  { %14303 = vmatprep.mubr.msk.f32.mxu1 %vm16728_vm1, %v24686_v16  ;;  %13219 = vmatprep.mubr.msk.f32.mxu0 %vm16728_vm1, %v24686_v16  ;;  %v11335_v10 = vld [vmem:[%s24117_s2 + $0x90] sm:$0xff] }
 0x32b   :  { %14304 = vmatmul.mubr.msk.f32.gmra.mrb[120].mxu1 %vm629_vm0, %v5488_v21  ;;  %13220 = vmatmul.mubr.msk.f32.gmra.mrb[208].mxu0 %vm629_vm0, %v2188_v7  ;;  %v11336_v21 = vld [vmem:[%s24117_s2 + $0x98] sm:$0xff]  ;;  %v2042_v7 = vld [vmem:[#allocation2 + $0x20] sm:$0xff] }
 0x32c   :  { %14306 = vmatprep.mubr.msk.f32.mxu1 %vm16728_vm1, %v24686_v16  ;;  %13222 = vmatprep.mubr.msk.f32.mxu0 %vm16728_vm1, %v24686_v16 }
 0x32f   :  { %14307 = vmatmul.mubr.msk.f32.gmra.mrb[122].mxu1 %vm629_vm0, %v5489_v36  ;;  %13223 = vmatmul.mubr.msk.f32.gmra.mrb[210].mxu0 %vm629_vm0, %v2189_v0  ;;  %v15411_v36 = vpack.c.bf16 %v11336_v21, %v11335_v10  ;;  %v20166_v0 = vld [vmem:[#allocation2 + $0xbc] sm:$0xff]  ;;  %v2068_v10 = vld [vmem:[#allocation2 + $0xf0] sm:$0xff] }
 0x330   :  { %14309 = vmatprep.mubr.msk.f32.mxu1 %vm16728_vm1, %v24686_v16  ;;  %13225 = vmatprep.mubr.msk.f32.mxu0 %vm16728_vm1, %v24686_v16  ;;  %v6342_v21 = vld [vmem:[#allocation2 + $0x18c] sm:$0xff] }
 0x333   :  { %14310 = vmatmul.mubr.msk.f32.gmra.mrb[124].mxu1 %vm629_vm0, %v5490_v19  ;;  %13226 = vmatmul.mubr.msk.f32.gmra.mrb[212].mxu0 %vm629_vm0, %v2190_v25  ;;  %v2043_v19 = vld [vmem:[#allocation2 + $0x28] sm:$0xff] }
 0x334   :  { %14312 = vmatprep.mubr.msk.f32.mxu1 %vm16728_vm1, %v24686_v16  ;;  %13228 = vmatprep.mubr.msk.f32.mxu0 %vm16728_vm1, %v24686_v16  ;;  %v20176_v25 = vld [vmem:[#allocation2 + $0xc4] sm:$0xff] }
 0x337   :  { %14313 = vmatmul.mubr.msk.f32.gmra.mrb[126].mxu1 %vm629_vm0, %v5491_v42  ;;  %13229 = vmatmul.mubr.msk.f32.gmra.mrb[214].mxu0 %vm629_vm0, %v2191_v33  ;;  %v2045_v42 = vld [vmem:[#allocation2 + $0x38] sm:$0xff] }
 0x338   :  { %14331 = vmatprep.mubr.msk.f32.mxu1 %vm16728_vm1, %v24686_v16  ;;  %13231 = vmatprep.mubr.msk.f32.mxu0 %vm16728_vm1, %v24686_v16  ;;  %v6319_v33 = vld [vmem:[#allocation2 + $0xd4] sm:$0xff] }
 0x33b   :  { %14332 = vmatmul.mubr.msk.f32.vlgmr.msra.gmra.mrb[128].mxu1 %vm629_vm0, %v6295_v18  ;;  %13232 = vmatmul.mubr.msk.f32.gmra.mrb[216].mxu0 %vm629_vm0, %v2192_v53  ;;  %v6321_v18 = vld [vmem:[#allocation2 + $0xe4] sm:$0xff]  ;;  %v2048_v53 = vld [vmem:[#allocation2 + $0x50] sm:$0xff] }
 0x33c   :  { %15457 = vmatpush3.bf16.msra.mxu1 %v15456_v11  ;;  %14334 = vmatprep.mubr.msk.f32.mxu1 %vm16728_vm1, %v24686_v16  ;;  %v2046_v11 = vld [vmem:[#allocation2 + $0x40] sm:$0xff] }
 0x33d   :  { %15458 = vmatprep.subr.bf16.mxu1 %v24788_v2  ;;  %13234 = vmatprep.mubr.msk.f32.mxu0 %vm16728_vm1, %v24686_v16 }
 0x33f   :  { %14335 = vmatmul.mubr.msk.f32.gmra.mrb[130].mxu1 %vm629_vm0, %v6296_v24  ;;  %13235 = vmatmul.mubr.msk.f32.gmra.mrb[218].mxu0 %vm629_vm0, %v2193_v35  ;;  %v2049_v24 = vld [vmem:[#allocation2 + $0x58] sm:$0xff] }
 0x340   :  { %14337 = vmatprep.mubr.msk.f32.mxu1 %vm16728_vm1, %v24686_v16  ;;  %15460 = vmatpush3.bf16.msra.mxu1 %v15459_v55  ;;  %v6322_v55 = vld [vmem:[#allocation2 + $0xec] sm:$0xff]  ;;  %v6323_v35 = vld [vmem:[#allocation2 + $0xf4] sm:$0xff] }
 0x341   :  { %15461 = vmatprep.subr.bf16.mxu1 %v24788_v2  ;;  %13237 = vmatprep.mubr.msk.f32.mxu0 %vm16728_vm1, %v24686_v16 }
 0x343   :  { %14338 = vmatmul.mubr.msk.f32.gmra.mrb[132].mxu1 %vm629_vm0, %v20029_v57  ;;  %13238 = vmatmul.mubr.msk.f32.gmra.mrb[220].mxu0 %vm629_vm0, %v2194_v49  ;;  %v2050_v49 = vld [vmem:[#allocation2 + $0x60] sm:$0xff] }
 0x344   :  { %14340 = vmatprep.mubr.msk.f32.mxu1 %vm16728_vm1, %v24686_v16  ;;  %13240 = vmatprep.mubr.msk.f32.mxu0 %vm16728_vm1, %v24686_v16 }
 0x345   :  { %15463 = vmatpush3.bf16.msra.mxu1 %v15462_v52  ;;  %v2056_v52 = vld [vmem:[#allocation2 + $0x90] sm:$0xff] }
 0x346   :  { %15464 = vmatprep.subr.bf16.mxu1 %v24788_v2 }
 0x347   :  { %14341 = vmatmul.mubr.msk.f32.gmra.mrb[134].mxu1 %vm629_vm0, %v6298_v1  ;;  %13241 = vmatmul.mubr.msk.f32.gmra.mrb[222].mxu0 %vm629_vm0, %v2195_v56  ;;  %v11695_v1 = vld [vmem:[%s24117_s2 + $0x1b0] sm:$0xff]  ;;  %v11696_v56 = vld [vmem:[%s24117_s2 + $0x1b8] sm:$0xff] }
 0x348   :  { %14343 = vmatprep.mubr.msk.f32.mxu1 %vm16728_vm1, %v24686_v16  ;;  %13243 = vmatprep.mubr.msk.f32.mxu0 %vm16728_vm1, %v24686_v16 }
 0x34b   :  { %14344 = vmatmul.mubr.msk.f32.gmra.mrb[136].mxu1 %vm629_vm0, %v6299_v30  ;;  %13244 = vmatmul.mubr.msk.f32.gmra.mrb[224].mxu0 %vm629_vm0, %v2196_v50  ;;  %v15465_v30 = vpack.c.bf16 %v11696_v56, %v11695_v1  ;;  %v6324_v50 = vld [vmem:[#allocation2 + $0xfc] sm:$0xff]  ;;  %v6351_v56 = vld [vmem:[#allocation2 + $0x1d4] sm:$0xff] }
 0x34c   :  { %14346 = vmatprep.mubr.msk.f32.mxu1 %vm16728_vm1, %v24686_v16  ;;  %13246 = vmatprep.mubr.msk.f32.mxu0 %vm16728_vm1, %v24686_v16  ;;  %v2077_v1 = vld [vmem:[#allocation2 + $0x138] sm:$0xff] }
 0x34d   :  { %15466 = vmatpush3.bf16.msra.mxu1 %v15465_v30  ;;  %v2078_v30 = vld [vmem:[#allocation2 + $0x140] sm:$0xff] }
 0x34e   :  { %15467 = vmatprep.subr.bf16.mxu1 %v24788_v2 }
 0x34f   :  { %14347 = vmatmul.mubr.msk.f32.gmra.mrb[138].mxu1 %vm629_vm0, %v6300_v51  ;;  %13247 = vmatmul.mubr.msk.f32.gmra.mrb[226].mxu0 %vm629_vm0, %v2197_v8  ;;  %v2051_v51 = vld [vmem:[#allocation2 + $0x68] sm:$0xff] }
 0x350   :  { %14349 = vmatprep.mubr.msk.f32.mxu1 %vm16728_vm1, %v24686_v16  ;;  %13249 = vmatprep.mubr.msk.f32.mxu0 %vm16728_vm1, %v24686_v16  ;;  %v6325_v8 = vld [vmem:[#allocation2 + $0x104] sm:$0xff] }
 0x353   :  { %14350 = vmatmul.mubr.msk.f32.gmra.mrb[140].mxu1 %vm629_vm0, %v6301_v58  ;;  %13250 = vmatmul.mubr.msk.f32.gmra.mrb[228].mxu0 %vm629_vm0, %v2198_v26  ;;  %v2052_v58 = vld [vmem:[#allocation2 + $0x70] sm:$0xff] }
 0x354   :  { %14352 = vmatprep.mubr.msk.f32.mxu1 %vm16728_vm1, %v24686_v16  ;;  %13252 = vmatprep.mubr.msk.f32.mxu0 %vm16728_vm1, %v24686_v16  ;;  %v6326_v26 = vld [vmem:[#allocation2 + $0x10c] sm:$0xff] }
 0x357   :  { %14353 = vmatmul.mubr.msk.f32.gmra.mrb[142].mxu1 %vm629_vm0, %v6302_v48  ;;  %13253 = vmatmul.mubr.msk.f32.gmra.mrb[230].mxu0 %vm629_vm0, %v2199_v34  ;;  %v2053_v48 = vld [vmem:[#allocation2 + $0x78] sm:$0xff] }
 0x358   :  { %14355 = vmatprep.mubr.msk.f32.mxu1 %vm16728_vm1, %v24686_v16  ;;  %13255 = vmatprep.mubr.msk.f32.mxu0 %vm16728_vm1, %v24686_v16  ;;  %v20246_v34 = vld [vmem:[#allocation2 + $0x114] sm:$0xff] }
 0x35b   :  { %14356 = vmatmul.mubr.msk.f32.gmra.mrb[144].mxu1 %vm629_vm0, %v6303_v47  ;;  %13256 = vmatmul.mubr.msk.f32.gmra.mrb[232].mxu0 %vm629_vm0, %v2200_v3  ;;  %v2054_v47 = vld [vmem:[#allocation2 + $0x80] sm:$0xff] }
 0x35c   :  { %14358 = vmatprep.mubr.msk.f32.mxu1 %vm16728_vm1, %v24686_v16  ;;  %13258 = vmatprep.mubr.msk.f32.mxu0 %vm16728_vm1, %v24686_v16  ;;  %v6329_v3 = vld [vmem:[#allocation2 + $0x124] sm:$0xff] }
 0x35f   :  { %14359 = vmatmul.mubr.msk.f32.gmra.mrb[146].mxu1 %vm629_vm0, %v6304_v23  ;;  %13259 = vmatmul.mubr.msk.f32.gmra.mrb[234].mxu0 %vm629_vm0, %v2201_v6  ;;  %v6330_v23 = vld [vmem:[#allocation2 + $0x12c] sm:$0xff]  ;;  %v2057_v6 = vld [vmem:[#allocation2 + $0x98] sm:$0xff] }
 0x360   :  { %14361 = vmatprep.mubr.msk.f32.mxu1 %vm16728_vm1, %v24686_v16  ;;  %13261 = vmatprep.mubr.msk.f32.mxu0 %vm16728_vm1, %v24686_v16 }
 0x363   :  { %14362 = vmatmul.mubr.msk.f32.gmra.mrb[148].mxu1 %vm629_vm0, %v6305_v43  ;;  %13262 = vmatmul.mubr.msk.f32.gmra.mrb[236].mxu0 %vm629_vm0, %v2202_v54  ;;  %v6331_v43 = vld [vmem:[#allocation2 + $0x134] sm:$0xff]  ;;  %v2058_v54 = vld [vmem:[#allocation2 + $0xa0] sm:$0xff] }
 0x364   :  { %14364 = vmatprep.mubr.msk.f32.mxu1 %vm16728_vm1, %v24686_v16  ;;  %13264 = vmatprep.mubr.msk.f32.mxu0 %vm16728_vm1, %v24686_v16 }
 0x367   :  { %14365 = vmatmul.mubr.msk.f32.gmra.mrb[150].mxu1 %vm629_vm0, %v6306_v59  ;;  %13265 = vmatmul.mubr.msk.f32.gmra.mrb[238].mxu0 %vm629_vm0, %v2203_v46  ;;  %v6332_v59 = vld [vmem:[#allocation2 + $0x13c] sm:$0xff]  ;;  %v2059_v46 = vld [vmem:[#allocation2 + $0xa8] sm:$0xff] }
 0x368   :  { %14367 = vmatprep.mubr.msk.f32.mxu1 %vm16728_vm1, %v24686_v16  ;;  %13267 = vmatprep.mubr.msk.f32.mxu0 %vm16728_vm1, %v24686_v16 }
 0x36b   :  { %14368 = vmatmul.mubr.msk.f32.gmra.mrb[152].mxu1 %vm629_vm0, %v6307_v40  ;;  %13268 = vmatmul.mubr.msk.f32.gmra.mrb[240].mxu0 %vm629_vm0, %v2204_v5  ;;  %v6333_v40 = vld [vmem:[#allocation2 + $0x144] sm:$0xff]  ;;  %v2060_v5 = vld [vmem:[#allocation2 + $0xb0] sm:$0xff] }
 0x36c   :  { %14370 = vmatprep.mubr.msk.f32.mxu1 %vm16728_vm1, %v24686_v16  ;;  %13270 = vmatprep.mubr.msk.f32.mxu0 %vm16728_vm1, %v24686_v16 }
 0x36f   :  { %14371 = vmatmul.mubr.msk.f32.gmra.mrb[154].mxu1 %vm629_vm0, %v6308_v63  ;;  %13271 = vmatmul.mubr.msk.f32.gmra.mrb[242].mxu0 %vm629_vm0, %v2205_v38  ;;  %v6334_v63 = vld [vmem:[#allocation2 + $0x14c] sm:$0xff]  ;;  %v2061_v38 = vld [vmem:[#allocation2 + $0xb8] sm:$0xff] }
 0x370   :  { %14373 = vmatprep.mubr.msk.f32.mxu1 %vm16728_vm1, %v24686_v16  ;;  %13273 = vmatprep.mubr.msk.f32.mxu0 %vm16728_vm1, %v24686_v16 }
 0x373   :  { %14374 = vmatmul.mubr.msk.f32.gmra.mrb[156].mxu1 %vm629_vm0, %v6309_v4  ;;  %13274 = vmatmul.mubr.msk.f32.gmra.mrb[244].mxu0 %vm629_vm0, %v2206_v32  ;;  %v6335_v4 = vld [vmem:[#allocation2 + $0x154] sm:$0xff]  ;;  %v11337_v32 = vld [vmem:[%s24117_s2 + $0xa0] sm:$0xff] }
 0x374   :  { %14376 = vmatprep.mubr.msk.f32.mxu1 %vm16728_vm1, %v24686_v16  ;;  %13276 = vmatprep.mubr.msk.f32.mxu0 %vm16728_vm1, %v24686_v16 }
 0x377   :  { %14377 = vmatmul.mubr.msk.f32.gmra.mrb[158].mxu1 %vm629_vm0, %v6310_v12  ;;  %13277 = vmatmul.mubr.msk.f32.gmra.mrb[246].mxu0 %vm629_vm0, %v2207_v60  ;;  %v11338_v12 = vld [vmem:[%s24117_s2 + $0xa8] sm:$0xff]  ;;  %v20312_v60 = vld [vmem:[#allocation2 + $0x15c] sm:$0xff] }
 0x378   :  { %14379 = vmatprep.mubr.msk.f32.mxu1 %vm16728_vm1, %v24686_v16  ;;  %13295 = vmatprep.mubr.msk.f32.mxu0 %vm16728_vm1, %v24686_v16  ;;  %v15414_v45 = vpack.c.bf16 %v11338_v12, %v11337_v32  ;;  %v6361_v32 = vld [vmem:[#allocation2 + $0x224] sm:$0xff]  ;;  %v2088_v12 = vld [vmem:[#allocation2 + $0x190] sm:$0xff] }
 0x37b   :  { %14380 = vmatmul.mubr.msk.f32.gmra.mrb[160].mxu1 %vm629_vm0, %v6311_v28  ;;  %13296 = vmatmul.mubr.msk.f32.vlgmr.msra.gmra.mrb[86].mxu0 %vm629_vm0, %v2038_v29  ;;  %v2063_v28 = vld [vmem:[#allocation2 + $0xc8] sm:$0xff]  ;;  %v2064_v29 = vld [vmem:[#allocation2 + $0xd0] sm:$0xff] }
 0x37c   :  { %14382 = vmatprep.mubr.msk.f32.mxu1 %vm16728_vm1, %v24686_v16  ;;  %13298 = vmatprep.mubr.msk.f32.mxu0 %vm16728_vm1, %v24686_v16 }
 0x37d   :  { %15409 = vmatpush3.bf16.msra.mxu0 %v15408_v39  ;;  %v20322_v39 = vld [vmem:[#allocation2 + $0x164] sm:$0xff] }
 0x37e   :  { %15410 = vmatprep.subr.bf16.mxu0 %v24788_v2 }
 0x37f   :  { %14383 = vmatmul.mubr.msk.f32.gmra.mrb[0].mxu1 %vm629_vm0, %v6312_v61  ;;  %13299 = vmatmul.mubr.msk.f32.gmra.mrb[88].mxu0 %vm629_vm0, %v2039_v15  ;;  %v6338_v61 = vld [vmem:[#allocation2 + $0x16c] sm:$0xff]  ;;  %v2065_v15 = vld [vmem:[#allocation2 + $0xd8] sm:$0xff] }
 0x380   :  { %14385 = vmatprep.mubr.msk.f32.mxu1 %vm16728_vm1, %v24686_v16  ;;  %13301 = vmatprep.mubr.msk.f32.mxu0 %vm16728_vm1, %v24686_v16 }
 0x381   :  { %15412 = vmatpush3.bf16.msra.mxu0 %v15411_v36  ;;  %v6343_v36 = vld [vmem:[#allocation2 + $0x194] sm:$0xff] }
 0x382   :  { %15413 = vmatprep.subr.bf16.mxu0 %v24788_v2 }
 0x383   :  { %14386 = vmatmul.mubr.msk.f32.gmra.mrb[2].mxu1 %vm629_vm0, %v6313_v62  ;;  %13302 = vmatmul.mubr.msk.f32.gmra.mrb[90].mxu0 %vm629_vm0, %v2040_v31  ;;  %v6339_v62 = vld [vmem:[#allocation2 + $0x174] sm:$0xff]  ;;  %v2066_v31 = vld [vmem:[#allocation2 + $0xe0] sm:$0xff] }
 0x384   :  { %14388 = vmatprep.mubr.msk.f32.mxu1 %vm16728_vm1, %v24686_v16  ;;  %13304 = vmatprep.mubr.msk.f32.mxu0 %vm16728_vm1, %v24686_v16 }
 0x385   :  { %15415 = vmatpush3.bf16.msra.mxu0 %v15414_v45  ;;  %v2089_v45 = vld [vmem:[#allocation2 + $0x198] sm:$0xff] }
 0x386   :  { %15416 = vmatprep.subr.bf16.mxu0 %v24788_v2 }
 0x387   :  { %14389 = vmatmul.mubr.msk.f32.gmra.mrb[4].mxu1 %vm629_vm0, %v6314_v27  ;;  %13305 = vmatmul.mubr.msk.f32.gmra.mrb[92].mxu0 %vm629_vm0, %v2041_v13  ;;  %v6340_v27 = vld [vmem:[#allocation2 + $0x17c] sm:$0xff]  ;;  %v2067_v13 = vld [vmem:[#allocation2 + $0xe8] sm:$0xff] }
 0x388   :  { %14391 = vmatprep.mubr.msk.f32.mxu1 %vm16728_vm1, %v24686_v16  ;;  %13307 = vmatprep.mubr.msk.f32.mxu0 %vm16728_vm1, %v24686_v16 }
 0x38b   :  { %14392 = vmatmul.mubr.msk.f32.gmra.mrb[6].mxu1 %vm629_vm0, %v6315_v37  ;;  %13308 = vmatmul.mubr.msk.f32.gmra.mrb[94].mxu0 %vm629_vm0, %v2042_v7  ;;  %v6341_v37 = vld [vmem:[#allocation2 + $0x184] sm:$0xff]  ;;  %v2069_v7 = vld [vmem:[#allocation2 + $0xf8] sm:$0xff] }
 0x38c   :  { %14394 = vmatprep.mubr.msk.f32.mxu1 %vm16728_vm1, %v24686_v16  ;;  %13310 = vmatprep.mubr.msk.f32.mxu0 %vm16728_vm1, %v24686_v16 }
 0x38f   :  { %14395 = vmatmul.mubr.msk.f32.gmra.mrb[8].mxu1 %vm629_vm0, %v20166_v0  ;;  %13311 = vmatmul.mubr.msk.f32.gmra.mrb[96].mxu0 %vm629_vm0, %v2043_v19  ;;  %v2070_v19 = vld [vmem:[#allocation2 + $0x100] sm:$0xff] }
 0x390   :  { %14397 = vmatprep.mubr.msk.f32.mxu1 %vm16728_vm1, %v24686_v16  ;;  %13313 = vmatprep.mubr.msk.f32.mxu0 %vm16728_vm1, %v24686_v16 }
 0x393   :  { %14398 = vmatmul.mubr.msk.f32.gmra.mrb[10].mxu1 %vm629_vm0, %v20176_v25  ;;  %13314 = vmatmul.mubr.msk.f32.gmra.mrb[98].mxu0 %vm629_vm0, %v2044_v44  ;;  %v6344_v44 = vld [vmem:[#allocation2 + $0x19c] sm:$0xff] }
 0x394   :  { %14400 = vmatprep.mubr.msk.f32.mxu1 %vm16728_vm1, %v24686_v16  ;;  %13316 = vmatprep.mubr.msk.f32.mxu0 %vm16728_vm1, %v24686_v16 }
 0x397   :  { %14401 = vmatmul.mubr.msk.f32.gmra.mrb[12].mxu1 %vm629_vm0, %v6318_v22  ;;  %13317 = vmatmul.mubr.msk.f32.gmra.mrb[100].mxu0 %vm629_vm0, %v2045_v42  ;;  %v2071_v22 = vld [vmem:[#allocation2 + $0x108] sm:$0xff] }
 0x398   :  { %14403 = vmatprep.mubr.msk.f32.mxu1 %vm16728_vm1, %v24686_v16  ;;  %13319 = vmatprep.mubr.msk.f32.mxu0 %vm16728_vm1, %v24686_v16  ;;  %v6345_v42 = vld [vmem:[#allocation2 + $0x1a4] sm:$0xff] }
 0x39b   :  { %14404 = vmatmul.mubr.msk.f32.gmra.mrb[14].mxu1 %vm629_vm0, %v6319_v33  ;;  %13320 = vmatmul.mubr.msk.f32.gmra.mrb[102].mxu0 %vm629_vm0, %v2046_v11  ;;  %v2072_v33 = vld [vmem:[#allocation2 + $0x110] sm:$0xff] }
 0x39c   :  { %14406 = vmatprep.mubr.msk.f32.mxu1 %vm16728_vm1, %v24686_v16  ;;  %13322 = vmatprep.mubr.msk.f32.mxu0 %vm16728_vm1, %v24686_v16  ;;  %v6346_v11 = vld [vmem:[#allocation2 + $0x1ac] sm:$0xff] }
 0x39f   :  { %14407 = vmatmul.mubr.msk.f32.gmra.mrb[16].mxu1 %vm629_vm0, %v6320_v9  ;;  %13323 = vmatmul.mubr.msk.f32.gmra.mrb[104].mxu0 %vm629_vm0, %v2047_v17  ;;  %v2073_v9 = vld [vmem:[#allocation2 + $0x118] sm:$0xff] }
 0x3a0   :  { %14409 = vmatprep.mubr.msk.f32.mxu1 %vm16728_vm1, %v24686_v16  ;;  %13325 = vmatprep.mubr.msk.f32.mxu0 %vm16728_vm1, %v24686_v16  ;;  %v6347_v17 = vld [vmem:[#allocation2 + $0x1b4] sm:$0xff] }
 0x3a3   :  { %14410 = vmatmul.mubr.msk.f32.gmra.mrb[18].mxu1 %vm629_vm0, %v6321_v18  ;;  %13326 = vmatmul.mubr.msk.f32.gmra.mrb[106].mxu0 %vm629_vm0, %v2048_v53  ;;  %v2074_v18 = vld [vmem:[#allocation2 + $0x120] sm:$0xff] }
 0x3a4   :  { %14412 = vmatprep.mubr.msk.f32.mxu1 %vm16728_vm1, %v24686_v16  ;;  %13328 = vmatprep.mubr.msk.f32.mxu0 %vm16728_vm1, %v24686_v16  ;;  %v20391_v53 = vld [vmem:[#allocation2 + $0x1bc] sm:$0xff] }
 0x3a7   :  { %14413 = vmatmul.mubr.msk.f32.gmra.mrb[20].mxu1 %vm629_vm0, %v6322_v55  ;;  %13329 = vmatmul.mubr.msk.f32.gmra.mrb[108].mxu0 %vm629_vm0, %v2049_v24  ;;  %v2075_v55 = vld [vmem:[#allocation2 + $0x128] sm:$0xff] }
 0x3a8   :  { %14415 = vmatprep.mubr.msk.f32.mxu1 %vm16728_vm1, %v24686_v16  ;;  %13331 = vmatprep.mubr.msk.f32.mxu0 %vm16728_vm1, %v24686_v16  ;;  %v20400_v24 = vld [vmem:[#allocation2 + $0x1c4] sm:$0xff] }
 0x3ab   :  { %14416 = vmatmul.mubr.msk.f32.gmra.mrb[22].mxu1 %vm629_vm0, %v6323_v35  ;;  %13332 = vmatmul.mubr.msk.f32.gmra.mrb[110].mxu0 %vm629_vm0, %v2050_v49  ;;  %v2076_v35 = vld [vmem:[#allocation2 + $0x130] sm:$0xff] }
 0x3ac   :  { %14418 = vmatprep.mubr.msk.f32.mxu1 %vm16728_vm1, %v24686_v16  ;;  %13334 = vmatprep.mubr.msk.f32.mxu0 %vm16728_vm1, %v24686_v16  ;;  %v6350_v49 = vld [vmem:[#allocation2 + $0x1cc] sm:$0xff] }
 0x3af   :  { %14419 = vmatmul.mubr.msk.f32.gmra.mrb[24].mxu1 %vm629_vm0, %v6324_v50  ;;  %13335 = vmatmul.mubr.msk.f32.gmra.mrb[112].mxu0 %vm629_vm0, %v2051_v51  ;;  %v6352_v50 = vld [vmem:[#allocation2 + $0x1dc] sm:$0xff]  ;;  %v2079_v51 = vld [vmem:[#allocation2 + $0x148] sm:$0xff] }
 0x3b0   :  { %14421 = vmatprep.mubr.msk.f32.mxu1 %vm16728_vm1, %v24686_v16  ;;  %13337 = vmatprep.mubr.msk.f32.mxu0 %vm16728_vm1, %v24686_v16 }
 0x3b3   :  { %14422 = vmatmul.mubr.msk.f32.gmra.mrb[26].mxu1 %vm629_vm0, %v6325_v8  ;;  %13338 = vmatmul.mubr.msk.f32.gmra.mrb[114].mxu0 %vm629_vm0, %v2052_v58  ;;  %v6353_v8 = vld [vmem:[#allocation2 + $0x1e4] sm:$0xff]  ;;  %v2080_v58 = vld [vmem:[#allocation2 + $0x150] sm:$0xff] }
 0x3b4   :  { %14424 = vmatprep.mubr.msk.f32.mxu1 %vm16728_vm1, %v24686_v16  ;;  %13340 = vmatprep.mubr.msk.f32.mxu0 %vm16728_vm1, %v24686_v16 }
 0x3b7   :  { %14425 = vmatmul.mubr.msk.f32.gmra.mrb[28].mxu1 %vm629_vm0, %v6326_v26  ;;  %13341 = vmatmul.mubr.msk.f32.gmra.mrb[116].mxu0 %vm629_vm0, %v2053_v48  ;;  %v6354_v26 = vld [vmem:[#allocation2 + $0x1ec] sm:$0xff]  ;;  %v2081_v48 = vld [vmem:[#allocation2 + $0x158] sm:$0xff] }
 0x3b8   :  { %14427 = vmatprep.mubr.msk.f32.mxu1 %vm16728_vm1, %v24686_v16  ;;  %13343 = vmatprep.mubr.msk.f32.mxu0 %vm16728_vm1, %v24686_v16 }
 0x3bb   :  { %14428 = vmatmul.mubr.msk.f32.gmra.mrb[30].mxu1 %vm629_vm0, %v20246_v34  ;;  %13344 = vmatmul.mubr.msk.f32.gmra.mrb[118].mxu0 %vm629_vm0, %v2054_v47  ;;  %v6355_v47 = vld [vmem:[#allocation2 + $0x1f4] sm:$0xff] }
 0x3bc   :  { %14430 = vmatprep.mubr.msk.f32.mxu1 %vm16728_vm1, %v24686_v16  ;;  %13346 = vmatprep.mubr.msk.f32.mxu0 %vm16728_vm1, %v24686_v16 }
 0x3bf   :  { %14431 = vmatmul.mubr.msk.f32.gmra.mrb[32].mxu1 %vm629_vm0, %v20255_v14  ;;  %13347 = vmatmul.mubr.msk.f32.gmra.mrb[120].mxu0 %vm629_vm0, %v2055_v20  ;;  %v11339_v20 = vld [vmem:[%s24117_s2 + $0xb0] sm:$0xff] }
 0x3c0   :  { %14433 = vmatprep.mubr.msk.f32.mxu1 %vm16728_vm1, %v24686_v16  ;;  %13349 = vmatprep.mubr.msk.f32.mxu0 %vm16728_vm1, %v24686_v16 }
 0x3c3   :  { %14434 = vmatmul.mubr.msk.f32.gmra.mrb[34].mxu1 %vm629_vm0, %v6329_v3  ;;  %13350 = vmatmul.mubr.msk.f32.gmra.mrb[122].mxu0 %vm629_vm0, %v2056_v52  ;;  %v11340_v3 = vld [vmem:[%s24117_s2 + $0xb8] sm:$0xff]  ;;  %v2082_v52 = vld [vmem:[#allocation2 + $0x160] sm:$0xff] }
 0x3c4   :  { %14436 = vmatprep.mubr.msk.f32.mxu1 %vm16728_vm1, %v24686_v16  ;;  %13352 = vmatprep.mubr.msk.f32.mxu0 %vm16728_vm1, %v24686_v16 }
 0x3c7   :  { %14437 = vmatmul.mubr.msk.f32.gmra.mrb[36].mxu1 %vm629_vm0, %v6330_v23  ;;  %13353 = vmatmul.mubr.msk.f32.gmra.mrb[124].mxu0 %vm629_vm0, %v2057_v6  ;;  %v15417_v23 = vpack.c.bf16 %v11340_v3, %v11339_v20  ;;  %v20451_v6 = vld [vmem:[#allocation2 + $0x1fc] sm:$0xff] }
 0x3c8   :  { %14439 = vmatprep.mubr.msk.f32.mxu1 %vm16728_vm1, %v24686_v16  ;;  %13355 = vmatprep.mubr.msk.f32.mxu0 %vm16728_vm1, %v24686_v16  ;;  %v2105_v20 = vld [vmem:[#allocation2 + $0x218] sm:$0xff] }
 0x3c9   :  { %15418 = vmatpush3.bf16.msra.mxu0 %v15417_v23  ;;  %v7182_v3 = vld [vmem:[#allocation2 + $0x3c] sm:$0xff]  ;;  %v7183_v23 = vld [vmem:[#allocation2 + $0x44] sm:$0xff] }
 0x3ca   :  { %15419 = vmatprep.subr.bf16.mxu0 %v24788_v2 }
 0x3cb   :  { %14440 = vmatmul.mubr.msk.f32.gmra.mrb[38].mxu1 %vm629_vm0, %v6331_v43  ;;  %13356 = vmatmul.mubr.msk.f32.gmra.mrb[126].mxu0 %vm629_vm0, %v2058_v54  ;;  %v2083_v43 = vld [vmem:[#allocation2 + $0x168] sm:$0xff] }
 0x3cc   :  { %14442 = vmatprep.mubr.msk.f32.mxu1 %vm16728_vm1, %v24686_v16  ;;  %13358 = vmatprep.mubr.msk.f32.mxu0 %vm16728_vm1, %v24686_v16  ;;  %v20461_v54 = vld [vmem:[#allocation2 + $0x204] sm:$0xff] }
 0x3cf   :  { %14443 = vmatmul.mubr.msk.f32.gmra.mrb[40].mxu1 %vm629_vm0, %v6332_v59  ;;  %13359 = vmatmul.mubr.msk.f32.gmra.mrb[128].mxu0 %vm629_vm0, %v2059_v46  ;;  %v2084_v59 = vld [vmem:[#allocation2 + $0x170] sm:$0xff] }
 0x3d0   :  { %14445 = vmatprep.mubr.msk.f32.mxu1 %vm16728_vm1, %v24686_v16  ;;  %13361 = vmatprep.mubr.msk.f32.mxu0 %vm16728_vm1, %v24686_v16  ;;  %v6358_v46 = vld [vmem:[#allocation2 + $0x20c] sm:$0xff] }
 0x3d3   :  { %14446 = vmatmul.mubr.msk.f32.gmra.mrb[42].mxu1 %vm629_vm0, %v6333_v40  ;;  %13362 = vmatmul.mubr.msk.f32.gmra.mrb[130].mxu0 %vm629_vm0, %v2060_v5  ;;  %v2085_v40 = vld [vmem:[#allocation2 + $0x178] sm:$0xff] }
 0x3d4   :  { %14448 = vmatprep.mubr.msk.f32.mxu1 %vm16728_vm1, %v24686_v16  ;;  %13364 = vmatprep.mubr.msk.f32.mxu0 %vm16728_vm1, %v24686_v16  ;;  %v6359_v5 = vld [vmem:[#allocation2 + $0x214] sm:$0xff] }
 0x3d7   :  { %14449 = vmatmul.mubr.msk.f32.gmra.mrb[44].mxu1 %vm629_vm0, %v6334_v63  ;;  %13365 = vmatmul.mubr.msk.f32.gmra.mrb[132].mxu0 %vm629_vm0, %v2061_v38  ;;  %v2086_v63 = vld [vmem:[#allocation2 + $0x180] sm:$0xff] }
 0x3d8   :  { %14451 = vmatprep.mubr.msk.f32.mxu1 %vm16728_vm1, %v24686_v16  ;;  %13367 = vmatprep.mubr.msk.f32.mxu0 %vm16728_vm1, %v24686_v16  ;;  %v6360_v38 = vld [vmem:[#allocation2 + $0x21c] sm:$0xff] }
 0x3db   :  { %14452 = vmatmul.mubr.msk.f32.gmra.mrb[46].mxu1 %vm629_vm0, %v6335_v4  ;;  %13368 = vmatmul.mubr.msk.f32.gmra.mrb[134].mxu0 %vm629_vm0, %v2062_v41  ;;  %v2087_v4 = vld [vmem:[#allocation2 + $0x188] sm:$0xff] }
 0x3dc   :  { %14454 = vmatprep.mubr.msk.f32.mxu1 %vm16728_vm1, %v24686_v16  ;;  %13370 = vmatprep.mubr.msk.f32.mxu0 %vm16728_vm1, %v24686_v16  ;;  %v6362_v41 = vld [vmem:[#allocation2 + $0x22c] sm:$0xff] }
 0x3df   :  { %14455 = vmatmul.mubr.msk.f32.gmra.mrb[48].mxu1 %vm629_vm0, %v20312_v60  ;;  %13371 = vmatmul.mubr.msk.f32.gmra.mrb[136].mxu0 %vm629_vm0, %v2063_v28  ;;  %v6363_v28 = vld [vmem:[#allocation2 + $0x234] sm:$0xff] }
 0x3e0   :  { %14457 = vmatprep.mubr.msk.f32.mxu1 %vm16728_vm1, %v24686_v16  ;;  %13373 = vmatprep.mubr.msk.f32.mxu0 %vm16728_vm1, %v24686_v16 }
 0x3e3   :  { %14458 = vmatmul.mubr.msk.f32.gmra.mrb[50].mxu1 %vm629_vm0, %v20322_v39  ;;  %13374 = vmatmul.mubr.msk.f32.gmra.mrb[138].mxu0 %vm629_vm0, %v2064_v29  ;;  %v2090_v29 = vld [vmem:[#allocation2 + $0x1a0] sm:$0xff] }
 0x3e4   :  { %14460 = vmatprep.mubr.msk.f32.mxu1 %vm16728_vm1, %v24686_v16  ;;  %13376 = vmatprep.mubr.msk.f32.mxu0 %vm16728_vm1, %v24686_v16 }
 0x3e7   :  { %14461 = vmatmul.mubr.msk.f32.gmra.mrb[52].mxu1 %vm629_vm0, %v6338_v61  ;;  %13377 = vmatmul.mubr.msk.f32.gmra.mrb[140].mxu0 %vm629_vm0, %v2065_v15  ;;  %v6364_v61 = vld [vmem:[#allocation2 + $0x23c] sm:$0xff]  ;;  %v2091_v15 = vld [vmem:[#allocation2 + $0x1a8] sm:$0xff] }
 0x3e8   :  { %14463 = vmatprep.mubr.msk.f32.mxu1 %vm16728_vm1, %v24686_v16  ;;  %13379 = vmatprep.mubr.msk.f32.mxu0 %vm16728_vm1, %v24686_v16 }
 0x3eb   :  { %14464 = vmatmul.mubr.msk.f32.gmra.mrb[54].mxu1 %vm629_vm0, %v6339_v62  ;;  %13380 = vmatmul.mubr.msk.f32.gmra.mrb[142].mxu0 %vm629_vm0, %v2066_v31  ;;  %v6365_v62 = vld [vmem:[#allocation2 + $0x244] sm:$0xff]  ;;  %v2092_v31 = vld [vmem:[#allocation2 + $0x1b0] sm:$0xff] }
 0x3ec   :  { %14466 = vmatprep.mubr.msk.f32.mxu1 %vm16728_vm1, %v24686_v16  ;;  %13382 = vmatprep.mubr.msk.f32.mxu0 %vm16728_vm1, %v24686_v16 }
 0x3ef   :  { %14467 = vmatmul.mubr.msk.f32.gmra.mrb[56].mxu1 %vm629_vm0, %v6340_v27  ;;  %13383 = vmatmul.mubr.msk.f32.gmra.mrb[144].mxu0 %vm629_vm0, %v2067_v13  ;;  %v6366_v27 = vld [vmem:[#allocation2 + $0x24c] sm:$0xff]  ;;  %v2093_v13 = vld [vmem:[#allocation2 + $0x1b8] sm:$0xff] }
 0x3f0   :  { %14469 = vmatprep.mubr.msk.f32.mxu1 %vm16728_vm1, %v24686_v16  ;;  %13385 = vmatprep.mubr.msk.f32.mxu0 %vm16728_vm1, %v24686_v16 }
 0x3f3   :  { %14470 = vmatmul.mubr.msk.f32.gmra.mrb[58].mxu1 %vm629_vm0, %v6341_v37  ;;  %13386 = vmatmul.mubr.msk.f32.gmra.mrb[146].mxu0 %vm629_vm0, %v2068_v10  ;;  %v6367_v37 = vld [vmem:[#allocation2 + $0x254] sm:$0xff]  ;;  %v2094_v10 = vld [vmem:[#allocation2 + $0x1c0] sm:$0xff] }
 0x3f4   :  { %14472 = vmatprep.mubr.msk.f32.mxu1 %vm16728_vm1, %v24686_v16  ;;  %13388 = vmatprep.mubr.msk.f32.mxu0 %vm16728_vm1, %v24686_v16 }
 0x3f7   :  { %14473 = vmatmul.mubr.msk.f32.gmra.mrb[60].mxu1 %vm629_vm0, %v6342_v21  ;;  %13389 = vmatmul.mubr.msk.f32.gmra.mrb[148].mxu0 %vm629_vm0, %v2069_v7  ;;  %v20530_v21 = vld [vmem:[#allocation2 + $0x25c] sm:$0xff]  ;;  %v2095_v7 = vld [vmem:[#allocation2 + $0x1c8] sm:$0xff] }
 0x3f8   :  { %14475 = vmatprep.mubr.msk.f32.mxu1 %vm16728_vm1, %v24686_v16  ;;  %13391 = vmatprep.mubr.msk.f32.mxu0 %vm16728_vm1, %v24686_v16 }
 0x3fb   :  { %14476 = vmatmul.mubr.msk.f32.gmra.mrb[62].mxu1 %vm629_vm0, %v6343_v36  ;;  %13392 = vmatmul.mubr.msk.f32.gmra.mrb[150].mxu0 %vm629_vm0, %v2070_v19  ;;  %v20539_v36 = vld [vmem:[#allocation2 + $0x264] sm:$0xff]  ;;  %v2096_v19 = vld [vmem:[#allocation2 + $0x1d0] sm:$0xff] }
 0x3fc   :  { %14478 = vmatprep.mubr.msk.f32.mxu1 %vm16728_vm1, %v24686_v16  ;;  %13394 = vmatprep.mubr.msk.f32.mxu0 %vm16728_vm1, %v24686_v16 }
 0x3ff   :  { %14479 = vmatmul.mubr.msk.f32.gmra.mrb[64].mxu1 %vm629_vm0, %v6344_v44  ;;  %13395 = vmatmul.mubr.msk.f32.gmra.mrb[152].mxu0 %vm629_vm0, %v2071_v22  ;;  %v6370_v44 = vld [vmem:[#allocation2 + $0x26c] sm:$0xff]  ;;  %v2097_v22 = vld [vmem:[#allocation2 + $0x1d8] sm:$0xff] }
 0x400   :  { %14481 = vmatprep.mubr.msk.f32.mxu1 %vm16728_vm1, %v24686_v16  ;;  %13397 = vmatprep.mubr.msk.f32.mxu0 %vm16728_vm1, %v24686_v16 }
 0x403   :  { %14482 = vmatmul.mubr.msk.f32.gmra.mrb[66].mxu1 %vm629_vm0, %v6345_v42  ;;  %13398 = vmatmul.mubr.msk.f32.gmra.mrb[154].mxu0 %vm629_vm0, %v2072_v33  ;;  %v6371_v42 = vld [vmem:[#allocation2 + $0x274] sm:$0xff]  ;;  %v2098_v33 = vld [vmem:[#allocation2 + $0x1e0] sm:$0xff] }
 0x404   :  { %14484 = vmatprep.mubr.msk.f32.mxu1 %vm16728_vm1, %v24686_v16  ;;  %13400 = vmatprep.mubr.msk.f32.mxu0 %vm16728_vm1, %v24686_v16 }
 0x407   :  { %14485 = vmatmul.mubr.msk.f32.gmra.mrb[68].mxu1 %vm629_vm0, %v6346_v11  ;;  %13401 = vmatmul.mubr.msk.f32.gmra.mrb[156].mxu0 %vm629_vm0, %v2073_v9  ;;  %v6372_v11 = vld [vmem:[#allocation2 + $0x27c] sm:$0xff]  ;;  %v2099_v9 = vld [vmem:[#allocation2 + $0x1e8] sm:$0xff] }
 0x408   :  { %14487 = vmatprep.mubr.msk.f32.mxu1 %vm16728_vm1, %v24686_v16  ;;  %13403 = vmatprep.mubr.msk.f32.mxu0 %vm16728_vm1, %v24686_v16 }
 0x40b   :  { %14488 = vmatmul.mubr.msk.f32.gmra.mrb[70].mxu1 %vm629_vm0, %v6347_v17  ;;  %13404 = vmatmul.mubr.msk.f32.gmra.mrb[158].mxu0 %vm629_vm0, %v2074_v18  ;;  %v6373_v17 = vld [vmem:[#allocation2 + $0x284] sm:$0xff]  ;;  %v2100_v18 = vld [vmem:[#allocation2 + $0x1f0] sm:$0xff] }
 0x40c   :  { %14490 = vmatprep.mubr.msk.f32.mxu1 %vm16728_vm1, %v24686_v16  ;;  %13406 = vmatprep.mubr.msk.f32.mxu0 %vm16728_vm1, %v24686_v16 }
 0x40f   :  { %14491 = vmatmul.mubr.msk.f32.gmra.mrb[72].mxu1 %vm629_vm0, %v20391_v53  ;;  %13407 = vmatmul.mubr.msk.f32.gmra.mrb[160].mxu0 %vm629_vm0, %v2075_v55  ;;  %v6374_v55 = vld [vmem:[#allocation2 + $0x28c] sm:$0xff] }
 0x410   :  { %14493 = vmatprep.mubr.msk.f32.mxu1 %vm16728_vm1, %v24686_v16  ;;  %13409 = vmatprep.mubr.msk.f32.mxu0 %vm16728_vm1, %v24686_v16 }
 0x413   :  { %14494 = vmatmul.mubr.msk.f32.gmra.mrb[74].mxu1 %vm629_vm0, %v20400_v24  ;;  %13410 = vmatmul.mubr.msk.f32.gmra.mrb[162].mxu0 %vm629_vm0, %v2076_v35  ;;  %v2101_v35 = vld [vmem:[#allocation2 + $0x1f8] sm:$0xff] }
 0x414   :  { %14496 = vmatprep.mubr.msk.f32.mxu1 %vm16728_vm1, %v24686_v16  ;;  %13412 = vmatprep.mubr.msk.f32.mxu0 %vm16728_vm1, %v24686_v16 }
 0x417   :  { %14497 = vmatmul.mubr.msk.f32.gmra.mrb[76].mxu1 %vm629_vm0, %v6350_v49  ;;  %13413 = vmatmul.mubr.msk.f32.gmra.mrb[164].mxu0 %vm629_vm0, %v2077_v1  ;;  %v11778_v49 = vld [vmem:[%s24117_s2 + $0x1c0] sm:$0xff]  ;;  %v11779_v1 = vld [vmem:[%s24117_s2 + $0x1c8] sm:$0xff] }
 0x418   :  { %14499 = vmatprep.mubr.msk.f32.mxu1 %vm16728_vm1, %v24686_v16  ;;  %13415 = vmatprep.mubr.msk.f32.mxu0 %vm16728_vm1, %v24686_v16 }
 0x41b   :  { %14500 = vmatmul.mubr.msk.f32.gmra.mrb[78].mxu1 %vm629_vm0, %v6351_v56  ;;  %13416 = vmatmul.mubr.msk.f32.gmra.mrb[166].mxu0 %vm629_vm0, %v2078_v30  ;;  %v6375_v56 = vld [vmem:[#allocation2 + $0x294] sm:$0xff]  ;;  %v2102_v30 = vld [vmem:[#allocation2 + $0x200] sm:$0xff] }
 0x41c   :  { %14502 = vmatprep.mubr.msk.f32.mxu1 %vm16728_vm1, %v24686_v16  ;;  %13418 = vmatprep.mubr.msk.f32.mxu0 %vm16728_vm1, %v24686_v16 }
 0x41f   :  { %14503 = vmatmul.mubr.msk.f32.gmra.mrb[80].mxu1 %vm629_vm0, %v6352_v50  ;;  %13419 = vmatmul.mubr.msk.f32.gmra.mrb[168].mxu0 %vm629_vm0, %v2079_v51  ;;  %v15468_v50 = vpack.c.bf16 %v11779_v1, %v11778_v49  ;;  %v11780_v51 = vld [vmem:[%s24117_s2 + $0x1d0] sm:$0xff]  ;;  %v3646_v1 = vld [vmem:[#allocation2 + $0x1a] sm:$0xff] }
 0x420   :  { %14505 = vmatprep.mubr.msk.f32.mxu1 %vm16728_vm1, %v24686_v16  ;;  %13421 = vmatprep.mubr.msk.f32.mxu0 %vm16728_vm1, %v24686_v16  ;;  %v3645_v49 = vld [vmem:[#allocation2 + $0x12] sm:$0xff] }
 0x423   :  { %14506 = vmatmul.mubr.msk.f32.gmra.mrb[82].mxu1 %vm629_vm0, %v6353_v8  ;;  %13422 = vmatmul.mubr.msk.f32.gmra.mrb[170].mxu0 %vm629_vm0, %v2080_v58  ;;  %v11781_v8 = vld [vmem:[%s24117_s2 + $0x1d8] sm:$0xff]  ;;  %v2103_v58 = vld [vmem:[#allocation2 + $0x208] sm:$0xff] }
 0x424   :  { %14508 = vmatprep.mubr.msk.f32.mxu1 %vm16728_vm1, %v24686_v16  ;;  %13424 = vmatprep.mubr.msk.f32.mxu0 %vm16728_vm1, %v24686_v16 }
 0x427   :  { %14509 = vmatmul.mubr.msk.f32.gmra.mrb[84].mxu1 %vm629_vm0, %v6354_v26  ;;  %13425 = vmatmul.mubr.msk.f32.gmra.mrb[172].mxu0 %vm629_vm0, %v2081_v48  ;;  %v15471_v26 = vpack.c.bf16 %v11781_v8, %v11780_v51  ;;  %v7180_v48 = vld [vmem:[#allocation2 + $0x2c] sm:$0xff]  ;;  %v7201_v8 = vld [vmem:[#allocation2 + $0xd4] sm:$0xff] }
 0x428   :  { %14511 = vmatprep.mubr.msk.f32.mxu1 %vm16728_vm1, %v24686_v16  ;;  %13427 = vmatprep.mubr.msk.f32.mxu0 %vm16728_vm1, %v24686_v16  ;;  %v7200_v51 = vld [vmem:[#allocation2 + $0xcc] sm:$0xff] }
 0x42b   :  { %14512 = vmatmul.mubr.msk.f32.gmra.mrb[86].mxu1 %vm629_vm0, %v6355_v47  ;;  %13428 = vmatmul.mubr.msk.f32.gmra.mrb[174].mxu0 %vm629_vm0, %v2082_v52  ;;  %v7181_v47 = vld [vmem:[#allocation2 + $0x34] sm:$0xff]  ;;  %v2106_v52 = vld [vmem:[#allocation2 + $0x220] sm:$0xff] }
 0x42c   :  { %14514 = vmatprep.mubr.msk.f32.mxu1 %vm16728_vm1, %v24686_v16  ;;  %13430 = vmatprep.mubr.msk.f32.mxu0 %vm16728_vm1, %v24686_v16 }
 0x42f   :  { %14515 = vmatmul.mubr.msk.f32.gmra.mrb[88].mxu1 %vm629_vm0, %v20451_v6  ;;  %13431 = vmatmul.mubr.msk.f32.gmra.mrb[176].mxu0 %vm629_vm0, %v2083_v43  ;;  %v2107_v43 = vld [vmem:[#allocation2 + $0x228] sm:$0xff] }
 0x430   :  { %14517 = vmatprep.mubr.msk.f32.mxu1 %vm16728_vm1, %v24686_v16  ;;  %13433 = vmatprep.mubr.msk.f32.mxu0 %vm16728_vm1, %v24686_v16 }
 0x433   :  { %14518 = vmatmul.mubr.msk.f32.gmra.mrb[90].mxu1 %vm629_vm0, %v20461_v54  ;;  %13434 = vmatmul.mubr.msk.f32.gmra.mrb[178].mxu0 %vm629_vm0, %v2084_v59  ;;  %v7184_v59 = vld [vmem:[#allocation2 + $0x4c] sm:$0xff] }
 0x434   :  { %14520 = vmatprep.mubr.msk.f32.mxu1 %vm16728_vm1, %v24686_v16  ;;  %13436 = vmatprep.mubr.msk.f32.mxu0 %vm16728_vm1, %v24686_v16 }
 0x437   :  { %14521 = vmatmul.mubr.msk.f32.gmra.mrb[92].mxu1 %vm629_vm0, %v6358_v46  ;;  %13437 = vmatmul.mubr.msk.f32.gmra.mrb[180].mxu0 %vm629_vm0, %v2085_v40  ;;  %v2108_v46 = vld [vmem:[#allocation2 + $0x230] sm:$0xff] }
 0x438   :  { %14523 = vmatprep.mubr.msk.f32.mxu1 %vm16728_vm1, %v24686_v16  ;;  %13439 = vmatprep.mubr.msk.f32.mxu0 %vm16728_vm1, %v24686_v16  ;;  %v7185_v40 = vld [vmem:[#allocation2 + $0x54] sm:$0xff] }
 0x43b   :  { %14524 = vmatmul.mubr.msk.f32.gmra.mrb[94].mxu1 %vm629_vm0, %v6359_v5  ;;  %13440 = vmatmul.mubr.msk.f32.gmra.mrb[182].mxu0 %vm629_vm0, %v2086_v63  ;;  %v2109_v5 = vld [vmem:[#allocation2 + $0x238] sm:$0xff] }
 0x43c   :  { %14526 = vmatprep.mubr.msk.f32.mxu1 %vm16728_vm1, %v24686_v16  ;;  %13442 = vmatprep.mubr.msk.f32.mxu0 %vm16728_vm1, %v24686_v16  ;;  %v7186_v63 = vld [vmem:[#allocation2 + $0x5c] sm:$0xff] }
 0x43f   :  { %14527 = vmatmul.mubr.msk.f32.gmra.mrb[96].mxu1 %vm629_vm0, %v6360_v38  ;;  %13443 = vmatmul.mubr.msk.f32.gmra.mrb[184].mxu0 %vm629_vm0, %v2087_v4  ;;  %v2110_v38 = vld [vmem:[#allocation2 + $0x240] sm:$0xff] }
 0x440   :  { %14529 = vmatprep.mubr.msk.f32.mxu1 %vm16728_vm1, %v24686_v16  ;;  %13445 = vmatprep.mubr.msk.f32.mxu0 %vm16728_vm1, %v24686_v16  ;;  %v7187_v4 = vld [vmem:[#allocation2 + $0x64] sm:$0xff] }
 0x443   :  { %14530 = vmatmul.mubr.msk.f32.gmra.mrb[98].mxu1 %vm629_vm0, %v6361_v32  ;;  %13446 = vmatmul.mubr.msk.f32.gmra.mrb[186].mxu0 %vm629_vm0, %v2088_v12  ;;  %v11782_v32 = vld [vmem:[%s24117_s2 + $0x1e0] sm:$0xff]  ;;  %v11783_v12 = vld [vmem:[%s24117_s2 + $0x1e8] sm:$0xff] }
 0x444   :  { %14532 = vmatprep.mubr.msk.f32.mxu1 %vm16728_vm1, %v24686_v16  ;;  %13448 = vmatprep.mubr.msk.f32.mxu0 %vm16728_vm1, %v24686_v16 }
 0x447   :  { %14533 = vmatmul.mubr.msk.f32.gmra.mrb[100].mxu1 %vm629_vm0, %v6362_v41  ;;  %13449 = vmatmul.mubr.msk.f32.gmra.mrb[188].mxu0 %vm629_vm0, %v2089_v45  ;;  %v2111_v41 = vld [vmem:[#allocation2 + $0x248] sm:$0xff]  ;;  %v15474_v45 = vpack.c.bf16 %v11783_v12, %v11782_v32  ;;  %v3657_v12 = vld [vmem:[#allocation2 + $0x72] sm:$0xff] }
 0x448   :  { %14535 = vmatprep.mubr.msk.f32.mxu1 %vm16728_vm1, %v24686_v16  ;;  %13451 = vmatprep.mubr.msk.f32.mxu0 %vm16728_vm1, %v24686_v16  ;;  %v3656_v32 = vld [vmem:[#allocation2 + $0x6a] sm:$0xff] }
 0x44b   :  { %14536 = vmatmul.mubr.msk.f32.gmra.mrb[102].mxu1 %vm629_vm0, %v6363_v28  ;;  %13452 = vmatmul.mubr.msk.f32.gmra.mrb[190].mxu0 %vm629_vm0, %v2090_v29  ;;  %v7188_v28 = vld [vmem:[#allocation2 + $0x6c] sm:$0xff] }
 0x44c   :  { %14538 = vmatprep.mubr.msk.f32.mxu1 %vm16728_vm1, %v24686_v16  ;;  %13454 = vmatprep.mubr.msk.f32.mxu0 %vm16728_vm1, %v24686_v16  ;;  %v2112_v29 = vld [vmem:[#allocation2 + $0x250] sm:$0xff] }
 0x44f   :  { %14539 = vmatmul.mubr.msk.f32.gmra.mrb[104].mxu1 %vm629_vm0, %v6364_v61  ;;  %13455 = vmatmul.mubr.msk.f32.gmra.mrb[192].mxu0 %vm629_vm0, %v2091_v15  ;;  %v16724_v61 = vld [vmem:[#allocation2 + $0x74] sm:$0xff] }
 0x450   :  { %14541 = vmatprep.mubr.msk.f32.mxu1 %vm16728_vm1, %v24686_v16  ;;  %13457 = vmatprep.mubr.msk.f32.mxu0 %vm16728_vm1, %v24686_v16  ;;  %v2113_v15 = vld [vmem:[#allocation2 + $0x258] sm:$0xff] }
 0x453   :  { %14542 = vmatmul.mubr.msk.f32.gmra.mrb[106].mxu1 %vm629_vm0, %v6365_v62  ;;  %13458 = vmatmul.mubr.msk.f32.gmra.mrb[194].mxu0 %vm629_vm0, %v2092_v31  ;;  %v16725_v62 = vld [vmem:[#allocation2 + $0x7c] sm:$0xff] }
 0x454   :  { %14544 = vmatprep.mubr.msk.f32.mxu1 %vm16728_vm1, %v24686_v16  ;;  %13460 = vmatprep.mubr.msk.f32.mxu0 %vm16728_vm1, %v24686_v16  ;;  %v2114_v31 = vld [vmem:[#allocation2 + $0x260] sm:$0xff] }
 0x457   :  { %14545 = vmatmul.mubr.msk.f32.gmra.mrb[108].mxu1 %vm629_vm0, %v6366_v27  ;;  %13461 = vmatmul.mubr.msk.f32.gmra.mrb[196].mxu0 %vm629_vm0, %v2093_v13  ;;  %v7191_v27 = vld [vmem:[#allocation2 + $0x84] sm:$0xff] }
 0x458   :  { %14547 = vmatprep.mubr.msk.f32.mxu1 %vm16728_vm1, %v24686_v16  ;;  %13463 = vmatprep.mubr.msk.f32.mxu0 %vm16728_vm1, %v24686_v16  ;;  %v2115_v13 = vld [vmem:[#allocation2 + $0x268] sm:$0xff] }
 0x45b   :  { %14548 = vmatmul.mubr.msk.f32.gmra.mrb[110].mxu1 %vm629_vm0, %v6367_v37  ;;  %13464 = vmatmul.mubr.msk.f32.gmra.mrb[198].mxu0 %vm629_vm0, %v2094_v10  ;;  %v7192_v37 = vld [vmem:[#allocation2 + $0x8c] sm:$0xff] }
 0x45c   :  { %14550 = vmatprep.mubr.msk.f32.mxu1 %vm16728_vm1, %v24686_v16  ;;  %13466 = vmatprep.mubr.msk.f32.mxu0 %vm16728_vm1, %v24686_v16  ;;  %v2116_v10 = vld [vmem:[#allocation2 + $0x270] sm:$0xff] }
 0x45f   :  { %14551 = vmatmul.mubr.msk.f32.gmra.mrb[112].mxu1 %vm629_vm0, %v20530_v21  ;;  %13467 = vmatmul.mubr.msk.f32.gmra.mrb[200].mxu0 %vm629_vm0, %v2095_v7  ;;  %v7193_v7 = vld [vmem:[#allocation2 + $0x94] sm:$0xff] }
 0x460   :  { %14553 = vmatprep.mubr.msk.f32.mxu1 %vm16728_vm1, %v24686_v16  ;;  %13469 = vmatprep.mubr.msk.f32.mxu0 %vm16728_vm1, %v24686_v16 }
 0x463   :  { %14554 = vmatmul.mubr.msk.f32.gmra.mrb[114].mxu1 %vm629_vm0, %v20539_v36  ;;  %13470 = vmatmul.mubr.msk.f32.gmra.mrb[202].mxu0 %vm629_vm0, %v2096_v19  ;;  %v2117_v19 = vld [vmem:[#allocation2 + $0x278] sm:$0xff] }
 0x464   :  { %14556 = vmatprep.mubr.msk.f32.mxu1 %vm16728_vm1, %v24686_v16  ;;  %13472 = vmatprep.mubr.msk.f32.mxu0 %vm16728_vm1, %v24686_v16 }
 0x467   :  { %14557 = vmatmul.mubr.msk.f32.gmra.mrb[116].mxu1 %vm629_vm0, %v6370_v44  ;;  %13473 = vmatmul.mubr.msk.f32.gmra.mrb[204].mxu0 %vm629_vm0, %v2097_v22  ;;  %v7194_v44 = vld [vmem:[#allocation2 + $0x9c] sm:$0xff] }
 0x468   :  { %14559 = vmatprep.mubr.msk.f32.mxu1 %vm16728_vm1, %v24686_v16  ;;  %13475 = vmatprep.mubr.msk.f32.mxu0 %vm16728_vm1, %v24686_v16  ;;  %v11422_v22 = vld [vmem:[%s24117_s2 + $0xc0] sm:$0xff] }
 0x46b   :  { %14560 = vmatmul.mubr.msk.f32.gmra.mrb[118].mxu1 %vm629_vm0, %v6371_v42  ;;  %13476 = vmatmul.mubr.msk.f32.gmra.mrb[206].mxu0 %vm629_vm0, %v2098_v33  ;;  %v11423_v42 = vld [vmem:[%s24117_s2 + $0xc8] sm:$0xff]  ;;  %v2118_v33 = vld [vmem:[#allocation2 + $0x280] sm:$0xff] }
 0x46c   :  { %14562 = vmatprep.mubr.msk.f32.mxu1 %vm16728_vm1, %v24686_v16  ;;  %13478 = vmatprep.mubr.msk.f32.mxu0 %vm16728_vm1, %v24686_v16 }
 0x46f   :  { %14563 = vmatmul.mubr.msk.f32.gmra.mrb[120].mxu1 %vm629_vm0, %v6372_v11  ;;  %13479 = vmatmul.mubr.msk.f32.gmra.mrb[208].mxu0 %vm629_vm0, %v2099_v9  ;;  %v7195_v11 = vld [vmem:[#allocation2 + $0xa4] sm:$0xff]  ;;  %v15420_v9 = vpack.c.bf16 %v11423_v42, %v11422_v22 }
 0x470   :  { %14565 = vmatprep.mubr.msk.f32.mxu1 %vm16728_vm1, %v24686_v16  ;;  %13481 = vmatprep.mubr.msk.f32.mxu0 %vm16728_vm1, %v24686_v16  ;;  %v20914_v22 = vld [vmem:[#allocation2 + $0xc2] sm:$0xff] }
 0x473   :  { %14566 = vmatmul.mubr.msk.f32.gmra.mrb[122].mxu1 %vm629_vm0, %v6373_v17  ;;  %13482 = vmatmul.mubr.msk.f32.gmra.mrb[210].mxu0 %vm629_vm0, %v2100_v18  ;;  %v3643_v17 = vld [vmem:[#allocation2 + $0x2] sm:$0xff]  ;;  %v7196_v18 = vld [vmem:[#allocation2 + $0xac] sm:$0xff] }
 0x474   :  { %14568 = vmatprep.mubr.msk.f32.mxu1 %vm16728_vm1, %v24686_v16  ;;  %13484 = vmatprep.mubr.msk.f32.mxu0 %vm16728_vm1, %v24686_v16 }
 0x477   :  { %14569 = vmatmul.mubr.msk.f32.gmra.mrb[124].mxu1 %vm629_vm0, %v6374_v55  ;;  %13485 = vmatmul.mubr.msk.f32.gmra.mrb[212].mxu0 %vm629_vm0, %v2101_v35  ;;  %v3644_v55 = vld [vmem:[#allocation2 + $0xa] sm:$0xff]  ;;  %v7197_v35 = vld [vmem:[#allocation2 + $0xb4] sm:$0xff] }
 0x478   :  { %14571 = vmatprep.mubr.msk.f32.mxu1 %vm16728_vm1, %v24686_v16  ;;  %13487 = vmatprep.mubr.msk.f32.mxu0 %vm16728_vm1, %v24686_v16 }
 0x47b   :  { %14572 = vmatmul.mubr.msk.f32.gmra.mrb[126].mxu1 %vm629_vm0, %v6375_v56  ;;  %13488 = vmatmul.mubr.msk.f32.gmra.mrb[214].mxu0 %vm629_vm0, %v2102_v30  ;;  %v11424_v56 = vld [vmem:[%s24117_s2 + $0xd0] sm:$0xff]  ;;  %v20746_v30 = vld [vmem:[#allocation2 + $0x22] sm:$0xff] }
 0x47c   :  { %14590 = vmatprep.mubr.msk.f32.mxu1 %vm16728_vm1, %v24686_v16  ;;  %13490 = vmatprep.mubr.msk.f32.mxu0 %vm16728_vm1, %v24686_v16 }
 0x47f   :  { %14591 = vmatmul.mubr.msk.f32.vlgmr.msra.gmra.mrb[128].mxu1 %vm629_vm0, %v20029_v57  ;;  %13491 = vmatmul.mubr.msk.f32.gmra.mrb[216].mxu0 %vm629_vm0, %v2103_v58  ;;  %v2104_v57 = vld [vmem:[#allocation2 + $0x210] sm:$0xff] }
 0x480   :  { %15469 = vmatpush3.bf16.msra.mxu1 %v15468_v50  ;;  %14593 = vmatprep.mubr.msk.f32.mxu1 %vm16728_vm1, %v24686_v16  ;;  %v3649_v58 = vld [vmem:[#allocation2 + $0x32] sm:$0xff] }
 0x481   :  { %15470 = vmatprep.subr.bf16.mxu1 %v24788_v2  ;;  %13493 = vmatprep.mubr.msk.f32.mxu0 %vm16728_vm1, %v24686_v16 }
 0x483   :  { %14594 = vmatmul.mubr.msk.f32.gmra.mrb[130].mxu1 %vm629_vm0, %v7180_v48  ;;  %13494 = vmatmul.mubr.msk.f32.gmra.mrb[218].mxu0 %vm629_vm0, %v2104_v57  ;;  %v3650_v48 = vld [vmem:[#allocation2 + $0x3a] sm:$0xff]  ;;  %v7203_v57 = vld [vmem:[#allocation2 + $0xe4] sm:$0xff] }
 0x484   :  { %14596 = vmatprep.mubr.msk.f32.mxu1 %vm16728_vm1, %v24686_v16  ;;  %15472 = vmatpush3.bf16.msra.mxu1 %v15471_v26  ;;  %v7202_v26 = vld [vmem:[#allocation2 + $0xdc] sm:$0xff] }
 0x485   :  { %15473 = vmatprep.subr.bf16.mxu1 %v24788_v2  ;;  %13496 = vmatprep.mubr.msk.f32.mxu0 %vm16728_vm1, %v24686_v16 }
 0x487   :  { %14597 = vmatmul.mubr.msk.f32.gmra.mrb[132].mxu1 %vm629_vm0, %v7181_v47  ;;  %13497 = vmatmul.mubr.msk.f32.gmra.mrb[220].mxu0 %vm629_vm0, %v2105_v20  ;;  %v3651_v47 = vld [vmem:[#allocation2 + $0x42] sm:$0xff]  ;;  %v7204_v20 = vld [vmem:[#allocation2 + $0xec] sm:$0xff] }
 0x488   :  { %14599 = vmatprep.mubr.msk.f32.mxu1 %vm16728_vm1, %v24686_v16  ;;  %13499 = vmatprep.mubr.msk.f32.mxu0 %vm16728_vm1, %v24686_v16 }
 0x489   :  { %15475 = vmatpush3.bf16.msra.mxu1 %v15474_v45  ;;  %v7211_v45 = vld [vmem:[#allocation2 + $0x124] sm:$0xff] }
 0x48a   :  { %15476 = vmatprep.subr.bf16.mxu1 %v24788_v2 }
 0x48b   :  { %14600 = vmatmul.mubr.msk.f32.gmra.mrb[134].mxu1 %vm629_vm0, %v7182_v3  ;;  %13500 = vmatmul.mubr.msk.f32.gmra.mrb[222].mxu0 %vm629_vm0, %v2106_v52  ;;  %v3652_v3 = vld [vmem:[#allocation2 + $0x4a] sm:$0xff]  ;;  %v7205_v52 = vld [vmem:[#allocation2 + $0xf4] sm:$0xff] }
 0x48c   :  { %14602 = vmatprep.mubr.msk.f32.mxu1 %vm16728_vm1, %v24686_v16  ;;  %13502 = vmatprep.mubr.msk.f32.mxu0 %vm16728_vm1, %v24686_v16 }
 0x48f   :  { %14603 = vmatmul.mubr.msk.f32.gmra.mrb[136].mxu1 %vm629_vm0, %v7183_v23  ;;  %13503 = vmatmul.mubr.msk.f32.gmra.mrb[224].mxu0 %vm629_vm0, %v2107_v43  ;;  %v3653_v23 = vld [vmem:[#allocation2 + $0x52] sm:$0xff]  ;;  %v7206_v43 = vld [vmem:[#allocation2 + $0xfc] sm:$0xff] }
 0x490   :  { %14605 = vmatprep.mubr.msk.f32.mxu1 %vm16728_vm1, %v24686_v16  ;;  %13505 = vmatprep.mubr.msk.f32.mxu0 %vm16728_vm1, %v24686_v16 }
 0x493   :  { %14606 = vmatmul.mubr.msk.f32.gmra.mrb[138].mxu1 %vm629_vm0, %v7184_v59  ;;  %13506 = vmatmul.mubr.msk.f32.gmra.mrb[226].mxu0 %vm629_vm0, %v2108_v46  ;;  %v3654_v59 = vld [vmem:[#allocation2 + $0x5a] sm:$0xff]  ;;  %v7207_v46 = vld [vmem:[#allocation2 + $0x104] sm:$0xff] }
 0x494   :  { %14608 = vmatprep.mubr.msk.f32.mxu1 %vm16728_vm1, %v24686_v16  ;;  %13508 = vmatprep.mubr.msk.f32.mxu0 %vm16728_vm1, %v24686_v16 }
 0x497   :  { %14609 = vmatmul.mubr.msk.f32.gmra.mrb[140].mxu1 %vm629_vm0, %v7185_v40  ;;  %13509 = vmatmul.mubr.msk.f32.gmra.mrb[228].mxu0 %vm629_vm0, %v2109_v5  ;;  %v3655_v40 = vld [vmem:[#allocation2 + $0x62] sm:$0xff]  ;;  %v11784_v5 = vld [vmem:[%s24117_s2 + $0x1f0] sm:$0xff] }
 0x498   :  { %14611 = vmatprep.mubr.msk.f32.mxu1 %vm16728_vm1, %v24686_v16  ;;  %13511 = vmatprep.mubr.msk.f32.mxu0 %vm16728_vm1, %v24686_v16 }
 0x49b   :  { %14612 = vmatmul.mubr.msk.f32.gmra.mrb[142].mxu1 %vm629_vm0, %v7186_v63  ;;  %13512 = vmatmul.mubr.msk.f32.gmra.mrb[230].mxu0 %vm629_vm0, %v2110_v38  ;;  %v11785_v63 = vld [vmem:[%s24117_s2 + $0x1f8] sm:$0xff] }
 0x49c   :  { %14614 = vmatprep.mubr.msk.f32.mxu1 %vm16728_vm1, %v24686_v16  ;;  %13514 = vmatprep.mubr.msk.f32.mxu0 %vm16728_vm1, %v24686_v16  ;;  %v15477_v38 = vpack.c.bf16 %v11785_v63, %v11784_v5  ;;  %v7236_v5 = vld [vmem:[#allocation2 + $0x1ec] sm:$0xff] }
 0x49d   :  { %v21070_v63 = vld [vmem:[#allocation2 + $0x14a] sm:$0xff] }
 0x49e   :  { %15478 = vmatpush3.bf16.msra.mxu1 %v15477_v38  ;;  %v7237_v38 = vld [vmem:[#allocation2 + $0x1f4] sm:$0xff] }
 0x49f   :  { %14615 = vmatmul.mubr.msk.f32.gmra.mrb[144].mxu1 %vm629_vm0, %v7187_v4  ;;  %13515 = vmatmul.mubr.msk.f32.gmra.mrb[232].mxu0 %vm629_vm0, %v2111_v41  ;;  %v7208_v4 = vld [vmem:[#allocation2 + $0x10c] sm:$0xff]  ;;  %v3658_v41 = vld [vmem:[#allocation2 + $0x7a] sm:$0xff] }
 0x4a0   :  { %14617 = vmatprep.mubr.msk.f32.mxu1 %vm16728_vm1, %v24686_v16  ;;  %13517 = vmatprep.mubr.msk.f32.mxu0 %vm16728_vm1, %v24686_v16 }
 0x4a1   :  { %15479 = vmatprep.subr.bf16.mxu1 %v24788_v2 }
 0x4a3   :  { %14618 = vmatmul.mubr.msk.f32.gmra.mrb[146].mxu1 %vm629_vm0, %v7188_v28  ;;  %13518 = vmatmul.mubr.msk.f32.gmra.mrb[234].mxu0 %vm629_vm0, %v2112_v29  ;;  %v20843_v28 = vld [vmem:[#allocation2 + $0x8a] sm:$0xff]  ;;  %v7213_v29 = vld [vmem:[#allocation2 + $0x134] sm:$0xff] }
 0x4a4   :  { %14620 = vmatprep.mubr.msk.f32.mxu1 %vm16728_vm1, %v24686_v16  ;;  %13520 = vmatprep.mubr.msk.f32.mxu0 %vm16728_vm1, %v24686_v16 }
 0x4a7   :  { %14621 = vmatmul.mubr.msk.f32.gmra.mrb[148].mxu1 %vm629_vm0, %v16724_v61  ;;  %13521 = vmatmul.mubr.msk.f32.gmra.mrb[236].mxu0 %vm629_vm0, %v2113_v15  ;;  %v20852_v61 = vld [vmem:[#allocation2 + $0x92] sm:$0xff]  ;;  %v7214_v15 = vld [vmem:[#allocation2 + $0x13c] sm:$0xff] }
 0x4a8   :  { %14623 = vmatprep.mubr.msk.f32.mxu1 %vm16728_vm1, %v24686_v16  ;;  %13523 = vmatprep.mubr.msk.f32.mxu0 %vm16728_vm1, %v24686_v16 }
 0x4ab   :  { %14624 = vmatmul.mubr.msk.f32.gmra.mrb[150].mxu1 %vm629_vm0, %v16725_v62  ;;  %13524 = vmatmul.mubr.msk.f32.gmra.mrb[238].mxu0 %vm629_vm0, %v2114_v31  ;;  %v20861_v62 = vld [vmem:[#allocation2 + $0x9a] sm:$0xff]  ;;  %v7215_v31 = vld [vmem:[#allocation2 + $0x144] sm:$0xff] }
 0x4ac   :  { %14626 = vmatprep.mubr.msk.f32.mxu1 %vm16728_vm1, %v24686_v16  ;;  %13526 = vmatprep.mubr.msk.f32.mxu0 %vm16728_vm1, %v24686_v16 }
 0x4af   :  { %14627 = vmatmul.mubr.msk.f32.gmra.mrb[152].mxu1 %vm629_vm0, %v7191_v27  ;;  %13527 = vmatmul.mubr.msk.f32.gmra.mrb[240].mxu0 %vm629_vm0, %v2115_v13  ;;  %v20870_v27 = vld [vmem:[#allocation2 + $0xa2] sm:$0xff]  ;;  %v7216_v13 = vld [vmem:[#allocation2 + $0x14c] sm:$0xff] }
 0x4b0   :  { %14629 = vmatprep.mubr.msk.f32.mxu1 %vm16728_vm1, %v24686_v16  ;;  %13529 = vmatprep.mubr.msk.f32.mxu0 %vm16728_vm1, %v24686_v16 }
 0x4b3   :  { %14630 = vmatmul.mubr.msk.f32.gmra.mrb[154].mxu1 %vm629_vm0, %v7192_v37  ;;  %13530 = vmatmul.mubr.msk.f32.gmra.mrb[242].mxu0 %vm629_vm0, %v2116_v10  ;;  %v20879_v37 = vld [vmem:[#allocation2 + $0xaa] sm:$0xff]  ;;  %v7217_v10 = vld [vmem:[#allocation2 + $0x154] sm:$0xff] }
 0x4b4   :  { %14632 = vmatprep.mubr.msk.f32.mxu1 %vm16728_vm1, %v24686_v16  ;;  %13532 = vmatprep.mubr.msk.f32.mxu0 %vm16728_vm1, %v24686_v16 }
 0x4b7   :  { %14633 = vmatmul.mubr.msk.f32.gmra.mrb[156].mxu1 %vm629_vm0, %v7193_v7  ;;  %13533 = vmatmul.mubr.msk.f32.gmra.mrb[244].mxu0 %vm629_vm0, %v2117_v19  ;;  %v20888_v7 = vld [vmem:[#allocation2 + $0xb2] sm:$0xff]  ;;  %v20898_v19 = vld [vmem:[#allocation2 + $0xba] sm:$0xff] }
 0x4b8   :  { %14635 = vmatprep.mubr.msk.f32.mxu1 %vm16728_vm1, %v24686_v16  ;;  %13535 = vmatprep.mubr.msk.f32.mxu0 %vm16728_vm1, %v24686_v16 }
 0x4bb   :  { %14636 = vmatmul.mubr.msk.f32.gmra.mrb[158].mxu1 %vm629_vm0, %v7194_v44  ;;  %13536 = vmatmul.mubr.msk.f32.gmra.mrb[246].mxu0 %vm629_vm0, %v2118_v33  ;;  %v11426_v44 = vld [vmem:[%s24117_s2 + $0xe0] sm:$0xff]  ;;  %v7220_v33 = vld [vmem:[#allocation2 + $0x16c] sm:$0xff] }
 0x4bc   :  { %14638 = vmatprep.mubr.msk.f32.mxu1 %vm16728_vm1, %v24686_v16  ;;  %13554 = vmatprep.mubr.msk.f32.mxu0 %vm16728_vm1, %v24686_v16 }
 0x4bf   :  { %14639 = vmatmul.mubr.msk.f32.gmra.mrb[160].mxu1 %vm629_vm0, %v7195_v11  ;;  %13555 = vmatmul.mubr.msk.f32.vlgmr.msra.gmra.mrb[86].mxu0 %vm629_vm0, %v3643_v17  ;;  %v7221_v11 = vld [vmem:[#allocation2 + $0x174] sm:$0xff]  ;;  %v7222_v17 = vld [vmem:[#allocation2 + $0x17c] sm:$0xff] }
 0x4c0   :  { %14641 = vmatprep.mubr.msk.f32.mxu1 %vm16728_vm1, %v24686_v16  ;;  %13557 = vmatprep.mubr.msk.f32.mxu0 %vm16728_vm1, %v24686_v16 }
 0x4c1   :  { %15421 = vmatpush3.bf16.msra.mxu0 %v15420_v9  ;;  %v20933_v9 = vld [vmem:[#allocation2 + $0xd2] sm:$0xff] }
 0x4c2   :  { %15422 = vmatprep.subr.bf16.mxu0 %v24788_v2 }
 0x4c3   :  { %14642 = vmatmul.mubr.msk.f32.gmra.mrb[0].mxu1 %vm629_vm0, %v7196_v18  ;;  %13558 = vmatmul.mubr.msk.f32.gmra.mrb[88].mxu0 %vm629_vm0, %v3644_v55  ;;  %v20942_v18 = vld [vmem:[#allocation2 + $0xda] sm:$0xff]  ;;  %v7223_v55 = vld [vmem:[#allocation2 + $0x184] sm:$0xff] }
 0x4c4   :  { %14644 = vmatprep.mubr.msk.f32.mxu1 %vm16728_vm1, %v24686_v16  ;;  %13560 = vmatprep.mubr.msk.f32.mxu0 %vm16728_vm1, %v24686_v16 }
 0x4c7   :  { %14645 = vmatmul.mubr.msk.f32.gmra.mrb[2].mxu1 %vm629_vm0, %v7197_v35  ;;  %13561 = vmatmul.mubr.msk.f32.gmra.mrb[90].mxu0 %vm629_vm0, %v3645_v49  ;;  %v20951_v35 = vld [vmem:[#allocation2 + $0xe2] sm:$0xff]  ;;  %v7224_v49 = vld [vmem:[#allocation2 + $0x18c] sm:$0xff] }
 0x4c8   :  { %14647 = vmatprep.mubr.msk.f32.mxu1 %vm16728_vm1, %v24686_v16  ;;  %13563 = vmatprep.mubr.msk.f32.mxu0 %vm16728_vm1, %v24686_v16 }
 0x4cb   :  { %14648 = vmatmul.mubr.msk.f32.gmra.mrb[4].mxu1 %vm629_vm0, %v20166_v0  ;;  %13564 = vmatmul.mubr.msk.f32.gmra.mrb[92].mxu0 %vm629_vm0, %v3646_v1  ;;  %v11425_v0 = vld [vmem:[%s24117_s2 + $0xd8] sm:$0xff]  ;;  %v20960_v1 = vld [vmem:[#allocation2 + $0xea] sm:$0xff] }
 0x4cc   :  { %14650 = vmatprep.mubr.msk.f32.mxu1 %vm16728_vm1, %v24686_v16  ;;  %13566 = vmatprep.mubr.msk.f32.mxu0 %vm16728_vm1, %v24686_v16  ;;  %v15423_v50 = vpack.c.bf16 %v11425_v0, %v11424_v56  ;;  %v7225_v56 = vld [vmem:[#allocation2 + $0x194] sm:$0xff] }
 0x4cd   :  { %v20969_v0 = vld [vmem:[#allocation2 + $0xf2] sm:$0xff] }
 0x4ce   :  { %15424 = vmatpush3.bf16.msra.mxu0 %v15423_v50  ;;  %v7226_v50 = vld [vmem:[#allocation2 + $0x19c] sm:$0xff] }
 0x4cf   :  { %14651 = vmatmul.mubr.msk.f32.gmra.mrb[6].mxu1 %vm629_vm0, %v20176_v25  ;;  %13567 = vmatmul.mubr.msk.f32.gmra.mrb[94].mxu0 %vm629_vm0, %v20746_v30  ;;  %v20756_v25 = vld [vmem:[#allocation2 + $0x2a] sm:$0xff] }
 0x4d0   :  { %14653 = vmatprep.mubr.msk.f32.mxu1 %vm16728_vm1, %v24686_v16  ;;  %13569 = vmatprep.mubr.msk.f32.mxu0 %vm16728_vm1, %v24686_v16 }
 0x4d1   :  { %15425 = vmatprep.subr.bf16.mxu0 %v24788_v2 }
 0x4d3   :  { %14654 = vmatmul.mubr.msk.f32.gmra.mrb[8].mxu1 %vm629_vm0, %v7200_v51  ;;  %13570 = vmatmul.mubr.msk.f32.gmra.mrb[96].mxu0 %vm629_vm0, %v20756_v25  ;;  %v20978_v51 = vld [vmem:[#allocation2 + $0xfa] sm:$0xff] }
 0x4d4   :  { %14656 = vmatprep.mubr.msk.f32.mxu1 %vm16728_vm1, %v24686_v16  ;;  %13572 = vmatprep.mubr.msk.f32.mxu0 %vm16728_vm1, %v24686_v16 }
 0x4d7   :  { %14657 = vmatmul.mubr.msk.f32.gmra.mrb[10].mxu1 %vm629_vm0, %v7201_v8  ;;  %13573 = vmatmul.mubr.msk.f32.gmra.mrb[98].mxu0 %vm629_vm0, %v3649_v58  ;;  %v7227_v8 = vld [vmem:[#allocation2 + $0x1a4] sm:$0xff] }
 0x4d8   :  { %14659 = vmatprep.mubr.msk.f32.mxu1 %vm16728_vm1, %v24686_v16  ;;  %13575 = vmatprep.mubr.msk.f32.mxu0 %vm16728_vm1, %v24686_v16  ;;  %v20987_v58 = vld [vmem:[#allocation2 + $0x102] sm:$0xff] }
 0x4db   :  { %14660 = vmatmul.mubr.msk.f32.gmra.mrb[12].mxu1 %vm629_vm0, %v7202_v26  ;;  %13576 = vmatmul.mubr.msk.f32.gmra.mrb[100].mxu0 %vm629_vm0, %v3650_v48  ;;  %v7228_v26 = vld [vmem:[#allocation2 + $0x1ac] sm:$0xff] }
 0x4dc   :  { %14662 = vmatprep.mubr.msk.f32.mxu1 %vm16728_vm1, %v24686_v16  ;;  %13578 = vmatprep.mubr.msk.f32.mxu0 %vm16728_vm1, %v24686_v16  ;;  %v20996_v48 = vld [vmem:[#allocation2 + $0x10a] sm:$0xff] }
 0x4df   :  { %14663 = vmatmul.mubr.msk.f32.gmra.mrb[14].mxu1 %vm629_vm0, %v7203_v57  ;;  %13579 = vmatmul.mubr.msk.f32.gmra.mrb[102].mxu0 %vm629_vm0, %v3651_v47  ;;  %v7229_v57 = vld [vmem:[#allocation2 + $0x1b4] sm:$0xff] }
 0x4e0   :  { %14665 = vmatprep.mubr.msk.f32.mxu1 %vm16728_vm1, %v24686_v16  ;;  %13581 = vmatprep.mubr.msk.f32.mxu0 %vm16728_vm1, %v24686_v16  ;;  %v21005_v47 = vld [vmem:[#allocation2 + $0x112] sm:$0xff] }
 0x4e3   :  { %14666 = vmatmul.mubr.msk.f32.gmra.mrb[16].mxu1 %vm629_vm0, %v7204_v20  ;;  %13582 = vmatmul.mubr.msk.f32.gmra.mrb[104].mxu0 %vm629_vm0, %v3652_v3  ;;  %v21015_v20 = vld [vmem:[#allocation2 + $0x11a] sm:$0xff]  ;;  %v21025_v3 = vld [vmem:[#allocation2 + $0x122] sm:$0xff] }
 0x4e4   :  { %14668 = vmatprep.mubr.msk.f32.mxu1 %vm16728_vm1, %v24686_v16  ;;  %13584 = vmatprep.mubr.msk.f32.mxu0 %vm16728_vm1, %v24686_v16 }
 0x4e7   :  { %14669 = vmatmul.mubr.msk.f32.gmra.mrb[18].mxu1 %vm629_vm0, %v7205_v52  ;;  %13585 = vmatmul.mubr.msk.f32.gmra.mrb[106].mxu0 %vm629_vm0, %v3653_v23  ;;  %v21034_v52 = vld [vmem:[#allocation2 + $0x12a] sm:$0xff]  ;;  %v21043_v23 = vld [vmem:[#allocation2 + $0x132] sm:$0xff] }
 0x4e8   :  { %14671 = vmatprep.mubr.msk.f32.mxu1 %vm16728_vm1, %v24686_v16  ;;  %13587 = vmatprep.mubr.msk.f32.mxu0 %vm16728_vm1, %v24686_v16 }
 0x4eb   :  { %14672 = vmatmul.mubr.msk.f32.gmra.mrb[20].mxu1 %vm629_vm0, %v7206_v43  ;;  %13588 = vmatmul.mubr.msk.f32.gmra.mrb[108].mxu0 %vm629_vm0, %v3654_v59  ;;  %v7234_v43 = vld [vmem:[#allocation2 + $0x1dc] sm:$0xff] }
 0x4ec   :  { %14674 = vmatprep.mubr.msk.f32.mxu1 %vm16728_vm1, %v24686_v16  ;;  %13590 = vmatprep.mubr.msk.f32.mxu0 %vm16728_vm1, %v24686_v16  ;;  %v21052_v59 = vld [vmem:[#allocation2 + $0x13a] sm:$0xff] }
 0x4ef   :  { %14675 = vmatmul.mubr.msk.f32.gmra.mrb[22].mxu1 %vm629_vm0, %v7207_v46  ;;  %13591 = vmatmul.mubr.msk.f32.gmra.mrb[110].mxu0 %vm629_vm0, %v3655_v40  ;;  %v7235_v46 = vld [vmem:[#allocation2 + $0x1e4] sm:$0xff] }
 0x4f0   :  { %14677 = vmatprep.mubr.msk.f32.mxu1 %vm16728_vm1, %v24686_v16  ;;  %13593 = vmatprep.mubr.msk.f32.mxu0 %vm16728_vm1, %v24686_v16  ;;  %v21061_v40 = vld [vmem:[#allocation2 + $0x142] sm:$0xff] }
 0x4f3   :  { %14678 = vmatmul.mubr.msk.f32.gmra.mrb[24].mxu1 %vm629_vm0, %v7208_v4  ;;  %13594 = vmatmul.mubr.msk.f32.gmra.mrb[112].mxu0 %vm629_vm0, %v3656_v32  ;;  %v21079_v4 = vld [vmem:[#allocation2 + $0x152] sm:$0xff]  ;;  %v21089_v32 = vld [vmem:[#allocation2 + $0x15a] sm:$0xff] }
 0x4f4   :  { %14680 = vmatprep.mubr.msk.f32.mxu1 %vm16728_vm1, %v24686_v16  ;;  %13596 = vmatprep.mubr.msk.f32.mxu0 %vm16728_vm1, %v24686_v16 }
 0x4f7   :  { %14681 = vmatmul.mubr.msk.f32.gmra.mrb[26].mxu1 %vm629_vm0, %v20246_v34  ;;  %13597 = vmatmul.mubr.msk.f32.gmra.mrb[114].mxu0 %vm629_vm0, %v3657_v12  ;;  %v20834_v34 = vld [vmem:[#allocation2 + $0x82] sm:$0xff]  ;;  %v11428_v12 = vld [vmem:[%s24117_s2 + $0xf0] sm:$0xff] }
 0x4f8   :  { %14683 = vmatprep.mubr.msk.f32.mxu1 %vm16728_vm1, %v24686_v16  ;;  %13599 = vmatprep.mubr.msk.f32.mxu0 %vm16728_vm1, %v24686_v16 }
 0x4fb   :  { %14684 = vmatmul.mubr.msk.f32.gmra.mrb[28].mxu1 %vm629_vm0, %v20255_v14  ;;  %13600 = vmatmul.mubr.msk.f32.gmra.mrb[116].mxu0 %vm629_vm0, %v3658_v41  ;;  %v7212_v14 = vld [vmem:[#allocation2 + $0x12c] sm:$0xff]  ;;  %v21105_v41 = vld [vmem:[#allocation2 + $0x162] sm:$0xff] }
 0x4fc   :  { %14686 = vmatprep.mubr.msk.f32.mxu1 %vm16728_vm1, %v24686_v16  ;;  %13602 = vmatprep.mubr.msk.f32.mxu0 %vm16728_vm1, %v24686_v16 }
 0x4ff   :  { %14687 = vmatmul.mubr.msk.f32.gmra.mrb[30].mxu1 %vm629_vm0, %v7211_v45  ;;  %13603 = vmatmul.mubr.msk.f32.gmra.mrb[118].mxu0 %vm629_vm0, %v20834_v34 }
 0x500   :  { %14689 = vmatprep.mubr.msk.f32.mxu1 %vm16728_vm1, %v24686_v16  ;;  %13605 = vmatprep.mubr.msk.f32.mxu0 %vm16728_vm1, %v24686_v16 }
 0x503   :  { %14690 = vmatmul.mubr.msk.f32.gmra.mrb[32].mxu1 %vm629_vm0, %v7212_v14  ;;  %13606 = vmatmul.mubr.msk.f32.gmra.mrb[120].mxu0 %vm629_vm0, %v20843_v28  ;;  %v7240_v14 = vld [vmem:[#allocation2 + $0x20c] sm:$0xff] }
 0x504   :  { %14692 = vmatprep.mubr.msk.f32.mxu1 %vm16728_vm1, %v24686_v16  ;;  %13608 = vmatprep.mubr.msk.f32.mxu0 %vm16728_vm1, %v24686_v16 }
 0x507   :  { %14693 = vmatmul.mubr.msk.f32.gmra.mrb[34].mxu1 %vm629_vm0, %v7213_v29  ;;  %13609 = vmatmul.mubr.msk.f32.gmra.mrb[122].mxu0 %vm629_vm0, %v20852_v61  ;;  %v7241_v29 = vld [vmem:[#allocation2 + $0x214] sm:$0xff] }
 0x508   :  { %14695 = vmatprep.mubr.msk.f32.mxu1 %vm16728_vm1, %v24686_v16  ;;  %13611 = vmatprep.mubr.msk.f32.mxu0 %vm16728_vm1, %v24686_v16 }
 0x50b   :  { %14696 = vmatmul.mubr.msk.f32.gmra.mrb[36].mxu1 %vm629_vm0, %v7214_v15  ;;  %13612 = vmatmul.mubr.msk.f32.gmra.mrb[124].mxu0 %vm629_vm0, %v20861_v62  ;;  %v21124_v15 = vld [vmem:[#allocation2 + $0x172] sm:$0xff] }
 0x50c   :  { %14698 = vmatprep.mubr.msk.f32.mxu1 %vm16728_vm1, %v24686_v16  ;;  %13614 = vmatprep.mubr.msk.f32.mxu0 %vm16728_vm1, %v24686_v16 }
 0x50f   :  { %14699 = vmatmul.mubr.msk.f32.gmra.mrb[38].mxu1 %vm629_vm0, %v7215_v31  ;;  %13615 = vmatmul.mubr.msk.f32.gmra.mrb[126].mxu0 %vm629_vm0, %v20870_v27  ;;  %v7242_v31 = vld [vmem:[#allocation2 + $0x21c] sm:$0xff] }
 0x510   :  { %14701 = vmatprep.mubr.msk.f32.mxu1 %vm16728_vm1, %v24686_v16  ;;  %13617 = vmatprep.mubr.msk.f32.mxu0 %vm16728_vm1, %v24686_v16 }
 0x513   :  { %14702 = vmatmul.mubr.msk.f32.gmra.mrb[40].mxu1 %vm629_vm0, %v7216_v13  ;;  %13618 = vmatmul.mubr.msk.f32.gmra.mrb[128].mxu0 %vm629_vm0, %v20879_v37  ;;  %v21133_v13 = vld [vmem:[#allocation2 + $0x17a] sm:$0xff] }
 0x514   :  { %14704 = vmatprep.mubr.msk.f32.mxu1 %vm16728_vm1, %v24686_v16  ;;  %13620 = vmatprep.mubr.msk.f32.mxu0 %vm16728_vm1, %v24686_v16 }
 0x517   :  { %14705 = vmatmul.mubr.msk.f32.gmra.mrb[42].mxu1 %vm629_vm0, %v7217_v10  ;;  %13621 = vmatmul.mubr.msk.f32.gmra.mrb[130].mxu0 %vm629_vm0, %v20888_v7  ;;  %v7243_v10 = vld [vmem:[#allocation2 + $0x224] sm:$0xff] }
 0x518   :  { %14707 = vmatprep.mubr.msk.f32.mxu1 %vm16728_vm1, %v24686_v16  ;;  %13623 = vmatprep.mubr.msk.f32.mxu0 %vm16728_vm1, %v24686_v16 }
 0x51b   :  { %14708 = vmatmul.mubr.msk.f32.gmra.mrb[44].mxu1 %vm629_vm0, %v20312_v60  ;;  %13624 = vmatmul.mubr.msk.f32.gmra.mrb[132].mxu0 %vm629_vm0, %v20898_v19  ;;  %v11427_v60 = vld [vmem:[%s24117_s2 + $0xe8] sm:$0xff] }
 0x51c   :  { %14710 = vmatprep.mubr.msk.f32.mxu1 %vm16728_vm1, %v24686_v16  ;;  %13626 = vmatprep.mubr.msk.f32.mxu0 %vm16728_vm1, %v24686_v16  ;;  %v15426_v42 = vpack.c.bf16 %v11427_v60, %v11426_v44  ;;  %v21142_v44 = vld [vmem:[#allocation2 + $0x182] sm:$0xff]  ;;  %v7244_v60 = vld [vmem:[#allocation2 + $0x22c] sm:$0xff] }
 0x51e   :  { %15427 = vmatpush3.bf16.msra.mxu0 %v15426_v42  ;;  %v21151_v42 = vld [vmem:[#allocation2 + $0x18a] sm:$0xff] }
 0x51f   :  { %14711 = vmatmul.mubr.msk.f32.gmra.mrb[46].mxu1 %vm629_vm0, %v20322_v39  ;;  %13627 = vmatmul.mubr.msk.f32.gmra.mrb[134].mxu0 %vm629_vm0, %v20914_v22  ;;  %v20924_v39 = vld [vmem:[#allocation2 + $0xca] sm:$0xff] }
 0x520   :  { %14713 = vmatprep.mubr.msk.f32.mxu1 %vm16728_vm1, %v24686_v16  ;;  %13629 = vmatprep.mubr.msk.f32.mxu0 %vm16728_vm1, %v24686_v16 }
 0x521   :  { %15428 = vmatprep.subr.bf16.mxu0 %v24788_v2 }
 0x523   :  { %14714 = vmatmul.mubr.msk.f32.gmra.mrb[48].mxu1 %vm629_vm0, %v7220_v33  ;;  %13630 = vmatmul.mubr.msk.f32.gmra.mrb[136].mxu0 %vm629_vm0, %v20924_v39  ;;  %v7245_v33 = vld [vmem:[#allocation2 + $0x234] sm:$0xff] }
 0x524   :  { %14716 = vmatprep.mubr.msk.f32.mxu1 %vm16728_vm1, %v24686_v16  ;;  %13632 = vmatprep.mubr.msk.f32.mxu0 %vm16728_vm1, %v24686_v16 }
 0x527   :  { %14717 = vmatmul.mubr.msk.f32.gmra.mrb[50].mxu1 %vm629_vm0, %v7221_v11  ;;  %13633 = vmatmul.mubr.msk.f32.gmra.mrb[138].mxu0 %vm629_vm0, %v20933_v9  ;;  %v21160_v11 = vld [vmem:[#allocation2 + $0x192] sm:$0xff] }
 0x528   :  { %14719 = vmatprep.mubr.msk.f32.mxu1 %vm16728_vm1, %v24686_v16  ;;  %13635 = vmatprep.mubr.msk.f32.mxu0 %vm16728_vm1, %v24686_v16 }
 0x52b   :  { %14720 = vmatmul.mubr.msk.f32.gmra.mrb[52].mxu1 %vm629_vm0, %v7222_v17  ;;  %13636 = vmatmul.mubr.msk.f32.gmra.mrb[140].mxu0 %vm629_vm0, %v20942_v18  ;;  %v7246_v17 = vld [vmem:[#allocation2 + $0x23c] sm:$0xff] }
 0x52c   :  { %14722 = vmatprep.mubr.msk.f32.mxu1 %vm16728_vm1, %v24686_v16  ;;  %13638 = vmatprep.mubr.msk.f32.mxu0 %vm16728_vm1, %v24686_v16 }
 0x52f   :  { %14723 = vmatmul.mubr.msk.f32.gmra.mrb[54].mxu1 %vm629_vm0, %v7223_v55  ;;  %13639 = vmatmul.mubr.msk.f32.gmra.mrb[142].mxu0 %vm629_vm0, %v20951_v35  ;;  %v21169_v55 = vld [vmem:[#allocation2 + $0x19a] sm:$0xff] }
 0x530   :  { %14725 = vmatprep.mubr.msk.f32.mxu1 %vm16728_vm1, %v24686_v16  ;;  %13641 = vmatprep.mubr.msk.f32.mxu0 %vm16728_vm1, %v24686_v16 }
 0x533   :  { %14726 = vmatmul.mubr.msk.f32.gmra.mrb[56].mxu1 %vm629_vm0, %v7224_v49  ;;  %13642 = vmatmul.mubr.msk.f32.gmra.mrb[144].mxu0 %vm629_vm0, %v20960_v1  ;;  %v7247_v49 = vld [vmem:[#allocation2 + $0x244] sm:$0xff] }
 0x534   :  { %14728 = vmatprep.mubr.msk.f32.mxu1 %vm16728_vm1, %v24686_v16  ;;  %13644 = vmatprep.mubr.msk.f32.mxu0 %vm16728_vm1, %v24686_v16 }
 0x537   :  { %14729 = vmatmul.mubr.msk.f32.gmra.mrb[58].mxu1 %vm629_vm0, %v7225_v56  ;;  %13645 = vmatmul.mubr.msk.f32.gmra.mrb[146].mxu0 %vm629_vm0, %v20969_v0  ;;  %v21178_v56 = vld [vmem:[#allocation2 + $0x1a2] sm:$0xff] }
 0x538   :  { %14731 = vmatprep.mubr.msk.f32.mxu1 %vm16728_vm1, %v24686_v16  ;;  %13647 = vmatprep.mubr.msk.f32.mxu0 %vm16728_vm1, %v24686_v16 }
 0x53b   :  { %14732 = vmatmul.mubr.msk.f32.gmra.mrb[60].mxu1 %vm629_vm0, %v7226_v50  ;;  %13648 = vmatmul.mubr.msk.f32.gmra.mrb[148].mxu0 %vm629_vm0, %v20978_v51  ;;  %v7248_v50 = vld [vmem:[#allocation2 + $0x24c] sm:$0xff] }
 0x53c   :  { %14734 = vmatprep.mubr.msk.f32.mxu1 %vm16728_vm1, %v24686_v16  ;;  %13650 = vmatprep.mubr.msk.f32.mxu0 %vm16728_vm1, %v24686_v16 }
 0x53f   :  { %14735 = vmatmul.mubr.msk.f32.gmra.mrb[62].mxu1 %vm629_vm0, %v7227_v8  ;;  %13651 = vmatmul.mubr.msk.f32.gmra.mrb[150].mxu0 %vm629_vm0, %v20987_v58  ;;  %v21187_v8 = vld [vmem:[#allocation2 + $0x1aa] sm:$0xff] }
 0x540   :  { %14737 = vmatprep.mubr.msk.f32.mxu1 %vm16728_vm1, %v24686_v16  ;;  %13653 = vmatprep.mubr.msk.f32.mxu0 %vm16728_vm1, %v24686_v16 }
 0x543   :  { %14738 = vmatmul.mubr.msk.f32.gmra.mrb[64].mxu1 %vm629_vm0, %v7228_v26  ;;  %13654 = vmatmul.mubr.msk.f32.gmra.mrb[152].mxu0 %vm629_vm0, %v20996_v48  ;;  %v7249_v26 = vld [vmem:[#allocation2 + $0x254] sm:$0xff] }
 0x544   :  { %14740 = vmatprep.mubr.msk.f32.mxu1 %vm16728_vm1, %v24686_v16  ;;  %13656 = vmatprep.mubr.msk.f32.mxu0 %vm16728_vm1, %v24686_v16 }
 0x547   :  { %14741 = vmatmul.mubr.msk.f32.gmra.mrb[66].mxu1 %vm629_vm0, %v7229_v57  ;;  %13657 = vmatmul.mubr.msk.f32.gmra.mrb[154].mxu0 %vm629_vm0, %v21005_v47  ;;  %v21196_v57 = vld [vmem:[#allocation2 + $0x1b2] sm:$0xff] }
 0x548   :  { %14743 = vmatprep.mubr.msk.f32.mxu1 %vm16728_vm1, %v24686_v16  ;;  %13659 = vmatprep.mubr.msk.f32.mxu0 %vm16728_vm1, %v24686_v16 }
 0x54b   :  { %14744 = vmatmul.mubr.msk.f32.gmra.mrb[68].mxu1 %vm629_vm0, %v20391_v53  ;;  %13660 = vmatmul.mubr.msk.f32.gmra.mrb[156].mxu0 %vm629_vm0, %v21015_v20  ;;  %v7232_v53 = vld [vmem:[#allocation2 + $0x1cc] sm:$0xff] }
 0x54c   :  { %14746 = vmatprep.mubr.msk.f32.mxu1 %vm16728_vm1, %v24686_v16  ;;  %13662 = vmatprep.mubr.msk.f32.mxu0 %vm16728_vm1, %v24686_v16 }
 0x54f   :  { %14747 = vmatmul.mubr.msk.f32.gmra.mrb[70].mxu1 %vm629_vm0, %v20400_v24  ;;  %13663 = vmatmul.mubr.msk.f32.gmra.mrb[158].mxu0 %vm629_vm0, %v21025_v3  ;;  %v7233_v24 = vld [vmem:[#allocation2 + $0x1d4] sm:$0xff] }
 0x550   :  { %14749 = vmatprep.mubr.msk.f32.mxu1 %vm16728_vm1, %v24686_v16  ;;  %13665 = vmatprep.mubr.msk.f32.mxu0 %vm16728_vm1, %v24686_v16 }
 0x553   :  { %14750 = vmatmul.mubr.msk.f32.gmra.mrb[72].mxu1 %vm629_vm0, %v7232_v53  ;;  %13666 = vmatmul.mubr.msk.f32.gmra.mrb[160].mxu0 %vm629_vm0, %v21034_v52  ;;  %v21206_v53 = vld [vmem:[#allocation2 + $0x1ba] sm:$0xff] }
 0x554   :  { %14752 = vmatprep.mubr.msk.f32.mxu1 %vm16728_vm1, %v24686_v16  ;;  %13668 = vmatprep.mubr.msk.f32.mxu0 %vm16728_vm1, %v24686_v16 }
 0x557   :  { %14753 = vmatmul.mubr.msk.f32.gmra.mrb[74].mxu1 %vm629_vm0, %v7233_v24  ;;  %13669 = vmatmul.mubr.msk.f32.gmra.mrb[162].mxu0 %vm629_vm0, %v21043_v23  ;;  %v21216_v24 = vld [vmem:[#allocation2 + $0x1c2] sm:$0xff] }
 0x558   :  { %14755 = vmatprep.mubr.msk.f32.mxu1 %vm16728_vm1, %v24686_v16  ;;  %13671 = vmatprep.mubr.msk.f32.mxu0 %vm16728_vm1, %v24686_v16 }
 0x55b   :  { %14756 = vmatmul.mubr.msk.f32.gmra.mrb[76].mxu1 %vm629_vm0, %v7234_v43  ;;  %13672 = vmatmul.mubr.msk.f32.gmra.mrb[164].mxu0 %vm629_vm0, %v21052_v59  ;;  %v21225_v43 = vld [vmem:[#allocation2 + $0x1ca] sm:$0xff] }
 0x55c   :  { %14758 = vmatprep.mubr.msk.f32.mxu1 %vm16728_vm1, %v24686_v16  ;;  %13674 = vmatprep.mubr.msk.f32.mxu0 %vm16728_vm1, %v24686_v16 }
 0x55f   :  { %14759 = vmatmul.mubr.msk.f32.gmra.mrb[78].mxu1 %vm629_vm0, %v7235_v46  ;;  %13675 = vmatmul.mubr.msk.f32.gmra.mrb[166].mxu0 %vm629_vm0, %v21061_v40  ;;  %v21234_v46 = vld [vmem:[#allocation2 + $0x1d2] sm:$0xff] }
 0x560   :  { %14761 = vmatprep.mubr.msk.f32.mxu1 %vm16728_vm1, %v24686_v16  ;;  %13677 = vmatprep.mubr.msk.f32.mxu0 %vm16728_vm1, %v24686_v16 }
 0x563   :  { %14762 = vmatmul.mubr.msk.f32.gmra.mrb[80].mxu1 %vm629_vm0, %v7236_v5  ;;  %13678 = vmatmul.mubr.msk.f32.gmra.mrb[168].mxu0 %vm629_vm0, %v21070_v63  ;;  %v7254_v5 = vld [vmem:[#allocation2 + $0x27c] sm:$0xff] }
 0x564   :  { %14764 = vmatprep.mubr.msk.f32.mxu1 %vm16728_vm1, %v24686_v16  ;;  %13680 = vmatprep.mubr.msk.f32.mxu0 %vm16728_vm1, %v24686_v16 }
 0x567   :  { %14765 = vmatmul.mubr.msk.f32.gmra.mrb[82].mxu1 %vm629_vm0, %v7237_v38  ;;  %13681 = vmatmul.mubr.msk.f32.gmra.mrb[170].mxu0 %vm629_vm0, %v21079_v4  ;;  %v21243_v38 = vld [vmem:[#allocation2 + $0x1da] sm:$0xff] }
 0x568   :  { %14767 = vmatprep.mubr.msk.f32.mxu1 %vm16728_vm1, %v24686_v16  ;;  %13683 = vmatprep.mubr.msk.f32.mxu0 %vm16728_vm1, %v24686_v16 }
 0x56b   :  { %14768 = vmatmul.mubr.msk.f32.gmra.mrb[84].mxu1 %vm629_vm0, %v20451_v6  ;;  %13684 = vmatmul.mubr.msk.f32.gmra.mrb[172].mxu0 %vm629_vm0, %v21089_v32  ;;  %v11429_v6 = vld [vmem:[%s24117_s2 + $0xf8] sm:$0xff] }
 0x56c   :  { %14770 = vmatprep.mubr.msk.f32.mxu1 %vm16728_vm1, %v24686_v16  ;;  %13686 = vmatprep.mubr.msk.f32.mxu0 %vm16728_vm1, %v24686_v16  ;;  %v15429_v45 = vpack.c.bf16 %v11429_v6, %v11428_v12  ;;  %v7255_v12 = vld [vmem:[#allocation2 + $0x284] sm:$0xff] }
 0x56d   :  { %v21252_v6 = vld [vmem:[#allocation2 + $0x1e2] sm:$0xff] }
 0x56e   :  { %15430 = vmatpush3.bf16.msra.mxu0 %v15429_v45  ;;  %v7256_v45 = vld [vmem:[#allocation2 + $0x28c] sm:$0xff] }
 0x56f   :  { %14771 = vmatmul.mubr.msk.f32.gmra.mrb[86].mxu1 %vm629_vm0, %v20461_v54  ;;  %13687 = vmatmul.mubr.msk.f32.gmra.mrb[174].mxu0 %vm629_vm0, %v21105_v41  ;;  %v21115_v54 = vld [vmem:[#allocation2 + $0x16a] sm:$0xff] }
 0x570   :  { %14773 = vmatprep.mubr.msk.f32.mxu1 %vm16728_vm1, %v24686_v16  ;;  %13689 = vmatprep.mubr.msk.f32.mxu0 %vm16728_vm1, %v24686_v16 }
 0x571   :  { %15431 = vmatprep.subr.bf16.mxu0 %v24788_v2 }
 0x573   :  { %14774 = vmatmul.mubr.msk.f32.gmra.mrb[88].mxu1 %vm629_vm0, %v7240_v14  ;;  %13690 = vmatmul.mubr.msk.f32.gmra.mrb[176].mxu0 %vm629_vm0, %v21115_v54  ;;  %v21261_v14 = vld [vmem:[#allocation2 + $0x1ea] sm:$0xff] }
 0x574   :  { %14776 = vmatprep.mubr.msk.f32.mxu1 %vm16728_vm1, %v24686_v16  ;;  %13692 = vmatprep.mubr.msk.f32.mxu0 %vm16728_vm1, %v24686_v16 }
 0x577   :  { %14777 = vmatmul.mubr.msk.f32.gmra.mrb[90].mxu1 %vm629_vm0, %v7241_v29  ;;  %13693 = vmatmul.mubr.msk.f32.gmra.mrb[178].mxu0 %vm629_vm0, %v21124_v15  ;;  %v7257_v29 = vld [vmem:[#allocation2 + $0x294] sm:$0xff] }
 0x578   :  { %14779 = vmatprep.mubr.msk.f32.mxu1 %vm16728_vm1, %v24686_v16  ;;  %13695 = vmatprep.mubr.msk.f32.mxu0 %vm16728_vm1, %v24686_v16 }
 0x57b   :  { %14780 = vmatmul.mubr.msk.f32.gmra.mrb[92].mxu1 %vm629_vm0, %v7242_v31  ;;  %13696 = vmatmul.mubr.msk.f32.gmra.mrb[180].mxu0 %vm629_vm0, %v21133_v13  ;;  %v21270_v31 = vld [vmem:[#allocation2 + $0x1f2] sm:$0xff] }
 0x57c   :  { %14782 = vmatprep.mubr.msk.f32.mxu1 %vm16728_vm1, %v24686_v16  ;;  %13698 = vmatprep.mubr.msk.f32.mxu0 %vm16728_vm1, %v24686_v16 }
 0x57f   :  { %14783 = vmatmul.mubr.msk.f32.gmra.mrb[94].mxu1 %vm629_vm0, %v7243_v10  ;;  %13699 = vmatmul.mubr.msk.f32.gmra.mrb[182].mxu0 %vm629_vm0, %v21142_v44  ;;  %v7258_v10 = vld [vmem:[#allocation2 + $0x29c] sm:$0xff] }
 0x580   :  { %14785 = vmatprep.mubr.msk.f32.mxu1 %vm16728_vm1, %v24686_v16  ;;  %13701 = vmatprep.mubr.msk.f32.mxu0 %vm16728_vm1, %v24686_v16 }
 0x583   :  { %14786 = vmatmul.mubr.msk.f32.gmra.mrb[96].mxu1 %vm629_vm0, %v7244_v60  ;;  %13702 = vmatmul.mubr.msk.f32.gmra.mrb[184].mxu0 %vm629_vm0, %v21151_v42  ;;  %v21279_v60 = vld [vmem:[#allocation2 + $0x1fa] sm:$0xff] }
 0x584   :  { %14788 = vmatprep.mubr.msk.f32.mxu1 %vm16728_vm1, %v24686_v16  ;;  %13704 = vmatprep.mubr.msk.f32.mxu0 %vm16728_vm1, %v24686_v16 }
 0x587   :  { %14789 = vmatmul.mubr.msk.f32.gmra.mrb[98].mxu1 %vm629_vm0, %v7245_v33  ;;  %13705 = vmatmul.mubr.msk.f32.gmra.mrb[186].mxu0 %vm629_vm0, %v21160_v11  ;;  %v11867_v33 = vld [vmem:[%s24117_s2 + $0x200] sm:$0xff] }
 0x588   :  { %14791 = vmatprep.mubr.msk.f32.mxu1 %vm16728_vm1, %v24686_v16  ;;  %13707 = vmatprep.mubr.msk.f32.mxu0 %vm16728_vm1, %v24686_v16 }
 0x58b   :  { %14792 = vmatmul.mubr.msk.f32.gmra.mrb[100].mxu1 %vm629_vm0, %v7246_v17  ;;  %13708 = vmatmul.mubr.msk.f32.gmra.mrb[188].mxu0 %vm629_vm0, %v21169_v55  ;;  %v11868_v17 = vld [vmem:[%s24117_s2 + $0x208] sm:$0xff] }
 0x58c   :  { %14794 = vmatprep.mubr.msk.f32.mxu1 %vm16728_vm1, %v24686_v16  ;;  %13710 = vmatprep.mubr.msk.f32.mxu0 %vm16728_vm1, %v24686_v16 }
 0x58f   :  { %14795 = vmatmul.mubr.msk.f32.gmra.mrb[102].mxu1 %vm629_vm0, %v7247_v49  ;;  %13711 = vmatmul.mubr.msk.f32.gmra.mrb[190].mxu0 %vm629_vm0, %v21178_v56  ;;  %v7259_v49 = vld [vmem:[#allocation2 + $0x2a4] sm:$0xff] }
 0x590   :  { %14797 = vmatprep.mubr.msk.f32.mxu1 %vm16728_vm1, %v24686_v16  ;;  %13713 = vmatprep.mubr.msk.f32.mxu0 %vm16728_vm1, %v24686_v16 }
 0x593   :  { %14798 = vmatmul.mubr.msk.f32.gmra.mrb[104].mxu1 %vm629_vm0, %v7248_v50  ;;  %13714 = vmatmul.mubr.msk.f32.gmra.mrb[192].mxu0 %vm629_vm0, %v21187_v8  ;;  %v21294_v50 = vld [vmem:[#allocation2 + $0x202] sm:$0xff] }
 0x594   :  { %14800 = vmatprep.mubr.msk.f32.mxu1 %vm16728_vm1, %v24686_v16  ;;  %13716 = vmatprep.mubr.msk.f32.mxu0 %vm16728_vm1, %v24686_v16 }
 0x597   :  { %14801 = vmatmul.mubr.msk.f32.gmra.mrb[106].mxu1 %vm629_vm0, %v7249_v26  ;;  %13717 = vmatmul.mubr.msk.f32.gmra.mrb[194].mxu0 %vm629_vm0, %v21196_v57  ;;  %v15480_v26 = vpack.c.bf16 %v11868_v17, %v11867_v33  ;;  %v8065_v33 = vld [vmem:[#allocation2 + $0x35] sm:$0xff] }
 0x598   :  { %14803 = vmatprep.mubr.msk.f32.mxu1 %vm16728_vm1, %v24686_v16  ;;  %13719 = vmatprep.mubr.msk.f32.mxu0 %vm16728_vm1, %v24686_v16  ;;  %v21329_v17 = vld [vmem:[#allocation2 + $0x21a] sm:$0xff] }
 0x59b   :  { %14804 = vmatmul.mubr.msk.f32.gmra.mrb[108].mxu1 %vm629_vm0, %v20530_v21  ;;  %13720 = vmatmul.mubr.msk.f32.gmra.mrb[196].mxu0 %vm629_vm0, %v21206_v53  ;;  %v7252_v21 = vld [vmem:[#allocation2 + $0x26c] sm:$0xff] }
 0x59c   :  { %14806 = vmatprep.mubr.msk.f32.mxu1 %vm16728_vm1, %v24686_v16  ;;  %13722 = vmatprep.mubr.msk.f32.mxu0 %vm16728_vm1, %v24686_v16 }
 0x59f   :  { %14807 = vmatmul.mubr.msk.f32.gmra.mrb[110].mxu1 %vm629_vm0, %v20539_v36  ;;  %13723 = vmatmul.mubr.msk.f32.gmra.mrb[198].mxu0 %vm629_vm0, %v21216_v24  ;;  %v7253_v36 = vld [vmem:[#allocation2 + $0x274] sm:$0xff] }
 0x5a0   :  { %14809 = vmatprep.mubr.msk.f32.mxu1 %vm16728_vm1, %v24686_v16  ;;  %13725 = vmatprep.mubr.msk.f32.mxu0 %vm16728_vm1, %v24686_v16 }
 0x5a3   :  { %14810 = vmatmul.mubr.msk.f32.gmra.mrb[112].mxu1 %vm629_vm0, %v7252_v21  ;;  %13726 = vmatmul.mubr.msk.f32.gmra.mrb[200].mxu0 %vm629_vm0, %v21225_v43  ;;  %v11869_v21 = vld [vmem:[%s24117_s2 + $0x210] sm:$0xff] }
 0x5a4   :  { %14812 = vmatprep.mubr.msk.f32.mxu1 %vm16728_vm1, %v24686_v16  ;;  %13728 = vmatprep.mubr.msk.f32.mxu0 %vm16728_vm1, %v24686_v16 }
 0x5a7   :  { %14813 = vmatmul.mubr.msk.f32.gmra.mrb[114].mxu1 %vm629_vm0, %v7253_v36  ;;  %13729 = vmatmul.mubr.msk.f32.gmra.mrb[202].mxu0 %vm629_vm0, %v21234_v46  ;;  %v11870_v36 = vld [vmem:[%s24117_s2 + $0x218] sm:$0xff] }
 0x5a8   :  { %14815 = vmatprep.mubr.msk.f32.mxu1 %vm16728_vm1, %v24686_v16  ;;  %13731 = vmatprep.mubr.msk.f32.mxu0 %vm16728_vm1, %v24686_v16 }
 0x5ab   :  { %14816 = vmatmul.mubr.msk.f32.gmra.mrb[116].mxu1 %vm629_vm0, %v7254_v5  ;;  %13732 = vmatmul.mubr.msk.f32.gmra.mrb[204].mxu0 %vm629_vm0, %v21243_v38  ;;  %v8063_v5 = vld [vmem:[#allocation2 + $0x25] sm:$0xff] }
 0x5ac   :  { %14818 = vmatprep.mubr.msk.f32.mxu1 %vm16728_vm1, %v24686_v16  ;;  %13734 = vmatprep.mubr.msk.f32.mxu0 %vm16728_vm1, %v24686_v16 }
 0x5af   :  { %14819 = vmatmul.mubr.msk.f32.gmra.mrb[118].mxu1 %vm629_vm0, %v7255_v12  ;;  %13735 = vmatmul.mubr.msk.f32.gmra.mrb[206].mxu0 %vm629_vm0, %v21252_v6  ;;  %v21309_v12 = vld [vmem:[#allocation2 + $0x20a] sm:$0xff] }
 0x5b0   :  { %14821 = vmatprep.mubr.msk.f32.mxu1 %vm16728_vm1, %v24686_v16  ;;  %13737 = vmatprep.mubr.msk.f32.mxu0 %vm16728_vm1, %v24686_v16 }
 0x5b3   :  { %14822 = vmatmul.mubr.msk.f32.gmra.mrb[120].mxu1 %vm629_vm0, %v7256_v45  ;;  %13738 = vmatmul.mubr.msk.f32.gmra.mrb[208].mxu0 %vm629_vm0, %v21261_v14  ;;  %v15483_v45 = vpack.c.bf16 %v11870_v36, %v11869_v21  ;;  %v8067_v21 = vld [vmem:[#allocation2 + $0x45] sm:$0xff] }
 0x5b4   :  { %14824 = vmatprep.mubr.msk.f32.mxu1 %vm16728_vm1, %v24686_v16  ;;  %13740 = vmatprep.mubr.msk.f32.mxu0 %vm16728_vm1, %v24686_v16  ;;  %v21347_v36 = vld [vmem:[#allocation2 + $0x22a] sm:$0xff] }
 0x5b7   :  { %14825 = vmatmul.mubr.msk.f32.gmra.mrb[122].mxu1 %vm629_vm0, %v7257_v29  ;;  %13741 = vmatmul.mubr.msk.f32.gmra.mrb[210].mxu0 %vm629_vm0, %v21270_v31  ;;  %v8064_v29 = vld [vmem:[#allocation2 + $0x2d] sm:$0xff] }
 0x5b8   :  { %14827 = vmatprep.mubr.msk.f32.mxu1 %vm16728_vm1, %v24686_v16  ;;  %13743 = vmatprep.mubr.msk.f32.mxu0 %vm16728_vm1, %v24686_v16 }
 0x5bb   :  { %14828 = vmatmul.mubr.msk.f32.gmra.mrb[124].mxu1 %vm629_vm0, %v7258_v10  ;;  %13744 = vmatmul.mubr.msk.f32.gmra.mrb[212].mxu0 %vm629_vm0, %v21279_v60  ;;  %v21319_v10 = vld [vmem:[#allocation2 + $0x212] sm:$0xff] }
 0x5bc   :  { %14830 = vmatprep.mubr.msk.f32.mxu1 %vm16728_vm1, %v24686_v16  ;;  %13746 = vmatprep.mubr.msk.f32.mxu0 %vm16728_vm1, %v24686_v16 }
 0x5bf   :  { %14831 = vmatmul.mubr.msk.f32.gmra.mrb[126].mxu1 %vm629_vm0, %v7259_v49  ;;  %13747 = vmatmul.mubr.msk.f32.gmra.mrb[214].mxu0 %vm629_vm0, %v21294_v50  ;;  %v8066_v49 = vld [vmem:[#allocation2 + $0x3d] sm:$0xff] }
 0x5c0   :  { %14849 = vmatprep.mubr.msk.f32.mxu1 %vm16728_vm1, %v24686_v16  ;;  %13749 = vmatprep.mubr.msk.f32.mxu0 %vm16728_vm1, %v24686_v16 }
 0x5c3   :  { %14850 = vmatmul.mubr.msk.f32.vlgmr.msra.gmra.mrb[128].mxu1 %vm629_vm0, %v8063_v5  ;;  %13750 = vmatmul.mubr.msk.f32.gmra.mrb[216].mxu0 %vm629_vm0, %v21309_v12  ;;  %v8068_v5 = vld [vmem:[#allocation2 + $0x4d] sm:$0xff] }
 0x5c4   :  { %15481 = vmatpush3.bf16.msra.mxu1 %v15480_v26  ;;  %14852 = vmatprep.mubr.msk.f32.mxu1 %vm16728_vm1, %v24686_v16  ;;  %v21338_v26 = vld [vmem:[#allocation2 + $0x222] sm:$0xff] }
 0x5c5   :  { %15482 = vmatprep.subr.bf16.mxu1 %v24788_v2  ;;  %13752 = vmatprep.mubr.msk.f32.mxu0 %vm16728_vm1, %v24686_v16 }
 0x5c7   :  { %14853 = vmatmul.mubr.msk.f32.gmra.mrb[130].mxu1 %vm629_vm0, %v8064_v29  ;;  %13753 = vmatmul.mubr.msk.f32.gmra.mrb[218].mxu0 %vm629_vm0, %v21319_v10  ;;  %v8069_v29 = vld [vmem:[#allocation2 + $0x55] sm:$0xff] }
 0x5c8   :  { %14855 = vmatprep.mubr.msk.f32.mxu1 %vm16728_vm1, %v24686_v16  ;;  %15484 = vmatpush3.bf16.msra.mxu1 %v15483_v45  ;;  %v21356_v45 = vld [vmem:[#allocation2 + $0x232] sm:$0xff] }
 0x5c9   :  { %15485 = vmatprep.subr.bf16.mxu1 %v24788_v2  ;;  %13755 = vmatprep.mubr.msk.f32.mxu0 %vm16728_vm1, %v24686_v16  ;;  %24789 = vst [vmem:[#allocation85_spill] sm:$0xff] %v21356_v45 }
 0x5cb   :  { %14856 = vmatmul.mubr.msk.f32.gmra.mrb[132].mxu1 %vm629_vm0, %v8065_v33  ;;  %13756 = vmatmul.mubr.msk.f32.gmra.mrb[220].mxu0 %vm629_vm0, %v21329_v17  ;;  %v21365_v33 = vld [vmem:[#allocation2 + $0x23a] sm:$0xff] }
 0x5cc   :  { %14858 = vmatprep.mubr.msk.f32.mxu1 %vm16728_vm1, %v24686_v16  ;;  %13758 = vmatprep.mubr.msk.f32.mxu0 %vm16728_vm1, %v24686_v16  ;;  %24790 = vst [vmem:[#allocation84_spill] sm:$0xff] %v21365_v33 }
 0x5cf   :  { %14859 = vmatmul.mubr.msk.f32.gmra.mrb[134].mxu1 %vm629_vm0, %v8066_v49  ;;  %13759 = vmatmul.mubr.msk.f32.gmra.mrb[222].mxu0 %vm629_vm0, %v21338_v26  ;;  %v8070_v49 = vld [vmem:[#allocation2 + $0x5d] sm:$0xff] }
 0x5d0   :  { %14861 = vmatprep.mubr.msk.f32.mxu1 %vm16728_vm1, %v24686_v16  ;;  %13761 = vmatprep.mubr.msk.f32.mxu0 %vm16728_vm1, %v24686_v16 }
 0x5d3   :  { %14862 = vmatmul.mubr.msk.f32.gmra.mrb[136].mxu1 %vm629_vm0, %v8067_v21  ;;  %13762 = vmatmul.mubr.msk.f32.gmra.mrb[224].mxu0 %vm629_vm0, %v21347_v36  ;;  %v21374_v21 = vld [vmem:[#allocation2 + $0x242] sm:$0xff] }
 0x5d4   :  { %14864 = vmatprep.mubr.msk.f32.mxu1 %vm16728_vm1, %v24686_v16  ;;  %13764 = vmatprep.mubr.msk.f32.mxu0 %vm16728_vm1, %v24686_v16  ;;  %24791 = vst [vmem:[#allocation86_spill] sm:$0xff] %v21374_v21 }
 0x5d7   :  { %14865 = vmatmul.mubr.msk.f32.gmra.mrb[138].mxu1 %vm629_vm0, %v8068_v5  ;;  %13765 = vmatmul.mubr.msk.f32.gmra.mrb[226].mxu0 %vm629_vm0, %v21356_v45  ;;  %v8071_v5 = vld [vmem:[#allocation2 + $0x65] sm:$0xff]  ;;  %v8072_v45 = vld [vmem:[#allocation2 + $0x6d] sm:$0xff] }
 0x5d8   :  { %14867 = vmatprep.mubr.msk.f32.mxu1 %vm16728_vm1, %v24686_v16  ;;  %13767 = vmatprep.mubr.msk.f32.mxu0 %vm16728_vm1, %v24686_v16 }
 0x5db   :  { %14868 = vmatmul.mubr.msk.f32.gmra.mrb[140].mxu1 %vm629_vm0, %v8069_v29  ;;  %13768 = vmatmul.mubr.msk.f32.gmra.mrb[228].mxu0 %vm629_vm0, %v21365_v33  ;;  %v11871_v29 = vld [vmem:[%s24117_s2 + $0x220] sm:$0xff]  ;;  %v21389_v33 = vld [vmem:[#allocation2 + $0x24a] sm:$0xff] }
 0x5dc   :  { %14870 = vmatprep.mubr.msk.f32.mxu1 %vm16728_vm1, %v24686_v16  ;;  %13770 = vmatprep.mubr.msk.f32.mxu0 %vm16728_vm1, %v24686_v16 }
 0x5df   :  { %14871 = vmatmul.mubr.msk.f32.gmra.mrb[142].mxu1 %vm629_vm0, %v8070_v49  ;;  %13771 = vmatmul.mubr.msk.f32.gmra.mrb[230].mxu0 %vm629_vm0, %v21374_v21  ;;  %v11872_v49 = vld [vmem:[%s24117_s2 + $0x228] sm:$0xff] }
 0x5e0   :  { %14873 = vmatprep.mubr.msk.f32.mxu1 %vm16728_vm1, %v24686_v16  ;;  %13773 = vmatprep.mubr.msk.f32.mxu0 %vm16728_vm1, %v24686_v16  ;;  %v15486_v21 = vpack.c.bf16 %v11872_v49, %v11871_v29  ;;  %v8073_v29 = vld [vmem:[#allocation2 + $0x75] sm:$0xff]  ;;  %v21417_v49 = vld [vmem:[#allocation2 + $0x262] sm:$0xff] }
 0x5e1   :  { %24794 = vst [vmem:[#allocation96_spill] sm:$0xff] %v21417_v49 }
 0x5e2   :  { %15487 = vmatpush3.bf16.msra.mxu1 %v15486_v21  ;;  %v8074_v21 = vld [vmem:[#allocation2 + $0x7d] sm:$0xff] }
 0x5e3   :  { %14874 = vmatmul.mubr.msk.f32.gmra.mrb[144].mxu1 %vm629_vm0, %v8071_v5  ;;  %13774 = vmatmul.mubr.msk.f32.gmra.mrb[232].mxu0 %vm629_vm0, %v21389_v33  ;;  %v21399_v5 = vld [vmem:[#allocation2 + $0x252] sm:$0xff] }
 0x5e4   :  { %14876 = vmatprep.mubr.msk.f32.mxu1 %vm16728_vm1, %v24686_v16  ;;  %13776 = vmatprep.mubr.msk.f32.mxu0 %vm16728_vm1, %v24686_v16  ;;  %24792 = vst [vmem:[#allocation89_spill] sm:$0xff] %v21399_v5 }
 0x5e5   :  { %15488 = vmatprep.subr.bf16.mxu1 %v24788_v2 }
 0x5e7   :  { %14877 = vmatmul.mubr.msk.f32.gmra.mrb[146].mxu1 %vm629_vm0, %v8072_v45  ;;  %13777 = vmatmul.mubr.msk.f32.gmra.mrb[234].mxu0 %vm629_vm0, %v21399_v5  ;;  %v21408_v45 = vld [vmem:[#allocation2 + $0x25a] sm:$0xff]  ;;  %v8079_v5 = vld [vmem:[#allocation2 + $0xa5] sm:$0xff] }
 0x5e8   :  { %14879 = vmatprep.mubr.msk.f32.mxu1 %vm16728_vm1, %v24686_v16  ;;  %13779 = vmatprep.mubr.msk.f32.mxu0 %vm16728_vm1, %v24686_v16  ;;  %24793 = vst [vmem:[#allocation88_spill] sm:$0xff] %v21408_v45 }
 0x5eb   :  { %14880 = vmatmul.mubr.msk.f32.gmra.mrb[148].mxu1 %vm629_vm0, %v8073_v29  ;;  %13780 = vmatmul.mubr.msk.f32.gmra.mrb[236].mxu0 %vm629_vm0, %v21408_v45  ;;  %v8075_v29 = vld [vmem:[#allocation2 + $0x85] sm:$0xff] }
 0x5ec   :  { %14882 = vmatprep.mubr.msk.f32.mxu1 %vm16728_vm1, %v24686_v16  ;;  %13782 = vmatprep.mubr.msk.f32.mxu0 %vm16728_vm1, %v24686_v16  ;;  %v21426_v45 = vld [vmem:[#allocation2 + $0x26a] sm:$0xff] }
 0x5ed   :  { %24795 = vst [vmem:[#allocation130_spill] sm:$0xff] %v21426_v45 }
 0x5ef   :  { %14883 = vmatmul.mubr.msk.f32.gmra.mrb[150].mxu1 %vm629_vm0, %v8074_v21  ;;  %13783 = vmatmul.mubr.msk.f32.gmra.mrb[238].mxu0 %vm629_vm0, %v21417_v49  ;;  %v8076_v21 = vld [vmem:[#allocation2 + $0x8d] sm:$0xff] }
 0x5f0   :  { %14885 = vmatprep.mubr.msk.f32.mxu1 %vm16728_vm1, %v24686_v16  ;;  %13785 = vmatprep.mubr.msk.f32.mxu0 %vm16728_vm1, %v24686_v16  ;;  %v21435_v49 = vld [vmem:[#allocation2 + $0x272] sm:$0xff] }
 0x5f1   :  { %24796 = vst [vmem:[#allocation19_spill] sm:$0xff] %v21435_v49 }
 0x5f3   :  { %14886 = vmatmul.mubr.msk.f32.gmra.mrb[152].mxu1 %vm629_vm0, %v8075_v29  ;;  %13786 = vmatmul.mubr.msk.f32.gmra.mrb[240].mxu0 %vm629_vm0, %v21426_v45  ;;  %v8077_v29 = vld [vmem:[#allocation2 + $0x95] sm:$0xff] }
 0x5f4   :  { %14888 = vmatprep.mubr.msk.f32.mxu1 %vm16728_vm1, %v24686_v16  ;;  %13788 = vmatprep.mubr.msk.f32.mxu0 %vm16728_vm1, %v24686_v16  ;;  %v3722_v45 = vld [vmem:[#allocation2 + $0x27a] sm:$0xff] }
 0x5f7   :  { %14889 = vmatmul.mubr.msk.f32.gmra.mrb[154].mxu1 %vm629_vm0, %v8076_v21  ;;  %13789 = vmatmul.mubr.msk.f32.gmra.mrb[242].mxu0 %vm629_vm0, %v21435_v49  ;;  %v8078_v21 = vld [vmem:[#allocation2 + $0x9d] sm:$0xff] }
 0x5f8   :  { %14891 = vmatprep.mubr.msk.f32.mxu1 %vm16728_vm1, %v24686_v16  ;;  %13791 = vmatprep.mubr.msk.f32.mxu0 %vm16728_vm1, %v24686_v16  ;;  %v3723_v49 = vld [vmem:[#allocation2 + $0x282] sm:$0xff] }
 0x5fb   :  { %14892 = vmatmul.mubr.msk.f32.gmra.mrb[156].mxu1 %vm629_vm0, %v8077_v29  ;;  %13792 = vmatmul.mubr.msk.f32.gmra.mrb[244].mxu0 %vm629_vm0, %v3722_v45  ;;  %v4527_v45 = vld [vmem:[#allocation2 + $0x12] sm:$0xff] }
 0x5fc   :  { %14894 = vmatprep.mubr.msk.f32.mxu1 %vm16728_vm1, %v24686_v16  ;;  %13794 = vmatprep.mubr.msk.f32.mxu0 %vm16728_vm1, %v24686_v16  ;;  %v8080_v29 = vld [vmem:[#allocation2 + $0xad] sm:$0xff] }
 0x5ff   :  { %14895 = vmatmul.mubr.msk.f32.gmra.mrb[158].mxu1 %vm629_vm0, %v8078_v21  ;;  %13795 = vmatmul.mubr.msk.f32.gmra.mrb[246].mxu0 %vm629_vm0, %v3723_v49  ;;  %v24797_v21 = vld [vmem:[#allocation112_spill] sm:$0xff] }
 0x600   :  { %14897 = vmatprep.mubr.msk.f32.mxu1 %vm16728_vm1, %v24686_v16  ;;  %13813 = vmatprep.mubr.msk.f32.mxu0 %vm16728_vm1, %v24686_v16  ;;  %v8081_v49 = vld [vmem:[#allocation2 + $0xb5] sm:$0xff] }
 0x603   :  { %14898 = vmatmul.mubr.msk.f32.gmra.mrb[160].mxu1 %vm629_vm0, %v8079_v5  ;;  %13814 = vmatmul.mubr.msk.f32.vlgmr.msra.gmra.mrb[86].mxu0 %vm629_vm0, %v4527_v45  ;;  %v4528_v5 = vld [vmem:[#allocation2 + $0x1a] sm:$0xff]  ;;  %v24798_v45 = vld [vmem:[#allocation115_spill] sm:$0xff] }
 0x604   :  { %14900 = vmatprep.mubr.msk.f32.mxu1 %vm16728_vm1, %v24686_v16  ;;  %13816 = vmatprep.mubr.msk.f32.mxu0 %vm16728_vm1, %v24686_v16 }
 0x605   :  { %15433 = vmatpush3.bf16.msra.mxu0 %v24797_v21  ;;  %v24799_v21 = vld [vmem:[#allocation117_spill] sm:$0xff] }
 0x606   :  { %15434 = vmatprep.subr.bf16.mxu0 %v24788_v2 }
 0x607   :  { %14901 = vmatmul.mubr.msk.f32.gmra.mrb[0].mxu1 %vm629_vm0, %v8080_v29  ;;  %13817 = vmatmul.mubr.msk.f32.gmra.mrb[88].mxu0 %vm629_vm0, %v4528_v5  ;;  %v8082_v29 = vld [vmem:[#allocation2 + $0xbd] sm:$0xff]  ;;  %v8083_v5 = vld [vmem:[#allocation2 + $0xc5] sm:$0xff] }
 0x608   :  { %14903 = vmatprep.mubr.msk.f32.mxu1 %vm16728_vm1, %v24686_v16  ;;  %13819 = vmatprep.mubr.msk.f32.mxu0 %vm16728_vm1, %v24686_v16 }
 0x609   :  { %15436 = vmatpush3.bf16.msra.mxu0 %v24798_v45  ;;  %v8085_v45 = vld [vmem:[#allocation2 + $0xd5] sm:$0xff] }
 0x60a   :  { %15437 = vmatprep.subr.bf16.mxu0 %v24788_v2 }
 0x60b   :  { %14904 = vmatmul.mubr.msk.f32.gmra.mrb[2].mxu1 %vm629_vm0, %v8081_v49  ;;  %13820 = vmatmul.mubr.msk.f32.gmra.mrb[90].mxu0 %vm629_vm0, %v20746_v30  ;;  %v24800_v30 = vld [vmem:[#allocation118_spill] sm:$0xff]  ;;  %v4531_v49 = vld [vmem:[#allocation2 + $0x32] sm:$0xff] }
 0x60c   :  { %14906 = vmatprep.mubr.msk.f32.mxu1 %vm16728_vm1, %v24686_v16  ;;  %13822 = vmatprep.mubr.msk.f32.mxu0 %vm16728_vm1, %v24686_v16 }
 0x60d   :  { %15439 = vmatpush3.bf16.msra.mxu0 %v24799_v21  ;;  %v8086_v21 = vld [vmem:[#allocation2 + $0xdd] sm:$0xff] }
 0x60e   :  { %15440 = vmatprep.subr.bf16.mxu0 %v24788_v2  ;;  %v8084_v2 = vld [vmem:[#allocation2 + $0xcd] sm:$0xff] }
 0x60f   :  { %14907 = vmatmul.mubr.msk.f32.gmra.mrb[4].mxu1 %vm629_vm0, %v8082_v29  ;;  %13823 = vmatmul.mubr.msk.f32.gmra.mrb[92].mxu0 %vm629_vm0, %v20756_v25  ;;  %v4532_v25 = vld [vmem:[#allocation2 + $0x3a] sm:$0xff]  ;;  %v4533_v29 = vld [vmem:[#allocation2 + $0x42] sm:$0xff] }
 0x610   :  { %14909 = vmatprep.mubr.msk.f32.mxu1 %vm16728_vm1, %v24686_v16  ;;  %13825 = vmatprep.mubr.msk.f32.mxu0 %vm16728_vm1, %v24686_v16 }
 0x611   :  { %15442 = vmatpush3.bf16.msra.mxu0 %v24800_v30  ;;  %v8087_v30 = vld [vmem:[#allocation2 + $0xe5] sm:$0xff] }
 0x613   :  { %14910 = vmatmul.mubr.msk.f32.gmra.mrb[6].mxu1 %vm629_vm0, %v8083_v5  ;;  %13826 = vmatmul.mubr.msk.f32.gmra.mrb[94].mxu0 %vm629_vm0, %v4531_v49  ;;  %v4534_v5 = vld [vmem:[#allocation2 + $0x4a] sm:$0xff]  ;;  %v4535_v49 = vld [vmem:[#allocation2 + $0x52] sm:$0xff] }
 0x614   :  { %14912 = vmatprep.mubr.msk.f32.mxu1 %vm16728_vm1, %v24686_v16  ;;  %13828 = vmatprep.mubr.msk.f32.mxu0 %vm16728_vm1, %v24686_v16 }
 0x617   :  { %14913 = vmatmul.mubr.msk.f32.gmra.mrb[8].mxu1 %vm629_vm0, %v8084_v2  ;;  %13829 = vmatmul.mubr.msk.f32.gmra.mrb[96].mxu0 %vm629_vm0, %v4532_v25  ;;  %v8088_v2 = vld [vmem:[#allocation2 + $0xed] sm:$0xff]  ;;  %v4536_v25 = vld [vmem:[#allocation2 + $0x5a] sm:$0xff] }
 0x618   :  { %14915 = vmatprep.mubr.msk.f32.mxu1 %vm16728_vm1, %v24686_v16  ;;  %13831 = vmatprep.mubr.msk.f32.mxu0 %vm16728_vm1, %v24686_v16 }
 0x61b   :  { %14916 = vmatmul.mubr.msk.f32.gmra.mrb[10].mxu1 %vm629_vm0, %v8085_v45  ;;  %13832 = vmatmul.mubr.msk.f32.gmra.mrb[98].mxu0 %vm629_vm0, %v4533_v29  ;;  %v8089_v45 = vld [vmem:[#allocation2 + $0xf5] sm:$0xff]  ;;  %v4537_v29 = vld [vmem:[#allocation2 + $0x62] sm:$0xff] }
 0x61c   :  { %14918 = vmatprep.mubr.msk.f32.mxu1 %vm16728_vm1, %v24686_v16  ;;  %13834 = vmatprep.mubr.msk.f32.mxu0 %vm16728_vm1, %v24686_v16 }
 0x61f   :  { %14919 = vmatmul.mubr.msk.f32.gmra.mrb[12].mxu1 %vm629_vm0, %v8086_v21  ;;  %13835 = vmatmul.mubr.msk.f32.gmra.mrb[100].mxu0 %vm629_vm0, %v4534_v5  ;;  %v8090_v21 = vld [vmem:[#allocation2 + $0xfd] sm:$0xff]  ;;  %v4538_v5 = vld [vmem:[#allocation2 + $0x6a] sm:$0xff] }
 0x620   :  { %14921 = vmatprep.mubr.msk.f32.mxu1 %vm16728_vm1, %v24686_v16  ;;  %13837 = vmatprep.mubr.msk.f32.mxu0 %vm16728_vm1, %v24686_v16 }
 0x623   :  { %14922 = vmatmul.mubr.msk.f32.gmra.mrb[14].mxu1 %vm629_vm0, %v8087_v30  ;;  %13838 = vmatmul.mubr.msk.f32.gmra.mrb[102].mxu0 %vm629_vm0, %v4535_v49  ;;  %v8091_v30 = vld [vmem:[#allocation2 + $0x105] sm:$0xff]  ;;  %v4539_v49 = vld [vmem:[#allocation2 + $0x72] sm:$0xff] }
 0x624   :  { %14924 = vmatprep.mubr.msk.f32.mxu1 %vm16728_vm1, %v24686_v16  ;;  %13840 = vmatprep.mubr.msk.f32.mxu0 %vm16728_vm1, %v24686_v16 }
 0x627   :  { %14925 = vmatmul.mubr.msk.f32.gmra.mrb[16].mxu1 %vm629_vm0, %v8088_v2  ;;  %13841 = vmatmul.mubr.msk.f32.gmra.mrb[104].mxu0 %vm629_vm0, %v4536_v25  ;;  %v11873_v2 = vld [vmem:[%s24117_s2 + $0x230] sm:$0xff]  ;;  %v11874_v25 = vld [vmem:[%s24117_s2 + $0x238] sm:$0xff] }
 0x628   :  { %14927 = vmatprep.mubr.msk.f32.mxu1 %vm16728_vm1, %v24686_v16  ;;  %13843 = vmatprep.mubr.msk.f32.mxu0 %vm16728_vm1, %v24686_v16 }
 0x62b   :  { %14928 = vmatmul.mubr.msk.f32.gmra.mrb[18].mxu1 %vm629_vm0, %v8089_v45  ;;  %13844 = vmatmul.mubr.msk.f32.gmra.mrb[106].mxu0 %vm629_vm0, %v4537_v29  ;;  %v15489_v45 = vpack.c.bf16 %v11874_v25, %v11873_v2  ;;  %v8092_v29 = vld [vmem:[#allocation2 + $0x10d] sm:$0xff] }
 0x62c   :  { %14930 = vmatprep.mubr.msk.f32.mxu1 %vm16728_vm1, %v24686_v16  ;;  %13846 = vmatprep.mubr.msk.f32.mxu0 %vm16728_vm1, %v24686_v16  ;;  %v8951_v2 = vld [vmem:[#allocation2 + $0x46] sm:$0xff]  ;;  %v8952_v25 = vld [vmem:[#allocation2 + $0x4e] sm:$0xff] }
 0x62d   :  { %15490 = vmatpush3.bf16.msra.mxu1 %v15489_v45 }
 0x62f   :  { %14931 = vmatmul.mubr.msk.f32.gmra.mrb[20].mxu1 %vm629_vm0, %v8090_v21  ;;  %13847 = vmatmul.mubr.msk.f32.gmra.mrb[108].mxu0 %vm629_vm0, %v4538_v5  ;;  %v4540_v21 = vld [vmem:[#allocation2 + $0x7a] sm:$0xff] }
 0x630   :  { %14933 = vmatprep.mubr.msk.f32.mxu1 %vm16728_vm1, %v24686_v16  ;;  %13849 = vmatprep.mubr.msk.f32.mxu0 %vm16728_vm1, %v24686_v16  ;;  %v8093_v5 = vld [vmem:[#allocation2 + $0x115] sm:$0xff] }
 0x633   :  { %14934 = vmatmul.mubr.msk.f32.gmra.mrb[22].mxu1 %vm629_vm0, %v8091_v30  ;;  %13850 = vmatmul.mubr.msk.f32.gmra.mrb[110].mxu0 %vm629_vm0, %v4539_v49  ;;  %v8094_v30 = vld [vmem:[#allocation2 + $0x11d] sm:$0xff]  ;;  %v8095_v49 = vld [vmem:[#allocation2 + $0x125] sm:$0xff] }
 0x634   :  { %14936 = vmatprep.mubr.msk.f32.mxu1 %vm16728_vm1, %v24686_v16  ;;  %13852 = vmatprep.mubr.msk.f32.mxu0 %vm16728_vm1, %v24686_v16 }
 0x637   :  { %14937 = vmatmul.mubr.msk.f32.gmra.mrb[24].mxu1 %vm629_vm0, %v8092_v29  ;;  %13853 = vmatmul.mubr.msk.f32.gmra.mrb[112].mxu0 %vm629_vm0, %v4540_v21  ;;  %v24803_v21 = vld [vmem:[#allocation86_spill] sm:$0xff] }
 0x638   :  { %14939 = vmatprep.mubr.msk.f32.mxu1 %vm16728_vm1, %v24686_v16  ;;  %13855 = vmatprep.mubr.msk.f32.mxu0 %vm16728_vm1, %v24686_v16 }
 0x63b   :  { %14940 = vmatmul.mubr.msk.f32.gmra.mrb[26].mxu1 %vm629_vm0, %v8093_v5  ;;  %13856 = vmatmul.mubr.msk.f32.gmra.mrb[114].mxu0 %vm629_vm0, %v20834_v34  ;;  %v8096_v34 = vld [vmem:[#allocation2 + $0x12d] sm:$0xff]  ;;  %v8953_v5 = vld [vmem:[#allocation2 + $0x56] sm:$0xff] }
 0x63c   :  { %14942 = vmatprep.mubr.msk.f32.mxu1 %vm16728_vm1, %v24686_v16  ;;  %13858 = vmatprep.mubr.msk.f32.mxu0 %vm16728_vm1, %v24686_v16 }
 0x63f   :  { %14943 = vmatmul.mubr.msk.f32.gmra.mrb[28].mxu1 %vm629_vm0, %v8094_v30  ;;  %13859 = vmatmul.mubr.msk.f32.gmra.mrb[116].mxu0 %vm629_vm0, %v20843_v28  ;;  %v8097_v28 = vld [vmem:[#allocation2 + $0x135] sm:$0xff] }
 0x640   :  { %14945 = vmatprep.mubr.msk.f32.mxu1 %vm16728_vm1, %v24686_v16  ;;  %13861 = vmatprep.mubr.msk.f32.mxu0 %vm16728_vm1, %v24686_v16 }
 0x643   :  { %14946 = vmatmul.mubr.msk.f32.gmra.mrb[30].mxu1 %vm629_vm0, %v8095_v49  ;;  %13862 = vmatmul.mubr.msk.f32.gmra.mrb[118].mxu0 %vm629_vm0, %v20852_v61  ;;  %v8098_v61 = vld [vmem:[#allocation2 + $0x13d] sm:$0xff] }
 0x644   :  { %14948 = vmatprep.mubr.msk.f32.mxu1 %vm16728_vm1, %v24686_v16  ;;  %13864 = vmatprep.mubr.msk.f32.mxu0 %vm16728_vm1, %v24686_v16 }
 0x647   :  { %14949 = vmatmul.mubr.msk.f32.gmra.mrb[32].mxu1 %vm629_vm0, %v8096_v34  ;;  %13865 = vmatmul.mubr.msk.f32.gmra.mrb[120].mxu0 %vm629_vm0, %v20861_v62  ;;  %v8099_v62 = vld [vmem:[#allocation2 + $0x145] sm:$0xff] }
 0x648   :  { %14951 = vmatprep.mubr.msk.f32.mxu1 %vm16728_vm1, %v24686_v16  ;;  %13867 = vmatprep.mubr.msk.f32.mxu0 %vm16728_vm1, %v24686_v16  ;;  %v8954_v34 = vld [vmem:[#allocation2 + $0x5e] sm:$0xff] }
 0x64b   :  { %14952 = vmatmul.mubr.msk.f32.gmra.mrb[34].mxu1 %vm629_vm0, %v8097_v28  ;;  %13868 = vmatmul.mubr.msk.f32.gmra.mrb[122].mxu0 %vm629_vm0, %v20870_v27  ;;  %v8100_v27 = vld [vmem:[#allocation2 + $0x14d] sm:$0xff] }
 0x64c   :  { %14954 = vmatprep.mubr.msk.f32.mxu1 %vm16728_vm1, %v24686_v16  ;;  %13870 = vmatprep.mubr.msk.f32.mxu0 %vm16728_vm1, %v24686_v16 }
 0x64f   :  { %14955 = vmatmul.mubr.msk.f32.gmra.mrb[36].mxu1 %vm629_vm0, %v8098_v61  ;;  %13871 = vmatmul.mubr.msk.f32.gmra.mrb[124].mxu0 %vm629_vm0, %v20879_v37  ;;  %v8101_v37 = vld [vmem:[#allocation2 + $0x155] sm:$0xff] }
 0x650   :  { %14957 = vmatprep.mubr.msk.f32.mxu1 %vm16728_vm1, %v24686_v16  ;;  %13873 = vmatprep.mubr.msk.f32.mxu0 %vm16728_vm1, %v24686_v16 }
 0x653   :  { %14958 = vmatmul.mubr.msk.f32.gmra.mrb[38].mxu1 %vm629_vm0, %v8099_v62  ;;  %13874 = vmatmul.mubr.msk.f32.gmra.mrb[126].mxu0 %vm629_vm0, %v20888_v7  ;;  %v8102_v7 = vld [vmem:[#allocation2 + $0x15d] sm:$0xff] }
 0x654   :  { %14960 = vmatprep.mubr.msk.f32.mxu1 %vm16728_vm1, %v24686_v16  ;;  %13876 = vmatprep.mubr.msk.f32.mxu0 %vm16728_vm1, %v24686_v16  ;;  %v24804_v62 = vld [vmem:[#allocation89_spill] sm:$0xff] }
 0x657   :  { %14961 = vmatmul.mubr.msk.f32.gmra.mrb[40].mxu1 %vm629_vm0, %v8100_v27  ;;  %13877 = vmatmul.mubr.msk.f32.gmra.mrb[128].mxu0 %vm629_vm0, %v20898_v19  ;;  %v8103_v19 = vld [vmem:[#allocation2 + $0x165] sm:$0xff] }
 0x658   :  { %14963 = vmatprep.mubr.msk.f32.mxu1 %vm16728_vm1, %v24686_v16  ;;  %13879 = vmatprep.mubr.msk.f32.mxu0 %vm16728_vm1, %v24686_v16  ;;  %v8955_v27 = vld [vmem:[#allocation2 + $0x66] sm:$0xff] }
 0x65b   :  { %14964 = vmatmul.mubr.msk.f32.gmra.mrb[42].mxu1 %vm629_vm0, %v8101_v37  ;;  %13880 = vmatmul.mubr.msk.f32.gmra.mrb[130].mxu0 %vm629_vm0, %v20914_v22  ;;  %v8104_v22 = vld [vmem:[#allocation2 + $0x16d] sm:$0xff] }
 0x65c   :  { %14966 = vmatprep.mubr.msk.f32.mxu1 %vm16728_vm1, %v24686_v16  ;;  %13882 = vmatprep.mubr.msk.f32.mxu0 %vm16728_vm1, %v24686_v16 }
 0x65f   :  { %14967 = vmatmul.mubr.msk.f32.gmra.mrb[44].mxu1 %vm629_vm0, %v8102_v7  ;;  %13883 = vmatmul.mubr.msk.f32.gmra.mrb[132].mxu0 %vm629_vm0, %v20924_v39  ;;  %v8105_v39 = vld [vmem:[#allocation2 + $0x175] sm:$0xff] }
 0x660   :  { %14969 = vmatprep.mubr.msk.f32.mxu1 %vm16728_vm1, %v24686_v16  ;;  %13885 = vmatprep.mubr.msk.f32.mxu0 %vm16728_vm1, %v24686_v16  ;;  %v24805_v7 = vld [vmem:[#allocation88_spill] sm:$0xff] }
 0x663   :  { %14970 = vmatmul.mubr.msk.f32.gmra.mrb[46].mxu1 %vm629_vm0, %v8103_v19  ;;  %13886 = vmatmul.mubr.msk.f32.gmra.mrb[134].mxu0 %vm629_vm0, %v20933_v9  ;;  %v8106_v9 = vld [vmem:[#allocation2 + $0x17d] sm:$0xff]  ;;  %v8956_v19 = vld [vmem:[#allocation2 + $0x6e] sm:$0xff] }
 0x664   :  { %14972 = vmatprep.mubr.msk.f32.mxu1 %vm16728_vm1, %v24686_v16  ;;  %13888 = vmatprep.mubr.msk.f32.mxu0 %vm16728_vm1, %v24686_v16 }
 0x667   :  { %14973 = vmatmul.mubr.msk.f32.gmra.mrb[48].mxu1 %vm629_vm0, %v8104_v22  ;;  %13889 = vmatmul.mubr.msk.f32.gmra.mrb[136].mxu0 %vm629_vm0, %v20942_v18  ;;  %v8107_v18 = vld [vmem:[#allocation2 + $0x185] sm:$0xff] }
 0x668   :  { %14975 = vmatprep.mubr.msk.f32.mxu1 %vm16728_vm1, %v24686_v16  ;;  %13891 = vmatprep.mubr.msk.f32.mxu0 %vm16728_vm1, %v24686_v16 }
 0x66b   :  { %14976 = vmatmul.mubr.msk.f32.gmra.mrb[50].mxu1 %vm629_vm0, %v8105_v39  ;;  %13892 = vmatmul.mubr.msk.f32.gmra.mrb[138].mxu0 %vm629_vm0, %v20951_v35  ;;  %v8108_v35 = vld [vmem:[#allocation2 + $0x18d] sm:$0xff] }
 0x66c   :  { %14978 = vmatprep.mubr.msk.f32.mxu1 %vm16728_vm1, %v24686_v16  ;;  %13894 = vmatprep.mubr.msk.f32.mxu0 %vm16728_vm1, %v24686_v16 }
 0x66f   :  { %14979 = vmatmul.mubr.msk.f32.gmra.mrb[52].mxu1 %vm629_vm0, %v8106_v9  ;;  %13895 = vmatmul.mubr.msk.f32.gmra.mrb[140].mxu0 %vm629_vm0, %v20960_v1  ;;  %v8109_v1 = vld [vmem:[#allocation2 + $0x195] sm:$0xff] }
 0x670   :  { %14981 = vmatprep.mubr.msk.f32.mxu1 %vm16728_vm1, %v24686_v16  ;;  %13897 = vmatprep.mubr.msk.f32.mxu0 %vm16728_vm1, %v24686_v16  ;;  %v24806_v9 = vld [vmem:[#allocation96_spill] sm:$0xff] }
 0x673   :  { %14982 = vmatmul.mubr.msk.f32.gmra.mrb[54].mxu1 %vm629_vm0, %v8107_v18  ;;  %13898 = vmatmul.mubr.msk.f32.gmra.mrb[142].mxu0 %vm629_vm0, %v20969_v0  ;;  %v8110_v0 = vld [vmem:[#allocation2 + $0x19d] sm:$0xff] }
 0x674   :  { %14984 = vmatprep.mubr.msk.f32.mxu1 %vm16728_vm1, %v24686_v16  ;;  %13900 = vmatprep.mubr.msk.f32.mxu0 %vm16728_vm1, %v24686_v16  ;;  %v8957_v18 = vld [vmem:[#allocation2 + $0x76] sm:$0xff] }
 0x677   :  { %14985 = vmatmul.mubr.msk.f32.gmra.mrb[56].mxu1 %vm629_vm0, %v8108_v35  ;;  %13901 = vmatmul.mubr.msk.f32.gmra.mrb[144].mxu0 %vm629_vm0, %v20978_v51  ;;  %v8111_v51 = vld [vmem:[#allocation2 + $0x1a5] sm:$0xff] }
 0x678   :  { %14987 = vmatprep.mubr.msk.f32.mxu1 %vm16728_vm1, %v24686_v16  ;;  %13903 = vmatprep.mubr.msk.f32.mxu0 %vm16728_vm1, %v24686_v16 }
 0x67b   :  { %14988 = vmatmul.mubr.msk.f32.gmra.mrb[58].mxu1 %vm629_vm0, %v8109_v1  ;;  %13904 = vmatmul.mubr.msk.f32.gmra.mrb[146].mxu0 %vm629_vm0, %v20987_v58  ;;  %v8112_v58 = vld [vmem:[#allocation2 + $0x1ad] sm:$0xff] }
 0x67c   :  { %14990 = vmatprep.mubr.msk.f32.mxu1 %vm16728_vm1, %v24686_v16  ;;  %13906 = vmatprep.mubr.msk.f32.mxu0 %vm16728_vm1, %v24686_v16 }
 0x67f   :  { %14991 = vmatmul.mubr.msk.f32.gmra.mrb[60].mxu1 %vm629_vm0, %v8110_v0  ;;  %13907 = vmatmul.mubr.msk.f32.gmra.mrb[148].mxu0 %vm629_vm0, %v20996_v48  ;;  %v8113_v48 = vld [vmem:[#allocation2 + $0x1b5] sm:$0xff]  ;;  %v24807_v0 = vld [vmem:[#allocation130_spill] sm:$0xff] }
 0x680   :  { %14993 = vmatprep.mubr.msk.f32.mxu1 %vm16728_vm1, %v24686_v16  ;;  %13909 = vmatprep.mubr.msk.f32.mxu0 %vm16728_vm1, %v24686_v16 }
 0x683   :  { %14994 = vmatmul.mubr.msk.f32.gmra.mrb[62].mxu1 %vm629_vm0, %v8111_v51  ;;  %13910 = vmatmul.mubr.msk.f32.gmra.mrb[150].mxu0 %vm629_vm0, %v21005_v47  ;;  %v8114_v47 = vld [vmem:[#allocation2 + $0x1bd] sm:$0xff] }
 0x684   :  { %14996 = vmatprep.mubr.msk.f32.mxu1 %vm16728_vm1, %v24686_v16  ;;  %13912 = vmatprep.mubr.msk.f32.mxu0 %vm16728_vm1, %v24686_v16  ;;  %v8958_v51 = vld [vmem:[#allocation2 + $0x7e] sm:$0xff] }
 0x687   :  { %14997 = vmatmul.mubr.msk.f32.gmra.mrb[64].mxu1 %vm629_vm0, %v8112_v58  ;;  %13913 = vmatmul.mubr.msk.f32.gmra.mrb[152].mxu0 %vm629_vm0, %v21015_v20  ;;  %v8115_v20 = vld [vmem:[#allocation2 + $0x1c5] sm:$0xff] }
 0x688   :  { %14999 = vmatprep.mubr.msk.f32.mxu1 %vm16728_vm1, %v24686_v16  ;;  %13915 = vmatprep.mubr.msk.f32.mxu0 %vm16728_vm1, %v24686_v16 }
 0x68b   :  { %15000 = vmatmul.mubr.msk.f32.gmra.mrb[66].mxu1 %vm629_vm0, %v8113_v48  ;;  %13916 = vmatmul.mubr.msk.f32.gmra.mrb[154].mxu0 %vm629_vm0, %v21025_v3  ;;  %v8116_v3 = vld [vmem:[#allocation2 + $0x1cd] sm:$0xff] }
 0x68c   :  { %15002 = vmatprep.mubr.msk.f32.mxu1 %vm16728_vm1, %v24686_v16  ;;  %13918 = vmatprep.mubr.msk.f32.mxu0 %vm16728_vm1, %v24686_v16 }
 0x68f   :  { %15003 = vmatmul.mubr.msk.f32.gmra.mrb[68].mxu1 %vm629_vm0, %v8114_v47  ;;  %13919 = vmatmul.mubr.msk.f32.gmra.mrb[156].mxu0 %vm629_vm0, %v21034_v52  ;;  %v8117_v52 = vld [vmem:[#allocation2 + $0x1d5] sm:$0xff] }
 0x690   :  { %15005 = vmatprep.mubr.msk.f32.mxu1 %vm16728_vm1, %v24686_v16  ;;  %13921 = vmatprep.mubr.msk.f32.mxu0 %vm16728_vm1, %v24686_v16  ;;  %v24808_v47 = vld [vmem:[#allocation19_spill] sm:$0xff] }
 0x693   :  { %15006 = vmatmul.mubr.msk.f32.gmra.mrb[70].mxu1 %vm629_vm0, %v8115_v20  ;;  %13922 = vmatmul.mubr.msk.f32.gmra.mrb[158].mxu0 %vm629_vm0, %v21043_v23  ;;  %v8118_v23 = vld [vmem:[#allocation2 + $0x1dd] sm:$0xff]  ;;  %v8959_v20 = vld [vmem:[#allocation2 + $0x86] sm:$0xff] }
 0x694   :  { %15008 = vmatprep.mubr.msk.f32.mxu1 %vm16728_vm1, %v24686_v16  ;;  %13924 = vmatprep.mubr.msk.f32.mxu0 %vm16728_vm1, %v24686_v16 }
 0x697   :  { %15009 = vmatmul.mubr.msk.f32.gmra.mrb[72].mxu1 %vm629_vm0, %v8116_v3  ;;  %13925 = vmatmul.mubr.msk.f32.gmra.mrb[160].mxu0 %vm629_vm0, %v21052_v59  ;;  %v8119_v59 = vld [vmem:[#allocation2 + $0x1e5] sm:$0xff] }
 0x698   :  { %15011 = vmatprep.mubr.msk.f32.mxu1 %vm16728_vm1, %v24686_v16  ;;  %13927 = vmatprep.mubr.msk.f32.mxu0 %vm16728_vm1, %v24686_v16 }
 0x69b   :  { %15012 = vmatmul.mubr.msk.f32.gmra.mrb[74].mxu1 %vm629_vm0, %v8117_v52  ;;  %13928 = vmatmul.mubr.msk.f32.gmra.mrb[162].mxu0 %vm629_vm0, %v21061_v40  ;;  %v8120_v40 = vld [vmem:[#allocation2 + $0x1ed] sm:$0xff]  ;;  %v4604_v52 = vld [vmem:[#allocation2 + $0x27a] sm:$0xff] }
 0x69c   :  { %15014 = vmatprep.mubr.msk.f32.mxu1 %vm16728_vm1, %v24686_v16  ;;  %13930 = vmatprep.mubr.msk.f32.mxu0 %vm16728_vm1, %v24686_v16 }
 0x69f   :  { %15015 = vmatmul.mubr.msk.f32.gmra.mrb[76].mxu1 %vm629_vm0, %v8118_v23  ;;  %13931 = vmatmul.mubr.msk.f32.gmra.mrb[164].mxu0 %vm629_vm0, %v21070_v63  ;;  %v8121_v63 = vld [vmem:[#allocation2 + $0x1f5] sm:$0xff] }
 0x6a0   :  { %15017 = vmatprep.mubr.msk.f32.mxu1 %vm16728_vm1, %v24686_v16  ;;  %13933 = vmatprep.mubr.msk.f32.mxu0 %vm16728_vm1, %v24686_v16 }
 0x6a3   :  { %15018 = vmatmul.mubr.msk.f32.gmra.mrb[78].mxu1 %vm629_vm0, %v8119_v59  ;;  %13934 = vmatmul.mubr.msk.f32.gmra.mrb[166].mxu0 %vm629_vm0, %v21079_v4  ;;  %v8122_v4 = vld [vmem:[#allocation2 + $0x1fd] sm:$0xff]  ;;  %v8960_v59 = vld [vmem:[#allocation2 + $0x8e] sm:$0xff] }
 0x6a4   :  { %15020 = vmatprep.mubr.msk.f32.mxu1 %vm16728_vm1, %v24686_v16  ;;  %13936 = vmatprep.mubr.msk.f32.mxu0 %vm16728_vm1, %v24686_v16 }
 0x6a7   :  { %15021 = vmatmul.mubr.msk.f32.gmra.mrb[80].mxu1 %vm629_vm0, %v8120_v40  ;;  %13937 = vmatmul.mubr.msk.f32.gmra.mrb[168].mxu0 %vm629_vm0, %v21089_v32  ;;  %v8123_v32 = vld [vmem:[#allocation2 + $0x205] sm:$0xff] }
 0x6a8   :  { %15023 = vmatprep.mubr.msk.f32.mxu1 %vm16728_vm1, %v24686_v16  ;;  %13939 = vmatprep.mubr.msk.f32.mxu0 %vm16728_vm1, %v24686_v16 }
 0x6ab   :  { %15024 = vmatmul.mubr.msk.f32.gmra.mrb[82].mxu1 %vm629_vm0, %v8121_v63  ;;  %13940 = vmatmul.mubr.msk.f32.gmra.mrb[170].mxu0 %vm629_vm0, %v21105_v41  ;;  %v8124_v41 = vld [vmem:[#allocation2 + $0x20d] sm:$0xff]  ;;  %v4605_v63 = vld [vmem:[#allocation2 + $0x282] sm:$0xff] }
 0x6ac   :  { %15026 = vmatprep.mubr.msk.f32.mxu1 %vm16728_vm1, %v24686_v16  ;;  %13942 = vmatprep.mubr.msk.f32.mxu0 %vm16728_vm1, %v24686_v16 }
 0x6af   :  { %15027 = vmatmul.mubr.msk.f32.gmra.mrb[84].mxu1 %vm629_vm0, %v8122_v4  ;;  %13943 = vmatmul.mubr.msk.f32.gmra.mrb[172].mxu0 %vm629_vm0, %v21115_v54  ;;  %v8125_v54 = vld [vmem:[#allocation2 + $0x215] sm:$0xff] }
 0x6b0   :  { %15029 = vmatprep.mubr.msk.f32.mxu1 %vm16728_vm1, %v24686_v16  ;;  %13945 = vmatprep.mubr.msk.f32.mxu0 %vm16728_vm1, %v24686_v16 }
 0x6b3   :  { %15030 = vmatmul.mubr.msk.f32.gmra.mrb[86].mxu1 %vm629_vm0, %v8123_v32  ;;  %13946 = vmatmul.mubr.msk.f32.gmra.mrb[174].mxu0 %vm629_vm0, %v21124_v15  ;;  %v8126_v15 = vld [vmem:[#allocation2 + $0x21d] sm:$0xff] }
 0x6b4   :  { %15032 = vmatprep.mubr.msk.f32.mxu1 %vm16728_vm1, %v24686_v16  ;;  %13948 = vmatprep.mubr.msk.f32.mxu0 %vm16728_vm1, %v24686_v16  ;;  %v8961_v32 = vld [vmem:[#allocation2 + $0x96] sm:$0xff] }
 0x6b7   :  { %15033 = vmatmul.mubr.msk.f32.gmra.mrb[88].mxu1 %vm629_vm0, %v8124_v41  ;;  %13949 = vmatmul.mubr.msk.f32.gmra.mrb[176].mxu0 %vm629_vm0, %v21133_v13  ;;  %v8127_v13 = vld [vmem:[#allocation2 + $0x225] sm:$0xff] }
 0x6b8   :  { %15035 = vmatprep.mubr.msk.f32.mxu1 %vm16728_vm1, %v24686_v16  ;;  %13951 = vmatprep.mubr.msk.f32.mxu0 %vm16728_vm1, %v24686_v16 }
 0x6bb   :  { %15036 = vmatmul.mubr.msk.f32.gmra.mrb[90].mxu1 %vm629_vm0, %v8125_v54  ;;  %13952 = vmatmul.mubr.msk.f32.gmra.mrb[178].mxu0 %vm629_vm0, %v21142_v44  ;;  %v8128_v44 = vld [vmem:[#allocation2 + $0x22d] sm:$0xff] }
 0x6bc   :  { %15038 = vmatprep.mubr.msk.f32.mxu1 %vm16728_vm1, %v24686_v16  ;;  %13954 = vmatprep.mubr.msk.f32.mxu0 %vm16728_vm1, %v24686_v16  ;;  %v4606_v54 = vld [vmem:[#allocation2 + $0x28a] sm:$0xff] }
 0x6bf   :  { %15039 = vmatmul.mubr.msk.f32.gmra.mrb[92].mxu1 %vm629_vm0, %v8126_v15  ;;  %13955 = vmatmul.mubr.msk.f32.gmra.mrb[180].mxu0 %vm629_vm0, %v21151_v42  ;;  %v8129_v42 = vld [vmem:[#allocation2 + $0x235] sm:$0xff] }
 0x6c0   :  { %15041 = vmatprep.mubr.msk.f32.mxu1 %vm16728_vm1, %v24686_v16  ;;  %13957 = vmatprep.mubr.msk.f32.mxu0 %vm16728_vm1, %v24686_v16 }
 0x6c3   :  { %15042 = vmatmul.mubr.msk.f32.gmra.mrb[94].mxu1 %vm629_vm0, %v8127_v13  ;;  %13958 = vmatmul.mubr.msk.f32.gmra.mrb[182].mxu0 %vm629_vm0, %v21160_v11  ;;  %v8130_v11 = vld [vmem:[#allocation2 + $0x23d] sm:$0xff] }
 0x6c4   :  { %15044 = vmatprep.mubr.msk.f32.mxu1 %vm16728_vm1, %v24686_v16  ;;  %13960 = vmatprep.mubr.msk.f32.mxu0 %vm16728_vm1, %v24686_v16  ;;  %v8962_v13 = vld [vmem:[#allocation2 + $0x9e] sm:$0xff] }
 0x6c7   :  { %15045 = vmatmul.mubr.msk.f32.gmra.mrb[96].mxu1 %vm629_vm0, %v8128_v44  ;;  %13961 = vmatmul.mubr.msk.f32.gmra.mrb[184].mxu0 %vm629_vm0, %v21169_v55  ;;  %v8131_v55 = vld [vmem:[#allocation2 + $0x245] sm:$0xff] }
 0x6c8   :  { %15047 = vmatprep.mubr.msk.f32.mxu1 %vm16728_vm1, %v24686_v16  ;;  %13963 = vmatprep.mubr.msk.f32.mxu0 %vm16728_vm1, %v24686_v16 }
 0x6cb   :  { %15048 = vmatmul.mubr.msk.f32.gmra.mrb[98].mxu1 %vm629_vm0, %v8129_v42  ;;  %13964 = vmatmul.mubr.msk.f32.gmra.mrb[186].mxu0 %vm629_vm0, %v21178_v56  ;;  %v8132_v56 = vld [vmem:[#allocation2 + $0x24d] sm:$0xff] }
 0x6cc   :  { %15050 = vmatprep.mubr.msk.f32.mxu1 %vm16728_vm1, %v24686_v16  ;;  %13966 = vmatprep.mubr.msk.f32.mxu0 %vm16728_vm1, %v24686_v16  ;;  %v4607_v42 = vld [vmem:[#allocation2 + $0x292] sm:$0xff] }
 0x6cf   :  { %15051 = vmatmul.mubr.msk.f32.gmra.mrb[100].mxu1 %vm629_vm0, %v8130_v11  ;;  %13967 = vmatmul.mubr.msk.f32.gmra.mrb[188].mxu0 %vm629_vm0, %v21187_v8  ;;  %v8133_v8 = vld [vmem:[#allocation2 + $0x255] sm:$0xff] }
 0x6d0   :  { %15053 = vmatprep.mubr.msk.f32.mxu1 %vm16728_vm1, %v24686_v16  ;;  %13969 = vmatprep.mubr.msk.f32.mxu0 %vm16728_vm1, %v24686_v16 }
 0x6d3   :  { %15054 = vmatmul.mubr.msk.f32.gmra.mrb[102].mxu1 %vm629_vm0, %v8131_v55  ;;  %13970 = vmatmul.mubr.msk.f32.gmra.mrb[190].mxu0 %vm629_vm0, %v21196_v57  ;;  %v8134_v57 = vld [vmem:[#allocation2 + $0x25d] sm:$0xff]  ;;  %v8963_v55 = vld [vmem:[#allocation2 + $0xa6] sm:$0xff] }
 0x6d4   :  { %15056 = vmatprep.mubr.msk.f32.mxu1 %vm16728_vm1, %v24686_v16  ;;  %13972 = vmatprep.mubr.msk.f32.mxu0 %vm16728_vm1, %v24686_v16 }
 0x6d7   :  { %15057 = vmatmul.mubr.msk.f32.gmra.mrb[104].mxu1 %vm629_vm0, %v8132_v56  ;;  %13973 = vmatmul.mubr.msk.f32.gmra.mrb[192].mxu0 %vm629_vm0, %v21206_v53  ;;  %v8135_v53 = vld [vmem:[#allocation2 + $0x265] sm:$0xff] }
 0x6d8   :  { %15059 = vmatprep.mubr.msk.f32.mxu1 %vm16728_vm1, %v24686_v16  ;;  %13975 = vmatprep.mubr.msk.f32.mxu0 %vm16728_vm1, %v24686_v16 }
 0x6db   :  { %15060 = vmatmul.mubr.msk.f32.gmra.mrb[106].mxu1 %vm629_vm0, %v8133_v8  ;;  %13976 = vmatmul.mubr.msk.f32.gmra.mrb[194].mxu0 %vm629_vm0, %v21216_v24  ;;  %v8136_v24 = vld [vmem:[#allocation2 + $0x26d] sm:$0xff] }
 0x6dc   :  { %15062 = vmatprep.mubr.msk.f32.mxu1 %vm16728_vm1, %v24686_v16  ;;  %13978 = vmatprep.mubr.msk.f32.mxu0 %vm16728_vm1, %v24686_v16  ;;  %v5411_v8 = vld [vmem:[#allocation2 + $0x13] sm:$0xff] }
 0x6df   :  { %15063 = vmatmul.mubr.msk.f32.gmra.mrb[108].mxu1 %vm629_vm0, %v8134_v57  ;;  %13979 = vmatmul.mubr.msk.f32.gmra.mrb[196].mxu0 %vm629_vm0, %v21225_v43  ;;  %v8137_v43 = vld [vmem:[#allocation2 + $0x275] sm:$0xff] }
 0x6e0   :  { %15065 = vmatprep.mubr.msk.f32.mxu1 %vm16728_vm1, %v24686_v16  ;;  %13981 = vmatprep.mubr.msk.f32.mxu0 %vm16728_vm1, %v24686_v16 }
 0x6e3   :  { %15066 = vmatmul.mubr.msk.f32.gmra.mrb[110].mxu1 %vm629_vm0, %v8135_v53  ;;  %13982 = vmatmul.mubr.msk.f32.gmra.mrb[198].mxu0 %vm629_vm0, %v21234_v46  ;;  %v8138_v46 = vld [vmem:[#allocation2 + $0x27d] sm:$0xff]  ;;  %v8964_v53 = vld [vmem:[#allocation2 + $0xae] sm:$0xff] }
 0x6e4   :  { %15068 = vmatprep.mubr.msk.f32.mxu1 %vm16728_vm1, %v24686_v16  ;;  %13984 = vmatprep.mubr.msk.f32.mxu0 %vm16728_vm1, %v24686_v16 }
 0x6e7   :  { %15069 = vmatmul.mubr.msk.f32.gmra.mrb[112].mxu1 %vm629_vm0, %v8136_v24  ;;  %13985 = vmatmul.mubr.msk.f32.gmra.mrb[200].mxu0 %vm629_vm0, %v21243_v38  ;;  %v8139_v38 = vld [vmem:[#allocation2 + $0x285] sm:$0xff] }
 0x6e8   :  { %15071 = vmatprep.mubr.msk.f32.mxu1 %vm16728_vm1, %v24686_v16  ;;  %13987 = vmatprep.mubr.msk.f32.mxu0 %vm16728_vm1, %v24686_v16 }
 0x6eb   :  { %15072 = vmatmul.mubr.msk.f32.gmra.mrb[114].mxu1 %vm629_vm0, %v8137_v43  ;;  %13988 = vmatmul.mubr.msk.f32.gmra.mrb[202].mxu0 %vm629_vm0, %v21252_v6  ;;  %v8140_v6 = vld [vmem:[#allocation2 + $0x28d] sm:$0xff]  ;;  %v5412_v43 = vld [vmem:[#allocation2 + $0x1b] sm:$0xff] }
 0x6ec   :  { %15074 = vmatprep.mubr.msk.f32.mxu1 %vm16728_vm1, %v24686_v16  ;;  %13990 = vmatprep.mubr.msk.f32.mxu0 %vm16728_vm1, %v24686_v16 }
 0x6ef   :  { %15075 = vmatmul.mubr.msk.f32.gmra.mrb[116].mxu1 %vm629_vm0, %v8138_v46  ;;  %13991 = vmatmul.mubr.msk.f32.gmra.mrb[204].mxu0 %vm629_vm0, %v21261_v14  ;;  %v8141_v14 = vld [vmem:[#allocation2 + $0x295] sm:$0xff] }
 0x6f0   :  { %15077 = vmatprep.mubr.msk.f32.mxu1 %vm16728_vm1, %v24686_v16  ;;  %13993 = vmatprep.mubr.msk.f32.mxu0 %vm16728_vm1, %v24686_v16 }
 0x6f3   :  { %15078 = vmatmul.mubr.msk.f32.gmra.mrb[118].mxu1 %vm629_vm0, %v8139_v38  ;;  %13994 = vmatmul.mubr.msk.f32.gmra.mrb[206].mxu0 %vm629_vm0, %v21270_v31  ;;  %v8142_v31 = vld [vmem:[#allocation2 + $0x29d] sm:$0xff] }
 0x6f4   :  { %15080 = vmatprep.mubr.msk.f32.mxu1 %vm16728_vm1, %v24686_v16  ;;  %13996 = vmatprep.mubr.msk.f32.mxu0 %vm16728_vm1, %v24686_v16  ;;  %v8965_v38 = vld [vmem:[#allocation2 + $0xb6] sm:$0xff] }
 0x6f7   :  { %15081 = vmatmul.mubr.msk.f32.gmra.mrb[120].mxu1 %vm629_vm0, %v8140_v6  ;;  %13997 = vmatmul.mubr.msk.f32.gmra.mrb[208].mxu0 %vm629_vm0, %v21279_v60  ;;  %v8143_v60 = vld [vmem:[#allocation2 + $0x2a5] sm:$0xff] }
 0x6f8   :  { %15083 = vmatprep.mubr.msk.f32.mxu1 %vm16728_vm1, %v24686_v16  ;;  %13999 = vmatprep.mubr.msk.f32.mxu0 %vm16728_vm1, %v24686_v16 }
 0x6fb   :  { %15084 = vmatmul.mubr.msk.f32.gmra.mrb[122].mxu1 %vm629_vm0, %v8141_v14  ;;  %14000 = vmatmul.mubr.msk.f32.gmra.mrb[210].mxu0 %vm629_vm0, %v21294_v50  ;;  %v8947_v50 = vld [vmem:[#allocation2 + $0x26] sm:$0xff] }
 0x6fc   :  { %15086 = vmatprep.mubr.msk.f32.mxu1 %vm16728_vm1, %v24686_v16  ;;  %14002 = vmatprep.mubr.msk.f32.mxu0 %vm16728_vm1, %v24686_v16  ;;  %v5413_v14 = vld [vmem:[#allocation2 + $0x23] sm:$0xff] }
 0x6ff   :  { %15087 = vmatmul.mubr.msk.f32.gmra.mrb[124].mxu1 %vm629_vm0, %v8142_v31  ;;  %14003 = vmatmul.mubr.msk.f32.gmra.mrb[212].mxu0 %vm629_vm0, %v21309_v12  ;;  %v8948_v12 = vld [vmem:[#allocation2 + $0x2e] sm:$0xff] }
 0x700   :  { %15089 = vmatprep.mubr.msk.f32.mxu1 %vm16728_vm1, %v24686_v16  ;;  %14005 = vmatprep.mubr.msk.f32.mxu0 %vm16728_vm1, %v24686_v16 }
 0x703   :  { %15090 = vmatmul.mubr.msk.f32.gmra.mrb[126].mxu1 %vm629_vm0, %v8143_v60  ;;  %14006 = vmatmul.mubr.msk.f32.gmra.mrb[214].mxu0 %vm629_vm0, %v21319_v10  ;;  %v8949_v10 = vld [vmem:[#allocation2 + $0x36] sm:$0xff]  ;;  %v8966_v60 = vld [vmem:[#allocation2 + $0xbe] sm:$0xff] }
 0x704   :  { %15108 = vmatprep.mubr.msk.f32.mxu1 %vm16728_vm1, %v24686_v16  ;;  %14008 = vmatprep.mubr.msk.f32.mxu0 %vm16728_vm1, %v24686_v16 }
 0x707   :  { %15109 = vmatmul.mubr.msk.f32.vlgmr.msra.gmra.mrb[128].mxu1 %vm629_vm0, %v8947_v50  ;;  %14009 = vmatmul.mubr.msk.f32.gmra.mrb[216].mxu0 %vm629_vm0, %v21329_v17  ;;  %v8950_v17 = vld [vmem:[#allocation2 + $0x3e] sm:$0xff] }
 0x708   :  { %15111 = vmatprep.mubr.msk.f32.mxu1 %vm16728_vm1, %v24686_v16  ;;  %14011 = vmatprep.mubr.msk.f32.mxu0 %vm16728_vm1, %v24686_v16 }
 0x70b   :  { %15112 = vmatmul.mubr.msk.f32.gmra.mrb[130].mxu1 %vm629_vm0, %v8948_v12  ;;  %14012 = vmatmul.mubr.msk.f32.gmra.mrb[218].mxu0 %vm629_vm0, %v21338_v26  ;;  %v24801_v26 = vld [vmem:[#allocation85_spill] sm:$0xff]  ;;  %v5414_v12 = vld [vmem:[#allocation2 + $0x2b] sm:$0xff] }
 0x70c   :  { %15114 = vmatprep.mubr.msk.f32.mxu1 %vm16728_vm1, %v24686_v16  ;;  %14014 = vmatprep.mubr.msk.f32.mxu0 %vm16728_vm1, %v24686_v16 }
 0x70f   :  { %15115 = vmatmul.mubr.msk.f32.gmra.mrb[132].mxu1 %vm629_vm0, %v8949_v10  ;;  %14015 = vmatmul.mubr.msk.f32.gmra.mrb[220].mxu0 %vm629_vm0, %v21347_v36  ;;  %v24802_v36 = vld [vmem:[#allocation84_spill] sm:$0xff] }
 0x710   :  { %15117 = vmatprep.mubr.msk.f32.mxu1 %vm16728_vm1, %v24686_v16  ;;  %14017 = vmatprep.mubr.msk.f32.mxu0 %vm16728_vm1, %v24686_v16 }
 0x713   :  { %15118 = vmatmul.mubr.msk.f32.gmra.mrb[134].mxu1 %vm629_vm0, %v8950_v17  ;;  %14018 = vmatmul.mubr.msk.f32.gmra.mrb[222].mxu0 %vm629_vm0, %v24801_v26  ;;  %v8967_v17 = vld [vmem:[#allocation2 + $0xc6] sm:$0xff] }
 0x714   :  { %15120 = vmatprep.mubr.msk.f32.mxu1 %vm16728_vm1, %v24686_v16  ;;  %14020 = vmatprep.mubr.msk.f32.mxu0 %vm16728_vm1, %v24686_v16 }
 0x717   :  { %15121 = vmatmul.mubr.msk.f32.gmra.mrb[136].mxu1 %vm629_vm0, %v8951_v2  ;;  %14021 = vmatmul.mubr.msk.f32.gmra.mrb[224].mxu0 %vm629_vm0, %v24802_v36  ;;  %v5415_v2 = vld [vmem:[#allocation2 + $0x33] sm:$0xff] }
 0x718   :  { %15123 = vmatprep.mubr.msk.f32.mxu1 %vm16728_vm1, %v24686_v16  ;;  %14023 = vmatprep.mubr.msk.f32.mxu0 %vm16728_vm1, %v24686_v16 }
 0x71a   :  { %v21945_v45 = vpop.f32.mrb[120].mxu0 }
 0x71b   :  { %15124 = vmatmul.mubr.msk.f32.gmra.mrb[138].mxu1 %vm629_vm0, %v8952_v25  ;;  %v13866_v29 = vpop.f32.mrb[121].mxu0  ;;  %14024 = vmatmul.mubr.msk.f32.gmra.mrb[226].mxu0 %vm629_vm0, %v24803_v21  ;;  %v8968_v25 = vld [vmem:[#allocation2 + $0xce] sm:$0xff]  ;;  %v5416_v21 = vld [vmem:[#allocation2 + $0x3b] sm:$0xff] }
 0x71c   :  { %15126 = vmatprep.mubr.msk.f32.mxu1 %vm16728_vm1, %v24686_v16  ;;  %14026 = vmatprep.mubr.msk.f32.mxu0 %vm16728_vm1, %v24686_v16 }
 0x71e   :  { %v21954_v30 = vpop.f32.mrb[122].mxu0 }
 0x71f   :  { %15127 = vmatmul.mubr.msk.f32.gmra.mrb[140].mxu1 %vm629_vm0, %v8953_v5  ;;  %v13869_v49 = vpop.f32.mrb[123].mxu0  ;;  %14027 = vmatmul.mubr.msk.f32.gmra.mrb[228].mxu0 %vm629_vm0, %v21389_v33 }
 0x720   :  { %15129 = vmatprep.mubr.msk.f32.mxu1 %vm16728_vm1, %v24686_v16  ;;  %14029 = vmatprep.mubr.msk.f32.mxu0 %vm16728_vm1, %v24686_v16  ;;  %v8969_v49 = vld [vmem:[#allocation2 + $0xd6] sm:$0xff] }
 0x722   :  { %v21963_v28 = vpop.f32.mrb[124].mxu0 }
 0x723   :  { %15130 = vmatmul.mubr.msk.f32.gmra.mrb[142].mxu1 %vm629_vm0, %v8954_v34  ;;  %v13872_v61 = vpop.f32.mrb[125].mxu0  ;;  %14030 = vmatmul.mubr.msk.f32.gmra.mrb[230].mxu0 %vm629_vm0, %v24804_v62 }
 0x724   :  { %15132 = vmatprep.mubr.msk.f32.mxu1 %vm16728_vm1, %v24686_v16  ;;  %14032 = vmatprep.mubr.msk.f32.mxu0 %vm16728_vm1, %v24686_v16  ;;  %v5417_v61 = vld [vmem:[#allocation2 + $0x43] sm:$0xff] }
 0x726   :  { %v21972_v33 = vpop.f32.mrb[126].mxu0 }
 0x727   :  { %15133 = vmatmul.mubr.msk.f32.gmra.mrb[144].mxu1 %vm629_vm0, %v8955_v27  ;;  %v13875_v37 = vpop.f32.mrb[127].mxu0  ;;  %14033 = vmatmul.mubr.msk.f32.gmra.mrb[232].mxu0 %vm629_vm0, %v24805_v7  ;;  %v8970_v27 = vld [vmem:[#allocation2 + $0xde] sm:$0xff]  ;;  %v5418_v7 = vld [vmem:[#allocation2 + $0x4b] sm:$0xff] }
 0x728   :  { %15135 = vmatprep.mubr.msk.f32.mxu1 %vm16728_vm1, %v24686_v16  ;;  %14035 = vmatprep.mubr.msk.f32.mxu0 %vm16728_vm1, %v24686_v16 }
 0x72a   :  { %v21981_v22 = vpop.f32.mrb[128].mxu0 }
 0x72b   :  { %15136 = vmatmul.mubr.msk.f32.gmra.mrb[146].mxu1 %vm629_vm0, %v8956_v19  ;;  %v13878_v39 = vpop.f32.mrb[129].mxu0  ;;  %14036 = vmatmul.mubr.msk.f32.gmra.mrb[234].mxu0 %vm629_vm0, %v24806_v9 }
 0x72c   :  { %15138 = vmatprep.mubr.msk.f32.mxu1 %vm16728_vm1, %v24686_v16  ;;  %14038 = vmatprep.mubr.msk.f32.mxu0 %vm16728_vm1, %v24686_v16  ;;  %v8971_v39 = vld [vmem:[#allocation2 + $0xe6] sm:$0xff] }
 0x72e   :  { %v21990_v35 = vpop.f32.mrb[130].mxu0 }
 0x72f   :  { %15139 = vmatmul.mubr.msk.f32.gmra.mrb[148].mxu1 %vm629_vm0, %v8957_v18  ;;  %v13881_v1 = vpop.f32.mrb[131].mxu0  ;;  %14039 = vmatmul.mubr.msk.f32.gmra.mrb[236].mxu0 %vm629_vm0, %v24807_v0  ;;  %v5419_v18 = vld [vmem:[#allocation2 + $0x53] sm:$0xff] }
 0x730   :  { %15141 = vmatprep.mubr.msk.f32.mxu1 %vm16728_vm1, %v24686_v16  ;;  %14041 = vmatprep.mubr.msk.f32.mxu0 %vm16728_vm1, %v24686_v16  ;;  %v8972_v0 = vld [vmem:[#allocation2 + $0xee] sm:$0xff] }
 0x732   :  { %v21999_v58 = vpop.f32.mrb[132].mxu0 }
 0x733   :  { %15142 = vmatmul.mubr.msk.f32.gmra.mrb[150].mxu1 %vm629_vm0, %v8958_v51  ;;  %v13884_v48 = vpop.f32.mrb[133].mxu0  ;;  %14042 = vmatmul.mubr.msk.f32.gmra.mrb[238].mxu0 %vm629_vm0, %v24808_v47 }
 0x734   :  { %15144 = vmatprep.mubr.msk.f32.mxu1 %vm16728_vm1, %v24686_v16  ;;  %14044 = vmatprep.mubr.msk.f32.mxu0 %vm16728_vm1, %v24686_v16  ;;  %v5420_v48 = vld [vmem:[#allocation2 + $0x5b] sm:$0xff] }
 0x736   :  { %v22008_v3 = vpop.f32.mrb[134].mxu0 }
 0x737   :  { %15145 = vmatmul.mubr.msk.f32.gmra.mrb[152].mxu1 %vm629_vm0, %v8959_v20  ;;  %v13887_v23 = vpop.f32.mrb[135].mxu0  ;;  %14045 = vmatmul.mubr.msk.f32.gmra.mrb[240].mxu0 %vm629_vm0, %v4604_v52  ;;  %v8973_v20 = vld [vmem:[#allocation2 + $0xf6] sm:$0xff] }
 0x738   :  { %15147 = vmatprep.mubr.msk.f32.mxu1 %vm16728_vm1, %v24686_v16  ;;  %14047 = vmatprep.mubr.msk.f32.mxu0 %vm16728_vm1, %v24686_v16  ;;  %v5421_v23 = vld [vmem:[#allocation2 + $0x63] sm:$0xff] }
 0x73a   :  { %v22016_v40 = vpop.f32.mrb[136].mxu0 }
 0x73b   :  { %15148 = vmatmul.mubr.msk.f32.gmra.mrb[154].mxu1 %vm629_vm0, %v8960_v59  ;;  %v13890_v4 = vpop.f32.mrb[137].mxu0  ;;  %14048 = vmatmul.mubr.msk.f32.gmra.mrb[242].mxu0 %vm629_vm0, %v4605_v63  ;;  %v8974_v63 = vld [vmem:[#allocation2 + $0xfe] sm:$0xff] }
 0x73c   :  { %15150 = vmatprep.mubr.msk.f32.mxu1 %vm16728_vm1, %v24686_v16  ;;  %14050 = vmatprep.mubr.msk.f32.mxu0 %vm16728_vm1, %v24686_v16 }
 0x73e   :  { %v22024_v41 = vpop.f32.mrb[138].mxu0 }
 0x73f   :  { %15151 = vmatmul.mubr.msk.f32.gmra.mrb[156].mxu1 %vm629_vm0, %v8961_v32  ;;  %v13893_v15 = vpop.f32.mrb[139].mxu0  ;;  %14051 = vmatmul.mubr.msk.f32.gmra.mrb[244].mxu0 %vm629_vm0, %v4606_v54  ;;  %v5422_v32 = vld [vmem:[#allocation2 + $0x6b] sm:$0xff] }
 0x740   :  { %15153 = vmatprep.mubr.msk.f32.mxu1 %vm16728_vm1, %v24686_v16  ;;  %14053 = vmatprep.mubr.msk.f32.mxu0 %vm16728_vm1, %v24686_v16  ;;  %v8975_v15 = vld [vmem:[#allocation2 + $0x106] sm:$0xff] }
 0x742   :  { %v22032_v44 = vpop.f32.mrb[140].mxu0 }
 0x743   :  { %15154 = vmatmul.mubr.msk.f32.gmra.mrb[158].mxu1 %vm629_vm0, %v8962_v13  ;;  %v13896_v11 = vpop.f32.mrb[141].mxu0  ;;  %14054 = vmatmul.mubr.msk.f32.gmra.mrb[246].mxu0 %vm629_vm0, %v4607_v42  ;;  %v5423_v42 = vld [vmem:[#allocation2 + $0x73] sm:$0xff] }
 0x744   :  { %15156 = vmatprep.mubr.msk.f32.mxu1 %vm16728_vm1, %v24686_v16  ;;  %14072 = vmatprep.mubr.msk.f32.mxu0 %vm16728_vm1, %v24686_v16 }
 0x746   :  { %v22040_v56 = vpop.f32.mrb[142].mxu0 }
 0x747   :  { %15157 = vmatmul.mubr.msk.f32.gmra.mrb[160].mxu1 %vm629_vm0, %v8963_v55  ;;  %v13899_v57 = vpop.f32.mrb[143].mxu0  ;;  %14073 = vmatmul.mubr.msk.f32.vlgmr.msra.gmra.mrb[86].mxu0 %vm629_vm0, %v5411_v8  ;;  %v8976_v55 = vld [vmem:[#allocation2 + $0x10e] sm:$0xff] }
 0x748   :  { %15159 = vmatprep.mubr.msk.f32.mxu1 %vm16728_vm1, %v24686_v16  ;;  %14075 = vmatprep.mubr.msk.f32.mxu0 %vm16728_vm1, %v24686_v16  ;;  %v5424_v57 = vld [vmem:[#allocation2 + $0x7b] sm:$0xff] }
 0x74a   :  { %v22048_v24 = vpop.f32.mrb[144].mxu0 }
 0x74b   :  { %15160 = vmatmul.mubr.msk.f32.gmra.mrb[0].mxu1 %vm629_vm0, %v8964_v53  ;;  %v13902_v46 = vpop.f32.mrb[145].mxu0  ;;  %14076 = vmatmul.mubr.msk.f32.gmra.mrb[88].mxu0 %vm629_vm0, %v5412_v43  ;;  %v8977_v43 = vld [vmem:[#allocation2 + $0x116] sm:$0xff] }
 0x74c   :  { %15162 = vmatprep.mubr.msk.f32.mxu1 %vm16728_vm1, %v24686_v16  ;;  %14078 = vmatprep.mubr.msk.f32.mxu0 %vm16728_vm1, %v24686_v16 }
 0x74e   :  { %v22056_v6 = vpop.f32.mrb[146].mxu0 }
 0x74f   :  { %15163 = vmatmul.mubr.msk.f32.gmra.mrb[2].mxu1 %vm629_vm0, %v8965_v38  ;;  %v13905_v31 = vpop.f32.mrb[147].mxu0  ;;  %14079 = vmatmul.mubr.msk.f32.gmra.mrb[90].mxu0 %vm629_vm0, %v5413_v14  ;;  %v5425_v38 = vld [vmem:[#allocation2 + $0x83] sm:$0xff] }
 0x750   :  { %15165 = vmatprep.mubr.msk.f32.mxu1 %vm16728_vm1, %v24686_v16  ;;  %14081 = vmatprep.mubr.msk.f32.mxu0 %vm16728_vm1, %v24686_v16  ;;  %v8978_v31 = vld [vmem:[#allocation2 + $0x11e] sm:$0xff] }
 0x752   :  { %v22064_v50 = vpop.f32.mrb[148].mxu0 }
 0x753   :  { %15166 = vmatmul.mubr.msk.f32.gmra.mrb[4].mxu1 %vm629_vm0, %v8966_v60  ;;  %v13908_v10 = vpop.f32.mrb[149].mxu0  ;;  %14082 = vmatmul.mubr.msk.f32.gmra.mrb[92].mxu0 %vm629_vm0, %v5414_v12  ;;  %v5426_v12 = vld [vmem:[#allocation2 + $0x8b] sm:$0xff] }
 0x754   :  { %15168 = vmatprep.mubr.msk.f32.mxu1 %vm16728_vm1, %v24686_v16  ;;  %14084 = vmatprep.mubr.msk.f32.mxu0 %vm16728_vm1, %v24686_v16 }
 0x756   :  { %v22072_v26 = vpop.f32.mrb[150].mxu0 }
 0x757   :  { %15169 = vmatmul.mubr.msk.f32.gmra.mrb[6].mxu1 %vm629_vm0, %v8967_v17  ;;  %v13911_v36 = vpop.f32.mrb[151].mxu0  ;;  %14085 = vmatmul.mubr.msk.f32.gmra.mrb[94].mxu0 %vm629_vm0, %v5415_v2  ;;  %v8979_v17 = vld [vmem:[#allocation2 + $0x126] sm:$0xff] }
 0x758   :  { %15171 = vmatprep.mubr.msk.f32.mxu1 %vm16728_vm1, %v24686_v16  ;;  %14087 = vmatprep.mubr.msk.f32.mxu0 %vm16728_vm1, %v24686_v16  ;;  %v5427_v36 = vld [vmem:[#allocation2 + $0x93] sm:$0xff] }
 0x75a   :  { %v22080_v29 = vpop.f32.mrb[152].mxu0 }
 0x75b   :  { %15172 = vmatmul.mubr.msk.f32.gmra.mrb[8].mxu1 %vm629_vm0, %v8968_v25  ;;  %v13914_v5 = vpop.f32.mrb[153].mxu0  ;;  %14088 = vmatmul.mubr.msk.f32.gmra.mrb[96].mxu0 %vm629_vm0, %v5416_v21  ;;  %v8980_v21 = vld [vmem:[#allocation2 + $0x12e] sm:$0xff] }
 0x75c   :  { %15174 = vmatprep.mubr.msk.f32.mxu1 %vm16728_vm1, %v24686_v16  ;;  %14090 = vmatprep.mubr.msk.f32.mxu0 %vm16728_vm1, %v24686_v16 }
 0x75e   :  { %v22088_v34 = vpop.f32.mrb[154].mxu0 }
 0x75f   :  { %15175 = vmatmul.mubr.msk.f32.gmra.mrb[10].mxu1 %vm629_vm0, %v8969_v49  ;;  %v13917_v62 = vpop.f32.mrb[155].mxu0  ;;  %14091 = vmatmul.mubr.msk.f32.gmra.mrb[98].mxu0 %vm629_vm0, %v5417_v61  ;;  %v8981_v61 = vld [vmem:[#allocation2 + $0x136] sm:$0xff] }
 0x760   :  { %15177 = vmatprep.mubr.msk.f32.mxu1 %vm16728_vm1, %v24686_v16  ;;  %14093 = vmatprep.mubr.msk.f32.mxu0 %vm16728_vm1, %v24686_v16 }
 0x762   :  { %v22096_v37 = vpop.f32.mrb[156].mxu0 }
 0x763   :  { %15178 = vmatmul.mubr.msk.f32.gmra.mrb[12].mxu1 %vm629_vm0, %v8970_v27  ;;  %v13920_v19 = vpop.f32.mrb[157].mxu0  ;;  %14094 = vmatmul.mubr.msk.f32.gmra.mrb[100].mxu0 %vm629_vm0, %v5418_v7  ;;  %v8982_v7 = vld [vmem:[#allocation2 + $0x13e] sm:$0xff] }
 0x764   :  { %15180 = vmatprep.mubr.msk.f32.mxu1 %vm16728_vm1, %v24686_v16  ;;  %14096 = vmatprep.mubr.msk.f32.mxu0 %vm16728_vm1, %v24686_v16 }
 0x766   :  { %v22104_v9 = vpop.f32.mrb[158].mxu0 }
 0x767   :  { %15181 = vmatmul.mubr.msk.f32.gmra.mrb[14].mxu1 %vm629_vm0, %v8971_v39  ;;  %v13923_v1 = vpop.f32.mrb[159].mxu0  ;;  %14097 = vmatmul.mubr.msk.f32.gmra.mrb[102].mxu0 %vm629_vm0, %v5419_v18  ;;  %v8983_v18 = vld [vmem:[#allocation2 + $0x146] sm:$0xff] }
 0x768   :  { %15183 = vmatprep.mubr.msk.f32.mxu1 %vm16728_vm1, %v24686_v16  ;;  %14099 = vmatprep.mubr.msk.f32.mxu0 %vm16728_vm1, %v24686_v16 }
 0x76a   :  { %v22112_v51 = vpop.f32.mrb[160].mxu0 }
 0x76b   :  { %15184 = vmatmul.mubr.msk.f32.gmra.mrb[16].mxu1 %vm629_vm0, %v8972_v0  ;;  %v13926_v47 = vpop.f32.mrb[161].mxu0  ;;  %14100 = vmatmul.mubr.msk.f32.gmra.mrb[104].mxu0 %vm629_vm0, %v5420_v48  ;;  %v8984_v48 = vld [vmem:[#allocation2 + $0x14e] sm:$0xff] }
 0x76c   :  { %15186 = vmatprep.mubr.msk.f32.mxu1 %vm16728_vm1, %v24686_v16  ;;  %14102 = vmatprep.mubr.msk.f32.mxu0 %vm16728_vm1, %v24686_v16 }
 0x76e   :  { %v22120_v52 = vpop.f32.mrb[162].mxu0 }
 0x76f   :  { %15187 = vmatmul.mubr.msk.f32.gmra.mrb[18].mxu1 %vm629_vm0, %v8973_v20  ;;  %v13929_v59 = vpop.f32.mrb[163].mxu0  ;;  %14103 = vmatmul.mubr.msk.f32.gmra.mrb[106].mxu0 %vm629_vm0, %v5421_v23  ;;  %v8985_v23 = vld [vmem:[#allocation2 + $0x156] sm:$0xff] }
 0x770   :  { %15189 = vmatprep.mubr.msk.f32.mxu1 %vm16728_vm1, %v24686_v16  ;;  %14105 = vmatprep.mubr.msk.f32.mxu0 %vm16728_vm1, %v24686_v16 }
 0x772   :  { %v22128_v4 = vpop.f32.mrb[164].mxu0 }
 0x773   :  { %15190 = vmatmul.mubr.msk.f32.gmra.mrb[20].mxu1 %vm629_vm0, %v8974_v63  ;;  %v13932_v54 = vpop.f32.mrb[165].mxu0  ;;  %14106 = vmatmul.mubr.msk.f32.gmra.mrb[108].mxu0 %vm629_vm0, %v5422_v32  ;;  %v8986_v32 = vld [vmem:[#allocation2 + $0x15e] sm:$0xff] }
 0x774   :  { %15192 = vmatprep.mubr.msk.f32.mxu1 %vm16728_vm1, %v24686_v16  ;;  %14108 = vmatprep.mubr.msk.f32.mxu0 %vm16728_vm1, %v24686_v16 }
 0x776   :  { %v22136_v13 = vpop.f32.mrb[166].mxu0 }
 0x777   :  { %15193 = vmatmul.mubr.msk.f32.gmra.mrb[22].mxu1 %vm629_vm0, %v8975_v15  ;;  %v13935_v11 = vpop.f32.mrb[167].mxu0  ;;  %14109 = vmatmul.mubr.msk.f32.gmra.mrb[110].mxu0 %vm629_vm0, %v5423_v42  ;;  %v8987_v42 = vld [vmem:[#allocation2 + $0x166] sm:$0xff] }
 0x778   :  { %15195 = vmatprep.mubr.msk.f32.mxu1 %vm16728_vm1, %v24686_v16  ;;  %14111 = vmatprep.mubr.msk.f32.mxu0 %vm16728_vm1, %v24686_v16 }
 0x77a   :  { %v22144_v8 = vpop.f32.mrb[168].mxu0 }
 0x77b   :  { %15196 = vmatmul.mubr.msk.f32.gmra.mrb[24].mxu1 %vm629_vm0, %v8976_v55  ;;  %24809 = vst [vmem:[#allocation20_spill] sm:$0xff] %v22144_v8  ;;  %v13938_v53 = vpop.f32.mrb[169].mxu0  ;;  %14112 = vmatmul.mubr.msk.f32.gmra.mrb[112].mxu0 %vm629_vm0, %v5424_v57  ;;  %v8988_v57 = vld [vmem:[#allocation2 + $0x16e] sm:$0xff] }
 0x77c   :  { %15198 = vmatprep.mubr.msk.f32.mxu1 %vm16728_vm1, %v24686_v16  ;;  %14114 = vmatprep.mubr.msk.f32.mxu0 %vm16728_vm1, %v24686_v16 }
 0x77e   :  { %v22152_v46 = vpop.f32.mrb[170].mxu0 }
 0x77f   :  { %15199 = vmatmul.mubr.msk.f32.gmra.mrb[26].mxu1 %vm629_vm0, %v8977_v43  ;;  %24810 = vst [vmem:[#allocation22_spill] sm:$0xff] %v22152_v46  ;;  %v13941_v14 = vpop.f32.mrb[171].mxu0  ;;  %14115 = vmatmul.mubr.msk.f32.gmra.mrb[114].mxu0 %vm629_vm0, %v5425_v38  ;;  %v8989_v38 = vld [vmem:[#allocation2 + $0x176] sm:$0xff] }
 0x780   :  { %15201 = vmatprep.mubr.msk.f32.mxu1 %vm16728_vm1, %v24686_v16  ;;  %14117 = vmatprep.mubr.msk.f32.mxu0 %vm16728_vm1, %v24686_v16 }
 0x782   :  { %v22160_v60 = vpop.f32.mrb[172].mxu0 }
 0x783   :  { %15202 = vmatmul.mubr.msk.f32.gmra.mrb[28].mxu1 %vm629_vm0, %v8978_v31  ;;  %24811 = vst [vmem:[#allocation24_spill] sm:$0xff] %v22160_v60  ;;  %v13944_v10 = vpop.f32.mrb[173].mxu0  ;;  %14118 = vmatmul.mubr.msk.f32.gmra.mrb[116].mxu0 %vm629_vm0, %v5426_v12  ;;  %v8990_v12 = vld [vmem:[#allocation2 + $0x17e] sm:$0xff] }
 0x784   :  { %15204 = vmatprep.mubr.msk.f32.mxu1 %vm16728_vm1, %v24686_v16  ;;  %14120 = vmatprep.mubr.msk.f32.mxu0 %vm16728_vm1, %v24686_v16 }
 0x786   :  { %v22168_v2 = vpop.f32.mrb[174].mxu0 }
 0x787   :  { %15205 = vmatmul.mubr.msk.f32.gmra.mrb[30].mxu1 %vm629_vm0, %v8979_v17  ;;  %24812 = vst [vmem:[#allocation26_spill] sm:$0xff] %v22168_v2  ;;  %v13947_v25 = vpop.f32.mrb[175].mxu0  ;;  %14121 = vmatmul.mubr.msk.f32.gmra.mrb[118].mxu0 %vm629_vm0, %v5427_v36  ;;  %v8991_v36 = vld [vmem:[#allocation2 + $0x186] sm:$0xff] }
 0x788   :  { %15207 = vmatprep.mubr.msk.f32.mxu1 %vm16728_vm1, %v24686_v16 }
 0x78a   :  { %v22174_v5 = vpop.f32.mrb[176].mxu0 }
 0x78b   :  { %15208 = vmatmul.mubr.msk.f32.gmra.mrb[32].mxu1 %vm629_vm0, %v8980_v21  ;;  %24813 = vst [vmem:[#allocation28_spill] sm:$0xff] %v22174_v5  ;;  %v13950_v49 = vpop.f32.mrb[177].mxu0 }
 0x78c   :  { %15210 = vmatprep.mubr.msk.f32.mxu1 %vm16728_vm1, %v24686_v16  ;;  %v8992_v49 = vld [vmem:[#allocation2 + $0x18e] sm:$0xff] }
 0x78e   :  { %v22179_v62 = vpop.f32.mrb[178].mxu0 }
 0x78f   :  { %15211 = vmatmul.mubr.msk.f32.gmra.mrb[34].mxu1 %vm629_vm0, %v8981_v61  ;;  %24814 = vst [vmem:[#allocation30_spill] sm:$0xff] %v22179_v62  ;;  %v13953_v27 = vpop.f32.mrb[179].mxu0 }
 0x790   :  { %15213 = vmatprep.mubr.msk.f32.mxu1 %vm16728_vm1, %v24686_v16 }
 0x792   :  { %v22184_v19 = vpop.f32.mrb[180].mxu0 }
 0x793   :  { %15214 = vmatmul.mubr.msk.f32.gmra.mrb[36].mxu1 %vm629_vm0, %v8982_v7  ;;  %24815 = vst [vmem:[#allocation32_spill] sm:$0xff] %v22184_v19  ;;  %v13956_v39 = vpop.f32.mrb[181].mxu0  ;;  %v8993_v7 = vld [vmem:[#allocation2 + $0x196] sm:$0xff] }
 0x794   :  { %15216 = vmatprep.mubr.msk.f32.mxu1 %vm16728_vm1, %v24686_v16 }
 0x796   :  { %v22189_v1 = vpop.f32.mrb[182].mxu0 }
 0x797   :  { %15217 = vmatmul.mubr.msk.f32.gmra.mrb[38].mxu1 %vm629_vm0, %v8983_v18  ;;  %24816 = vst [vmem:[#allocation34_spill] sm:$0xff] %v22189_v1  ;;  %v13959_v0 = vpop.f32.mrb[183].mxu0 }
 0x798   :  { %15219 = vmatprep.mubr.msk.f32.mxu1 %vm16728_vm1, %v24686_v16  ;;  %v8994_v0 = vld [vmem:[#allocation2 + $0x19e] sm:$0xff] }
 0x79a   :  { %v22194_v47 = vpop.f32.mrb[184].mxu0 }
 0x79b   :  { %15220 = vmatmul.mubr.msk.f32.gmra.mrb[40].mxu1 %vm629_vm0, %v8984_v48  ;;  %24817 = vst [vmem:[#allocation36_spill] sm:$0xff] %v22194_v47  ;;  %v13962_v20 = vpop.f32.mrb[185].mxu0 }
 0x79c   :  { %15222 = vmatprep.mubr.msk.f32.mxu1 %vm16728_vm1, %v24686_v16 }
 0x79e   :  { %v22199_v59 = vpop.f32.mrb[186].mxu0 }
 0x79f   :  { %15223 = vmatmul.mubr.msk.f32.gmra.mrb[42].mxu1 %vm629_vm0, %v8985_v23  ;;  %24818 = vst [vmem:[#allocation38_spill] sm:$0xff] %v22199_v59  ;;  %v13965_v63 = vpop.f32.mrb[187].mxu0  ;;  %v8995_v23 = vld [vmem:[#allocation2 + $0x1a6] sm:$0xff] }
 0x7a0   :  { %15225 = vmatprep.mubr.msk.f32.mxu1 %vm16728_vm1, %v24686_v16 }
 0x7a2   :  { %v22204_v54 = vpop.f32.mrb[188].mxu0 }
 0x7a3   :  { %15226 = vmatmul.mubr.msk.f32.gmra.mrb[44].mxu1 %vm629_vm0, %v8986_v32  ;;  %24819 = vst [vmem:[#allocation40_spill] sm:$0xff] %v22204_v54  ;;  %v13968_v15 = vpop.f32.mrb[189].mxu0 }
 0x7a4   :  { %15228 = vmatprep.mubr.msk.f32.mxu1 %vm16728_vm1, %v24686_v16  ;;  %v8996_v15 = vld [vmem:[#allocation2 + $0x1ae] sm:$0xff] }
 0x7a6   :  { %v22209_v11 = vpop.f32.mrb[190].mxu0 }
 0x7a7   :  { %15229 = vmatmul.mubr.msk.f32.gmra.mrb[46].mxu1 %vm629_vm0, %v8987_v42  ;;  %24820 = vst [vmem:[#allocation42_spill] sm:$0xff] %v22209_v11  ;;  %v13971_v55 = vpop.f32.mrb[191].mxu0 }
 0x7a8   :  { %15231 = vmatprep.mubr.msk.f32.mxu1 %vm16728_vm1, %v24686_v16 }
 0x7aa   :  { %v22214_v53 = vpop.f32.mrb[192].mxu0 }
 0x7ab   :  { %15232 = vmatmul.mubr.msk.f32.gmra.mrb[48].mxu1 %vm629_vm0, %v8988_v57  ;;  %24821 = vst [vmem:[#allocation44_spill] sm:$0xff] %v22214_v53  ;;  %v13974_v43 = vpop.f32.mrb[193].mxu0  ;;  %v8997_v57 = vld [vmem:[#allocation2 + $0x1b6] sm:$0xff] }
 0x7ac   :  { %15234 = vmatprep.mubr.msk.f32.mxu1 %vm16728_vm1, %v24686_v16 }
 0x7ae   :  { %v22219_v14 = vpop.f32.mrb[194].mxu0 }
 0x7af   :  { %15235 = vmatmul.mubr.msk.f32.gmra.mrb[50].mxu1 %vm629_vm0, %v8989_v38  ;;  %24822 = vst [vmem:[#allocation46_spill] sm:$0xff] %v22219_v14  ;;  %v13977_v31 = vpop.f32.mrb[195].mxu0 }
 0x7b0   :  { %15237 = vmatprep.mubr.msk.f32.mxu1 %vm16728_vm1, %v24686_v16  ;;  %v8998_v31 = vld [vmem:[#allocation2 + $0x1be] sm:$0xff] }
 0x7b2   :  { %v22224_v10 = vpop.f32.mrb[196].mxu0 }
 0x7b3   :  { %15238 = vmatmul.mubr.msk.f32.gmra.mrb[52].mxu1 %vm629_vm0, %v8990_v12  ;;  %24823 = vst [vmem:[#allocation48_spill] sm:$0xff] %v22224_v10  ;;  %v13980_v17 = vpop.f32.mrb[197].mxu0 }
 0x7b4   :  { %15240 = vmatprep.mubr.msk.f32.mxu1 %vm16728_vm1, %v24686_v16 }
 0x7b6   :  { %v22229_v25 = vpop.f32.mrb[198].mxu0 }
 0x7b7   :  { %15241 = vmatmul.mubr.msk.f32.gmra.mrb[54].mxu1 %vm629_vm0, %v8991_v36  ;;  %24824 = vst [vmem:[#allocation50_spill] sm:$0xff] %v22229_v25  ;;  %v13983_v21 = vpop.f32.mrb[199].mxu0  ;;  %v8999_v36 = vld [vmem:[#allocation2 + $0x1c6] sm:$0xff] }
 0x7b8   :  { %15243 = vmatprep.mubr.msk.f32.mxu1 %vm16728_vm1, %v24686_v16 }
 0x7ba   :  { %v22234_v61 = vpop.f32.mrb[200].mxu0 }
 0x7bb   :  { %15244 = vmatmul.mubr.msk.f32.gmra.mrb[56].mxu1 %vm629_vm0, %v8992_v49  ;;  %24825 = vst [vmem:[#allocation52_spill] sm:$0xff] %v22234_v61  ;;  %v13986_v27 = vpop.f32.mrb[201].mxu0 }
 0x7bc   :  { %15246 = vmatprep.mubr.msk.f32.mxu1 %vm16728_vm1, %v24686_v16 }
 0x7be   :  { %v22239_v39 = vpop.f32.mrb[202].mxu0 }
 0x7bf   :  { %15247 = vmatmul.mubr.msk.f32.gmra.mrb[58].mxu1 %vm629_vm0, %v8993_v7  ;;  %24826 = vst [vmem:[#allocation54_spill] sm:$0xff] %v22239_v39  ;;  %v13989_v18 = vpop.f32.mrb[203].mxu0  ;;  %v9000_v7 = vld [vmem:[#allocation2 + $0x1ce] sm:$0xff] }
 0x7c0   :  { %15249 = vmatprep.mubr.msk.f32.mxu1 %vm16728_vm1, %v24686_v16 }
 0x7c2   :  { %v22244_v48 = vpop.f32.mrb[204].mxu0 }
 0x7c3   :  { %15250 = vmatmul.mubr.msk.f32.gmra.mrb[60].mxu1 %vm629_vm0, %v8994_v0  ;;  %24827 = vst [vmem:[#allocation3_spill] sm:$0xff] %v22244_v48  ;;  %v13992_v20 = vpop.f32.mrb[205].mxu0 }
 0x7c4   :  { %15252 = vmatprep.mubr.msk.f32.mxu1 %vm16728_vm1, %v24686_v16 }
 0x7c6   :  { %v22249_v63 = vpop.f32.mrb[206].mxu0 }
 0x7c7   :  { %15253 = vmatmul.mubr.msk.f32.gmra.mrb[62].mxu1 %vm629_vm0, %v8995_v23  ;;  %24828 = vst [vmem:[#allocation5_spill] sm:$0xff] %v22249_v63  ;;  %v13995_v32 = vpop.f32.mrb[207].mxu0 }
 0x7c8   :  { %15255 = vmatprep.mubr.msk.f32.mxu1 %vm16728_vm1, %v24686_v16  ;;  %v9001_v32 = vld [vmem:[#allocation2 + $0x1d6] sm:$0xff] }
 0x7ca   :  { %v22254_v42 = vpop.f32.mrb[208].mxu0 }
 0x7cb   :  { %15256 = vmatmul.mubr.msk.f32.gmra.mrb[64].mxu1 %vm629_vm0, %v8996_v15  ;;  %24829 = vst [vmem:[#allocation4_spill] sm:$0xff] %v22254_v42  ;;  %v13998_v55 = vpop.f32.mrb[209].mxu0 }
 0x7cc   :  { %15258 = vmatprep.mubr.msk.f32.mxu1 %vm16728_vm1, %v24686_v16 }
 0x7ce   :  { %v22259_v43 = vpop.f32.mrb[210].mxu0 }
 0x7cf   :  { %15259 = vmatmul.mubr.msk.f32.gmra.mrb[66].mxu1 %vm629_vm0, %v8997_v57  ;;  %24830 = vst [vmem:[#allocation6_spill] sm:$0xff] %v22259_v43  ;;  %v14001_v38 = vpop.f32.mrb[211].mxu0 }
 0x7d0   :  { %15261 = vmatprep.mubr.msk.f32.mxu1 %vm16728_vm1, %v24686_v16 }
 0x7d2   :  { %v22264_v12 = vpop.f32.mrb[212].mxu0 }
 0x7d3   :  { %15262 = vmatmul.mubr.msk.f32.gmra.mrb[68].mxu1 %vm629_vm0, %v8998_v31  ;;  %24831 = vst [vmem:[#allocation7_spill] sm:$0xff] %v22264_v12  ;;  %v14004_v17 = vpop.f32.mrb[213].mxu0  ;;  %v9002_v31 = vld [vmem:[#allocation2 + $0x1de] sm:$0xff] }
 0x7d4   :  { %15264 = vmatprep.mubr.msk.f32.mxu1 %vm16728_vm1, %v24686_v16 }
 0x7d6   :  { %v22269_v21 = vpop.f32.mrb[214].mxu0 }
 0x7d7   :  { %15265 = vmatmul.mubr.msk.f32.gmra.mrb[70].mxu1 %vm629_vm0, %v8999_v36  ;;  %24832 = vst [vmem:[#allocation8_spill] sm:$0xff] %v22269_v21  ;;  %v14007_v49 = vpop.f32.mrb[215].mxu0 }
 0x7d8   :  { %15267 = vmatprep.mubr.msk.f32.mxu1 %vm16728_vm1, %v24686_v16 }
 0x7da   :  { %v22273_v27 = vpop.f32.mrb[128].mxu1  ;;  %v22276_v0 = vpop.f32.mrb[216].mxu0 }
 0x7db   :  { %v15110_v18 = vpop.f32.mrb[129].mxu1  ;;  %15268 = vmatmul.mubr.msk.f32.gmra.mrb[72].mxu1 %vm629_vm0, %v9000_v7  ;;  %24833 = vst [vmem:[#allocation9_spill] sm:$0xff] %v22276_v0  ;;  %v14010_v20 = vpop.f32.mrb[217].mxu0 }
 0x7dc   :  { %15270 = vmatprep.mubr.msk.f32.mxu1 %vm16728_vm1, %v24686_v16  ;;  %v9003_v18 = vld [vmem:[#allocation2 + $0x1e6] sm:$0xff] }
 0x7de   :  { %v22280_v23 = vpop.f32.mrb[130].mxu1  ;;  %v22283_v55 = vpop.f32.mrb[218].mxu0 }
 0x7df   :  { %v15113_v15 = vpop.f32.mrb[131].mxu1  ;;  %15271 = vmatmul.mubr.msk.f32.gmra.mrb[74].mxu1 %vm629_vm0, %v9001_v32  ;;  %24834 = vst [vmem:[#allocation10_spill] sm:$0xff] %v22283_v55  ;;  %v14013_v57 = vpop.f32.mrb[219].mxu0 }
 0x7e0   :  { %15273 = vmatprep.mubr.msk.f32.mxu1 %vm16728_vm1, %v24686_v16 }
 0x7e2   :  { %v22287_v38 = vpop.f32.mrb[132].mxu1  ;;  %v22290_v36 = vpop.f32.mrb[220].mxu0 }
 0x7e3   :  { %v15116_v17 = vpop.f32.mrb[133].mxu1  ;;  %15274 = vmatmul.mubr.msk.f32.gmra.mrb[76].mxu1 %vm629_vm0, %v9002_v31  ;;  %24835 = vst [vmem:[#allocation11_spill] sm:$0xff] %v22290_v36  ;;  %v14016_v49 = vpop.f32.mrb[221].mxu0  ;;  %v9004_v31 = vld [vmem:[#allocation2 + $0x1ee] sm:$0xff] }
 0x7e4   :  { %15276 = vmatprep.mubr.msk.f32.mxu1 %vm16728_vm1, %v24686_v16 }
 0x7e6   :  { %v22294_v7 = vpop.f32.mrb[134].mxu1  ;;  %v22297_v32 = vpop.f32.mrb[222].mxu0 }
 0x7e7   :  { %v15119_v20 = vpop.f32.mrb[135].mxu1  ;;  %15277 = vmatmul.mubr.msk.f32.gmra.mrb[78].mxu1 %vm629_vm0, %v9003_v18  ;;  %24836 = vst [vmem:[#allocation12_spill] sm:$0xff] %v22297_v32  ;;  %v14019_v15 = vpop.f32.mrb[223].mxu0  ;;  %v9005_v18 = vld [vmem:[#allocation2 + $0x1f6] sm:$0xff] }
 0x7e8   :  { %15279 = vmatprep.mubr.msk.f32.mxu1 %vm16728_vm1, %v24686_v16 }
 0x7ea   :  { %v22301_v57 = vpop.f32.mrb[136].mxu1  ;;  %v22304_v36 = vpop.f32.mrb[224].mxu0 }
 0x7eb   :  { %v15122_v17 = vpop.f32.mrb[137].mxu1  ;;  %15280 = vmatmul.mubr.msk.f32.gmra.mrb[80].mxu1 %vm629_vm0, %v9004_v31  ;;  %24837 = vst [vmem:[#allocation13_spill] sm:$0xff] %v22304_v36  ;;  %v14022_v49 = vpop.f32.mrb[225].mxu0  ;;  %v9006_v31 = vld [vmem:[#allocation2 + $0x1fe] sm:$0xff] }
 0x7ec   :  { %15282 = vmatprep.mubr.msk.f32.mxu1 %vm16728_vm1, %v24686_v16 }
 0x7ee   :  { %v22308_v20 = vpop.f32.mrb[138].mxu1  ;;  %v22311_v55 = vpop.f32.mrb[226].mxu0 }
 0x7ef   :  { %v15125_v32 = vpop.f32.mrb[139].mxu1  ;;  %15283 = vmatmul.mubr.msk.f32.gmra.mrb[82].mxu1 %vm629_vm0, %v9005_v18  ;;  %24838 = vst [vmem:[#allocation14_spill] sm:$0xff] %v22311_v55  ;;  %v14025_v15 = vpop.f32.mrb[227].mxu0  ;;  %v9007_v18 = vld [vmem:[#allocation2 + $0x206] sm:$0xff] }
 0x7f0   :  { %15285 = vmatprep.mubr.msk.f32.mxu1 %vm16728_vm1, %v24686_v16 }
 0x7f2   :  { %v22315_v17 = vpop.f32.mrb[140].mxu1  ;;  %v22318_v0 = vpop.f32.mrb[228].mxu0 }
 0x7f3   :  { %v15128_v36 = vpop.f32.mrb[141].mxu1  ;;  %15286 = vmatmul.mubr.msk.f32.gmra.mrb[84].mxu1 %vm629_vm0, %v9006_v31  ;;  %24839 = vst [vmem:[#allocation15_spill] sm:$0xff] %v22318_v0  ;;  %v14028_v32 = vpop.f32.mrb[229].mxu0  ;;  %v9008_v31 = vld [vmem:[#allocation2 + $0x20e] sm:$0xff] }
 0x7f4   :  { %15288 = vmatprep.mubr.msk.f32.mxu1 %vm16728_vm1, %v24686_v16 }
 0x7f6   :  { %v22322_v49 = vpop.f32.mrb[142].mxu1  ;;  %v22325_v21 = vpop.f32.mrb[230].mxu0 }
 0x7f7   :  { %v15131_v55 = vpop.f32.mrb[143].mxu1  ;;  %15289 = vmatmul.mubr.msk.f32.gmra.mrb[86].mxu1 %vm629_vm0, %v9007_v18  ;;  %24840 = vst [vmem:[#allocation16_spill] sm:$0xff] %v22325_v21  ;;  %v14031_v36 = vpop.f32.mrb[231].mxu0  ;;  %v9009_v18 = vld [vmem:[#allocation2 + $0x216] sm:$0xff] }
 0x7f8   :  { %15291 = vmatprep.mubr.msk.f32.mxu1 %vm16728_vm1, %v24686_v16 }
 0x7fa   :  { %v22329_v15 = vpop.f32.mrb[144].mxu1  ;;  %v22332_v12 = vpop.f32.mrb[232].mxu0 }
 0x7fb   :  { %v15134_v0 = vpop.f32.mrb[145].mxu1  ;;  %15292 = vmatmul.mubr.msk.f32.gmra.mrb[88].mxu1 %vm629_vm0, %v9008_v31  ;;  %24841 = vst [vmem:[#allocation17_spill] sm:$0xff] %v22332_v12  ;;  %v14034_v55 = vpop.f32.mrb[233].mxu0  ;;  %v9010_v31 = vld [vmem:[#allocation2 + $0x21e] sm:$0xff] }
 0x7fc   :  { %15294 = vmatprep.mubr.msk.f32.mxu1 %vm16728_vm1, %v24686_v16 }
 0x7fe   :  { %v22336_v32 = vpop.f32.mrb[146].mxu1  ;;  %v22339_v43 = vpop.f32.mrb[234].mxu0 }
 0x7ff   :  { %v15137_v21 = vpop.f32.mrb[147].mxu1  ;;  %15295 = vmatmul.mubr.msk.f32.gmra.mrb[90].mxu1 %vm629_vm0, %v9009_v18  ;;  %24842 = vst [vmem:[#allocation18_spill] sm:$0xff] %v22339_v43  ;;  %v14037_v0 = vpop.f32.mrb[235].mxu0  ;;  %v9011_v18 = vld [vmem:[#allocation2 + $0x226] sm:$0xff] }
 0x800   :  { %15297 = vmatprep.mubr.msk.f32.mxu1 %vm16728_vm1, %v24686_v16 }
 0x802   :  { %v22343_v36 = vpop.f32.mrb[148].mxu1  ;;  %v22346_v42 = vpop.f32.mrb[236].mxu0 }
 0x803   :  { %v15140_v12 = vpop.f32.mrb[149].mxu1  ;;  %15298 = vmatmul.mubr.msk.f32.gmra.mrb[92].mxu1 %vm629_vm0, %v9010_v31  ;;  %24843 = vst [vmem:[#allocation21_spill] sm:$0xff] %v22346_v42  ;;  %v14040_v21 = vpop.f32.mrb[237].mxu0  ;;  %v9012_v31 = vld [vmem:[#allocation2 + $0x22e] sm:$0xff] }
 0x804   :  { %15300 = vmatprep.mubr.msk.f32.mxu1 %vm16728_vm1, %v24686_v16 }
 0x806   :  { %v22350_v55 = vpop.f32.mrb[150].mxu1  ;;  %v22353_v63 = vpop.f32.mrb[238].mxu0 }
 0x807   :  { %v15143_v43 = vpop.f32.mrb[151].mxu1  ;;  %15301 = vmatmul.mubr.msk.f32.gmra.mrb[94].mxu1 %vm629_vm0, %v9011_v18  ;;  %24844 = vst [vmem:[#allocation101_spill] sm:$0xff] %v22353_v63  ;;  %v14043_v12 = vpop.f32.mrb[239].mxu0  ;;  %v9013_v18 = vld [vmem:[#allocation2 + $0x236] sm:$0xff] }
 0x808   :  { %15303 = vmatprep.mubr.msk.f32.mxu1 %vm16728_vm1, %v24686_v16 }
 0x80a   :  { %v22357_v0 = vpop.f32.mrb[152].mxu1  ;;  %v22360_v48 = vpop.f32.mrb[240].mxu0 }
 0x80b   :  { %v15146_v42 = vpop.f32.mrb[153].mxu1  ;;  %15304 = vmatmul.mubr.msk.f32.gmra.mrb[96].mxu1 %vm629_vm0, %v9012_v31  ;;  %24845 = vst [vmem:[#allocation23_spill] sm:$0xff] %v22360_v48  ;;  %v14046_v43 = vpop.f32.mrb[241].mxu0  ;;  %v9014_v31 = vld [vmem:[#allocation2 + $0x23e] sm:$0xff] }
 0x80c   :  { %15306 = vmatprep.mubr.msk.f32.mxu1 %vm16728_vm1, %v24686_v16 }
 0x80e   :  { %v22364_v21 = vpop.f32.mrb[154].mxu1  ;;  %v22367_v39 = vpop.f32.mrb[242].mxu0 }
 0x80f   :  { %v15149_v63 = vpop.f32.mrb[155].mxu1  ;;  %15307 = vmatmul.mubr.msk.f32.gmra.mrb[98].mxu1 %vm629_vm0, %v9013_v18  ;;  %24846 = vst [vmem:[#allocation100_spill] sm:$0xff] %v22367_v39  ;;  %v14049_v42 = vpop.f32.mrb[243].mxu0  ;;  %v9015_v18 = vld [vmem:[#allocation2 + $0x246] sm:$0xff] }
 0x810   :  { %15309 = vmatprep.mubr.msk.f32.mxu1 %vm16728_vm1, %v24686_v16 }
 0x812   :  { %v22371_v12 = vpop.f32.mrb[156].mxu1  ;;  %v22374_v61 = vpop.f32.mrb[244].mxu0 }
 0x813   :  { %v15152_v48 = vpop.f32.mrb[157].mxu1  ;;  %15310 = vmatmul.mubr.msk.f32.gmra.mrb[100].mxu1 %vm629_vm0, %v9014_v31  ;;  %24847 = vst [vmem:[#allocation25_spill] sm:$0xff] %v22374_v61  ;;  %v14052_v63 = vpop.f32.mrb[245].mxu0  ;;  %v9016_v31 = vld [vmem:[#allocation2 + $0x24e] sm:$0xff] }
 0x814   :  { %15312 = vmatprep.mubr.msk.f32.mxu1 %vm16728_vm1, %v24686_v16 }
 0x816   :  { %v22378_v43 = vpop.f32.mrb[158].mxu1  ;;  %v22381_v25 = vpop.f32.mrb[246].mxu0 }
 0x817   :  { %v15155_v39 = vpop.f32.mrb[159].mxu1  ;;  %15313 = vmatmul.mubr.msk.f32.gmra.mrb[102].mxu1 %vm629_vm0, %v9015_v18  ;;  %24848 = vst [vmem:[#allocation103_spill] sm:$0xff] %v22381_v25  ;;  %v14055_v48 = vpop.f32.mrb[247].mxu0  ;;  %v9017_v25 = vld [vmem:[#allocation2 + $0x256] sm:$0xff] }
 0x818   :  { %15315 = vmatprep.mubr.msk.f32.mxu1 %vm16728_vm1, %v24686_v16 }
 0x81a   :  { %v22385_v42 = vpop.f32.mrb[160].mxu1  ;;  %v5810_v10 = vpop.f32.mrb[86].mxu0 }
 0x81b   :  { %v15158_v61 = vpop.f32.mrb[161].mxu1  ;;  %15316 = vmatmul.mubr.msk.f32.gmra.mrb[104].mxu1 %vm629_vm0, %v9016_v31  ;;  %v22391_v39 = vadd.f32 %v22273_v27, %v5810_v10  ;;  %v14074_v63 = vpop.f32.mrb[87].mxu0  ;;  %v9018_v10 = vld [vmem:[#allocation2 + $0x25e] sm:$0xff] }
 0x81c   :  { %15318 = vmatprep.mubr.msk.f32.mxu1 %vm16728_vm1, %v24686_v16 }
 0x81d   :  { %24849 = vst [vmem:[#allocation27_spill] sm:$0xff] %v22391_v39 }
 0x81e   :  { %v9431_v18 = vpop.f32.mrb[0].mxu1  ;;  %v5815_v53 = vpop.f32.mrb[88].mxu0 }
 0x81f   :  { %v22394_v14 = vadd.f32 %v9431_v18, %v21945_v45  ;;  %v15161_v48 = vpop.f32.mrb[1].mxu1  ;;  %15319 = vmatmul.mubr.msk.f32.gmra.mrb[106].mxu1 %vm629_vm0, %v9017_v25  ;;  %v22400_v61 = vadd.f32 %v22280_v23, %v5815_v53  ;;  %v14077_v31 = vpop.f32.mrb[89].mxu0  ;;  %v9019_v53 = vld [vmem:[#allocation2 + $0x266] sm:$0xff] }
 0x820   :  { %15321 = vmatprep.mubr.msk.f32.mxu1 %vm16728_vm1, %v24686_v16 }
 0x821   :  { %24850 = vst [vmem:[#allocation102_spill] sm:$0xff] %v22400_v61 }
 0x822   :  { %v9436_v11 = vpop.f32.mrb[2].mxu1  ;;  %v5820_v45 = vpop.f32.mrb[90].mxu0 }
 0x823   :  { %v15164_v27 = vpop.f32.mrb[3].mxu1  ;;  %15322 = vmatmul.mubr.msk.f32.gmra.mrb[108].mxu1 %vm629_vm0, %v9018_v10  ;;  %v22404_v63 = vadd.f32 %v9436_v11, %v21954_v30  ;;  %v22409_v25 = vadd.f32 %v22287_v38, %v5820_v45  ;;  %v14080_v18 = vpop.f32.mrb[91].mxu0 }
 0x824   :  { %15324 = vmatprep.mubr.msk.f32.mxu1 %vm16728_vm1, %v24686_v16  ;;  %v9915_v10 = vpop.permute.xlu0 %9914  ;;  %v9920_v38 = vpop.permute.xlu1 %9919  ;;  %v9020_v18 = vld [vmem:[#allocation2 + $0x26e] sm:$0xff] }
 0x825   :  { %24851 = vst [vmem:[#allocation29_spill] sm:$0xff] %v22409_v25  ;;  %v10318_v62 = vmul.f32 %v22400_v61, %v9920_v38 }
 0x826   :  { %v9441_v48 = vpop.f32.mrb[4].mxu1  ;;  %v5825_v27 = vpop.f32.mrb[92].mxu0 }
 0x827   :  { %v22412_v23 = vadd.f32 %v9441_v48, %v21963_v28  ;;  %v15167_v31 = vpop.f32.mrb[5].mxu1  ;;  %15325 = vmatmul.mubr.msk.f32.gmra.mrb[110].mxu1 %vm629_vm0, %v9019_v53  ;;  %v22418_v30 = vadd.f32 %v22294_v7, %v5825_v27  ;;  %v14083_v11 = vpop.f32.mrb[93].mxu0 }
 0x828   :  { %15327 = vmatprep.mubr.msk.f32.mxu1 %vm16728_vm1, %v24686_v16  ;;  %v9925_v7 = vpop.permute.xlu0 %9924  ;;  %v9021_v11 = vld [vmem:[#allocation2 + $0x276] sm:$0xff] }
 0x829   :  { %24852 = vst [vmem:[#allocation105_spill] sm:$0xff] %v22418_v30 }
 0x82a   :  { %v9446_v45 = vpop.f32.mrb[6].mxu1  ;;  %v5830_v48 = vpop.f32.mrb[94].mxu0 }
 0x82b   :  { %v15170_v54 = vpop.f32.mrb[7].mxu1  ;;  %15328 = vmatmul.mubr.msk.f32.gmra.mrb[112].mxu1 %vm629_vm0, %v9020_v18  ;;  %v22422_v28 = vadd.f32 %v9446_v45, %v21972_v33  ;;  %v22427_v53 = vadd.f32 %v22301_v57, %v5830_v48  ;;  %v14086_v31 = vpop.f32.mrb[95].mxu0 }
 0x82c   :  { %15330 = vmatprep.mubr.msk.f32.mxu1 %vm16728_vm1, %v24686_v16  ;;  %v9930_v18 = vpop.permute.xlu1 %9929  ;;  %v9022_v31 = vld [vmem:[#allocation2 + $0x27e] sm:$0xff]  ;;  %v9935_v1 = vpop.permute.xlu0 %9934 }
 0x82d   :  { %24853 = vst [vmem:[#allocation31_spill] sm:$0xff] %v22427_v53 }
 0x82e   :  { %v9451_v27 = vpop.f32.mrb[8].mxu1  ;;  %v5835_v33 = vpop.f32.mrb[96].mxu0 }
 0x82f   :  { %v22430_v59 = vadd.f32 %v9451_v27, %v21981_v22  ;;  %v15173_v54 = vpop.f32.mrb[9].mxu1  ;;  %15331 = vmatmul.mubr.msk.f32.gmra.mrb[114].mxu1 %vm629_vm0, %v9021_v11  ;;  %v22436_v45 = vadd.f32 %v22308_v20, %v5835_v33  ;;  %v14089_v57 = vpop.f32.mrb[97].mxu0 }
 0x830   :  { %15333 = vmatprep.mubr.msk.f32.mxu1 %vm16728_vm1, %v24686_v16  ;;  %v9940_v20 = vpop.permute.xlu1 %9939  ;;  %v9023_v57 = vld [vmem:[#allocation2 + $0x286] sm:$0xff] }
 0x831   :  { %v10322_v8 = vmul.f32 %v22436_v45, %v9940_v20 }
 0x832   :  { %v9456_v48 = vpop.f32.mrb[10].mxu1  ;;  %v5840_v27 = vpop.f32.mrb[98].mxu0 }
 0x833   :  { %v15176_v47 = vpop.f32.mrb[11].mxu1  ;;  %15334 = vmatmul.mubr.msk.f32.gmra.mrb[116].mxu1 %vm629_vm0, %v9022_v31  ;;  %v22440_v22 = vadd.f32 %v9456_v48, %v21990_v35  ;;  %v22445_v11 = vadd.f32 %v22315_v17, %v5840_v27  ;;  %v14092_v54 = vpop.f32.mrb[99].mxu0 }
 0x834   :  { %15336 = vmatprep.mubr.msk.f32.mxu1 %vm16728_vm1, %v24686_v16  ;;  %v9945_v17 = vpop.permute.xlu0 %9944  ;;  %v9024_v54 = vld [vmem:[#allocation2 + $0x28e] sm:$0xff] }
 0x835   :  { %24854 = vst [vmem:[#allocation104_spill] sm:$0xff] %v22445_v11  ;;  %v10323_v20 = vmul.f32 %v22445_v11, %v9945_v17 }
 0x836   :  { %v9461_v33 = vpop.f32.mrb[12].mxu1  ;;  %v5845_v31 = vpop.f32.mrb[100].mxu0 }
 0x837   :  { %v22448_v19 = vadd.f32 %v9461_v33, %v21999_v58  ;;  %v15179_v47 = vpop.f32.mrb[13].mxu1  ;;  %15337 = vmatmul.mubr.msk.f32.gmra.mrb[118].mxu1 %vm629_vm0, %v9023_v57  ;;  %v22454_v35 = vadd.f32 %v22322_v49, %v5845_v31  ;;  %v14095_v48 = vpop.f32.mrb[101].mxu0  ;;  %v10317_v33 = vmul.f32 %v22391_v39, %v9915_v10  ;;  %v10319_v57 = vmul.f32 %v22409_v25, %v9925_v7 }
 0x838   :  { %15339 = vmatprep.mubr.msk.f32.mxu1 %vm16728_vm1, %v24686_v16  ;;  %v9950_v58 = vpop.permute.xlu1 %9949  ;;  %v9025_v48 = vld [vmem:[#allocation2 + $0x296] sm:$0xff] }
 0x839   :  { %v10567_v60 = vmul.f32 %v22409_v25, %v10319_v57  ;;  %v10401_v46 = vsel %vm629_vm0, %v10319_v57, 0.0 }
 0x83a   :  { %v9466_v27 = vpop.f32.mrb[14].mxu1  ;;  %v5850_v2 = vpop.f32.mrb[102].mxu0 }
 0x83b   :  { %v15182_v5 = vpop.f32.mrb[15].mxu1  ;;  %15340 = vmatmul.mubr.msk.f32.gmra.mrb[120].mxu1 %vm629_vm0, %v9024_v54  ;;  %v22461_v47 = vadd.f32 %v9466_v27, %v22008_v3  ;;  %v22466_v49 = vadd.f32 %v22329_v15, %v5850_v2  ;;  %v14098_v31 = vpop.f32.mrb[103].mxu0  ;;  %v10566_v54 = vmul.f32 %v22400_v61, %v10318_v62  ;;  %v10565_v27 = vmul.f32 %v22391_v39, %v10317_v33  ;;  %v9026_v61 = vld [vmem:[#allocation2 + $0x29e] sm:$0xff] }
 0x83c   :  { %15342 = vmatprep.mubr.msk.f32.mxu1 %vm16728_vm1, %v24686_v16  ;;  %v10320_v5 = vmul.f32 %v22418_v30, %v9930_v18  ;;  %v9955_v3 = vpop.permute.xlu0 %9954  ;;  %v10399_v15 = vsel %vm629_vm0, %v10318_v62, 0.0  ;;  %v10321_v18 = vmul.f32 %v22427_v53, %v9935_v1  ;;  %v10398_v39 = vsel %vm629_vm0, %v10317_v33, 0.0 }
 0x83d   :  { %v10647_v25 = vsel %vm629_vm0, %v10566_v54, 0.0  ;;  %v10646_v1 = vsel %vm629_vm0, %v10565_v27, 0.0 }
 0x83e   :  { %v9471_v38 = vpop.f32.mrb[16].mxu1  ;;  %v5855_v2 = vpop.f32.mrb[104].mxu0  ;;  %v10403_v33 = vsel %vm629_vm0, %v10320_v5, 0.0  ;;  %v10569_v57 = vmul.f32 %v22427_v53, %v10321_v18  ;;  %v10648_v27 = vadd.f32 %v10647_v25, %v10646_v1 }
 0x83f   :  { %v22471_v10 = vadd.f32 %v9471_v38, %v22016_v40  ;;  %v15185_v7 = vpop.f32.mrb[17].mxu1  ;;  %15343 = vmatmul.mubr.msk.f32.gmra.mrb[122].mxu1 %vm629_vm0, %v9025_v48  ;;  %v22481_v31 = vadd.f32 %v22336_v32, %v5855_v2  ;;  %v14101_v40 = vpop.f32.mrb[105].mxu0  ;;  %v10568_v48 = vmul.f32 %v22418_v30, %v10320_v5  ;;  %v10400_v32 = vadd.f32 %v10399_v15, %v10398_v39 }
 0x840   :  { %15345 = vmatprep.mubr.msk.f32.mxu1 %vm16728_vm1, %v24686_v16  ;;  %v9960_v38 = vpop.permute.xlu1 %9959  ;;  %v10649_v2 = vsel %vm629_vm0, %v10567_v60, 0.0  ;;  %v9965_v39 = vpop.permute.xlu0 %9964  ;;  %v10324_v5 = vmul.f32 %v22454_v35, %v9950_v58  ;;  %v10653_v1 = vsel %vm629_vm0, %v10569_v57, 0.0 }
 0x841   :  { %24855 = vst [vmem:[#allocation33_spill] sm:$0xff] %v22471_v10  ;;  %v10402_v60 = vadd.f32 %v10401_v46, %v10400_v32  ;;  %v10325_v46 = vmul.f32 %v22466_v49, %v9955_v3  ;;  %v10571_v32 = vmul.f32 %v22445_v11, %v10323_v20 }
 0x842   :  { %v9476_v7 = vpop.f32.mrb[18].mxu1  ;;  %v5860_v30 = vpop.f32.mrb[106].mxu0  ;;  %v10572_v3 = vmul.f32 %v22454_v35, %v10324_v5 }
 0x843   :  { %v15188_v62 = vpop.f32.mrb[19].mxu1  ;;  %15346 = vmatmul.mubr.msk.f32.gmra.mrb[124].mxu1 %vm629_vm0, %v9026_v61  ;;  %v22492_v40 = vadd.f32 %v9476_v7, %v22024_v41  ;;  %v22500_v61 = vadd.f32 %v22343_v36, %v5860_v30  ;;  %v14104_v54 = vpop.f32.mrb[107].mxu0  ;;  %v10651_v41 = vsel %vm629_vm0, %v10568_v48, 0.0  ;;  %v9027_v7 = vld [vmem:[#allocation2 + $0x2a6] sm:$0xff]  ;;  %v10650_v30 = vadd.f32 %v10649_v2, %v10648_v27 }
 0x844   :  { %15348 = vmatprep.mubr.msk.f32.mxu1 %vm16728_vm1, %v24686_v16  ;;  %v10405_v62 = vsel %vm629_vm0, %v10321_v18, 0.0  ;;  %v10570_v16 = vmul.f32 %v22436_v45, %v10322_v8  ;;  %v9970_v36 = vpop.permute.xlu1 %9969  ;;  %v10404_v25 = vadd.f32 %v10403_v33, %v10402_v60  ;;  %v10407_v18 = vsel %vm629_vm0, %v10322_v8, 0.0  ;;  %v9975_v27 = vpop.permute.xlu0 %9974 }
 0x845   :  { %24856 = vst [vmem:[#allocation107_spill] sm:$0xff] %v22492_v40  ;;  %v10652_v54 = vadd.f32 %v10651_v41, %v10650_v30  ;;  %v10409_v2 = vsel %vm629_vm0, %v10323_v20, 0.0  ;;  %v10326_v33 = vmul.f32 %v22481_v31, %v9960_v38  ;;  %v10573_v11 = vmul.f32 %v22466_v49, %v10325_v46 }
 0x846   :  { %v9481_v15 = vpop.f32.mrb[20].mxu1  ;;  %v5865_v48 = vpop.f32.mrb[108].mxu0  ;;  %v10327_v20 = vmul.f32 %v22500_v61, %v9965_v39 }
 0x847   :  { %v22507_v53 = vadd.f32 %v9481_v15, %v22032_v44  ;;  %v15191_v17 = vpop.f32.mrb[21].mxu1  ;;  %15349 = vmatmul.mubr.msk.f32.gmra.mrb[126].mxu1 %vm629_vm0, %v9027_v7  ;;  %v22515_v58 = vadd.f32 %v22350_v55, %v5865_v48  ;;  %v14107_v44 = vpop.f32.mrb[109].mxu0  ;;  %v10406_v15 = vadd.f32 %v10405_v62, %v10404_v25  ;;  %v10655_v7 = vsel %vm629_vm0, %v10570_v16, 0.0 }
 0x848   :  { %v10654_v8 = vadd.f32 %v10653_v1, %v10652_v54  ;;  %v10657_v62 = vsel %vm629_vm0, %v10571_v32, 0.0  ;;  %v10411_v16 = vsel %vm629_vm0, %v10324_v5, 0.0  ;;  %v9980_v25 = vpop.permute.xlu1 %9979  ;;  %v10413_v54 = vsel %vm629_vm0, %v10325_v46, 0.0 }
 0x849   :  { %24857 = vst [vmem:[#allocation35_spill] sm:$0xff] %v22507_v53  ;;  %v10408_v60 = vadd.f32 %v10407_v18, %v10406_v15  ;;  %v10328_v18 = vmul.f32 %v22515_v58, %v9970_v36  ;;  %v10574_v32 = vmul.f32 %v22481_v31, %v10326_v33  ;;  %v10575_v36 = vmul.f32 %v22500_v61, %v10327_v20 }
 0x84a   :  { %v9486_v17 = vpop.f32.mrb[22].mxu1  ;;  %v5870_v41 = vpop.f32.mrb[110].mxu0  ;;  %v10656_v48 = vadd.f32 %v10655_v7, %v10654_v8  ;;  %v10415_v7 = vsel %vm629_vm0, %v10326_v33, 0.0 }
 0x84b   :  { %v15194_v57 = vpop.f32.mrb[23].mxu1  ;;  %v22523_v55 = vadd.f32 %v9486_v17, %v22040_v56  ;;  %v22529_v30 = vadd.f32 %v22357_v0, %v5870_v41  ;;  %v14110_v38 = vpop.f32.mrb[111].mxu0  ;;  %v10410_v1 = vadd.f32 %v10409_v2, %v10408_v60  ;;  %v10659_v56 = vsel %vm629_vm0, %v10572_v3, 0.0 }
 0x84c   :  { %v10658_v15 = vadd.f32 %v10657_v62, %v10656_v48  ;;  %v10661_v17 = vsel %vm629_vm0, %v10573_v11, 0.0  ;;  %v9985_v8 = vpop.permute.xlu0 %9984  ;;  %v10576_v41 = vmul.f32 %v22515_v58, %v10328_v18  ;;  %v10417_v11 = vsel %vm629_vm0, %v10327_v20, 0.0  ;;  %v9990_v48 = vpop.permute.xlu1 %9989 }
 0x84d   :  { %24858 = vst [vmem:[#allocation106_spill] sm:$0xff] %v22523_v55  ;;  %v10412_v0 = vadd.f32 %v10411_v16, %v10410_v1  ;;  %v10329_v2 = vmul.f32 %v22529_v30, %v9975_v27  ;;  %v10663_v16 = vsel %vm629_vm0, %v10574_v32, 0.0 }
 0x84e   :  { %v9491_v44 = vpop.f32.mrb[24].mxu1  ;;  %v5875_v57 = vpop.f32.mrb[112].mxu0  ;;  %v10660_v60 = vadd.f32 %v10659_v56, %v10658_v15  ;;  %v10665_v56 = vsel %vm629_vm0, %v10575_v36, 0.0 }
 0x84f   :  { %v22536_v5 = vadd.f32 %v9491_v44, %v22048_v24  ;;  %v15197_v39 = vpop.f32.mrb[25].mxu1  ;;  %v22543_v3 = vadd.f32 %v22364_v21, %v5875_v57  ;;  %v14113_v46 = vpop.f32.mrb[113].mxu0  ;;  %v10414_v24 = vadd.f32 %v10413_v54, %v10412_v0  ;;  %v10419_v54 = vsel %vm629_vm0, %v10328_v18, 0.0 }
 0x850   :  { %v10662_v1 = vadd.f32 %v10661_v17, %v10660_v60  ;;  %v10577_v39 = vmul.f32 %v22529_v30, %v10329_v2  ;;  %v10667_v0 = vsel %vm629_vm0, %v10576_v41, 0.0  ;;  %v10421_v57 = vsel %vm629_vm0, %v10329_v2, 0.0  ;;  %v9995_v46 = vpop.permute.xlu0 %9994 }
 0x851   :  { %24859 = vst [vmem:[#allocation37_spill] sm:$0xff] %v22536_v5  ;;  %v10330_v33 = vmul.f32 %v22543_v3, %v9980_v25  ;;  %v10416_v27 = vadd.f32 %v10415_v7, %v10414_v24 }
 0x852   :  { %v9496_v62 = vpop.f32.mrb[26].mxu1  ;;  %v5880_v44 = vpop.f32.mrb[114].mxu0  ;;  %v10664_v15 = vadd.f32 %v10663_v16, %v10662_v1 }
 0x853   :  { %v15200_v38 = vpop.f32.mrb[27].mxu1  ;;  %v22550_v21 = vadd.f32 %v9496_v62, %v22056_v6  ;;  %v22556_v32 = vadd.f32 %v22371_v12, %v5880_v44  ;;  %v14116_v20 = vpop.f32.mrb[115].mxu0  ;;  %v10418_v25 = vadd.f32 %v10417_v11, %v10416_v27  ;;  %v10578_v6 = vmul.f32 %v22543_v3, %v10330_v33 }
 0x854   :  { %v10666_v60 = vadd.f32 %v10665_v56, %v10664_v15  ;;  %v10669_v62 = vsel %vm629_vm0, %v10577_v39, 0.0  ;;  %v10423_v16 = vsel %vm629_vm0, %v10330_v33, 0.0  ;;  %v10000_v38 = vpop.permute.xlu1 %9999 }
 0x855   :  { %24860 = vst [vmem:[#allocation109_spill] sm:$0xff] %v22550_v21  ;;  %v10331_v7 = vmul.f32 %v22556_v32, %v9985_v8  ;;  %v10420_v12 = vadd.f32 %v10419_v54, %v10418_v25  ;;  %v10671_v27 = vsel %vm629_vm0, %v10578_v6, 0.0  ;;  %v10334_v39 = vmul.f32 %v22394_v14, %v10000_v38 }
 0x856   :  { %v9501_v17 = vpop.f32.mrb[28].mxu1  ;;  %v5885_v24 = vpop.f32.mrb[116].mxu0  ;;  %v10668_v8 = vadd.f32 %v10667_v0, %v10666_v60 }
 0x857   :  { %v22563_v36 = vadd.f32 %v9501_v17, %v22064_v50  ;;  %v15203_v18 = vpop.f32.mrb[29].mxu1  ;;  %v10579_v41 = vmul.f32 %v22556_v32, %v10331_v7  ;;  %v22569_v2 = vadd.f32 %v22378_v43, %v5885_v24  ;;  %v14119_v11 = vpop.f32.mrb[117].mxu0  ;;  %v10422_v1 = vadd.f32 %v10421_v57, %v10420_v12 }
 0x858   :  { %v10425_v44 = vsel %vm629_vm0, %v10331_v7, 0.0  ;;  %v10670_v33 = vadd.f32 %v10669_v62, %v10668_v8 }
 0x859   :  { %24861 = vst [vmem:[#allocation39_spill] sm:$0xff] %v22563_v36  ;;  %v10332_v56 = vmul.f32 %v22569_v2, %v9990_v48  ;;  %v10424_v20 = vadd.f32 %v10423_v16, %v10422_v1  ;;  %v10673_v25 = vsel %vm629_vm0, %v10579_v41, 0.0  ;;  %v10005_v48 = vpop.permute.xlu0 %10004  ;;  %v10010_v41 = vpop.permute.xlu1 %10009 }
 0x85a   :  { %v9506_v50 = vpop.f32.mrb[30].mxu1  ;;  %v5890_v43 = vpop.f32.mrb[118].mxu0  ;;  %v10672_v7 = vadd.f32 %v10671_v27, %v10670_v33  ;;  %v10335_v12 = vmul.f32 %v22404_v63, %v10005_v48  ;;  %v10336_v8 = vmul.f32 %v22412_v23, %v10010_v41 }
 0x85b   :  { %v15206_v54 = vpop.f32.mrb[31].mxu1  ;;  %v22576_v15 = vadd.f32 %v9506_v50, %v22072_v26  ;;  %v10427_v0 = vsel %vm629_vm0, %v10332_v56, 0.0  ;;  %v10580_v17 = vmul.f32 %v22569_v2, %v10332_v56  ;;  %v22582_v57 = vadd.f32 %v22385_v42, %v5890_v43  ;;  %v14122_v6 = vpop.f32.mrb[119].mxu0 }
 0x85c   :  { %v10426_v18 = vadd.f32 %v10425_v44, %v10424_v20  ;;  %v10674_v11 = vadd.f32 %v10673_v25, %v10672_v7  ;;  %v10582_v42 = vmul.f32 %v22394_v14, %v10334_v39  ;;  %v10433_v6 = vsel %vm629_vm0, %v10335_v12, 0.0 }
 0x85d   :  { %24862 = vst [vmem:[#allocation108_spill] sm:$0xff] %v22576_v15  ;;  %v10675_v26 = vsel %vm629_vm0, %v10580_v17, 0.0  ;;  %v10333_v24 = vmul.f32 %v22582_v57, %v9995_v46  ;;  %v10431_v46 = vsel %vm629_vm0, %v10334_v39, 0.0  ;;  %v10015_v43 = vpop.permute.xlu0 %10014  ;;  %v10584_v48 = vmul.f32 %v22412_v23, %v10336_v8  ;;  %v10020_v41 = vpop.permute.xlu1 %10019 }
 0x85e   :  { %v9511_v60 = vpop.f32.mrb[32].mxu1  ;;  %v10428_v38 = vadd.f32 %v10427_v0, %v10426_v18  ;;  %v10676_v27 = vadd.f32 %v10675_v26, %v10674_v11  ;;  %v10679_v17 = vsel %vm629_vm0, %v10582_v42, 0.0  ;;  %v10337_v7 = vmul.f32 %v22422_v28, %v10015_v43 }
 0x85f   :  { %v22588_v62 = vadd.f32 %v9511_v60, %v22080_v29  ;;  %v15209_v16 = vpop.f32.mrb[33].mxu1  ;;  %v10429_v1 = vsel %vm629_vm0, %v10333_v24, 0.0  ;;  %v10581_v50 = vmul.f32 %v22582_v57, %v10333_v24  ;;  %v10583_v29 = vmul.f32 %v22404_v63, %v10335_v12 }
 0x860   :  { %v10430_v44 = vadd.f32 %v10429_v1, %v10428_v38  ;;  %v10683_v12 = vsel %vm629_vm0, %v10584_v48, 0.0  ;;  %v10585_v42 = vmul.f32 %v22422_v28, %v10337_v7  ;;  %v10338_v1 = vmul.f32 %v22430_v59, %v10020_v41 }
 0x861   :  { %24863 = vst [vmem:[#allocation41_spill] sm:$0xff] %v22588_v62  ;;  %v10677_v54 = vsel %vm629_vm0, %v10581_v50, 0.0  ;;  %v10681_v26 = vsel %vm629_vm0, %v10583_v29, 0.0  ;;  %v10030_v43 = vpop.permute.xlu1 %10029 }
 0x862   :  { %v9516_v56 = vpop.f32.mrb[34].mxu1  ;;  %v10432_v25 = vadd.f32 %v10431_v46, %v10430_v44  ;;  %v10678_v0 = vadd.f32 %v10677_v54, %v10676_v27  ;;  %v10437_v44 = vsel %vm629_vm0, %v10337_v7, 0.0  ;;  %v10685_v29 = vsel %vm629_vm0, %v10585_v42, 0.0 }
 0x863   :  { %v22598_v33 = vadd.f32 %v9516_v56, %v22088_v34  ;;  %v15212_v20 = vpop.f32.mrb[35].mxu1  ;;  %v10435_v34 = vsel %vm629_vm0, %v10336_v8, 0.0  ;;  %v10586_v54 = vmul.f32 %v22430_v59, %v10338_v1 }
 0x864   :  { %v10434_v39 = vadd.f32 %v10433_v6, %v10432_v25  ;;  %v10680_v18 = vadd.f32 %v10679_v17, %v10678_v0  ;;  %v10439_v17 = vsel %vm629_vm0, %v10338_v1, 0.0 }
 0x865   :  { %24864 = vst [vmem:[#allocation111_spill] sm:$0xff] %v22598_v33  ;;  %v10687_v7 = vsel %vm629_vm0, %v10586_v54, 0.0 }
 0x866   :  { %v9521_v60 = vpop.f32.mrb[36].mxu1  ;;  %v10436_v11 = vadd.f32 %v10435_v34, %v10434_v39  ;;  %v10682_v38 = vadd.f32 %v10681_v26, %v10680_v18  ;;  %v10340_v18 = vmul.f32 %v22448_v19, %v10030_v43 }
 0x867   :  { %v22607_v24 = vadd.f32 %v9521_v60, %v22096_v37  ;;  %v15215_v16 = vpop.f32.mrb[37].mxu1  ;;  %v10025_v37 = vpop.permute.xlu0 %10024 }
 0x868   :  { %v10684_v50 = vadd.f32 %v10683_v12, %v10682_v38  ;;  %v10438_v46 = vadd.f32 %v10437_v44, %v10436_v11  ;;  %v10339_v20 = vmul.f32 %v22440_v22, %v10025_v37  ;;  %v10040_v38 = vpop.permute.xlu1 %10039  ;;  %v10588_v42 = vmul.f32 %v22448_v19, %v10340_v18 }
 0x869   :  { %24865 = vst [vmem:[#allocation43_spill] sm:$0xff] %v22607_v24  ;;  %v10443_v44 = vsel %vm629_vm0, %v10340_v18, 0.0 }
 0x86a   :  { %v9526_v27 = vpop.f32.mrb[38].mxu1  ;;  %v10686_v25 = vadd.f32 %v10685_v29, %v10684_v50  ;;  %v10587_v39 = vmul.f32 %v22440_v22, %v10339_v20  ;;  %v10441_v16 = vsel %vm629_vm0, %v10339_v20, 0.0  ;;  %v10691_v29 = vsel %vm629_vm0, %v10588_v42, 0.0 }
 0x86b   :  { %v22614_v56 = vadd.f32 %v9526_v27, %v22104_v9  ;;  %v15218_v8 = vpop.f32.mrb[39].mxu1  ;;  %v10440_v9 = vadd.f32 %v10439_v17, %v10438_v46  ;;  %v10035_v60 = vpop.permute.xlu0 %10034  ;;  %v10342_v20 = vmul.f32 %v22471_v10, %v10040_v38 }
 0x86c   :  { %v10688_v26 = vadd.f32 %v10687_v7, %v10686_v25  ;;  %v10689_v12 = vsel %vm629_vm0, %v10587_v39, 0.0  ;;  %v10341_v1 = vmul.f32 %v22461_v47, %v10035_v60  ;;  %v10050_v43 = vpop.permute.xlu1 %10049 }
 0x86d   :  { %24866 = vst [vmem:[#allocation110_spill] sm:$0xff] %v22614_v56  ;;  %v10590_v39 = vmul.f32 %v22471_v10, %v10342_v20 }
 0x86e   :  { %v9531_v0 = vpop.f32.mrb[40].mxu1  ;;  %v10690_v50 = vadd.f32 %v10689_v12, %v10688_v26  ;;  %v10589_v54 = vmul.f32 %v22461_v47, %v10341_v1  ;;  %v10445_v17 = vsel %vm629_vm0, %v10341_v1, 0.0 }
 0x86f   :  { %v22621_v6 = vadd.f32 %v9531_v0, %v22112_v51  ;;  %v15221_v48 = vpop.f32.mrb[41].mxu1  ;;  %v10442_v51 = vadd.f32 %v10441_v16, %v10440_v9  ;;  %v10045_v46 = vpop.permute.xlu0 %10044  ;;  %v10447_v16 = vsel %vm629_vm0, %v10342_v20, 0.0  ;;  %v10695_v42 = vsel %vm629_vm0, %v10590_v39, 0.0  ;;  %v24875_v39 = vld [vmem:[#allocation24_spill] sm:$0xff] }
 0x870   :  { %v10692_v25 = vadd.f32 %v10691_v29, %v10690_v50  ;;  %v10693_v7 = vsel %vm629_vm0, %v10589_v54, 0.0  ;;  %v10343_v18 = vmul.f32 %v22492_v40, %v10045_v46  ;;  %v10060_v12 = vpop.permute.xlu1 %10059  ;;  %v10344_v50 = vmul.f32 %v22507_v53, %v10050_v43  ;;  %v24873_v46 = vld [vmem:[#allocation22_spill] sm:$0xff] }
 0x871   :  { %24867 = vst [vmem:[#allocation45_spill] sm:$0xff] %v22621_v6 }
 0x872   :  { %v9536_v34 = vpop.f32.mrb[42].mxu1  ;;  %v10694_v26 = vadd.f32 %v10693_v7, %v10692_v25  ;;  %v10591_v1 = vmul.f32 %v22492_v40, %v10343_v18  ;;  %v10451_v43 = vsel %vm629_vm0, %v10344_v50, 0.0 }
 0x873   :  { %v22628_v41 = vadd.f32 %v9536_v34, %v22120_v52  ;;  %v15224_v11 = vpop.f32.mrb[43].mxu1  ;;  %v10444_v52 = vadd.f32 %v10443_v44, %v10442_v51  ;;  %v10055_v60 = vpop.permute.xlu0 %10054 }
 0x874   :  { %v24871_v11 = vld [vmem:[#allocation20_spill] sm:$0xff]  ;;  %v10697_v25 = vsel %vm629_vm0, %v10591_v1, 0.0 }
 0x875   :  { %24868 = vst [vmem:[#allocation114_spill] sm:$0xff] %v22628_v41 }
 0x876   :  { %v9541_v27 = vpop.f32.mrb[44].mxu1 }
 0x877   :  { %v22635_v8 = vadd.f32 %v9541_v27, %v22128_v4  ;;  %v15227_v37 = vpop.f32.mrb[45].mxu1  ;;  %v10446_v4 = vadd.f32 %v10445_v17, %v10444_v52  ;;  %v10696_v27 = vadd.f32 %v10695_v42, %v10694_v26  ;;  %v10065_v54 = vpop.permute.xlu0 %10064  ;;  %v10345_v17 = vmul.f32 %v22523_v55, %v10055_v60 }
 0x878   :  { %v10449_v37 = vsel %vm629_vm0, %v10343_v18, 0.0 }
 0x879   :  { %24869 = vst [vmem:[#allocation47_spill] sm:$0xff] %v22635_v8  ;;  %v10453_v60 = vsel %vm629_vm0, %v10345_v17, 0.0 }
 0x87a   :  { %v9546_v0 = vpop.f32.mrb[46].mxu1 }
 0x87b   :  { %v22642_v48 = vadd.f32 %v9546_v0, %v22136_v13  ;;  %v15230_v9 = vpop.f32.mrb[47].mxu1  ;;  %v10448_v13 = vadd.f32 %v10447_v16, %v10446_v4  ;;  %v10592_v0 = vmul.f32 %v22507_v53, %v10344_v50  ;;  %v10698_v4 = vadd.f32 %v10697_v25, %v10696_v27  ;;  %v24877_v27 = vld [vmem:[#allocation26_spill] sm:$0xff] }
 0x87c   :  { %v10070_v9 = vpop.permute.xlu1 %10069  ;;  %v10347_v25 = vmul.f32 %v22550_v21, %v10065_v54 }
 0x87d   :  { %24870 = vst [vmem:[#allocation113_spill] sm:$0xff] %v22642_v48  ;;  %v10450_v20 = vadd.f32 %v10449_v37, %v10448_v13  ;;  %v10699_v16 = vsel %vm629_vm0, %v10592_v0, 0.0  ;;  %v10075_v13 = vpop.permute.xlu0 %10074 }
 0x87e   :  { %v9551_v34 = vpop.f32.mrb[48].mxu1  ;;  %v10700_v42 = vadd.f32 %v10699_v16, %v10698_v4  ;;  %v24879_v4 = vld [vmem:[#allocation28_spill] sm:$0xff]  ;;  %v10457_v54 = vsel %vm629_vm0, %v10347_v25, 0.0 }
 0x87f   :  { %v22649_v38 = vadd.f32 %v9551_v34, %v24871_v11  ;;  %v15233_v51 = vpop.f32.mrb[49].mxu1  ;;  %v10452_v34 = vadd.f32 %v10451_v43, %v10450_v20  ;;  %v10593_v11 = vmul.f32 %v22523_v55, %v10345_v17 }
 0x880   :  { %v10346_v51 = vmul.f32 %v22536_v5, %v10060_v12  ;;  %v10080_v37 = vpop.permute.xlu1 %10079 }
 0x881   :  { %24872 = vst [vmem:[#allocation49_spill] sm:$0xff] %v22649_v38 }
 0x882   :  { %v9556_v44 = vpop.f32.mrb[50].mxu1  ;;  %v10594_v20 = vmul.f32 %v22536_v5, %v10346_v51  ;;  %v10455_v12 = vsel %vm629_vm0, %v10346_v51, 0.0 }
 0x883   :  { %v22656_v52 = vadd.f32 %v9556_v44, %v24873_v46  ;;  %v15236_v29 = vpop.f32.mrb[51].mxu1  ;;  %v10454_v46 = vadd.f32 %v10453_v60, %v10452_v34  ;;  %v10595_v34 = vmul.f32 %v22550_v21, %v10347_v25 }
 0x884   :  { %v10701_v29 = vsel %vm629_vm0, %v10593_v11, 0.0  ;;  %v10703_v16 = vsel %vm629_vm0, %v10594_v20, 0.0  ;;  %v10348_v11 = vmul.f32 %v22563_v36, %v10070_v9  ;;  %v10349_v20 = vmul.f32 %v22576_v15, %v10075_v13 }
 0x885   :  { %24874 = vst [vmem:[#allocation116_spill] sm:$0xff] %v22656_v52  ;;  %v10702_v0 = vadd.f32 %v10701_v29, %v10700_v42  ;;  %v24881_v42 = vld [vmem:[#allocation30_spill] sm:$0xff] }
 0x886   :  { %v9561_v7 = vpop.f32.mrb[52].mxu1  ;;  %v10459_v9 = vsel %vm629_vm0, %v10348_v11, 0.0  ;;  %v10461_v13 = vsel %vm629_vm0, %v10349_v20, 0.0 }
 0x887   :  { %v22663_v26 = vadd.f32 %v9561_v7, %v24875_v39  ;;  %v15239_v18 = vpop.f32.mrb[53].mxu1  ;;  %v10085_v39 = vpop.permute.xlu0 %10084  ;;  %v10704_v60 = vadd.f32 %v10703_v16, %v10702_v0  ;;  %v24883_v0 = vld [vmem:[#allocation32_spill] sm:$0xff] }
 0x888   :  { %v10456_v18 = vadd.f32 %v10455_v12, %v10454_v46  ;;  %v10596_v46 = vmul.f32 %v22563_v36, %v10348_v11 }
 0x889   :  { %24876 = vst [vmem:[#allocation51_spill] sm:$0xff] %v22663_v26 }
 0x88a   :  { %v9566_v1 = vpop.f32.mrb[54].mxu1  ;;  %v10458_v29 = vadd.f32 %v10457_v54, %v10456_v18  ;;  %v10597_v18 = vmul.f32 %v22576_v15, %v10349_v20 }
 0x88b   :  { %v22670_v44 = vadd.f32 %v9566_v1, %v24877_v27  ;;  %v15242_v50 = vpop.f32.mrb[55].mxu1  ;;  %v10090_v1 = vpop.permute.xlu1 %10089 }
 0x88c   :  { %v10095_v12 = vpop.permute.xlu0 %10094 }
 0x88d   :  { %24878 = vst [vmem:[#allocation71_spill] sm:$0xff] %v22670_v44 }
 0x88e   :  { %v9571_v7 = vpop.f32.mrb[56].mxu1 }
 0x88f   :  { %v22677_v43 = vadd.f32 %v9571_v7, %v24879_v4  ;;  %v15245_v17 = vpop.f32.mrb[57].mxu1  ;;  %v10705_v7 = vsel %vm629_vm0, %v10595_v34, 0.0  ;;  %v10100_v21 = vpop.permute.xlu1 %10099  ;;  %v10350_v34 = vmul.f32 %v22588_v62, %v10080_v37 }
 0x890   :  { %v10706_v4 = vadd.f32 %v10705_v7, %v10704_v60  ;;  %v24885_v60 = vld [vmem:[#allocation34_spill] sm:$0xff]  ;;  %v10105_v36 = vpop.permute.xlu0 %10104 }
 0x891   :  { %24880 = vst [vmem:[#allocation53_spill] sm:$0xff] %v22677_v43  ;;  %v10463_v37 = vsel %vm629_vm0, %v10350_v34, 0.0 }
 0x892   :  { %v9576_v27 = vpop.f32.mrb[58].mxu1 }
 0x893   :  { %v22684_v50 = vadd.f32 %v9576_v27, %v24881_v42  ;;  %v15248_v51 = vpop.f32.mrb[59].mxu1  ;;  %v10460_v27 = vadd.f32 %v10459_v9, %v10458_v29  ;;  %v10707_v42 = vsel %vm629_vm0, %v10596_v46, 0.0  ;;  %v10598_v29 = vmul.f32 %v22588_v62, %v10350_v34  ;;  %v10110_v9 = vpop.permute.xlu1 %10109 }
 0x894   :  { %v10708_v54 = vadd.f32 %v10707_v42, %v10706_v4  ;;  %v10351_v46 = vmul.f32 %v22598_v33, %v10085_v39  ;;  %v24887_v4 = vld [vmem:[#allocation36_spill] sm:$0xff] }
 0x895   :  { %24882 = vst [vmem:[#allocation70_spill] sm:$0xff] %v22684_v50 }
 0x896   :  { %v9581_v17 = vpop.f32.mrb[60].mxu1  ;;  %v10465_v39 = vsel %vm629_vm0, %v10351_v46, 0.0 }
 0x897   :  { %v22691_v16 = vadd.f32 %v9581_v17, %v24883_v0  ;;  %v15251_v25 = vpop.f32.mrb[61].mxu1  ;;  %v10462_v17 = vadd.f32 %v10461_v13, %v10460_v27  ;;  %v10709_v0 = vsel %vm629_vm0, %v10597_v18, 0.0  ;;  %v10599_v27 = vmul.f32 %v22598_v33, %v10351_v46  ;;  %v10115_v13 = vpop.permute.xlu0 %10114 }
 0x898   :  { %v10710_v25 = vadd.f32 %v10709_v0, %v10708_v54  ;;  %v10352_v18 = vmul.f32 %v22607_v24, %v10090_v1  ;;  %v24889_v54 = vld [vmem:[#allocation38_spill] sm:$0xff]  ;;  %v10120_v5 = vpop.permute.xlu1 %10119 }
 0x899   :  { %24884 = vst [vmem:[#allocation55_spill] sm:$0xff] %v22691_v16 }
 0x89a   :  { %v9586_v51 = vpop.f32.mrb[62].mxu1  ;;  %v10467_v1 = vsel %vm629_vm0, %v10352_v18, 0.0 }
 0x89b   :  { %v22698_v7 = vadd.f32 %v9586_v51, %v24885_v60  ;;  %v15254_v11 = vpop.f32.mrb[63].mxu1  ;;  %v10464_v51 = vadd.f32 %v10463_v37, %v10462_v17  ;;  %v10711_v60 = vsel %vm629_vm0, %v10598_v29, 0.0  ;;  %v10600_v17 = vmul.f32 %v22607_v24, %v10352_v18  ;;  %v10125_v33 = vpop.permute.xlu0 %10124 }
 0x89c   :  { %v10712_v11 = vadd.f32 %v10711_v60, %v10710_v25  ;;  %v10353_v29 = vmul.f32 %v22614_v56, %v10095_v12  ;;  %v24891_v25 = vld [vmem:[#allocation40_spill] sm:$0xff] }
 0x89d   :  { %24886 = vst [vmem:[#allocation75_spill] sm:$0xff] %v22698_v7 }
 0x89e   :  { %v9591_v15 = vpop.f32.mrb[64].mxu1  ;;  %v10469_v12 = vsel %vm629_vm0, %v10353_v29, 0.0 }
 0x89f   :  { %v22705_v42 = vadd.f32 %v9591_v15, %v24887_v4  ;;  %v15257_v20 = vpop.f32.mrb[65].mxu1  ;;  %v10466_v15 = vadd.f32 %v10465_v39, %v10464_v51  ;;  %v10713_v4 = vsel %vm629_vm0, %v10599_v27, 0.0  ;;  %v10601_v51 = vmul.f32 %v22614_v56, %v10353_v29  ;;  %v10130_v39 = vpop.permute.xlu1 %10129 }
 0x8a0   :  { %v10714_v37 = vadd.f32 %v10713_v4, %v10712_v11  ;;  %v10354_v27 = vmul.f32 %v22621_v6, %v10100_v21  ;;  %v24893_v11 = vld [vmem:[#allocation42_spill] sm:$0xff] }
 0x8a1   :  { %24888 = vst [vmem:[#allocation56_spill] sm:$0xff] %v22705_v42 }
 0x8a2   :  { %v9596_v62 = vpop.f32.mrb[66].mxu1  ;;  %v10471_v21 = vsel %vm629_vm0, %v10354_v27, 0.0 }
 0x8a3   :  { %v22712_v0 = vadd.f32 %v9596_v62, %v24889_v54  ;;  %v15260_v34 = vpop.f32.mrb[67].mxu1  ;;  %v10468_v62 = vadd.f32 %v10467_v1, %v10466_v15  ;;  %v10715_v54 = vsel %vm629_vm0, %v10600_v17, 0.0  ;;  %v10602_v15 = vmul.f32 %v22621_v6, %v10354_v27  ;;  %v10135_v1 = vpop.permute.xlu0 %10134 }
 0x8a4   :  { %v10716_v34 = vadd.f32 %v10715_v54, %v10714_v37  ;;  %v10355_v17 = vmul.f32 %v22628_v41, %v10105_v36  ;;  %v24895_v37 = vld [vmem:[#allocation44_spill] sm:$0xff]  ;;  %v22735_v55 = vpop.permute.xlu1 %10139 }
 0x8a5   :  { %24890 = vst [vmem:[#allocation74_spill] sm:$0xff] %v22712_v0 }
 0x8a6   :  { %v9601_v20 = vpop.f32.mrb[68].mxu1 }
 0x8a7   :  { %v22719_v60 = vadd.f32 %v9601_v20, %v24891_v25  ;;  %v15263_v46 = vpop.f32.mrb[69].mxu1  ;;  %v10470_v20 = vadd.f32 %v10469_v12, %v10468_v62  ;;  %v10717_v25 = vsel %vm629_vm0, %v10601_v51, 0.0  ;;  %v10719_v62 = vsel %vm629_vm0, %v10602_v15, 0.0 }
 0x8a8   :  { %v10718_v46 = vadd.f32 %v10717_v25, %v10716_v34  ;;  %v10603_v51 = vmul.f32 %v22628_v41, %v10355_v17  ;;  %v10356_v12 = vmul.f32 %v22635_v8, %v10110_v9  ;;  %v10473_v34 = vsel %vm629_vm0, %v10355_v17, 0.0  ;;  %v24899_v17 = vld [vmem:[#allocation48_spill] sm:$0xff] }
 0x8a9   :  { %24892 = vst [vmem:[#allocation57_spill] sm:$0xff] %v22719_v60  ;;  %v10357_v15 = vmul.f32 %v22642_v48, %v10115_v13 }
 0x8aa   :  { %v9606_v24 = vpop.f32.mrb[70].mxu1 }
 0x8ab   :  { %v22726_v4 = vadd.f32 %v9606_v24, %v24893_v11  ;;  %v15266_v18 = vpop.f32.mrb[71].mxu1  ;;  %v10472_v24 = vadd.f32 %v10471_v21, %v10470_v20  ;;  %v10720_v11 = vadd.f32 %v10719_v62, %v10718_v46  ;;  %v10604_v20 = vmul.f32 %v22635_v8, %v10356_v12  ;;  %v22749_v21 = vpop.permute.xlu1 %10149 }
 0x8ac   :  { %v24897_v18 = vld [vmem:[#allocation46_spill] sm:$0xff]  ;;  %v10475_v62 = vsel %vm629_vm0, %v10356_v12, 0.0 }
 0x8ad   :  { %24894 = vst [vmem:[#allocation77_spill] sm:$0xff] %v22726_v4 }
 0x8ae   :  { %v9611_v56 = vpop.f32.mrb[72].mxu1 }
 0x8af   :  { %v22733_v54 = vadd.f32 %v9611_v56, %v24895_v37  ;;  %v15269_v29 = vpop.f32.mrb[73].mxu1  ;;  %v22744_v56 = vpop.permute.xlu0 %10144  ;;  %v10474_v37 = vadd.f32 %v10473_v34, %v10472_v24  ;;  %v10605_v24 = vmul.f32 %v22642_v48, %v10357_v15 }
 0x8b0   :  { %v10721_v29 = vsel %vm629_vm0, %v10603_v51, 0.0  ;;  %v10358_v51 = vmul.f32 %v22649_v38, %v10120_v5 }
 0x8b1   :  { %24896 = vst [vmem:[#allocation58_spill] sm:$0xff] %v22733_v54  ;;  %v10722_v9 = vadd.f32 %v10721_v29, %v10720_v11  ;;  %v10477_v11 = vsel %vm629_vm0, %v10357_v15, 0.0  ;;  %v24900_v29 = vld [vmem:[#allocation50_spill] sm:$0xff] }
 0x8b2   :  { %v9616_v36 = vpop.f32.mrb[74].mxu1 }
 0x8b3   :  { %v22742_v25 = vadd.f32 %v9616_v36, %v24897_v18  ;;  %v15272_v27 = vpop.f32.mrb[75].mxu1  ;;  %v10476_v18 = vadd.f32 %v10475_v62, %v10474_v37  ;;  %v22758_v34 = vpop.permute.xlu0 %10154  ;;  %v10725_v37 = vsel %vm629_vm0, %v10605_v24, 0.0  ;;  %v10359_v62 = vmul.f32 %v22656_v52, %v10125_v33 }
 0x8b4   :  { %v10723_v27 = vsel %vm629_vm0, %v10604_v20, 0.0  ;;  %v10606_v20 = vmul.f32 %v22649_v38, %v10358_v51  ;;  %v10360_v24 = vmul.f32 %v22663_v26, %v10130_v39 }
 0x8b5   :  { %24898 = vst [vmem:[#allocation76_spill] sm:$0xff] %v22742_v25  ;;  %v10724_v13 = vadd.f32 %v10723_v27, %v10722_v9  ;;  %v10479_v9 = vsel %vm629_vm0, %v10358_v51, 0.0  ;;  %v24901_v27 = vld [vmem:[#allocation52_spill] sm:$0xff]  ;;  %v24902_v51 = vld [vmem:[#allocation54_spill] sm:$0xff] }
 0x8b6   :  { %v9621_v46 = vpop.f32.mrb[76].mxu1 }
 0x8b7   :  { %v22753_v41 = vadd.f32 %v9621_v46, %v24899_v17  ;;  %v15275_v36 = vpop.f32.mrb[77].mxu1  ;;  %v22764_v46 = vpop.permute.xlu1 %10159  ;;  %v10478_v17 = vadd.f32 %v10477_v11, %v10476_v18  ;;  %v10726_v5 = vadd.f32 %v10725_v37, %v10724_v13  ;;  %v10607_v18 = vmul.f32 %v22656_v52, %v10359_v62 }
 0x8b8   :  { %v10481_v37 = vsel %vm629_vm0, %v10359_v62, 0.0 }
 0x8ba   :  { %v9626_v8 = vpop.f32.mrb[78].mxu1 }
 0x8bb   :  { %v22762_v6 = vadd.f32 %v9626_v8, %v24900_v29  ;;  %v15278_v12 = vpop.f32.mrb[79].mxu1  ;;  %v22773_v8 = vpop.permute.xlu0 %10164  ;;  %v10480_v29 = vadd.f32 %v10479_v9, %v10478_v17  ;;  %v10608_v17 = vmul.f32 %v22663_v26, %v10360_v24 }
 0x8bc   :  { %v10727_v12 = vsel %vm629_vm0, %v10606_v20, 0.0  ;;  %v22778_v11 = vpop.permute.xlu1 %10169  ;;  %v10361_v20 = vmul.f32 %v22670_v44, %v10135_v1  ;;  %v10362_v1 = vmul.f32 %v22677_v43, %v22735_v55 }
 0x8bd   :  { %v10728_v33 = vadd.f32 %v10727_v12, %v10726_v5  ;;  %v10483_v5 = vsel %vm629_vm0, %v10360_v24, 0.0  ;;  %v24903_v12 = vld [vmem:[#allocation3_spill] sm:$0xff] }
 0x8be   :  { %v9631_v36 = vpop.f32.mrb[80].mxu1 }
 0x8bf   :  { %v22771_v48 = vadd.f32 %v9631_v36, %v24901_v27  ;;  %v15281_v15 = vpop.f32.mrb[81].mxu1  ;;  %v10482_v27 = vadd.f32 %v10481_v37, %v10480_v29  ;;  %v22787_v9 = vpop.permute.xlu0 %10174  ;;  %v10731_v29 = vsel %vm629_vm0, %v10608_v17, 0.0  ;;  %v10363_v17 = vmul.f32 %v22684_v50, %v22744_v56 }
 0x8c0   :  { %v10729_v15 = vsel %vm629_vm0, %v10607_v18, 0.0  ;;  %v10609_v18 = vmul.f32 %v22670_v44, %v10361_v20 }
 0x8c1   :  { %v10730_v39 = vadd.f32 %v10729_v15, %v10728_v33  ;;  %v10485_v33 = vsel %vm629_vm0, %v10361_v20, 0.0  ;;  %v24904_v15 = vld [vmem:[#allocation5_spill] sm:$0xff]  ;;  %v24906_v20 = vld [vmem:[#allocation4_spill] sm:$0xff] }
 0x8c2   :  { %v9636_v13 = vpop.f32.mrb[82].mxu1  ;;  %v10733_v26 = vsel %vm629_vm0, %v10609_v18, 0.0  ;;  %v10611_v18 = vmul.f32 %v22684_v50, %v10363_v17 }
 0x8c3   :  { %v22782_v38 = vadd.f32 %v9636_v13, %v24902_v51  ;;  %v15284_v36 = vpop.f32.mrb[83].mxu1  ;;  %v22793_v13 = vpop.permute.xlu1 %10179  ;;  %v10484_v51 = vadd.f32 %v10483_v5, %v10482_v27  ;;  %v10732_v37 = vadd.f32 %v10731_v29, %v10730_v39  ;;  %v10610_v27 = vmul.f32 %v22677_v43, %v10362_v1 }
 0x8c4   :  { %v10487_v29 = vsel %vm629_vm0, %v10362_v1, 0.0 }
 0x8c5   :  { %v10734_v55 = vadd.f32 %v10733_v26, %v10732_v37  ;;  %v10489_v26 = vsel %vm629_vm0, %v10363_v17, 0.0  ;;  %v24907_v37 = vld [vmem:[#allocation6_spill] sm:$0xff] }
 0x8c6   :  { %v9641_v52 = vpop.f32.mrb[84].mxu1 }
 0x8c7   :  { %v22791_v53 = vadd.f32 %v9641_v52, %v24903_v12  ;;  %v15287_v62 = vpop.f32.mrb[85].mxu1  ;;  %v10185_v12 = vpop.permute.xlu0 %10184 }
 0x8c8   :  { %v10486_v62 = vadd.f32 %v10485_v33, %v10484_v51  ;;  %v22807_v5 = vpop.permute.xlu1 %10189  ;;  %v10735_v51 = vsel %vm629_vm0, %v10610_v27, 0.0  ;;  %v10364_v33 = vmul.f32 %v22691_v16, %v22749_v21  ;;  %v10737_v27 = vsel %vm629_vm0, %v10611_v18, 0.0 }
 0x8c9   :  { %v10736_v56 = vadd.f32 %v10735_v51, %v10734_v55  ;;  %v10365_v21 = vmul.f32 %v22698_v7, %v22758_v34  ;;  %v24908_v51 = vld [vmem:[#allocation7_spill] sm:$0xff] }
 0x8ca   :  { %v9646_v36 = vpop.f32.mrb[86].mxu1  ;;  %v10491_v55 = vsel %vm629_vm0, %v10364_v33, 0.0 }
 0x8cb   :  { %v22801_v24 = vadd.f32 %v9646_v36, %v24904_v15  ;;  %v15290_v52 = vpop.f32.mrb[87].mxu1  ;;  %v10488_v15 = vadd.f32 %v10487_v29, %v10486_v62  ;;  %v10612_v29 = vmul.f32 %v22691_v16, %v10364_v33  ;;  %v10613_v18 = vmul.f32 %v22698_v7, %v10365_v21 }
 0x8cc   :  { %v22817_v52 = vpop.permute.xlu0 %10194  ;;  %v10493_v33 = vsel %vm629_vm0, %v10365_v21, 0.0 }
 0x8cd   :  { %24905 = vst [vmem:[#allocation59_spill] sm:$0xff] %v22801_v24  ;;  %v10490_v62 = vadd.f32 %v10489_v26, %v10488_v15  ;;  %v10739_v15 = vsel %vm629_vm0, %v10612_v29, 0.0  ;;  %v10366_v26 = vmul.f32 %v22705_v42, %v22764_v46  ;;  %v10741_v29 = vsel %vm629_vm0, %v10613_v18, 0.0 }
 0x8ce   :  { %v9651_v39 = vpop.f32.mrb[88].mxu1  ;;  %v10368_v46 = vmul.f32 %v22719_v60, %v22778_v11 }
 0x8cf   :  { %v22811_v44 = vadd.f32 %v9651_v39, %v24906_v20  ;;  %v15293_v36 = vpop.f32.mrb[89].mxu1  ;;  %v22823_v20 = vpop.permute.xlu1 %10199  ;;  %v10495_v21 = vsel %vm629_vm0, %v10366_v26, 0.0 }
 0x8d0   :  { %v10738_v36 = vadd.f32 %v10737_v27, %v10736_v56  ;;  %v24909_v27 = vld [vmem:[#allocation8_spill] sm:$0xff] }
 0x8d2   :  { %v9656_v43 = vpop.f32.mrb[90].mxu1  ;;  %v10740_v34 = vadd.f32 %v10739_v15, %v10738_v36 }
 0x8d3   :  { %v22821_v1 = vadd.f32 %v9656_v43, %v24907_v37  ;;  %v15296_v39 = vpop.f32.mrb[91].mxu1  ;;  %v22833_v37 = vpop.permute.xlu0 %10204 }
 0x8d4   :  { %v10492_v39 = vadd.f32 %v10491_v55, %v10490_v62  ;;  %v22839_v16 = vpop.permute.xlu1 %10209  ;;  %v10742_v36 = vadd.f32 %v10741_v29, %v10740_v34  ;;  %v10616_v34 = vmul.f32 %v22719_v60, %v10368_v46 }
 0x8d6   :  { %v9661_v50 = vpop.f32.mrb[92].mxu1  ;;  %v10494_v55 = vadd.f32 %v10493_v33, %v10492_v39  ;;  %v10747_v60 = vsel %vm629_vm0, %v10616_v34, 0.0 }
 0x8d7   :  { %v22831_v17 = vadd.f32 %v9661_v50, %v24908_v51  ;;  %v15299_v43 = vpop.f32.mrb[93].mxu1  ;;  %v10367_v50 = vmul.f32 %v22712_v0, %v22773_v8  ;;  %v22851_v7 = vpop.permute.xlu0 %10214 }
 0x8d8   :  { %v10614_v43 = vmul.f32 %v22705_v42, %v10366_v26  ;;  %v22860_v33 = vpop.permute.xlu1 %10219  ;;  %v10370_v26 = vmul.f32 %v22733_v54, %v22793_v13 }
 0x8d9   :  { %v10615_v8 = vmul.f32 %v22712_v0, %v10367_v50  ;;  %v10497_v42 = vsel %vm629_vm0, %v10367_v50, 0.0  ;;  %v10371_v0 = vmul.f32 %v22742_v25, %v10185_v12  ;;  %v10372_v12 = vmul.f32 %v22753_v41, %v22807_v5 }
 0x8da   :  { %v9666_v56 = vpop.f32.mrb[94].mxu1  ;;  %v10743_v11 = vsel %vm629_vm0, %v10614_v43, 0.0 }
 0x8db   :  { %v22845_v51 = vadd.f32 %v9666_v56, %v24909_v27  ;;  %v15302_v62 = vpop.f32.mrb[95].mxu1  ;;  %v10369_v56 = vmul.f32 %v22726_v4, %v22787_v9  ;;  %v24911_v27 = vld [vmem:[#allocation9_spill] sm:$0xff]  ;;  %v10744_v29 = vadd.f32 %v10743_v11, %v10742_v36  ;;  %v10225_v50 = vpop.permute.xlu0 %10224  ;;  %v10618_v36 = vmul.f32 %v22733_v54, %v10370_v26 }
 0x8dc   :  { %v10496_v62 = vadd.f32 %v10495_v21, %v10494_v55  ;;  %v24912_v55 = vld [vmem:[#allocation10_spill] sm:$0xff] }
 0x8dd   :  { %24910 = vst [vmem:[#allocation79_spill] sm:$0xff] %v22845_v51  ;;  %v10501_v13 = vsel %vm629_vm0, %v10369_v56, 0.0  ;;  %v10751_v10 = vsel %vm629_vm0, %v10618_v36, 0.0  ;;  %v24914_v36 = vld [vmem:[#allocation12_spill] sm:$0xff] }
 0x8de   :  { %v9671_v15 = vpop.f32.mrb[96].mxu1  ;;  %v10498_v40 = vadd.f32 %v10497_v42, %v10496_v62  ;;  %v10503_v42 = vsel %vm629_vm0, %v10370_v26, 0.0  ;;  %v10373_v62 = vmul.f32 %v22762_v6, %v22817_v52 }
 0x8df   :  { %v22858_v39 = vadd.f32 %v9671_v15, %v24911_v27  ;;  %v15305_v18 = vpop.f32.mrb[97].mxu1  ;;  %v10745_v15 = vsel %vm629_vm0, %v10615_v8, 0.0  ;;  %v10499_v27 = vsel %vm629_vm0, %v10368_v46, 0.0  ;;  %v22879_v8 = vpop.permute.xlu1 %10229 }
 0x8e0   :  { %v10617_v18 = vmul.f32 %v22726_v4, %v10369_v56  ;;  %v10746_v46 = vadd.f32 %v10745_v15, %v10744_v29  ;;  %v10500_v11 = vadd.f32 %v10499_v27, %v10498_v40  ;;  %v10619_v4 = vmul.f32 %v22742_v25, %v10371_v0  ;;  %v24913_v56 = vld [vmem:[#allocation11_spill] sm:$0xff]  ;;  %v10235_v27 = vpop.permute.xlu0 %10234 }
 0x8e1   :  { %v10505_v40 = vsel %vm629_vm0, %v10371_v0, 0.0  ;;  %v10620_v29 = vmul.f32 %v22753_v41, %v10372_v12  ;;  %v10374_v15 = vmul.f32 %v22771_v48, %v22823_v20 }
 0x8e2   :  { %v9676_v9 = vpop.f32.mrb[98].mxu1  ;;  %v10748_v54 = vadd.f32 %v10747_v60, %v10746_v46  ;;  %v10502_v5 = vadd.f32 %v10501_v13, %v10500_v11  ;;  %v10753_v52 = vsel %vm629_vm0, %v10619_v4, 0.0  ;;  %v10621_v60 = vmul.f32 %v22762_v6, %v10373_v62 }
 0x8e3   :  { %v22872_v21 = vadd.f32 %v9676_v9, %v24912_v55  ;;  %v15308_v43 = vpop.f32.mrb[99].mxu1  ;;  %v10749_v55 = vsel %vm629_vm0, %v10617_v18, 0.0  ;;  %v10375_v13 = vmul.f32 %v22782_v38, %v22833_v37  ;;  %v10240_v11 = vpop.permute.xlu1 %10239  ;;  %v10622_v4 = vmul.f32 %v22771_v48, %v10374_v15 }
 0x8e4   :  { %v10750_v26 = vadd.f32 %v10749_v55, %v10748_v54  ;;  %v10504_v18 = vadd.f32 %v10503_v42, %v10502_v5  ;;  %v10755_v54 = vsel %vm629_vm0, %v10620_v29, 0.0  ;;  %v10509_v55 = vsel %vm629_vm0, %v10373_v62, 0.0  ;;  %v24915_v29 = vld [vmem:[#allocation13_spill] sm:$0xff] }
 0x8e5   :  { %v10377_v37 = vmul.f32 %v22801_v24, %v22851_v7  ;;  %v10757_v5 = vsel %vm629_vm0, %v10621_v60, 0.0 }
 0x8e6   :  { %v9681_v9 = vpop.f32.mrb[100].mxu1  ;;  %v10506_v20 = vadd.f32 %v10505_v40, %v10504_v18  ;;  %v10623_v40 = vmul.f32 %v22782_v38, %v10375_v13  ;;  %v10245_v18 = vpop.permute.xlu0 %10244 }
 0x8e7   :  { %v22887_v34 = vadd.f32 %v9681_v9, %v24913_v56  ;;  %v15311_v43 = vpop.f32.mrb[101].mxu1  ;;  %v10507_v9 = vsel %vm629_vm0, %v10372_v12, 0.0  ;;  %v10752_v56 = vadd.f32 %v10751_v10, %v10750_v26  ;;  %v10376_v12 = vmul.f32 %v22791_v53, %v22839_v16  ;;  %v10250_v60 = vpop.permute.xlu1 %10249 }
 0x8e8   :  { %v10508_v43 = vadd.f32 %v10507_v9, %v10506_v20  ;;  %v10511_v10 = vsel %vm629_vm0, %v10374_v15, 0.0  ;;  %v10759_v16 = vsel %vm629_vm0, %v10622_v4, 0.0  ;;  %v10378_v9 = vmul.f32 %v22811_v44, %v22860_v33  ;;  %v24916_v4 = vld [vmem:[#allocation14_spill] sm:$0xff] }
 0x8e9   :  { %v10754_v42 = vadd.f32 %v10753_v52, %v10752_v56  ;;  %v10513_v52 = vsel %vm629_vm0, %v10375_v13, 0.0  ;;  %v10624_v7 = vmul.f32 %v22791_v53, %v10376_v12  ;;  %v10625_v20 = vmul.f32 %v22801_v24, %v10377_v37 }
 0x8ea   :  { %v9686_v25 = vpop.f32.mrb[102].mxu1 }
 0x8eb   :  { %v22900_v0 = vadd.f32 %v9686_v25, %v24914_v36  ;;  %v15314_v46 = vpop.f32.mrb[103].mxu1  ;;  %v10756_v36 = vadd.f32 %v10755_v54, %v10754_v42  ;;  %v10515_v54 = vsel %vm629_vm0, %v10376_v12, 0.0  ;;  %v10763_v33 = vsel %vm629_vm0, %v10624_v7, 0.0  ;;  %v24918_v7 = vld [vmem:[#allocation15_spill] sm:$0xff] }
 0x8ec   :  { %v10510_v46 = vadd.f32 %v10509_v55, %v10508_v43  ;;  %v10379_v55 = vmul.f32 %v22821_v1, %v10225_v50  ;;  %v10765_v50 = vsel %vm629_vm0, %v10625_v20, 0.0 }
 0x8ed   :  { %v10758_v15 = vadd.f32 %v10757_v5, %v10756_v36  ;;  %v10517_v5 = vsel %vm629_vm0, %v10377_v37, 0.0  ;;  %v10380_v36 = vmul.f32 %v22831_v17, %v22879_v8 }
 0x8ee   :  { %v9691_v25 = vpop.f32.mrb[104].mxu1  ;;  %v10512_v56 = vadd.f32 %v10511_v10, %v10510_v46  ;;  %v10626_v10 = vmul.f32 %v22811_v44, %v10378_v9 }
 0x8ef   :  { %v22913_v26 = vadd.f32 %v9691_v25, %v24915_v29  ;;  %v15317_v62 = vpop.f32.mrb[105].mxu1  ;;  %v10761_v29 = vsel %vm629_vm0, %v10623_v40, 0.0  ;;  %v10760_v43 = vadd.f32 %v10759_v16, %v10758_v15  ;;  %v10255_v40 = vpop.permute.xlu0 %10254  ;;  %v10627_v16 = vmul.f32 %v22821_v1, %v10379_v55 }
 0x8f0   :  { %v10514_v62 = vadd.f32 %v10513_v52, %v10512_v56  ;;  %v10381_v52 = vmul.f32 %v22845_v51, %v10235_v27  ;;  %v10260_v56 = vpop.permute.xlu1 %10259  ;;  %v10767_v8 = vsel %vm629_vm0, %v10626_v10, 0.0  ;;  %v10628_v20 = vmul.f32 %v22831_v17, %v10380_v36 }
 0x8f1   :  { %v10762_v46 = vadd.f32 %v10761_v29, %v10760_v43  ;;  %v10521_v29 = vsel %vm629_vm0, %v10379_v55, 0.0 }
 0x8f2   :  { %v9696_v25 = vpop.f32.mrb[106].mxu1  ;;  %v10516_v12 = vadd.f32 %v10515_v54, %v10514_v62  ;;  %v10382_v54 = vmul.f32 %v22858_v39, %v10240_v11  ;;  %v10383_v62 = vmul.f32 %v22872_v21, %v10245_v18  ;;  %v10771_v11 = vsel %vm629_vm0, %v10628_v20, 0.0 }
 0x8f3   :  { %v22925_v42 = vadd.f32 %v9696_v25, %v24916_v4  ;;  %v15320_v13 = vpop.f32.mrb[107].mxu1  ;;  %v10519_v25 = vsel %vm629_vm0, %v10378_v9, 0.0  ;;  %v10764_v4 = vadd.f32 %v10763_v33, %v10762_v46  ;;  %v10629_v33 = vmul.f32 %v22845_v51, %v10381_v52  ;;  %v10265_v55 = vpop.permute.xlu0 %10264 }
 0x8f4   :  { %v10518_v13 = vadd.f32 %v10517_v5, %v10516_v12  ;;  %v24919_v5 = vld [vmem:[#allocation16_spill] sm:$0xff]  ;;  %v10630_v18 = vmul.f32 %v22858_v39, %v10382_v54 }
 0x8f5   :  { %24917 = vst [vmem:[#allocation60_spill] sm:$0xff] %v22925_v42  ;;  %v10766_v9 = vadd.f32 %v10765_v50, %v10764_v4  ;;  %v10525_v50 = vsel %vm629_vm0, %v10381_v52, 0.0 }
 0x8f6   :  { %v9701_v24 = vpop.f32.mrb[108].mxu1  ;;  %v10520_v43 = vadd.f32 %v10519_v25, %v10518_v13  ;;  %v10384_v25 = vmul.f32 %v22887_v34, %v10250_v60  ;;  %v10631_v13 = vmul.f32 %v22872_v21, %v10383_v62  ;;  %v10775_v60 = vsel %vm629_vm0, %v10630_v18, 0.0 }
 0x8f7   :  { %v22937_v15 = vadd.f32 %v9701_v24, %v24918_v7  ;;  %v15323_v37 = vpop.f32.mrb[109].mxu1  ;;  %v10769_v24 = vsel %vm629_vm0, %v10627_v16, 0.0  ;;  %v10523_v7 = vsel %vm629_vm0, %v10380_v36, 0.0  ;;  %v10768_v12 = vadd.f32 %v10767_v8, %v10766_v9  ;;  %v10270_v16 = vpop.permute.xlu1 %10269 }
 0x8f8   :  { %v10522_v37 = vadd.f32 %v10521_v29, %v10520_v43  ;;  %v10385_v8 = vmul.f32 %v22900_v0, %v10255_v40  ;;  %v24920_v29 = vld [vmem:[#allocation17_spill] sm:$0xff] }
 0x8f9   :  { %v10770_v4 = vadd.f32 %v10769_v24, %v10768_v12  ;;  %v10529_v24 = vsel %vm629_vm0, %v10383_v62, 0.0  ;;  %v10275_v12 = vpop.permute.xlu0 %10274 }
 0x8fa   :  { %v9706_v27 = vpop.f32.mrb[110].mxu1  ;;  %v10524_v36 = vadd.f32 %v10523_v7, %v10522_v37  ;;  %v10632_v7 = vmul.f32 %v22887_v34, %v10384_v25 }
 0x8fb   :  { %v22948_v46 = vadd.f32 %v9706_v27, %v24919_v5  ;;  %v15326_v10 = vpop.f32.mrb[111].mxu1  ;;  %v10773_v27 = vsel %vm629_vm0, %v10629_v33, 0.0  ;;  %v10527_v5 = vsel %vm629_vm0, %v10382_v54, 0.0  ;;  %v10772_v9 = vadd.f32 %v10771_v11, %v10770_v4  ;;  %v10280_v4 = vpop.permute.xlu1 %10279 }
 0x8fc   :  { %v10526_v43 = vadd.f32 %v10525_v50, %v10524_v36  ;;  %v10386_v10 = vmul.f32 %v22913_v26, %v10260_v56  ;;  %v10777_v54 = vsel %vm629_vm0, %v10631_v13, 0.0  ;;  %v10387_v11 = vmul.f32 %v22925_v42, %v10265_v55  ;;  %v24921_v50 = vld [vmem:[#allocation18_spill] sm:$0xff] }
 0x8fd   :  { %v10774_v33 = vadd.f32 %v10773_v27, %v10772_v9  ;;  %v10779_v56 = vsel %vm629_vm0, %v10632_v7, 0.0  ;;  %v10533_v27 = vsel %vm629_vm0, %v10385_v8, 0.0 }
 0x8fe   :  { %v9711_v51 = vpop.f32.mrb[112].mxu1  ;;  %v10528_v37 = vadd.f32 %v10527_v5, %v10526_v43  ;;  %v10634_v13 = vmul.f32 %v22913_v26, %v10386_v10  ;;  %v10388_v5 = vmul.f32 %v22937_v15, %v10270_v16  ;;  %v10389_v43 = vmul.f32 %v22948_v46, %v10275_v12 }
 0x8ff   :  { %v22959_v20 = vadd.f32 %v9711_v51, %v24920_v29  ;;  %v15329_v52 = vpop.f32.mrb[113].mxu1  ;;  %v10531_v51 = vsel %vm629_vm0, %v10384_v25, 0.0  ;;  %v10633_v29 = vmul.f32 %v22900_v0, %v10385_v8  ;;  %v10776_v36 = vadd.f32 %v10775_v60, %v10774_v33  ;;  %v10285_v8 = vpop.permute.xlu0 %10284 }
 0x900   :  { %v10530_v52 = vadd.f32 %v10529_v24, %v10528_v37  ;;  %v10635_v60 = vmul.f32 %v22925_v42, %v10387_v11  ;;  %v24922_v24 = vld [vmem:[#allocation21_spill] sm:$0xff]  ;;  %v10783_v16 = vsel %vm629_vm0, %v10634_v13, 0.0  ;;  %v10636_v12 = vmul.f32 %v22937_v15, %v10388_v5 }
 0x901   :  { %v10778_v25 = vadd.f32 %v10777_v54, %v10776_v36  ;;  %v10537_v54 = vsel %vm629_vm0, %v10387_v11, 0.0 }
 0x902   :  { %v9716_v40 = vpop.f32.mrb[114].mxu1  ;;  %v10532_v9 = vadd.f32 %v10531_v51, %v10530_v52  ;;  %v10390_v51 = vmul.f32 %v22959_v20, %v10280_v4  ;;  %v10637_v52 = vmul.f32 %v22948_v46, %v10389_v43  ;;  %v10787_v4 = vsel %vm629_vm0, %v10636_v12, 0.0 }
 0x903   :  { %v22970_v18 = vadd.f32 %v9716_v40, %v24921_v50  ;;  %v15332_v62 = vpop.f32.mrb[115].mxu1  ;;  %v10781_v40 = vsel %vm629_vm0, %v10633_v29, 0.0  ;;  %v10535_v50 = vsel %vm629_vm0, %v10386_v10, 0.0  ;;  %v10780_v37 = vadd.f32 %v10779_v56, %v10778_v25  ;;  %v10290_v29 = vpop.permute.xlu1 %10289 }
 0x904   :  { %v10534_v62 = vadd.f32 %v10533_v27, %v10532_v9  ;;  %v24923_v27 = vld [vmem:[#allocation101_spill] sm:$0xff] }
 0x905   :  { %v10782_v36 = vadd.f32 %v10781_v40, %v10780_v37  ;;  %v10391_v56 = vmul.f32 %v22970_v18, %v10285_v8  ;;  %v10541_v40 = vsel %vm629_vm0, %v10389_v43, 0.0  ;;  %v10295_v37 = vpop.permute.xlu0 %10294 }
 0x906   :  { %v9721_v55 = vpop.f32.mrb[116].mxu1  ;;  %v10536_v10 = vadd.f32 %v10535_v50, %v10534_v62  ;;  %v10638_v50 = vmul.f32 %v22959_v20, %v10390_v51 }
 0x907   :  { %v22981_v33 = vadd.f32 %v9721_v55, %v24922_v24  ;;  %v15335_v7 = vpop.f32.mrb[117].mxu1  ;;  %v10785_v55 = vsel %vm629_vm0, %v10635_v60, 0.0  ;;  %v10539_v24 = vsel %vm629_vm0, %v10388_v5, 0.0  ;;  %v10784_v25 = vadd.f32 %v10783_v16, %v10782_v36  ;;  %v10300_v36 = vpop.permute.xlu1 %10299 }
 0x908   :  { %v10538_v9 = vadd.f32 %v10537_v54, %v10536_v10  ;;  %v10789_v5 = vsel %vm629_vm0, %v10637_v52, 0.0  ;;  %v24924_v54 = vld [vmem:[#allocation23_spill] sm:$0xff] }
 0x909   :  { %v10392_v7 = vmul.f32 %v22981_v33, %v10290_v29  ;;  %v10786_v60 = vadd.f32 %v10785_v55, %v10784_v25  ;;  %v10791_v29 = vsel %vm629_vm0, %v10638_v50, 0.0  ;;  %v10545_v55 = vsel %vm629_vm0, %v10391_v56, 0.0  ;;  %v10305_v50 = vpop.permute.xlu0 %10304 }
 0x90a   :  { %v9726_v42 = vpop.f32.mrb[118].mxu1  ;;  %v10540_v62 = vadd.f32 %v10539_v24, %v10538_v9 }
 0x90b   :  { %v22992_v13 = vadd.f32 %v9726_v42, %v24923_v27  ;;  %v15338_v11 = vpop.f32.mrb[119].mxu1  ;;  %v10543_v42 = vsel %vm629_vm0, %v10390_v51, 0.0  ;;  %v10639_v27 = vmul.f32 %v22970_v18, %v10391_v56  ;;  %v10788_v10 = vadd.f32 %v10787_v4, %v10786_v60 }
 0x90c   :  { %v10542_v11 = vadd.f32 %v10541_v40, %v10540_v62  ;;  %v10640_v52 = vmul.f32 %v22981_v33, %v10392_v7 }
 0x90d   :  { %v10393_v16 = vmul.f32 %v22992_v13, %v10295_v37  ;;  %v10790_v51 = vadd.f32 %v10789_v5, %v10788_v10  ;;  %v10793_v37 = vsel %vm629_vm0, %v10639_v27, 0.0 }
 0x90e   :  { %v9731_v8 = vpop.f32.mrb[120].mxu1  ;;  %v10544_v25 = vadd.f32 %v10543_v42, %v10542_v11  ;;  %v10795_v62 = vsel %vm629_vm0, %v10640_v52, 0.0  ;;  %v10310_v52 = vpop.permute.xlu1 %10309 }
 0x90f   :  { %v23003_v12 = vadd.f32 %v9731_v8, %v24924_v54  ;;  %v15341_v43 = vpop.f32.mrb[121].mxu1  ;;  %v10547_v8 = vsel %vm629_vm0, %v10392_v7, 0.0  ;;  %v10641_v54 = vmul.f32 %v22992_v13, %v10393_v16  ;;  %v10792_v60 = vadd.f32 %v10791_v29, %v10790_v51 }
 0x910   :  { %v24925_v43 = vld [vmem:[#allocation100_spill] sm:$0xff]  ;;  %v10546_v56 = vadd.f32 %v10545_v55, %v10544_v25 }
 0x911   :  { %v10394_v24 = vmul.f32 %v23003_v12, %v10300_v36  ;;  %v10549_v36 = vsel %vm629_vm0, %v10393_v16, 0.0  ;;  %v10794_v27 = vadd.f32 %v10793_v37, %v10792_v60  ;;  %v10797_v11 = vsel %vm629_vm0, %v10641_v54, 0.0 }
 0x912   :  { %v9736_v9 = vpop.f32.mrb[122].mxu1  ;;  %v10548_v10 = vadd.f32 %v10547_v8, %v10546_v56 }
 0x913   :  { %v23013_v4 = vadd.f32 %v9736_v9, %v24925_v43  ;;  %v15344_v40 = vpop.f32.mrb[123].mxu1  ;;  %v10642_v5 = vmul.f32 %v23003_v12, %v10394_v24  ;;  %v10551_v9 = vsel %vm629_vm0, %v10394_v24, 0.0  ;;  %v10796_v51 = vadd.f32 %v10795_v62, %v10794_v27 }
 0x914   :  { %v24927_v40 = vld [vmem:[#allocation25_spill] sm:$0xff]  ;;  %v10550_v16 = vadd.f32 %v10549_v36, %v10548_v10  ;;  %v10315_v36 = vpop.permute.xlu0 %10314 }
 0x915   :  { %24926 = vst [vmem:[#allocation61_spill] sm:$0xff] %v23013_v4  ;;  %v10395_v42 = vmul.f32 %v23013_v4, %v10305_v50  ;;  %v10799_v25 = vsel %vm629_vm0, %v10642_v5, 0.0  ;;  %v10798_v8 = vadd.f32 %v10797_v11, %v10796_v51 }
 0x916   :  { %v9741_v7 = vpop.f32.mrb[124].mxu1  ;;  %v10552_v60 = vadd.f32 %v10551_v9, %v10550_v16 }
 0x917   :  { %v10643_v43 = vmul.f32 %v23013_v4, %v10395_v42  ;;  %v23023_v29 = vadd.f32 %v9741_v7, %v24927_v40  ;;  %v15347_v55 = vpop.f32.mrb[125].mxu1  ;;  %v10553_v50 = vsel %vm629_vm0, %v10395_v42, 0.0  ;;  %v24929_v40 = vld [vmem:[#allocation103_spill] sm:$0xff]  ;;  %v10800_v27 = vadd.f32 %v10799_v25, %v10798_v8 }
 0x918   :  { %v10554_v5 = vadd.f32 %v10553_v50, %v10552_v60 }
 0x919   :  { %24928 = vst [vmem:[#allocation81_spill] sm:$0xff] %v23023_v29  ;;  %v10396_v37 = vmul.f32 %v23023_v29, %v10310_v52  ;;  %v10801_v24 = vsel %vm629_vm0, %v10643_v43, 0.0 }
 0x91a   :  { %v9746_v54 = vpop.f32.mrb[126].mxu1  ;;  %v10802_v11 = vadd.f32 %v10801_v24, %v10800_v27 }
 0x91b   :  { %v10555_v56 = vsel %vm629_vm0, %v10396_v37, 0.0  ;;  %v10644_v7 = vmul.f32 %v23023_v29, %v10396_v37  ;;  %v23032_v55 = vadd.f32 %v9746_v54, %v24929_v40  ;;  %v15350_v62 = vpop.f32.mrb[127].mxu1 }
 0x91c   :  { %v10556_v9 = vadd.f32 %v10555_v56, %v10554_v5 }
 0x91d   :  { %v10803_v42 = vsel %vm629_vm0, %v10644_v7, 0.0  ;;  %v10397_v10 = vmul.f32 %v23032_v55, %v10315_v36 }
 0x91e   :  { %v10804_v51 = vadd.f32 %v10803_v42, %v10802_v11 }
 0x91f   :  { %v10557_v52 = vsel %vm629_vm0, %v10397_v10, 0.0  ;;  %v10645_v43 = vmul.f32 %v23032_v55, %v10397_v10 }
 0x920   :  { %v10558_v16 = vadd.f32 %v10557_v52, %v10556_v9  ;;  %v10820_v52 = vld [vmem:[%s24120_s5] sm:$0x1] }
 0x921   :  { %v10805_v37 = vsel %vm629_vm0, %v10645_v43, 0.0 }
 0x922   :  { %v10559_v54 = vrot.slane %v10558_v16, 4  ;;  %v10806_v40 = vadd.f32 %v10805_v37, %v10804_v51  ;;  %v23045_v51 = vld [vmem:[%s24121_s6] sm:$0x1]  ;;  %v24930_v37 = vld [vmem:[#allocation124_spill] sm:$0xff] }
 0x924   :  { %v10560_v62 = vadd.f32 %v10559_v54, %v10558_v16  ;;  %v10807_v29 = vrot.slane %v10806_v40, 4 }
 0x926   :  { %v10561_v25 = vrot.slane %v10560_v62, 2  ;;  %v10808_v50 = vadd.f32 %v10807_v29, %v10806_v40  ;;  %v24931_v40 = vld [vmem:[#allocation27_spill] sm:$0xff] }
 0x928   :  { %v10562_v8 = vadd.f32 %v10561_v25, %v10560_v62  ;;  %v10809_v60 = vrot.slane %v10808_v50, 2  ;;  %v24932_v25 = vld [vmem:[#allocation102_spill] sm:$0xff] }
 0x92a   :  { %v10563_v7 = vrot.slane %v10562_v8, 1  ;;  %v10810_v36 = vadd.f32 %v10809_v60, %v10808_v50 }
 0x92c   :  { %v10564_v24 = vadd.f32 %v10563_v7, %v10562_v8  ;;  %v10811_v56 = vrot.slane %v10810_v36, 1  ;;  %v24933_v8 = vld [vmem:[#allocation29_spill] sm:$0xff] }
 0x92d   :  { %v24934_v7 = vld [vmem:[#allocation105_spill] sm:$0xff] }
 0x92e   :  { %v10812_v27 = vadd.f32 %v10811_v56, %v10810_v36  ;;  %v10813_v5 = vmul.f32 0.001953125, %v10564_v24  ;;  %v24935_v24 = vld [vmem:[#allocation31_spill] sm:$0xff] }
 0x930   :  { %v10814_v4 = vmul.f32 0.001953125, %v10812_v27  ;;  %v10815_v10 = vmul.f32 %v10813_v5, %v10813_v5 }
 0x932   :  { %v10816_v42 = vsub.f32 %v10814_v4, %v10815_v10  ;;  %v24950_v4 = vld [vmem:[#allocation41_spill] sm:$0xff] }
 0x934   :  { %v10817_v11 = vmax.f32 %v10816_v42, 0.0 }
 0x936   :  { %v10818_v9 = vadd.f32 0.001, %v10817_v11 }
 0x938   :  { %16722 = vrsqrt.f32 %v10818_v9 }
 0x942   :  { %v16723_v43 = vpop.eup %16722 }
 0x943   :  { %v10821_v29 = vmul.f32 %v16723_v43, %v10820_v52  ;;  %v24937_v43 = vld [vmem:[#allocation33_spill] sm:$0xff] }
 0x945   :  { %v23047_v16 = vmul.f32 %v10821_v29, %v10813_v5  ;;  %v23050_v54 = vrot.slane %v10821_v29, %v24930_v37  ;;  %v24936_v5 = vld [vmem:[#allocation104_spill] sm:$0xff]  ;;  %v24938_v29 = vld [vmem:[#allocation107_spill] sm:$0xff] }
 0x947   :  { %v23056_v62 = vmul.f32 %v24931_v40, %v23050_v54  ;;  %v23060_v50 = vmul.f32 %v24932_v25, %v23050_v54  ;;  %v23064_v60 = vmul.f32 %v24933_v8, %v23050_v54  ;;  %v23068_v36 = vmul.f32 %v24934_v7, %v23050_v54  ;;  %v24939_v40 = vld [vmem:[#allocation35_spill] sm:$0xff]  ;;  %v24940_v25 = vld [vmem:[#allocation106_spill] sm:$0xff]  ;;  %v24942_v8 = vld [vmem:[#allocation37_spill] sm:$0xff] }
 0x948   :  { %v23072_v56 = vmul.f32 %v24935_v24, %v23050_v54  ;;  %v23076_v27 = vmul.f32 %v22436_v45, %v23050_v54  ;;  %v23080_v10 = vmul.f32 %v24936_v5, %v23050_v54  ;;  %v23084_v42 = vmul.f32 %v22454_v35, %v23050_v54  ;;  %v24944_v7 = vld [vmem:[#allocation109_spill] sm:$0xff]  ;;  %v24946_v5 = vld [vmem:[#allocation39_spill] sm:$0xff] }
 0x949   :  { %v23088_v11 = vmul.f32 %v22466_v49, %v23050_v54  ;;  %v23092_v9 = vmul.f32 %v22481_v31, %v23050_v54  ;;  %v23096_v45 = vmul.f32 %v22500_v61, %v23050_v54  ;;  %v23100_v52 = vmul.f32 %v22515_v58, %v23050_v54 }
 0x94a   :  { %v23104_v35 = vmul.f32 %v22529_v30, %v23050_v54  ;;  %v23108_v49 = vmul.f32 %v22543_v3, %v23050_v54  ;;  %v23112_v31 = vmul.f32 %v22556_v32, %v23050_v54  ;;  %v23116_v61 = vmul.f32 %v22569_v2, %v23050_v54 }
 0x94b   :  { %v23120_v58 = vmul.f32 %v22582_v57, %v23050_v54  ;;  %v23124_v30 = vmul.f32 %v22394_v14, %v23050_v54  ;;  %v23128_v3 = vmul.f32 %v22404_v63, %v23050_v54  ;;  %v23132_v32 = vmul.f32 %v22412_v23, %v23050_v54 }
 0x94c   :  { %v23136_v2 = vmul.f32 %v22422_v28, %v23050_v54  ;;  %v23140_v57 = vmul.f32 %v22430_v59, %v23050_v54  ;;  %v23144_v14 = vmul.f32 %v22440_v22, %v23050_v54  ;;  %v23148_v63 = vmul.f32 %v22448_v19, %v23050_v54 }
 0x94d   :  { %v23152_v23 = vmul.f32 %v22461_v47, %v23050_v54  ;;  %v23156_v28 = vmul.f32 %v24937_v43, %v23050_v54  ;;  %v23160_v59 = vmul.f32 %v24938_v29, %v23050_v54  ;;  %v23164_v22 = vmul.f32 %v24939_v40, %v23050_v54  ;;  %v24948_v29 = vld [vmem:[#allocation108_spill] sm:$0xff] }
 0x94e   :  { %v23168_v19 = vmul.f32 %v24940_v25, %v23050_v54  ;;  %v23172_v47 = vmul.f32 %v24942_v8, %v23050_v54  ;;  %v23176_v24 = vmul.f32 %v24944_v7, %v23050_v54  ;;  %v23180_v43 = vmul.f32 %v24946_v5, %v23050_v54 }
 0x94f   :  { %v23184_v40 = vmul.f32 %v24948_v29, %v23050_v54  ;;  %v23188_v25 = vmul.f32 %v24950_v4, %v23050_v54 }
 0x950   :  { %24941 = vst [vmem:[#allocation62_spill] sm:$0xff] %v23168_v19  ;;  %24943 = vst [vmem:[#allocation80_spill] sm:$0xff] %v23172_v47  ;;  %v24952_v19 = vld [vmem:[#allocation111_spill] sm:$0xff] }
 0x951   :  { %24945 = vst [vmem:[#allocation63_spill] sm:$0xff] %v23176_v24  ;;  %24947 = vst [vmem:[#allocation83_spill] sm:$0xff] %v23180_v43  ;;  %v23192_v8 = vmul.f32 %v24952_v19, %v23050_v54  ;;  %v24954_v47 = vld [vmem:[#allocation43_spill] sm:$0xff]  ;;  %v24956_v24 = vld [vmem:[#allocation110_spill] sm:$0xff] }
 0x952   :  { %24949 = vst [vmem:[#allocation64_spill] sm:$0xff] %v23184_v40  ;;  %24951 = vst [vmem:[#allocation82_spill] sm:$0xff] %v23188_v25  ;;  %v23196_v7 = vmul.f32 %v24954_v47, %v23050_v54  ;;  %v23200_v5 = vmul.f32 %v24956_v24, %v23050_v54  ;;  %v24958_v43 = vld [vmem:[#allocation45_spill] sm:$0xff]  ;;  %v24960_v40 = vld [vmem:[#allocation114_spill] sm:$0xff] }
 0x953   :  { %24953 = vst [vmem:[#allocation65_spill] sm:$0xff] %v23192_v8  ;;  %v23204_v29 = vmul.f32 %v24958_v43, %v23050_v54  ;;  %v23208_v4 = vmul.f32 %v24960_v40, %v23050_v54  ;;  %v24962_v25 = vld [vmem:[#allocation47_spill] sm:$0xff]  ;;  %v24964_v8 = vld [vmem:[#allocation113_spill] sm:$0xff] }
 0x954   :  { %24955 = vst [vmem:[#allocation66_spill] sm:$0xff] %v23196_v7  ;;  %24957 = vst [vmem:[#allocation67_spill] sm:$0xff] %v23200_v5  ;;  %v23212_v19 = vmul.f32 %v24962_v25, %v23050_v54  ;;  %v23216_v47 = vmul.f32 %v24964_v8, %v23050_v54  ;;  %v24966_v7 = vld [vmem:[#allocation49_spill] sm:$0xff]  ;;  %v24968_v5 = vld [vmem:[#allocation116_spill] sm:$0xff] }
 0x955   :  { %24959 = vst [vmem:[#allocation87_spill] sm:$0xff] %v23204_v29  ;;  %24961 = vst [vmem:[#allocation68_spill] sm:$0xff] %v23208_v4  ;;  %v23220_v24 = vmul.f32 %v24966_v7, %v23050_v54  ;;  %v23224_v43 = vmul.f32 %v24968_v5, %v23050_v54  ;;  %v24970_v29 = vld [vmem:[#allocation51_spill] sm:$0xff] }
 0x956   :  { %24963 = vst [vmem:[#allocation69_spill] sm:$0xff] %v23212_v19  ;;  %24965 = vst [vmem:[#allocation127_spill] sm:$0xff] %v23216_v47  ;;  %v23228_v40 = vmul.f32 %v24970_v29, %v23050_v54  ;;  %v24972_v4 = vld [vmem:[#allocation71_spill] sm:$0xff]  ;;  %v24974_v19 = vld [vmem:[#allocation53_spill] sm:$0xff] }
 0x957   :  { %24967 = vst [vmem:[#allocation126_spill] sm:$0xff] %v23220_v24  ;;  %24969 = vst [vmem:[#allocation72_spill] sm:$0xff] %v23224_v43  ;;  %v23232_v25 = vmul.f32 %v24972_v4, %v23050_v54  ;;  %v23236_v8 = vmul.f32 %v24974_v19, %v23050_v54  ;;  %v24976_v47 = vld [vmem:[#allocation70_spill] sm:$0xff]  ;;  %v24978_v24 = vld [vmem:[#allocation55_spill] sm:$0xff] }
 0x958   :  { %24971 = vst [vmem:[#allocation73_spill] sm:$0xff] %v23228_v40  ;;  %v23240_v7 = vmul.f32 %v24976_v47, %v23050_v54  ;;  %v23244_v5 = vmul.f32 %v24978_v24, %v23050_v54  ;;  %v24980_v43 = vld [vmem:[#allocation75_spill] sm:$0xff]  ;;  %v24982_v40 = vld [vmem:[#allocation56_spill] sm:$0xff] }
 0x959   :  { %24973 = vst [vmem:[#allocation91_spill] sm:$0xff] %v23232_v25  ;;  %24975 = vst [vmem:[#allocation129_spill] sm:$0xff] %v23236_v8  ;;  %v23248_v29 = vmul.f32 %v24980_v43, %v23050_v54  ;;  %v23252_v4 = vmul.f32 %v24982_v40, %v23050_v54  ;;  %v24983_v25 = vld [vmem:[#allocation74_spill] sm:$0xff]  ;;  %v24984_v8 = vld [vmem:[#allocation57_spill] sm:$0xff] }
 0x95a   :  { %24977 = vst [vmem:[#allocation90_spill] sm:$0xff] %v23240_v7  ;;  %24979 = vst [vmem:[#allocation119_spill] sm:$0xff] %v23244_v5  ;;  %v23256_v19 = vmul.f32 %v24983_v25, %v23050_v54  ;;  %v23260_v47 = vmul.f32 %v24984_v8, %v23050_v54  ;;  %v24985_v7 = vld [vmem:[#allocation77_spill] sm:$0xff]  ;;  %v24986_v5 = vld [vmem:[#allocation58_spill] sm:$0xff]  ;;  %v23276_v25 = vmul.f32 %v22753_v41, %v23050_v54 }
 0x95b   :  { %24981 = vst [vmem:[#allocation93_spill] sm:$0xff] %v23248_v29  ;;  %v23264_v24 = vmul.f32 %v24985_v7, %v23050_v54  ;;  %v23268_v43 = vmul.f32 %v24986_v5, %v23050_v54  ;;  %v24987_v29 = vld [vmem:[#allocation76_spill] sm:$0xff]  ;;  %v23280_v8 = vmul.f32 %v22762_v6, %v23050_v54  ;;  %v23284_v7 = vmul.f32 %v22771_v48, %v23050_v54 }
 0x95c   :  { %v23272_v40 = vmul.f32 %v24987_v29, %v23050_v54  ;;  %v23288_v5 = vmul.f32 %v22782_v38, %v23050_v54  ;;  %v23292_v29 = vmul.f32 %v22791_v53, %v23050_v54  ;;  %v23300_v6 = vmul.f32 %v22811_v44, %v23050_v54 }
 0x95d   :  { %v23304_v48 = vmul.f32 %v22821_v1, %v23050_v54  ;;  %v23308_v38 = vmul.f32 %v22831_v17, %v23050_v54  ;;  %v23320_v44 = vmul.f32 %v22872_v21, %v23050_v54  ;;  %v23324_v1 = vmul.f32 %v22887_v34, %v23050_v54 }
 0x95e   :  { %24988 = vst [vmem:[#allocation99_spill] sm:$0xff] %v23272_v40  ;;  %24989 = vst [vmem:[#allocation92_spill] sm:$0xff] %v23288_v5  ;;  %v24990_v40 = vld [vmem:[#allocation59_spill] sm:$0xff]  ;;  %v23328_v17 = vmul.f32 %v22900_v0, %v23050_v54  ;;  %v23340_v21 = vmul.f32 %v22937_v15, %v23050_v54  ;;  %v23344_v34 = vmul.f32 %v22948_v46, %v23050_v54 }
 0x95f   :  { %v23296_v41 = vmul.f32 %v24990_v40, %v23050_v54  ;;  %v24991_v5 = vld [vmem:[#allocation79_spill] sm:$0xff]  ;;  %v23316_v40 = vmul.f32 %v22858_v39, %v23050_v54  ;;  %v23348_v0 = vmul.f32 %v22959_v20, %v23050_v54  ;;  %v23360_v15 = vmul.f32 %v22992_v13, %v23050_v54 }
 0x960   :  { %v23312_v53 = vmul.f32 %v24991_v5, %v23050_v54  ;;  %v23332_v5 = vmul.f32 %v22913_v26, %v23050_v54  ;;  %24994 = vst [vmem:[#allocation133_spill] sm:$0xff] %v23344_v34  ;;  %v23352_v26 = vmul.f32 %v22970_v18, %v23050_v54  ;;  %v24997_v46 = vsub.f32 %v23045_v51, %v23047_v16  ;;  %v24998_v18 = vld [vmem:[#allocation61_spill] sm:$0xff] }
 0x961   :  { %v23370_v20 = vmul.f32 %v23003_v12, %v23050_v54  ;;  %v23382_v13 = vmul.f32 %v23032_v55, %v23050_v54 }
 0x962   :  { %24992 = vst [vmem:[#allocation120_spill] sm:$0xff] %v23312_v53  ;;  %v24993_v53 = vld [vmem:[#allocation60_spill] sm:$0xff]  ;;  %24995 = vst [vmem:[#allocation121_spill] sm:$0xff] %v23352_v26  ;;  %v23366_v34 = vrot.slane %v24997_v46, %v24930_v37  ;;  %v23374_v26 = vmul.f32 %v24998_v18, %v23050_v54  ;;  %v25006_v18 = vld [vmem:[#allocation63_spill] sm:$0xff] }
 0x963   :  { %v23336_v39 = vmul.f32 %v24993_v53, %v23050_v54  ;;  %v23356_v53 = vmul.f32 %v22981_v33, %v23050_v54  ;;  %v24999_v33 = vld [vmem:[#allocation81_spill] sm:$0xff]  ;;  %v25004_v46 = vld [vmem:[#allocation80_spill] sm:$0xff] }
 0x964   :  { %v23386_v51 = vadd.f32 %v23366_v34, %v23056_v62  ;;  %v23390_v12 = vadd.f32 %v23366_v34, %v23060_v50  ;;  %v23394_v16 = vadd.f32 %v23366_v34, %v23064_v60  ;;  %v23398_v37 = vadd.f32 %v23366_v34, %v23068_v36 }
 0x965   :  { %24996 = vst [vmem:[#allocation95_spill] sm:$0xff] %v23356_v53  ;;  %v23378_v53 = vmul.f32 %v24999_v33, %v23050_v54  ;;  %v23402_v55 = vadd.f32 %v23366_v34, %v23072_v56  ;;  %v23406_v54 = vadd.f32 %v23366_v34, %v23076_v27  ;;  %v23410_v62 = vadd.f32 %v23366_v34, %v23080_v10  ;;  %v25008_v33 = vld [vmem:[#allocation83_spill] sm:$0xff] }
 0x966   :  { %v23414_v50 = vadd.f32 %v23366_v34, %v23084_v42  ;;  %v23418_v60 = vadd.f32 %v23366_v34, %v23088_v11  ;;  %v23422_v36 = vadd.f32 %v23366_v34, %v23092_v9  ;;  %v23426_v56 = vadd.f32 %v23366_v34, %v23096_v45 }
 0x967   :  { %v23430_v27 = vadd.f32 %v23366_v34, %v23100_v52  ;;  %v23434_v10 = vadd.f32 %v23366_v34, %v23104_v35  ;;  %v23438_v42 = vadd.f32 %v23366_v34, %v23108_v49  ;;  %v23442_v11 = vadd.f32 %v23366_v34, %v23112_v31 }
 0x968   :  { %v23446_v9 = vadd.f32 %v23366_v34, %v23116_v61  ;;  %v23450_v45 = vadd.f32 %v23366_v34, %v23120_v58  ;;  %v23454_v52 = vadd.f32 %v23366_v34, %v23124_v30  ;;  %v23458_v35 = vadd.f32 %v23366_v34, %v23128_v3 }
 0x969   :  { %v23462_v49 = vadd.f32 %v23366_v34, %v23132_v32  ;;  %v23466_v31 = vadd.f32 %v23366_v34, %v23136_v2  ;;  %v23470_v61 = vadd.f32 %v23366_v34, %v23140_v57  ;;  %v23474_v58 = vadd.f32 %v23366_v34, %v23144_v14  ;;  %v25002_v14 = vld [vmem:[#allocation62_spill] sm:$0xff] }
 0x96a   :  { %v23478_v30 = vadd.f32 %v23366_v34, %v23148_v63  ;;  %v23482_v3 = vadd.f32 %v23366_v34, %v23152_v23  ;;  %v23486_v32 = vadd.f32 %v23366_v34, %v23156_v28  ;;  %v23490_v2 = vadd.f32 %v23366_v34, %v23160_v59 }
 0x96b   :  { %v23494_v57 = vadd.f32 %v23366_v34, %v23164_v22  ;;  %v23498_v63 = vadd.f32 %v23366_v34, %v25002_v14  ;;  %v23502_v23 = vadd.f32 %v23366_v34, %v25004_v46  ;;  %v23506_v28 = vadd.f32 %v23366_v34, %v25006_v18 }
 0x96c   :  { %25000 = vst [vmem:[#allocation134_spill] sm:$0xff] %v23490_v2  ;;  %v23510_v59 = vadd.f32 %v23366_v34, %v25008_v33  ;;  %v25010_v2 = vld [vmem:[#allocation64_spill] sm:$0xff] }
 0x96d   :  { %25001 = vst [vmem:[#allocation122_spill] sm:$0xff] %v23494_v57  ;;  %25003 = vst [vmem:[#allocation94_spill] sm:$0xff] %v23498_v63  ;;  %v23514_v22 = vadd.f32 %v23366_v34, %v25010_v2  ;;  %v25012_v57 = vld [vmem:[#allocation82_spill] sm:$0xff]  ;;  %v25014_v63 = vld [vmem:[#allocation65_spill] sm:$0xff] }
 0x96e   :  { %25005 = vst [vmem:[#allocation78_spill] sm:$0xff] %v23502_v23  ;;  %25007 = vst [vmem:[#allocation123_spill] sm:$0xff] %v23506_v28  ;;  %v23518_v14 = vadd.f32 %v23366_v34, %v25012_v57  ;;  %v23522_v46 = vadd.f32 %v23366_v34, %v25014_v63  ;;  %v25016_v23 = vld [vmem:[#allocation66_spill] sm:$0xff]  ;;  %v25018_v28 = vld [vmem:[#allocation67_spill] sm:$0xff] }
 0x96f   :  { %25009 = vst [vmem:[#allocation97_spill] sm:$0xff] %v23510_v59  ;;  %25011 = vst [vmem:[#allocation125_spill] sm:$0xff] %v23514_v22  ;;  %v23526_v18 = vadd.f32 %v23366_v34, %v25016_v23  ;;  %v23530_v33 = vadd.f32 %v23366_v34, %v25018_v28  ;;  %v25020_v59 = vld [vmem:[#allocation87_spill] sm:$0xff]  ;;  %v25022_v22 = vld [vmem:[#allocation68_spill] sm:$0xff] }
 0x970   :  { %25013 = vst [vmem:[#allocation98_spill] sm:$0xff] %v23518_v14  ;;  %25015 = vst [vmem:[#allocation128_spill] sm:$0xff] %v23522_v46  ;;  %v23534_v2 = vadd.f32 %v23366_v34, %v25020_v59  ;;  %v23538_v57 = vadd.f32 %v23366_v34, %v25022_v22  ;;  %v25024_v14 = vld [vmem:[#allocation69_spill] sm:$0xff]  ;;  %v25026_v46 = vld [vmem:[#allocation127_spill] sm:$0xff] }
 0x971   :  { %25017 = vst [vmem:[#allocation131_spill] sm:$0xff] %v23526_v18  ;;  %25019 = vst [vmem:[#allocation132_spill] sm:$0xff] %v23530_v33  ;;  %v23542_v63 = vadd.f32 %v23366_v34, %v25024_v14  ;;  %v23546_v23 = vadd.f32 %v23366_v34, %v25026_v46  ;;  %v25028_v18 = vld [vmem:[#allocation126_spill] sm:$0xff]  ;;  %v25030_v33 = vld [vmem:[#allocation72_spill] sm:$0xff] }
 0x972   :  { %25021 = vst [vmem:[#allocation112_spill] sm:$0xff] %v23534_v2  ;;  %25023 = vst [vmem:[#allocation115_spill] sm:$0xff] %v23538_v57  ;;  %v23550_v28 = vadd.f32 %v23366_v34, %v25028_v18  ;;  %v23554_v59 = vadd.f32 %v23366_v34, %v25030_v33  ;;  %v25032_v2 = vld [vmem:[#allocation73_spill] sm:$0xff]  ;;  %v25033_v57 = vld [vmem:[#allocation91_spill] sm:$0xff] }
 0x973   :  { %25025 = vst [vmem:[#allocation117_spill] sm:$0xff] %v23542_v63  ;;  %25027 = vst [vmem:[#allocation118_spill] sm:$0xff] %v23546_v23  ;;  %v23558_v22 = vadd.f32 %v23366_v34, %v25032_v2  ;;  %v23562_v14 = vadd.f32 %v23366_v34, %v25033_v57  ;;  %v25034_v63 = vld [vmem:[#allocation129_spill] sm:$0xff]  ;;  %v25035_v23 = vld [vmem:[#allocation90_spill] sm:$0xff]  ;;  %v23582_v57 = vadd.f32 %v23366_v34, %v23252_v4 }
 0x974   :  { %25029 = vst [vmem:[#allocation85_spill] sm:$0xff] %v23550_v28  ;;  %25031 = vst [vmem:[#allocation84_spill] sm:$0xff] %v23554_v59  ;;  %v23566_v46 = vadd.f32 %v23366_v34, %v25034_v63  ;;  %v23570_v18 = vadd.f32 %v23366_v34, %v25035_v23  ;;  %v25036_v28 = vld [vmem:[#allocation119_spill] sm:$0xff]  ;;  %v25037_v59 = vld [vmem:[#allocation93_spill] sm:$0xff]  ;;  %v23586_v63 = vadd.f32 %v23366_v34, %v23256_v19 }
 0x975   :  { %v23574_v33 = vadd.f32 %v23366_v34, %v25036_v28  ;;  %v23578_v2 = vadd.f32 %v23366_v34, %v25037_v59  ;;  %v23590_v23 = vadd.f32 %v23366_v34, %v23260_v47  ;;  %v23594_v28 = vadd.f32 %v23366_v34, %v23264_v24 }
 0x976   :  { %v23598_v59 = vadd.f32 %v23366_v34, %v23268_v43  ;;  %v23606_v19 = vadd.f32 %v23366_v34, %v23276_v25  ;;  %v23610_v47 = vadd.f32 %v23366_v34, %v23280_v8  ;;  %v23614_v24 = vadd.f32 %v23366_v34, %v23284_v7 }
 0x977   :  { %25038 = vst [vmem:[#allocation86_spill] sm:$0xff] %v23578_v2  ;;  %25039 = vst [vmem:[#allocation89_spill] sm:$0xff] %v23594_v28  ;;  %v25040_v2 = vld [vmem:[#allocation99_spill] sm:$0xff]  ;;  %v25041_v28 = vld [vmem:[#allocation92_spill] sm:$0xff]  ;;  %v23626_v25 = vadd.f32 %v23366_v34, %v23296_v41  ;;  %v23630_v8 = vadd.f32 %v23366_v34, %v23300_v6  ;;  %v23634_v7 = vadd.f32 %v23366_v34, %v23304_v48 }
 0x978   :  { %v23602_v4 = vadd.f32 %v23366_v34, %v25040_v2  ;;  %v23618_v43 = vadd.f32 %v23366_v34, %v25041_v28  ;;  %v23622_v2 = vadd.f32 %v23366_v34, %v23292_v29  ;;  %v23638_v28 = vadd.f32 %v23366_v34, %v23308_v38 }
 0x979   :  { %v23646_v41 = vadd.f32 %v23366_v34, %v23316_v40  ;;  %v23650_v6 = vadd.f32 %v23366_v34, %v23320_v44  ;;  %v23654_v48 = vadd.f32 %v23366_v34, %v23324_v1  ;;  %v23658_v38 = vadd.f32 %v23366_v34, %v23328_v17 }
 0x97a   :  { %25042 = vst [vmem:[#allocation88_spill] sm:$0xff] %v23618_v43  ;;  %v25043_v43 = vld [vmem:[#allocation120_spill] sm:$0xff]  ;;  %v23666_v40 = vadd.f32 %v23366_v34, %v23336_v39  ;;  %v23670_v44 = vadd.f32 %v23366_v34, %v23340_v21  ;;  %v23678_v17 = vadd.f32 %v23366_v34, %v23348_v0  ;;  %v23690_v21 = vadd.f32 %v23366_v34, %v23360_v15 }
 0x97b   :  { %v23642_v29 = vadd.f32 %v23366_v34, %v25043_v43  ;;  %25044 = vst [vmem:[#allocation96_spill] sm:$0xff] %v23650_v6  ;;  %25045 = vst [vmem:[#allocation130_spill] sm:$0xff] %v23658_v38  ;;  %v23662_v43 = vadd.f32 %v23366_v34, %v23332_v5  ;;  %v25047_v6 = vld [vmem:[#allocation133_spill] sm:$0xff]  ;;  %v23698_v0 = vadd.f32 %v23366_v34, %v23374_v26  ;;  %v10998_v15 = vmax.f32 %v23390_v12, 0.0 }
 0x97c   :  { %v23674_v1 = vadd.f32 %v23366_v34, %v25047_v6  ;;  %v25048_v38 = vld [vmem:[#allocation121_spill] sm:$0xff]  ;;  %25051 = vst [vmem:[#allocation22_spill] sm:$0xff] %v23690_v21  ;;  %v23694_v6 = vadd.f32 %v23366_v34, %v23370_v20  ;;  %v10999_v21 = vmax.f32 %v23394_v16, 0.0  ;;  %v11000_v20 = vmax.f32 %v23398_v37, 0.0 }
 0x97d   :  { %25046 = vst [vmem:[#allocation19_spill] sm:$0xff] %v23662_v43  ;;  %v23682_v5 = vadd.f32 %v23366_v34, %v25048_v38  ;;  %v25049_v43 = vld [vmem:[#allocation95_spill] sm:$0xff]  ;;  %25053 = vst [vmem:[#allocation26_spill] sm:$0xff] %v23698_v0  ;;  %v23702_v38 = vadd.f32 %v23366_v34, %v23378_v53  ;;  %v11002_v26 = vmax.f32 %v23406_v54, 0.0  ;;  %v11003_v0 = vmax.f32 %v23410_v62, 0.0 }
 0x97e   :  { %v23686_v39 = vadd.f32 %v23366_v34, %v25049_v43  ;;  %25052 = vst [vmem:[#allocation24_spill] sm:$0xff] %v23694_v6  ;;  %v23706_v43 = vadd.f32 %v23366_v34, %v23382_v13  ;;  %v11001_v6 = vmax.f32 %v23402_v55, 0.0  ;;  %v11004_v53 = vmax.f32 %v23414_v50, 0.0  ;;  %11079 = vst.msk [vmem:[%s24122_s9 + $0x8] sm:$0xff] %vm629_vm0, %v10998_v15  ;;  %v25063_v15 = vld [vmem:[#allocation128_spill] sm:$0xff] }
 0x97f   :  { %25054 = vst [vmem:[#allocation28_spill] sm:$0xff] %v23702_v38  ;;  %v11005_v38 = vmax.f32 %v23418_v60, 0.0  ;;  %v11006_v34 = vmax.f32 %v23422_v36, 0.0  ;;  %v11007_v13 = vmax.f32 %v23426_v56, 0.0  ;;  %11080 = vst.msk [vmem:[%s24122_s9 + $0x10] sm:$0xff] %vm629_vm0, %v10999_v21  ;;  %v11009_v12 = vmax.f32 %v23434_v10, 0.0 }
 0x980   :  { %25050 = vst [vmem:[#allocation20_spill] sm:$0xff] %v23686_v39  ;;  %v10997_v39 = vmax.f32 %v23386_v51, 0.0  ;;  %v11008_v51 = vmax.f32 %v23430_v27, 0.0  ;;  %v11010_v16 = vmax.f32 %v23438_v42, 0.0  ;;  %v11011_v37 = vmax.f32 %v23442_v11, 0.0  ;;  %11081 = vst.msk [vmem:[%s24122_s9 + $0x18] sm:$0xff] %vm629_vm0, %v11000_v20 }
 0x981   :  { %11082 = vst.msk [vmem:[%s24122_s9 + $0x20] sm:$0xff] %vm629_vm0, %v11001_v6  ;;  %11083 = vst.msk [vmem:[%s24122_s9 + $0x28] sm:$0xff] %vm629_vm0, %v11002_v26  ;;  %v11012_v55 = vmax.f32 %v23446_v9, 0.0  ;;  %v11013_v54 = vmax.f32 %v23450_v45, 0.0  ;;  %v11014_v62 = vmax.f32 %v23454_v52, 0.0  ;;  %v11015_v50 = vmax.f32 %v23458_v35, 0.0 }
 0x982   :  { %11078 = vst.msk [vmem:[%s24122_s9] sm:$0xff] %vm629_vm0, %v10997_v39  ;;  %11084 = vst.msk [vmem:[%s24122_s9 + $0x30] sm:$0xff] %vm629_vm0, %v11003_v0  ;;  %v11016_v60 = vmax.f32 %v23462_v49, 0.0  ;;  %v11017_v36 = vmax.f32 %v23466_v31, 0.0  ;;  %v11018_v56 = vmax.f32 %v23470_v61, 0.0  ;;  %v11019_v27 = vmax.f32 %v23474_v58, 0.0 }
 0x983   :  { %11085 = vst.msk [vmem:[%s24122_s9 + $0x38] sm:$0xff] %vm629_vm0, %v11004_v53  ;;  %11086 = vst.msk [vmem:[%s24122_s9 + $0x40] sm:$0xff] %vm629_vm0, %v11005_v38  ;;  %v11020_v10 = vmax.f32 %v23478_v30, 0.0  ;;  %v11021_v42 = vmax.f32 %v23482_v3, 0.0  ;;  %v11022_v11 = vmax.f32 %v23486_v32, 0.0  ;;  %v25055_v9 = vld [vmem:[#allocation134_spill] sm:$0xff] }
 0x984   :  { %11087 = vst.msk [vmem:[%s24122_s9 + $0x48] sm:$0xff] %vm629_vm0, %v11006_v34  ;;  %11088 = vst.msk [vmem:[%s24122_s9 + $0x50] sm:$0xff] %vm629_vm0, %v11007_v13  ;;  %v11023_v45 = vmax.f32 %v25055_v9, 0.0  ;;  %v25056_v52 = vld [vmem:[#allocation122_spill] sm:$0xff]  ;;  %v25059_v30 = vld [vmem:[#allocation123_spill] sm:$0xff]  ;;  %v11031_v20 = vmax.f32 %v25063_v15, 0.0 }
 0x985   :  { %11089 = vst.msk [vmem:[%s24122_s9 + $0x58] sm:$0xff] %vm629_vm0, %v11008_v51  ;;  %11090 = vst.msk [vmem:[%s24122_s9 + $0x60] sm:$0xff] %vm629_vm0, %v11009_v12  ;;  %v11024_v35 = vmax.f32 %v25056_v52, 0.0  ;;  %v25057_v49 = vld [vmem:[#allocation94_spill] sm:$0xff]  ;;  %v11027_v3 = vmax.f32 %v25059_v30, 0.0  ;;  %v25060_v32 = vld [vmem:[#allocation97_spill] sm:$0xff] }
 0x986   :  { %11091 = vst.msk [vmem:[%s24122_s9 + $0x68] sm:$0xff] %vm629_vm0, %v11010_v16  ;;  %11092 = vst.msk [vmem:[%s24122_s9 + $0x70] sm:$0xff] %vm629_vm0, %v11011_v37  ;;  %v11025_v31 = vmax.f32 %v25057_v49, 0.0  ;;  %v25058_v61 = vld [vmem:[#allocation78_spill] sm:$0xff]  ;;  %v11028_v39 = vmax.f32 %v25060_v32, 0.0  ;;  %v25061_v21 = vld [vmem:[#allocation125_spill] sm:$0xff] }
 0x987   :  { %11093 = vst.msk [vmem:[%s24122_s9 + $0x78] sm:$0xff] %vm629_vm0, %v11012_v55  ;;  %11094 = vst.msk [vmem:[%s24122_s9 + $0x80] sm:$0xff] %vm629_vm0, %v11013_v54  ;;  %v11026_v58 = vmax.f32 %v25058_v61, 0.0  ;;  %v11029_v6 = vmax.f32 %v25061_v21, 0.0  ;;  %v25062_v0 = vld [vmem:[#allocation98_spill] sm:$0xff]  ;;  %v25064_v26 = vld [vmem:[#allocation131_spill] sm:$0xff] }
 0x988   :  { %11095 = vst.msk [vmem:[%s24122_s9 + $0x88] sm:$0xff] %vm629_vm0, %v11014_v62  ;;  %11096 = vst.msk [vmem:[%s24122_s9 + $0x90] sm:$0xff] %vm629_vm0, %v11015_v50  ;;  %v11030_v38 = vmax.f32 %v25062_v0, 0.0  ;;  %v11032_v53 = vmax.f32 %v25064_v26, 0.0  ;;  %v25065_v34 = vld [vmem:[#allocation132_spill] sm:$0xff]  ;;  %v25067_v16 = vld [vmem:[#allocation115_spill] sm:$0xff] }
 0x989   :  { %11097 = vst.msk [vmem:[%s24122_s9 + $0x98] sm:$0xff] %vm629_vm0, %v11016_v60  ;;  %11098 = vst.msk [vmem:[%s24122_s9 + $0xa0] sm:$0xff] %vm629_vm0, %v11017_v36  ;;  %v11033_v13 = vmax.f32 %v25065_v34, 0.0  ;;  %v25066_v51 = vld [vmem:[#allocation112_spill] sm:$0xff]  ;;  %v11035_v37 = vmax.f32 %v25067_v16, 0.0  ;;  %v25068_v55 = vld [vmem:[#allocation117_spill] sm:$0xff] }
 0x98a   :  { %11099 = vst.msk [vmem:[%s24122_s9 + $0xa8] sm:$0xff] %vm629_vm0, %v11018_v56  ;;  %11100 = vst.msk [vmem:[%s24122_s9 + $0xb0] sm:$0xff] %vm629_vm0, %v11019_v27  ;;  %v11034_v12 = vmax.f32 %v25066_v51, 0.0  ;;  %v11036_v54 = vmax.f32 %v25068_v55, 0.0  ;;  %v25069_v62 = vld [vmem:[#allocation118_spill] sm:$0xff]  ;;  %v25070_v60 = vld [vmem:[#allocation85_spill] sm:$0xff] }
 0x98b   :  { %11101 = vst.msk [vmem:[%s24122_s9 + $0xb8] sm:$0xff] %vm629_vm0, %v11020_v10  ;;  %11102 = vst.msk [vmem:[%s24122_s9 + $0xc0] sm:$0xff] %vm629_vm0, %v11021_v42  ;;  %v11037_v50 = vmax.f32 %v25069_v62, 0.0  ;;  %v11038_v36 = vmax.f32 %v25070_v60, 0.0  ;;  %v25071_v56 = vld [vmem:[#allocation84_spill] sm:$0xff]  ;;  %v11040_v10 = vmax.f32 %v23558_v22, 0.0 }
 0x98c   :  { %11103 = vst.msk [vmem:[%s24122_s9 + $0xc8] sm:$0xff] %vm629_vm0, %v11022_v11  ;;  %11104 = vst.msk [vmem:[%s24122_s9 + $0xd0] sm:$0xff] %vm629_vm0, %v11023_v45  ;;  %v11039_v27 = vmax.f32 %v25071_v56, 0.0  ;;  %v11041_v42 = vmax.f32 %v23562_v14, 0.0  ;;  %v11042_v11 = vmax.f32 %v23566_v46, 0.0  ;;  %v11043_v9 = vmax.f32 %v23570_v18, 0.0 }
 0x98d   :  { %11105 = vst.msk [vmem:[%s24122_s9 + $0xd8] sm:$0xff] %vm629_vm0, %v11024_v35  ;;  %11106 = vst.msk [vmem:[%s24122_s9 + $0xe0] sm:$0xff] %vm629_vm0, %v11025_v31  ;;  %v11044_v22 = vmax.f32 %v23574_v33, 0.0  ;;  %v25072_v14 = vld [vmem:[#allocation86_spill] sm:$0xff]  ;;  %v11046_v18 = vmax.f32 %v23582_v57, 0.0  ;;  %v11047_v45 = vmax.f32 %v23586_v63, 0.0 }
 0x98e   :  { %11107 = vst.msk [vmem:[%s24122_s9 + $0xe8] sm:$0xff] %vm629_vm0, %v11026_v58  ;;  %11108 = vst.msk [vmem:[%s24122_s9 + $0xf0] sm:$0xff] %vm629_vm0, %v11027_v3  ;;  %v11045_v46 = vmax.f32 %v25072_v14, 0.0  ;;  %v11048_v33 = vmax.f32 %v23590_v23, 0.0  ;;  %v25073_v57 = vld [vmem:[#allocation89_spill] sm:$0xff]  ;;  %v11050_v52 = vmax.f32 %v23598_v59, 0.0 }
 0x98f   :  { %11109 = vst.msk [vmem:[%s24122_s9 + $0xf8] sm:$0xff] %vm629_vm0, %v11028_v39  ;;  %11110 = vst.msk [vmem:[%s24122_s9 + $0x100] sm:$0xff] %vm629_vm0, %v11029_v6  ;;  %v11049_v63 = vmax.f32 %v25073_v57, 0.0  ;;  %v11051_v35 = vmax.f32 %v23602_v4, 0.0  ;;  %v11052_v23 = vmax.f32 %v23606_v19, 0.0  ;;  %v11053_v59 = vmax.f32 %v23610_v47, 0.0 }
 0x990   :  { %11111 = vst.msk [vmem:[%s24122_s9 + $0x108] sm:$0xff] %vm629_vm0, %v11030_v38  ;;  %11112 = vst.msk [vmem:[%s24122_s9 + $0x110] sm:$0xff] %vm629_vm0, %v11031_v20  ;;  %v11054_v4 = vmax.f32 %v23614_v24, 0.0  ;;  %v25074_v49 = vld [vmem:[#allocation88_spill] sm:$0xff]  ;;  %v11056_v19 = vmax.f32 %v23622_v2, 0.0  ;;  %v11057_v47 = vmax.f32 %v23626_v25, 0.0 }
 0x991   :  { %11113 = vst.msk [vmem:[%s24122_s9 + $0x118] sm:$0xff] %vm629_vm0, %v11032_v53  ;;  %11114 = vst.msk [vmem:[%s24122_s9 + $0x120] sm:$0xff] %vm629_vm0, %v11033_v13  ;;  %v11055_v31 = vmax.f32 %v25074_v49, 0.0  ;;  %v11058_v24 = vmax.f32 %v23630_v8, 0.0  ;;  %v11059_v61 = vmax.f32 %v23634_v7, 0.0  ;;  %v11060_v2 = vmax.f32 %v23638_v28, 0.0 }
 0x992   :  { %11115 = vst.msk [vmem:[%s24122_s9 + $0x128] sm:$0xff] %vm629_vm0, %v11034_v12  ;;  %11116 = vst.msk [vmem:[%s24122_s9 + $0x130] sm:$0xff] %vm629_vm0, %v11035_v37  ;;  %v11061_v25 = vmax.f32 %v23642_v29, 0.0  ;;  %v11062_v8 = vmax.f32 %v23646_v41, 0.0  ;;  %v25075_v7 = vld [vmem:[#allocation96_spill] sm:$0xff]  ;;  %v11064_v28 = vmax.f32 %v23654_v48, 0.0 }
 0x993   :  { %11117 = vst.msk [vmem:[%s24122_s9 + $0x138] sm:$0xff] %vm629_vm0, %v11036_v54  ;;  %11118 = vst.msk [vmem:[%s24122_s9 + $0x140] sm:$0xff] %vm629_vm0, %v11037_v50  ;;  %v11063_v58 = vmax.f32 %v25075_v7, 0.0  ;;  %v25076_v29 = vld [vmem:[#allocation130_spill] sm:$0xff]  ;;  %v25077_v30 = vld [vmem:[#allocation19_spill] sm:$0xff]  ;;  %v11067_v32 = vmax.f32 %v23666_v40, 0.0 }
 0x994   :  { %11119 = vst.msk [vmem:[%s24122_s9 + $0x148] sm:$0xff] %vm629_vm0, %v11038_v36  ;;  %11120 = vst.msk [vmem:[%s24122_s9 + $0x150] sm:$0xff] %vm629_vm0, %v11039_v27  ;;  %v11065_v41 = vmax.f32 %v25076_v29, 0.0  ;;  %v11066_v3 = vmax.f32 %v25077_v30, 0.0  ;;  %v11068_v48 = vmax.f32 %v23670_v44, 0.0  ;;  %v11069_v40 = vmax.f32 %v23674_v1, 0.0 }
 0x995   :  { %11121 = vst.msk [vmem:[%s24122_s9 + $0x158] sm:$0xff] %vm629_vm0, %v11040_v10  ;;  %11122 = vst.msk [vmem:[%s24122_s9 + $0x160] sm:$0xff] %vm629_vm0, %v11041_v42  ;;  %v11070_v39 = vmax.f32 %v23678_v17, 0.0  ;;  %v11071_v21 = vmax.f32 %v23682_v5, 0.0  ;;  %v25078_v44 = vld [vmem:[#allocation20_spill] sm:$0xff]  ;;  %v25079_v17 = vld [vmem:[#allocation22_spill] sm:$0xff] }
 0x996   :  { %11123 = vst.msk [vmem:[%s24122_s9 + $0x168] sm:$0xff] %vm629_vm0, %v11042_v11  ;;  %11124 = vst.msk [vmem:[%s24122_s9 + $0x170] sm:$0xff] %vm629_vm0, %v11043_v9  ;;  %v11072_v1 = vmax.f32 %v25078_v44, 0.0  ;;  %v11073_v5 = vmax.f32 %v25079_v17, 0.0  ;;  %v25080_v6 = vld [vmem:[#allocation24_spill] sm:$0xff]  ;;  %v25081_v38 = vld [vmem:[#allocation26_spill] sm:$0xff] }
 0x997   :  { %11125 = vst.msk [vmem:[%s24122_s9 + $0x178] sm:$0xff] %vm629_vm0, %v11044_v22  ;;  %11126 = vst.msk [vmem:[%s24122_s9 + $0x180] sm:$0xff] %vm629_vm0, %v11045_v46  ;;  %v11074_v0 = vmax.f32 %v25080_v6, 0.0  ;;  %v11075_v15 = vmax.f32 %v25081_v38, 0.0  ;;  %v25082_v20 = vld [vmem:[#allocation28_spill] sm:$0xff]  ;;  %v11077_v53 = vmax.f32 %v23706_v43, 0.0 }
 0x998   :  { %11127 = vst.msk [vmem:[%s24122_s9 + $0x188] sm:$0xff] %vm629_vm0, %v11046_v18  ;;  %11128 = vst.msk [vmem:[%s24122_s9 + $0x190] sm:$0xff] %vm629_vm0, %v11047_v45  ;;  %v11076_v26 = vmax.f32 %v25082_v20, 0.0 }
 0x999   :  { %11129 = vst.msk [vmem:[%s24122_s9 + $0x198] sm:$0xff] %vm629_vm0, %v11048_v33  ;;  %11130 = vst.msk [vmem:[%s24122_s9 + $0x1a0] sm:$0xff] %vm629_vm0, %v11049_v63 }
 0x99a   :  { %11131 = vst.msk [vmem:[%s24122_s9 + $0x1a8] sm:$0xff] %vm629_vm0, %v11050_v52  ;;  %11132 = vst.msk [vmem:[%s24122_s9 + $0x1b0] sm:$0xff] %vm629_vm0, %v11051_v35 }
 0x99b   :  { %11133 = vst.msk [vmem:[%s24122_s9 + $0x1b8] sm:$0xff] %vm629_vm0, %v11052_v23  ;;  %11134 = vst.msk [vmem:[%s24122_s9 + $0x1c0] sm:$0xff] %vm629_vm0, %v11053_v59 }
 0x99c   :  { %11135 = vst.msk [vmem:[%s24122_s9 + $0x1c8] sm:$0xff] %vm629_vm0, %v11054_v4  ;;  %11136 = vst.msk [vmem:[%s24122_s9 + $0x1d0] sm:$0xff] %vm629_vm0, %v11055_v31 }
 0x99d   :  { %11137 = vst.msk [vmem:[%s24122_s9 + $0x1d8] sm:$0xff] %vm629_vm0, %v11056_v19  ;;  %11138 = vst.msk [vmem:[%s24122_s9 + $0x1e0] sm:$0xff] %vm629_vm0, %v11057_v47 }
 0x99e   :  { %11139 = vst.msk [vmem:[%s24122_s9 + $0x1e8] sm:$0xff] %vm629_vm0, %v11058_v24  ;;  %11140 = vst.msk [vmem:[%s24122_s9 + $0x1f0] sm:$0xff] %vm629_vm0, %v11059_v61 }
 0x99f   :  { %11141 = vst.msk [vmem:[%s24122_s9 + $0x1f8] sm:$0xff] %vm629_vm0, %v11060_v2  ;;  %11142 = vst.msk [vmem:[%s24122_s9 + $0x200] sm:$0xff] %vm629_vm0, %v11061_v25 }
 0x9a0   :  { %11143 = vst.msk [vmem:[%s24122_s9 + $0x208] sm:$0xff] %vm629_vm0, %v11062_v8  ;;  %11144 = vst.msk [vmem:[%s24122_s9 + $0x210] sm:$0xff] %vm629_vm0, %v11063_v58 }
 0x9a1   :  { %11145 = vst.msk [vmem:[%s24122_s9 + $0x218] sm:$0xff] %vm629_vm0, %v11064_v28  ;;  %11146 = vst.msk [vmem:[%s24122_s9 + $0x220] sm:$0xff] %vm629_vm0, %v11065_v41 }
 0x9a2   :  { %11147 = vst.msk [vmem:[%s24122_s9 + $0x228] sm:$0xff] %vm629_vm0, %v11066_v3  ;;  %11148 = vst.msk [vmem:[%s24122_s9 + $0x230] sm:$0xff] %vm629_vm0, %v11067_v32 }
 0x9a3   :  { %11149 = vst.msk [vmem:[%s24122_s9 + $0x238] sm:$0xff] %vm629_vm0, %v11068_v48  ;;  %11150 = vst.msk [vmem:[%s24122_s9 + $0x240] sm:$0xff] %vm629_vm0, %v11069_v40 }
 0x9a4   :  { %11151 = vst.msk [vmem:[%s24122_s9 + $0x248] sm:$0xff] %vm629_vm0, %v11070_v39  ;;  %11152 = vst.msk [vmem:[%s24122_s9 + $0x250] sm:$0xff] %vm629_vm0, %v11071_v21 }
 0x9a5   :  { %11153 = vst.msk [vmem:[%s24122_s9 + $0x258] sm:$0xff] %vm629_vm0, %v11072_v1  ;;  %11154 = vst.msk [vmem:[%s24122_s9 + $0x260] sm:$0xff] %vm629_vm0, %v11073_v5 }
 0x9a6   :  { %11155 = vst.msk [vmem:[%s24122_s9 + $0x268] sm:$0xff] %vm629_vm0, %v11074_v0  ;;  %11156 = vst.msk [vmem:[%s24122_s9 + $0x270] sm:$0xff] %vm629_vm0, %v11075_v15 }
 0x9a7   :  { %11157 = vst.msk [vmem:[%s24122_s9 + $0x278] sm:$0xff] %vm629_vm0, %v11076_v26  ;;  %11158 = vst.msk [vmem:[%s24122_s9 + $0x280] sm:$0xff] %vm629_vm0, %v11077_v53 }

</bundles_post_ra>
